<compile_context>
chip_gen: v5e
topology: v5e:2x2
jax: 0.10.0
libtpu: 0.0.40
codegen_flags: <defaults>
</compile_context>

<pallas_src>
import jax
import jax.numpy as jnp
from jax.experimental import pallas as pl
from jax.experimental.pallas import tpu as pltpu


def _ceil_to(x, m):
    return ((x + m - 1) // m) * m


def _make_dknm_kernel(T, D, double, unroll):
    """Build the fused-sequence kernel specialized for (T, D, score_mode)."""
    G = 3 * D                                  # gate-padded GRU width
    NT = (((1,), (1,)), ((), ()))              # contract last dims: (1,D)x(Tpad,D)->(1,Tpad)

    def kernel(topic_ref,   # (Tpad, C)  multi-hot topics (rows >= T are zero)
               score_ref,   # (Tpad, 1)  per-step responses
               wemb_ref,    # (C, D)     embedding weight (in, out), lanes >= H zero
               misc_ref,    # (4, D)     [b_emb ; w_score_v ; w_score_h ; [b_score,0..]]
               giw_ref,     # (2D, G) or (D, G)  input-side GRU weights, gate-padded
               whh_ref,     # (D, G)     hidden-side GRU weights, gate-padded
               grur_ref,    # (3, G)     [w_i_s ; b_ih ; b_hh], gate-padded
               h0_ref,      # (1, D)     initial hidden state (lanes >= H zero)
               scores_ref,  # out (1, Tpad) per-step scores, lane dense
               hout_ref,    # out (1, D)    final hidden state (padded)
               gi_scr,      # scratch (Tpad, G) precomputed input-side gate terms
               hh_scr):     # scratch (Tpad, D) h_{t-1} history for the score head
        # Loop-invariant small rows (a few vregs each).
        b_emb = misc_ref[0:1, :]
        w_s_v = misc_ref[1:2, :]
        w_s_h = misc_ref[2:3, :]
        b_s = misc_ref[3:4, 0:1]
        w_i_s = grur_ref[0:1, :]
        b_ih = grur_ref[1:2, :]
        b_hh = grur_ref[2:3, :]

        # ---- h-independent precompute, batched over Tpad rows (fills MXU sublanes) ----
        v_all = jnp.dot(topic_ref[...], wemb_ref[...],
                        preferred_element_type=jnp.float32) + b_emb          # (Tpad, D)
        s_col = score_ref[...]                                               # (Tpad, 1)
        if double:
            m_ge = (s_col >= 0.5).astype(jnp.float32)
            gi = (jnp.dot(v_all * m_ge, giw_ref[0:D, :],
                          preferred_element_type=jnp.float32)
                  + jnp.dot(v_all * (1.0 - m_ge), giw_ref[D:2 * D, :],
                            preferred_element_type=jnp.float32))
        else:  # 'concat': x = [v, s] -> single un-masked dot
            gi = jnp.dot(v_all, giw_ref[...], preferred_element_type=jnp.float32)
        gi_scr[...] = gi + s_col * w_i_s + b_ih                              # (Tpad, G)
        hh_scr[...] = jnp.zeros_like(hh_scr)

        # ---- serial recurrence: only the h-dependent matvec + gate math remain ----
        def step(t, h):
            hh_scr[pl.ds(t, 1), :] = h                       # h BEFORE update (score head)
            gi_t = gi_scr[pl.ds(t, 1), :]                    # (1, G) precomputed row
            gh = jnp.dot(h, whh_ref[...],
                         preferred_element_type=jnp.float32) + b_hh          # (1, G)
            r = jax.nn.sigmoid(gi_t[:, 0:D] + gh[:, 0:D])        # vreg-aligned gate slices
            z = jax.nn.sigmoid(gi_t[:, D:2 * D] + gh[:, D:2 * D])
            n = jnp.tanh(gi_t[:, 2 * D:3 * D] + r * gh[:, 2 * D:3 * D])
            return (1.0 - z) * n + z * h                     # padded lanes stay exactly 0

        h_final = jax.lax.fori_loop(0, T, step, h0_ref[...], unroll=unroll)

        # ---- post-loop vectorized score head: score_t = v_t.w_sv + h_{t-1}.w_sh + b ----
        sc = jax.lax.dot_general(w_s_v, v_all, NT, preferred_element_type=jnp.float32)
        sc = sc + jax.lax.dot_general(w_s_h, hh_scr[...], NT,
                                      preferred_element_type=jnp.float32)
        scores_ref[...] = sc + b_s                            # single lane-dense store
        hout_ref[...] = h_final

    return kernel


class DKNMPallas:
    """Pallas port of DKNM (topic Linear embedding + GRU SeqModel + score head)."""

    def __init__(self, tcnt, topic_size, seq_hidden_size, score_mode="double",
                 key=jax.random.PRNGKey(0)):
        # SeqModel.default_hidden() only works when topic_size == seq_hidden_size
        # (as in the module defaults 50/50), because of the swapped attributes upstream.
        assert topic_size == seq_hidden_size
        assert score_mode in ("double", "concat")
        self.tcnt = tcnt
        self.topic_size = topic_size
        self.seq_hidden_size = seq_hidden_size
        self.score_mode = score_mode
        self.num_layers = 1

        C, H = tcnt, seq_hidden_size
        D = _ceil_to(H, 128)                    # lane-aligned feature / gate-block width
        self.D = D
        d_in = (2 * H + 1) if score_mode == "double" else (H + 1)

        ks = jax.random.split(key, 8)
        u = lambda k, shape, bound: jax.random.uniform(
            k, shape, jnp.float32, minval=-bound, maxval=bound)

        # --- parameters (PyTorch-style uniform init), stored transposed (in, out) ---
        be = 1.0 / float(C) ** 0.5
        self.w_emb = u(ks[0], (C, H), be)               # embedding: Linear(C -> H)
        self.b_emb = u(ks[1], (1, H), be)
        bsc = 1.0 / float(2 * H) ** 0.5                 # score: Linear(H + H -> 1), input [v, h]
        self.w_score = u(ks[2], (1, 2 * H), bsc)        # (out=1, in=2H), PyTorch layout
        self.b_score = u(ks[3], (1, 1), bsc)
        bg = 1.0 / float(H) ** 0.5                      # GRU(d_in -> H), gate order [r, z, n]
        self.w_ih_t = u(ks[4], (d_in, 3 * H), bg)       # = weight_ih_l0.T
        self.w_hh_t = u(ks[5], (H, 3 * H), bg)          # = weight_hh_l0.T
        self.b_ih = u(ks[6], (1, 3 * H), bg)
        self.b_hh = u(ks[7], (1, 3 * H), bg)

        # --- packed, kernel-resident slabs; gate blocks padded to 128-lane boundaries ---
        def gate_pad(w):                                # (rows, 3H) -> (rows, 3D)
            out = jnp.zeros((w.shape[0], 3 * D), jnp.float32)
            for g in range(3):
                out = out.at[:, g * D:g * D + H].set(w[:, g * H:(g + 1) * H])
            return out

        def row_pad(w, rows):                           # zero-pad leading dim to `rows`
            return jnp.zeros((rows, w.shape[1]), jnp.float32).at[:w.shape[0]].set(w)

        self.wemb_p = jnp.zeros((C, D), jnp.float32).at[:, :H].set(self.w_emb)   # (C, D)

        misc = jnp.zeros((4, D), jnp.float32)
        misc = misc.at[0, :H].set(self.b_emb[0])        # b_emb
        misc = misc.at[1, :H].set(self.w_score[0, :H])  # score weight for v
        misc = misc.at[2, :H].set(self.w_score[0, H:])  # score weight for h
        misc = misc.at[3, 0].set(self.b_score[0, 0])    # score bias
        self.misc_p = misc                                                        # (4, D)

        if score_mode == "double":
            self.giw_p = jnp.concatenate(
                [row_pad(gate_pad(self.w_ih_t[0:H]), D),        # rows for v * (s >= 0.5)
                 row_pad(gate_pad(self.w_ih_t[H:2 * H]), D)],   # rows for v * (s <  0.5)
                axis=0)                                                            # (2D, 3D)
            w_i_s = self.w_ih_t[2 * H:2 * H + 1]
        else:  # 'concat': x = [v, s] -> single weight block, no duplication
            self.giw_p = row_pad(gate_pad(self.w_ih_t[0:H]), D)                   # (D, 3D)
            w_i_s = self.w_ih_t[H:H + 1]
        self.whh_p = row_pad(gate_pad(self.w_hh_t), D)                            # (D, 3D)
        self.grur_p = jnp.concatenate(
            [gate_pad(w_i_s), gate_pad(self.b_ih), gate_pad(self.b_hh)], axis=0)  # (3, 3D)

        self._calls = {}

    def _get_call(self, T):
        Tpad = _ceil_to(max(T, 1), 128)
        key = (T, Tpad)
        if key not in self._calls:
            D = self.D
            G = 3 * D
            # Full unroll for short sequences (LLO scheduling visibility); partial otherwise.
            unroll = True if T <= 128 else 4
            vmem = pl.BlockSpec(memory_space=pltpu.MemorySpace.VMEM)
            kernel = _make_dknm_kernel(T, D, self.score_mode == "double", unroll)
            self._calls[key] = pl.pallas_call(
                kernel,
                out_shape=(
                    jax.ShapeDtypeStruct((1, Tpad), jnp.float32),   # per-step scores
                    jax.ShapeDtypeStruct((1, D), jnp.float32),      # final hidden (padded)
                ),
                in_specs=[vmem] * 8,
                out_specs=(vmem, vmem),
                scratch_shapes=[
                    pltpu.VMEM((Tpad, G), jnp.float32),   # precomputed input-side gate terms
                    pltpu.VMEM((Tpad, D), jnp.float32),   # h_{t-1} history for score head
                ],
            )
        return self._calls[key], Tpad

    def forward_sequence(self, topic_seq, score_seq, hidden=None):
        """Run a whole exercise sequence in one kernel launch.

        topic_seq: (T, tcnt) float multi-hot topics; score_seq: (T,) float scores.
        Returns (scores (T,), hidden (num_layers, 1, H)) -- identical per-step
        semantics to looping the PyTorch DKNM.forward.
        """
        T = int(topic_seq.shape[0])
        C, H, D = self.tcnt, self.seq_hidden_size, self.D
        call, Tpad = self._get_call(T)

        topic_p = jnp.zeros((Tpad, C), jnp.float32).at[:T].set(
            jnp.asarray(topic_seq, jnp.float32).reshape(T, C))
        score_p = jnp.zeros((Tpad, 1), jnp.float32).at[:T, 0].set(
            jnp.asarray(score_seq, jnp.float32).reshape(T))
        h0 = jnp.zeros((1, D), jnp.float32)
        if hidden is not None:
            h0 = h0.at[:, :H].set(jnp.asarray(hidden, jnp.float32).reshape(1, H))

        scores_row, h_out = call(topic_p, score_p, self.wemb_p, self.misc_p,
                                 self.giw_p, self.whh_p, self.grur_p, h0)
        return scores_row[0, :T], h_out[:, :H].reshape(self.num_layers, 1, H)

    def __call__(self, topic, score, time=None, hidden=None):
        """Single-step interface matching DKNM.forward(topic, score, time, hidden)."""
        scores, h = self.forward_sequence(
            jnp.asarray(topic, jnp.float32).reshape(1, self.tcnt),
            jnp.asarray(score, jnp.float32).reshape(1),
            hidden)
        return scores.reshape(1), h


def _reference(model, topic_seq, score_seq, hidden=None):
    """Pure-JAX reference mirroring the PyTorch DKNM/SeqModel forward step-by-step."""
    H = model.seq_hidden_size
    T = topic_seq.shape[0]
    hp = jax.lax.Precision.HIGHEST
    h = (jnp.zeros((model.num_layers, 1, H), jnp.float32) if hidden is None
         else jnp.asarray(hidden, jnp.float32))
    scores = []
    for t in range(T):
        topic = topic_seq[t]
        s = score_seq[t:t + 1]                                                 # (1,)
        v = (jnp.dot(topic.reshape(1, -1), model.w_emb, precision=hp) + model.b_emb)[0]
        pred_v = jnp.concatenate([v, h.reshape(-1)])
        sc = jnp.dot(pred_v.reshape(1, -1), model.w_score.T, precision=hp) + model.b_score
        if model.score_mode == "concat":
            x = v
        else:
            x = jnp.concatenate([v * (s >= 0.5).astype(v.dtype),
                                 v * (s < 0.5).astype(v.dtype)])
        x = jnp.concatenate([x, s])
        gi = jnp.dot(x, model.w_ih_t, precision=hp) + model.b_ih[0]
        gh = jnp.dot(h.reshape(-1), model.w_hh_t, precision=hp) + model.b_hh[0]
        r = jax.nn.sigmoid(gi[0:H] + gh[0:H])
        z = jax.nn.sigmoid(gi[H:2 * H] + gh[H:2 * H])
        n = jnp.tanh(gi[2 * H:3 * H] + r * gh[2 * H:3 * H])
        h_new = (1.0 - z) * n + z * h.reshape(-1)
        h = h_new.reshape(model.num_layers, 1, H)
        scores.append(sc.reshape(1))
    return jnp.concatenate(scores), h


if __name__ == "__main__":
    tcnt = 128            # number of knowledge concepts
    topic_size = 64       # topic embedding size
    seq_hidden_size = 64  # GRU hidden size (== topic_size, as in the module defaults)
    T = 32                # exercise-sequence length

    model = DKNMPallas(tcnt, topic_size, seq_hidden_size, score_mode="double",
                       key=jax.random.PRNGKey(0))

    k1, k2 = jax.random.split(jax.random.PRNGKey(0))
    topic_seq = (jax.random.uniform(k1, (T, tcnt)) < 0.05).astype(jnp.float32)  # multi-hot topics
    score_seq = jax.random.uniform(k2, (T,), jnp.float32)                       # responses in [0,1)

    # fused-sequence kernel: one launch for all T steps
    scores, hidden = model.forward_sequence(topic_seq, score_seq, hidden=None)
    jax.block_until_ready((scores, hidden))

    ref_scores, ref_hidden = _reference(model, topic_seq, score_seq, None)
    assert jnp.allclose(scores, ref_scores, atol=2e-3, rtol=2e-3), (scores, ref_scores)
    assert jnp.allclose(hidden, ref_hidden, atol=2e-3, rtol=2e-3)

    # single-step interface (matches DKNM.forward signature; `time` is unused upstream)
    s0, h0 = model(topic_seq[0], score_seq[0:1], time=None, hidden=None)
    jax.block_until_ready((s0, h0))
    assert jnp.allclose(s0, ref_scores[0:1], atol=2e-3, rtol=2e-3)

    print("KERNEL_OK")
</pallas_src>

<mosaic_0001>
module attributes {stable_mosaic.version = 11 : i64} {
  func.func @kernel(%arg0: memref<128x128xf32, #tpu.memory_space<vmem>>, %arg1: memref<128x1xf32, #tpu.memory_space<vmem>>, %arg2: memref<128x128xf32, #tpu.memory_space<vmem>>, %arg3: memref<4x128xf32, #tpu.memory_space<vmem>>, %arg4: memref<256x384xf32, #tpu.memory_space<vmem>>, %arg5: memref<128x384xf32, #tpu.memory_space<vmem>>, %arg6: memref<3x384xf32, #tpu.memory_space<vmem>>, %arg7: memref<1x128xf32, #tpu.memory_space<vmem>>, %arg8: memref<1x128xf32, #tpu.memory_space<vmem>>, %arg9: memref<1x128xf32, #tpu.memory_space<vmem>>, %arg10: memref<128x384xf32, #tpu.memory_space<vmem>>, %arg11: memref<128x128xf32, #tpu.memory_space<vmem>>) attributes {dimension_semantics = [], scalar_prefetch = 0 : i64, scratch_operands = 2 : i64, tpu.core_type = #tpu.core_type<tc>} {
    %c0 = arith.constant 0 : index
    %c0_0 = arith.constant 0 : index
    %0 = vector.load %arg3[%c0, %c0_0] : memref<4x128xf32, #tpu.memory_space<vmem>>, vector<1x128xf32>
    %c1 = arith.constant 1 : index
    %c0_1 = arith.constant 0 : index
    %1 = vector.load %arg3[%c1, %c0_1] : memref<4x128xf32, #tpu.memory_space<vmem>>, vector<1x128xf32>
    %c2 = arith.constant 2 : index
    %c0_2 = arith.constant 0 : index
    %2 = vector.load %arg3[%c2, %c0_2] : memref<4x128xf32, #tpu.memory_space<vmem>>, vector<1x128xf32>
    %c3 = arith.constant 3 : index
    %c0_3 = arith.constant 0 : index
    %3 = vector.load %arg3[%c3, %c0_3] : memref<4x128xf32, #tpu.memory_space<vmem>>, vector<1x1xf32>
    %c0_4 = arith.constant 0 : index
    %c0_5 = arith.constant 0 : index
    %4 = vector.load %arg6[%c0_4, %c0_5] : memref<3x384xf32, #tpu.memory_space<vmem>>, vector<1x384xf32>
    %c1_6 = arith.constant 1 : index
    %c0_7 = arith.constant 0 : index
    %5 = vector.load %arg6[%c1_6, %c0_7] : memref<3x384xf32, #tpu.memory_space<vmem>>, vector<1x384xf32>
    %c2_8 = arith.constant 2 : index
    %c0_9 = arith.constant 0 : index
    %6 = vector.load %arg6[%c2_8, %c0_9] : memref<3x384xf32, #tpu.memory_space<vmem>>, vector<1x384xf32>
    %c0_10 = arith.constant 0 : index
    %c0_11 = arith.constant 0 : index
    %7 = vector.load %arg0[%c0_10, %c0_11] : memref<128x128xf32, #tpu.memory_space<vmem>>, vector<128x128xf32>
    %c0_12 = arith.constant 0 : index
    %c0_13 = arith.constant 0 : index
    %8 = vector.load %arg2[%c0_12, %c0_13] : memref<128x128xf32, #tpu.memory_space<vmem>>, vector<128x128xf32>
    %cst = arith.constant dense<0.000000e+00> : vector<128x128xf32>
    %9 = tpu.matmul %7, %8, %cst {dimension_numbers = #tpu.dot_dimension_numbers<[1], [0], [0], [1], [0, 0, 1, 1], [], []>} : vector<128x128xf32>, vector<128x128xf32>, vector<128x128xf32> -> vector<128x128xf32>
    %10 = vector.broadcast %0 : vector<1x128xf32> to vector<128x128xf32>
    %11 = arith.addf %9, %10 : vector<128x128xf32>
    %c0_14 = arith.constant 0 : index
    %c0_15 = arith.constant 0 : index
    %12 = vector.load %arg1[%c0_14, %c0_15] : memref<128x1xf32, #tpu.memory_space<vmem>>, vector<128x1xf32>
    %cst_16 = arith.constant 5.000000e-01 : f32
    %13 = vector.broadcast %cst_16 : f32 to vector<128x1xf32>
    %14 = arith.cmpf oge, %12, %13 : vector<128x1xf32>
    %15 = arith.extui %14 : vector<128x1xi1> to vector<128x1xi32>
    %16 = arith.sitofp %15 : vector<128x1xi32> to vector<128x1xf32>
    %17 = vector.broadcast %16 : vector<128x1xf32> to vector<128x128xf32>
    %18 = arith.mulf %11, %17 : vector<128x128xf32>
    %c0_17 = arith.constant 0 : index
    %c0_18 = arith.constant 0 : index
    %19 = vector.load %arg4[%c0_17, %c0_18] : memref<256x384xf32, #tpu.memory_space<vmem>>, vector<128x384xf32>
    %cst_19 = arith.constant dense<0.000000e+00> : vector<128x384xf32>
    %20 = tpu.matmul %18, %19, %cst_19 {dimension_numbers = #tpu.dot_dimension_numbers<[1], [0], [0], [1], [0, 0, 1, 1], [], []>} : vector<128x128xf32>, vector<128x384xf32>, vector<128x384xf32> -> vector<128x384xf32>
    %cst_20 = arith.constant 1.000000e+00 : f32
    %21 = vector.broadcast %cst_20 : f32 to vector<128x1xf32>
    %22 = arith.subf %21, %16 : vector<128x1xf32>
    %23 = vector.broadcast %22 : vector<128x1xf32> to vector<128x128xf32>
    %24 = arith.mulf %11, %23 : vector<128x128xf32>
    %c128 = arith.constant 128 : index
    %c0_21 = arith.constant 0 : index
    %25 = vector.load %arg4[%c128, %c0_21] : memref<256x384xf32, #tpu.memory_space<vmem>>, vector<128x384xf32>
    %cst_22 = arith.constant dense<0.000000e+00> : vector<128x384xf32>
    %26 = tpu.matmul %24, %25, %cst_22 {dimension_numbers = #tpu.dot_dimension_numbers<[1], [0], [0], [1], [0, 0, 1, 1], [], []>} : vector<128x128xf32>, vector<128x384xf32>, vector<128x384xf32> -> vector<128x384xf32>
    %27 = arith.addf %20, %26 : vector<128x384xf32>
    %28 = vector.broadcast %12 : vector<128x1xf32> to vector<128x384xf32>
    %29 = vector.broadcast %4 : vector<1x384xf32> to vector<128x384xf32>
    %30 = arith.mulf %28, %29 : vector<128x384xf32>
    %31 = arith.addf %27, %30 : vector<128x384xf32>
    %32 = vector.broadcast %5 : vector<1x384xf32> to vector<128x384xf32>
    %33 = arith.addf %31, %32 : vector<128x384xf32>
    %c0_23 = arith.constant 0 : index
    %c0_24 = arith.constant 0 : index
    %34 = vector.load %arg10[%c0_23, %c0_24] : memref<128x384xf32, #tpu.memory_space<vmem>>, vector<128x384xf32>
    tpu.vector_store %arg10[%c0_23, %c0_24], %33 {strides = array<i32>} : memref<128x384xf32, #tpu.memory_space<vmem>>, vector<128x384xf32>,
    %cst_25 = arith.constant 0.000000e+00 : f32
    %35 = vector.broadcast %cst_25 : f32 to vector<128x128xf32>
    %c0_26 = arith.constant 0 : index
    %c0_27 = arith.constant 0 : index
    %36 = vector.load %arg11[%c0_26, %c0_27] : memref<128x128xf32, #tpu.memory_space<vmem>>, vector<128x128xf32>
    tpu.vector_store %arg11[%c0_26, %c0_27], %35 {strides = array<i32>} : memref<128x128xf32, #tpu.memory_space<vmem>>, vector<128x128xf32>,
    %c0_28 = arith.constant 0 : index
    %c0_29 = arith.constant 0 : index
    %37 = vector.load %arg7[%c0_28, %c0_29] : memref<1x128xf32, #tpu.memory_space<vmem>>, vector<1x128xf32>
    %c0_i32 = arith.constant 0 : i32
    %38 = arith.index_cast %c0_i32 : i32 to index
    %c0_30 = arith.constant 0 : index
    %39 = vector.load %arg11[%38, %c0_30] : memref<128x128xf32, #tpu.memory_space<vmem>>, vector<1x128xf32>
    tpu.vector_store %arg11[%38, %c0_30], %37 {strides = array<i32>} : memref<128x128xf32, #tpu.memory_space<vmem>>, vector<1x128xf32>,
    %40 = arith.index_cast %c0_i32 : i32 to index
    %c0_31 = arith.constant 0 : index
    %41 = vector.load %arg10[%40, %c0_31] : memref<128x384xf32, #tpu.memory_space<vmem>>, vector<1x384xf32>
    %c0_32 = arith.constant 0 : index
    %c0_33 = arith.constant 0 : index
    %42 = vector.load %arg5[%c0_32, %c0_33] : memref<128x384xf32, #tpu.memory_space<vmem>>, vector<128x384xf32>
    %cst_34 = arith.constant dense<0.000000e+00> : vector<1x384xf32>
    %43 = tpu.matmul %37, %42, %cst_34 {dimension_numbers = #tpu.dot_dimension_numbers<[1], [0], [0], [1], [0, 0, 1, 1], [], []>} : vector<1x128xf32>, vector<128x384xf32>, vector<1x384xf32> -> vector<1x384xf32>
    %44 = arith.addf %43, %6 : vector<1x384xf32>
    %45 = vector.extract_strided_slice %41 {offsets = [0, 0], sizes = [1, 128], strides = [1, 1]} : vector<1x384xf32> to vector<1x128xf32>
    %46 = vector.extract_strided_slice %44 {offsets = [0, 0], sizes = [1, 128], strides = [1, 1]} : vector<1x384xf32> to vector<1x128xf32>
    %47 = arith.addf %45, %46 : vector<1x128xf32>
    %48 = arith.negf %47 : vector<1x128xf32>
    %49 = math.exp %48 : vector<1x128xf32>
    %cst_35 = arith.constant 1.000000e+00 : f32
    %50 = vector.broadcast %cst_35 : f32 to vector<1x128xf32>
    %51 = arith.addf %50, %49 : vector<1x128xf32>
    %52 = arith.divf %50, %51 : vector<1x128xf32>
    %53 = vector.extract_strided_slice %41 {offsets = [0, 128], sizes = [1, 128], strides = [1, 1]} : vector<1x384xf32> to vector<1x128xf32>
    %54 = vector.extract_strided_slice %44 {offsets = [0, 128], sizes = [1, 128], strides = [1, 1]} : vector<1x384xf32> to vector<1x128xf32>
    %55 = arith.addf %53, %54 : vector<1x128xf32>
    %56 = arith.negf %55 : vector<1x128xf32>
    %57 = math.exp %56 : vector<1x128xf32>
    %cst_36 = arith.constant 1.000000e+00 : f32
    %58 = vector.broadcast %cst_36 : f32 to vector<1x128xf32>
    %59 = arith.addf %58, %57 : vector<1x128xf32>
    %60 = arith.divf %58, %59 : vector<1x128xf32>
    %61 = vector.extract_strided_slice %41 {offsets = [0, 256], sizes = [1, 128], strides = [1, 1]} : vector<1x384xf32> to vector<1x128xf32>
    %62 = vector.extract_strided_slice %44 {offsets = [0, 256], sizes = [1, 128], strides = [1, 1]} : vector<1x384xf32> to vector<1x128xf32>
    %63 = arith.mulf %52, %62 : vector<1x128xf32>
    %64 = arith.addf %61, %63 : vector<1x128xf32>
    %65 = math.tanh %64 : vector<1x128xf32>
    %cst_37 = arith.constant 1.000000e+00 : f32
    %66 = vector.broadcast %cst_37 : f32 to vector<1x128xf32>
    %67 = arith.subf %66, %60 : vector<1x128xf32>
    %68 = arith.mulf %67, %65 : vector<1x128xf32>
    %69 = arith.mulf %60, %37 : vector<1x128xf32>
    %70 = arith.addf %68, %69 : vector<1x128xf32>
    %c1_i32 = arith.constant 1 : i32
    %71 = arith.index_cast %c1_i32 : i32 to index
    %c0_38 = arith.constant 0 : index
    %72 = vector.load %arg11[%71, %c0_38] : memref<128x128xf32, #tpu.memory_space<vmem>>, vector<1x128xf32>
    tpu.vector_store %arg11[%71, %c0_38], %70 {strides = array<i32>} : memref<128x128xf32, #tpu.memory_space<vmem>>, vector<1x128xf32>,
    %73 = arith.index_cast %c1_i32 : i32 to index
    %c0_39 = arith.constant 0 : index
    %74 = vector.load %arg10[%73, %c0_39] : memref<128x384xf32, #tpu.memory_space<vmem>>, vector<1x384xf32>
    %c0_40 = arith.constant 0 : index
    %c0_41 = arith.constant 0 : index
    %75 = vector.load %arg5[%c0_40, %c0_41] : memref<128x384xf32, #tpu.memory_space<vmem>>, vector<128x384xf32>
    %cst_42 = arith.constant dense<0.000000e+00> : vector<1x384xf32>
    %76 = tpu.matmul %70, %75, %cst_42 {dimension_numbers = #tpu.dot_dimension_numbers<[1], [0], [0], [1], [0, 0, 1, 1], [], []>} : vector<1x128xf32>, vector<128x384xf32>, vector<1x384xf32> -> vector<1x384xf32>
    %77 = arith.addf %76, %6 : vector<1x384xf32>
    %78 = vector.extract_strided_slice %74 {offsets = [0, 0], sizes = [1, 128], strides = [1, 1]} : vector<1x384xf32> to vector<1x128xf32>
    %79 = vector.extract_strided_slice %77 {offsets = [0, 0], sizes = [1, 128], strides = [1, 1]} : vector<1x384xf32> to vector<1x128xf32>
    %80 = arith.addf %78, %79 : vector<1x128xf32>
    %81 = arith.negf %80 : vector<1x128xf32>
    %82 = math.exp %81 : vector<1x128xf32>
    %cst_43 = arith.constant 1.000000e+00 : f32
    %83 = vector.broadcast %cst_43 : f32 to vector<1x128xf32>
    %84 = arith.addf %83, %82 : vector<1x128xf32>
    %85 = arith.divf %83, %84 : vector<1x128xf32>
    %86 = vector.extract_strided_slice %74 {offsets = [0, 128], sizes = [1, 128], strides = [1, 1]} : vector<1x384xf32> to vector<1x128xf32>
    %87 = vector.extract_strided_slice %77 {offsets = [0, 128], sizes = [1, 128], strides = [1, 1]} : vector<1x384xf32> to vector<1x128xf32>
    %88 = arith.addf %86, %87 : vector<1x128xf32>
    %89 = arith.negf %88 : vector<1x128xf32>
    %90 = math.exp %89 : vector<1x128xf32>
    %cst_44 = arith.constant 1.000000e+00 : f32
    %91 = vector.broadcast %cst_44 : f32 to vector<1x128xf32>
    %92 = arith.addf %91, %90 : vector<1x128xf32>
    %93 = arith.divf %91, %92 : vector<1x128xf32>
    %94 = vector.extract_strided_slice %74 {offsets = [0, 256], sizes = [1, 128], strides = [1, 1]} : vector<1x384xf32> to vector<1x128xf32>
    %95 = vector.extract_strided_slice %77 {offsets = [0, 256], sizes = [1, 128], strides = [1, 1]} : vector<1x384xf32> to vector<1x128xf32>
    %96 = arith.mulf %85, %95 : vector<1x128xf32>
    %97 = arith.addf %94, %96 : vector<1x128xf32>
    %98 = math.tanh %97 : vector<1x128xf32>
    %cst_45 = arith.constant 1.000000e+00 : f32
    %99 = vector.broadcast %cst_45 : f32 to vector<1x128xf32>
    %100 = arith.subf %99, %93 : vector<1x128xf32>
    %101 = arith.mulf %100, %98 : vector<1x128xf32>
    %102 = arith.mulf %93, %70 : vector<1x128xf32>
    %103 = arith.addf %101, %102 : vector<1x128xf32>
    %c2_i32 = arith.constant 2 : i32
    %104 = arith.index_cast %c2_i32 : i32 to index
    %c0_46 = arith.constant 0 : index
    %105 = vector.load %arg11[%104, %c0_46] : memref<128x128xf32, #tpu.memory_space<vmem>>, vector<1x128xf32>
    tpu.vector_store %arg11[%104, %c0_46], %103 {strides = array<i32>} : memref<128x128xf32, #tpu.memory_space<vmem>>, vector<1x128xf32>,
    %106 = arith.index_cast %c2_i32 : i32 to index
    %c0_47 = arith.constant 0 : index
    %107 = vector.load %arg10[%106, %c0_47] : memref<128x384xf32, #tpu.memory_space<vmem>>, vector<1x384xf32>
    %c0_48 = arith.constant 0 : index
    %c0_49 = arith.constant 0 : index
    %108 = vector.load %arg5[%c0_48, %c0_49] : memref<128x384xf32, #tpu.memory_space<vmem>>, vector<128x384xf32>
    %cst_50 = arith.constant dense<0.000000e+00> : vector<1x384xf32>
    %109 = tpu.matmul %103, %108, %cst_50 {dimension_numbers = #tpu.dot_dimension_numbers<[1], [0], [0], [1], [0, 0, 1, 1], [], []>} : vector<1x128xf32>, vector<128x384xf32>, vector<1x384xf32> -> vector<1x384xf32>
    %110 = arith.addf %109, %6 : vector<1x384xf32>
    %111 = vector.extract_strided_slice %107 {offsets = [0, 0], sizes = [1, 128], strides = [1, 1]} : vector<1x384xf32> to vector<1x128xf32>
    %112 = vector.extract_strided_slice %110 {offsets = [0, 0], sizes = [1, 128], strides = [1, 1]} : vector<1x384xf32> to vector<1x128xf32>
    %113 = arith.addf %111, %112 : vector<1x128xf32>
    %114 = arith.negf %113 : vector<1x128xf32>
    %115 = math.exp %114 : vector<1x128xf32>
    %cst_51 = arith.constant 1.000000e+00 : f32
    %116 = vector.broadcast %cst_51 : f32 to vector<1x128xf32>
    %117 = arith.addf %116, %115 : vector<1x128xf32>
    %118 = arith.divf %116, %117 : vector<1x128xf32>
    %119 = vector.extract_strided_slice %107 {offsets = [0, 128], sizes = [1, 128], strides = [1, 1]} : vector<1x384xf32> to vector<1x128xf32>
    %120 = vector.extract_strided_slice %110 {offsets = [0, 128], sizes = [1, 128], strides = [1, 1]} : vector<1x384xf32> to vector<1x128xf32>
    %121 = arith.addf %119, %120 : vector<1x128xf32>
    %122 = arith.negf %121 : vector<1x128xf32>
    %123 = math.exp %122 : vector<1x128xf32>
    %cst_52 = arith.constant 1.000000e+00 : f32
    %124 = vector.broadcast %cst_52 : f32 to vector<1x128xf32>
    %125 = arith.addf %124, %123 : vector<1x128xf32>
    %126 = arith.divf %124, %125 : vector<1x128xf32>
    %127 = vector.extract_strided_slice %107 {offsets = [0, 256], sizes = [1, 128], strides = [1, 1]} : vector<1x384xf32> to vector<1x128xf32>
    %128 = vector.extract_strided_slice %110 {offsets = [0, 256], sizes = [1, 128], strides = [1, 1]} : vector<1x384xf32> to vector<1x128xf32>
    %129 = arith.mulf %118, %128 : vector<1x128xf32>
    %130 = arith.addf %127, %129 : vector<1x128xf32>
    %131 = math.tanh %130 : vector<1x128xf32>
    %cst_53 = arith.constant 1.000000e+00 : f32
    %132 = vector.broadcast %cst_53 : f32 to vector<1x128xf32>
    %133 = arith.subf %132, %126 : vector<1x128xf32>
    %134 = arith.mulf %133, %131 : vector<1x128xf32>
    %135 = arith.mulf %126, %103 : vector<1x128xf32>
    %136 = arith.addf %134, %135 : vector<1x128xf32>
    %c3_i32 = arith.constant 3 : i32
    %137 = arith.index_cast %c3_i32 : i32 to index
    %c0_54 = arith.constant 0 : index
    %138 = vector.load %arg11[%137, %c0_54] : memref<128x128xf32, #tpu.memory_space<vmem>>, vector<1x128xf32>
    tpu.vector_store %arg11[%137, %c0_54], %136 {strides = array<i32>} : memref<128x128xf32, #tpu.memory_space<vmem>>, vector<1x128xf32>,
    %139 = arith.index_cast %c3_i32 : i32 to index
    %c0_55 = arith.constant 0 : index
    %140 = vector.load %arg10[%139, %c0_55] : memref<128x384xf32, #tpu.memory_space<vmem>>, vector<1x384xf32>
    %c0_56 = arith.constant 0 : index
    %c0_57 = arith.constant 0 : index
    %141 = vector.load %arg5[%c0_56, %c0_57] : memref<128x384xf32, #tpu.memory_space<vmem>>, vector<128x384xf32>
    %cst_58 = arith.constant dense<0.000000e+00> : vector<1x384xf32>
    %142 = tpu.matmul %136, %141, %cst_58 {dimension_numbers = #tpu.dot_dimension_numbers<[1], [0], [0], [1], [0, 0, 1, 1], [], []>} : vector<1x128xf32>, vector<128x384xf32>, vector<1x384xf32> -> vector<1x384xf32>
    %143 = arith.addf %142, %6 : vector<1x384xf32>
    %144 = vector.extract_strided_slice %140 {offsets = [0, 0], sizes = [1, 128], strides = [1, 1]} : vector<1x384xf32> to vector<1x128xf32>
    %145 = vector.extract_strided_slice %143 {offsets = [0, 0], sizes = [1, 128], strides = [1, 1]} : vector<1x384xf32> to vector<1x128xf32>
    %146 = arith.addf %144, %145 : vector<1x128xf32>
    %147 = arith.negf %146 : vector<1x128xf32>
    %148 = math.exp %147 : vector<1x128xf32>
    %cst_59 = arith.constant 1.000000e+00 : f32
    %149 = vector.broadcast %cst_59 : f32 to vector<1x128xf32>
    %150 = arith.addf %149, %148 : vector<1x128xf32>
    %151 = arith.divf %149, %150 : vector<1x128xf32>
    %152 = vector.extract_strided_slice %140 {offsets = [0, 128], sizes = [1, 128], strides = [1, 1]} : vector<1x384xf32> to vector<1x128xf32>
    %153 = vector.extract_strided_slice %143 {offsets = [0, 128], sizes = [1, 128], strides = [1, 1]} : vector<1x384xf32> to vector<1x128xf32>
    %154 = arith.addf %152, %153 : vector<1x128xf32>
    %155 = arith.negf %154 : vector<1x128xf32>
    %156 = math.exp %155 : vector<1x128xf32>
    %cst_60 = arith.constant 1.000000e+00 : f32
    %157 = vector.broadcast %cst_60 : f32 to vector<1x128xf32>
    %158 = arith.addf %157, %156 : vector<1x128xf32>
    %159 = arith.divf %157, %158 : vector<1x128xf32>
    %160 = vector.extract_strided_slice %140 {offsets = [0, 256], sizes = [1, 128], strides = [1, 1]} : vector<1x384xf32> to vector<1x128xf32>
    %161 = vector.extract_strided_slice %143 {offsets = [0, 256], sizes = [1, 128], strides = [1, 1]} : vector<1x384xf32> to vector<1x128xf32>
    %162 = arith.mulf %151, %161 : vector<1x128xf32>
    %163 = arith.addf %160, %162 : vector<1x128xf32>
    %164 = math.tanh %163 : vector<1x128xf32>
    %cst_61 = arith.constant 1.000000e+00 : f32
    %165 = vector.broadcast %cst_61 : f32 to vector<1x128xf32>
    %166 = arith.subf %165, %159 : vector<1x128xf32>
    %167 = arith.mulf %166, %164 : vector<1x128xf32>
    %168 = arith.mulf %159, %136 : vector<1x128xf32>
    %169 = arith.addf %167, %168 : vector<1x128xf32>
    %c4_i32 = arith.constant 4 : i32
    %170 = arith.index_cast %c4_i32 : i32 to index
    %c0_62 = arith.constant 0 : index
    %171 = vector.load %arg11[%170, %c0_62] : memref<128x128xf32, #tpu.memory_space<vmem>>, vector<1x128xf32>
    tpu.vector_store %arg11[%170, %c0_62], %169 {strides = array<i32>} : memref<128x128xf32, #tpu.memory_space<vmem>>, vector<1x128xf32>,
    %172 = arith.index_cast %c4_i32 : i32 to index
    %c0_63 = arith.constant 0 : index
    %173 = vector.load %arg10[%172, %c0_63] : memref<128x384xf32, #tpu.memory_space<vmem>>, vector<1x384xf32>
    %c0_64 = arith.constant 0 : index
    %c0_65 = arith.constant 0 : index
    %174 = vector.load %arg5[%c0_64, %c0_65] : memref<128x384xf32, #tpu.memory_space<vmem>>, vector<128x384xf32>
    %cst_66 = arith.constant dense<0.000000e+00> : vector<1x384xf32>
    %175 = tpu.matmul %169, %174, %cst_66 {dimension_numbers = #tpu.dot_dimension_numbers<[1], [0], [0], [1], [0, 0, 1, 1], [], []>} : vector<1x128xf32>, vector<128x384xf32>, vector<1x384xf32> -> vector<1x384xf32>
    %176 = arith.addf %175, %6 : vector<1x384xf32>
    %177 = vector.extract_strided_slice %173 {offsets = [0, 0], sizes = [1, 128], strides = [1, 1]} : vector<1x384xf32> to vector<1x128xf32>
    %178 = vector.extract_strided_slice %176 {offsets = [0, 0], sizes = [1, 128], strides = [1, 1]} : vector<1x384xf32> to vector<1x128xf32>
    %179 = arith.addf %177, %178 : vector<1x128xf32>
    %180 = arith.negf %179 : vector<1x128xf32>
    %181 = math.exp %180 : vector<1x128xf32>
    %cst_67 = arith.constant 1.000000e+00 : f32
    %182 = vector.broadcast %cst_67 : f32 to vector<1x128xf32>
    %183 = arith.addf %182, %181 : vector<1x128xf32>
    %184 = arith.divf %182, %183 : vector<1x128xf32>
    %185 = vector.extract_strided_slice %173 {offsets = [0, 128], sizes = [1, 128], strides = [1, 1]} : vector<1x384xf32> to vector<1x128xf32>
    %186 = vector.extract_strided_slice %176 {offsets = [0, 128], sizes = [1, 128], strides = [1, 1]} : vector<1x384xf32> to vector<1x128xf32>
    %187 = arith.addf %185, %186 : vector<1x128xf32>
    %188 = arith.negf %187 : vector<1x128xf32>
    %189 = math.exp %188 : vector<1x128xf32>
    %cst_68 = arith.constant 1.000000e+00 : f32
    %190 = vector.broadcast %cst_68 : f32 to vector<1x128xf32>
    %191 = arith.addf %190, %189 : vector<1x128xf32>
    %192 = arith.divf %190, %191 : vector<1x128xf32>
    %193 = vector.extract_strided_slice %173 {offsets = [0, 256], sizes = [1, 128], strides = [1, 1]} : vector<1x384xf32> to vector<1x128xf32>
    %194 = vector.extract_strided_slice %176 {offsets = [0, 256], sizes = [1, 128], strides = [1, 1]} : vector<1x384xf32> to vector<1x128xf32>
    %195 = arith.mulf %184, %194 : vector<1x128xf32>
    %196 = arith.addf %193, %195 : vector<1x128xf32>
    %197 = math.tanh %196 : vector<1x128xf32>
    %cst_69 = arith.constant 1.000000e+00 : f32
    %198 = vector.broadcast %cst_69 : f32 to vector<1x128xf32>
    %199 = arith.subf %198, %192 : vector<1x128xf32>
    %200 = arith.mulf %199, %197 : vector<1x128xf32>
    %201 = arith.mulf %192, %169 : vector<1x128xf32>
    %202 = arith.addf %200, %201 : vector<1x128xf32>
    %c5_i32 = arith.constant 5 : i32
    %203 = arith.index_cast %c5_i32 : i32 to index
    %c0_70 = arith.constant 0 : index
    %204 = vector.load %arg11[%203, %c0_70] : memref<128x128xf32, #tpu.memory_space<vmem>>, vector<1x128xf32>
    tpu.vector_store %arg11[%203, %c0_70], %202 {strides = array<i32>} : memref<128x128xf32, #tpu.memory_space<vmem>>, vector<1x128xf32>,
    %205 = arith.index_cast %c5_i32 : i32 to index
    %c0_71 = arith.constant 0 : index
    %206 = vector.load %arg10[%205, %c0_71] : memref<128x384xf32, #tpu.memory_space<vmem>>, vector<1x384xf32>
    %c0_72 = arith.constant 0 : index
    %c0_73 = arith.constant 0 : index
    %207 = vector.load %arg5[%c0_72, %c0_73] : memref<128x384xf32, #tpu.memory_space<vmem>>, vector<128x384xf32>
    %cst_74 = arith.constant dense<0.000000e+00> : vector<1x384xf32>
    %208 = tpu.matmul %202, %207, %cst_74 {dimension_numbers = #tpu.dot_dimension_numbers<[1], [0], [0], [1], [0, 0, 1, 1], [], []>} : vector<1x128xf32>, vector<128x384xf32>, vector<1x384xf32> -> vector<1x384xf32>
    %209 = arith.addf %208, %6 : vector<1x384xf32>
    %210 = vector.extract_strided_slice %206 {offsets = [0, 0], sizes = [1, 128], strides = [1, 1]} : vector<1x384xf32> to vector<1x128xf32>
    %211 = vector.extract_strided_slice %209 {offsets = [0, 0], sizes = [1, 128], strides = [1, 1]} : vector<1x384xf32> to vector<1x128xf32>
    %212 = arith.addf %210, %211 : vector<1x128xf32>
    %213 = arith.negf %212 : vector<1x128xf32>
    %214 = math.exp %213 : vector<1x128xf32>
    %cst_75 = arith.constant 1.000000e+00 : f32
    %215 = vector.broadcast %cst_75 : f32 to vector<1x128xf32>
    %216 = arith.addf %215, %214 : vector<1x128xf32>
    %217 = arith.divf %215, %216 : vector<1x128xf32>
    %218 = vector.extract_strided_slice %206 {offsets = [0, 128], sizes = [1, 128], strides = [1, 1]} : vector<1x384xf32> to vector<1x128xf32>
    %219 = vector.extract_strided_slice %209 {offsets = [0, 128], sizes = [1, 128], strides = [1, 1]} : vector<1x384xf32> to vector<1x128xf32>
    %220 = arith.addf %218, %219 : vector<1x128xf32>
    %221 = arith.negf %220 : vector<1x128xf32>
    %222 = math.exp %221 : vector<1x128xf32>
    %cst_76 = arith.constant 1.000000e+00 : f32
    %223 = vector.broadcast %cst_76 : f32 to vector<1x128xf32>
    %224 = arith.addf %223, %222 : vector<1x128xf32>
    %225 = arith.divf %223, %224 : vector<1x128xf32>
    %226 = vector.extract_strided_slice %206 {offsets = [0, 256], sizes = [1, 128], strides = [1, 1]} : vector<1x384xf32> to vector<1x128xf32>
    %227 = vector.extract_strided_slice %209 {offsets = [0, 256], sizes = [1, 128], strides = [1, 1]} : vector<1x384xf32> to vector<1x128xf32>
    %228 = arith.mulf %217, %227 : vector<1x128xf32>
    %229 = arith.addf %226, %228 : vector<1x128xf32>
    %230 = math.tanh %229 : vector<1x128xf32>
    %cst_77 = arith.constant 1.000000e+00 : f32
    %231 = vector.broadcast %cst_77 : f32 to vector<1x128xf32>
    %232 = arith.subf %231, %225 : vector<1x128xf32>
    %233 = arith.mulf %232, %230 : vector<1x128xf32>
    %234 = arith.mulf %225, %202 : vector<1x128xf32>
    %235 = arith.addf %233, %234 : vector<1x128xf32>
    %c6_i32 = arith.constant 6 : i32
    %236 = arith.index_cast %c6_i32 : i32 to index
    %c0_78 = arith.constant 0 : index
    %237 = vector.load %arg11[%236, %c0_78] : memref<128x128xf32, #tpu.memory_space<vmem>>, vector<1x128xf32>
    tpu.vector_store %arg11[%236, %c0_78], %235 {strides = array<i32>} : memref<128x128xf32, #tpu.memory_space<vmem>>, vector<1x128xf32>,
    %238 = arith.index_cast %c6_i32 : i32 to index
    %c0_79 = arith.constant 0 : index
    %239 = vector.load %arg10[%238, %c0_79] : memref<128x384xf32, #tpu.memory_space<vmem>>, vector<1x384xf32>
    %c0_80 = arith.constant 0 : index
    %c0_81 = arith.constant 0 : index
    %240 = vector.load %arg5[%c0_80, %c0_81] : memref<128x384xf32, #tpu.memory_space<vmem>>, vector<128x384xf32>
    %cst_82 = arith.constant dense<0.000000e+00> : vector<1x384xf32>
    %241 = tpu.matmul %235, %240, %cst_82 {dimension_numbers = #tpu.dot_dimension_numbers<[1], [0], [0], [1], [0, 0, 1, 1], [], []>} : vector<1x128xf32>, vector<128x384xf32>, vector<1x384xf32> -> vector<1x384xf32>
    %242 = arith.addf %241, %6 : vector<1x384xf32>
    %243 = vector.extract_strided_slice %239 {offsets = [0, 0], sizes = [1, 128], strides = [1, 1]} : vector<1x384xf32> to vector<1x128xf32>
    %244 = vector.extract_strided_slice %242 {offsets = [0, 0], sizes = [1, 128], strides = [1, 1]} : vector<1x384xf32> to vector<1x128xf32>
    %245 = arith.addf %243, %244 : vector<1x128xf32>
    %246 = arith.negf %245 : vector<1x128xf32>
    %247 = math.exp %246 : vector<1x128xf32>
    %cst_83 = arith.constant 1.000000e+00 : f32
    %248 = vector.broadcast %cst_83 : f32 to vector<1x128xf32>
    %249 = arith.addf %248, %247 : vector<1x128xf32>
    %250 = arith.divf %248, %249 : vector<1x128xf32>
    %251 = vector.extract_strided_slice %239 {offsets = [0, 128], sizes = [1, 128], strides = [1, 1]} : vector<1x384xf32> to vector<1x128xf32>
    %252 = vector.extract_strided_slice %242 {offsets = [0, 128], sizes = [1, 128], strides = [1, 1]} : vector<1x384xf32> to vector<1x128xf32>
    %253 = arith.addf %251, %252 : vector<1x128xf32>
    %254 = arith.negf %253 : vector<1x128xf32>
    %255 = math.exp %254 : vector<1x128xf32>
    %cst_84 = arith.constant 1.000000e+00 : f32
    %256 = vector.broadcast %cst_84 : f32 to vector<1x128xf32>
    %257 = arith.addf %256, %255 : vector<1x128xf32>
    %258 = arith.divf %256, %257 : vector<1x128xf32>
    %259 = vector.extract_strided_slice %239 {offsets = [0, 256], sizes = [1, 128], strides = [1, 1]} : vector<1x384xf32> to vector<1x128xf32>
    %260 = vector.extract_strided_slice %242 {offsets = [0, 256], sizes = [1, 128], strides = [1, 1]} : vector<1x384xf32> to vector<1x128xf32>
    %261 = arith.mulf %250, %260 : vector<1x128xf32>
    %262 = arith.addf %259, %261 : vector<1x128xf32>
    %263 = math.tanh %262 : vector<1x128xf32>
    %cst_85 = arith.constant 1.000000e+00 : f32
    %264 = vector.broadcast %cst_85 : f32 to vector<1x128xf32>
    %265 = arith.subf %264, %258 : vector<1x128xf32>
    %266 = arith.mulf %265, %263 : vector<1x128xf32>
    %267 = arith.mulf %258, %235 : vector<1x128xf32>
    %268 = arith.addf %266, %267 : vector<1x128xf32>
    %c7_i32 = arith.constant 7 : i32
    %269 = arith.index_cast %c7_i32 : i32 to index
    %c0_86 = arith.constant 0 : index
    %270 = vector.load %arg11[%269, %c0_86] : memref<128x128xf32, #tpu.memory_space<vmem>>, vector<1x128xf32>
    tpu.vector_store %arg11[%269, %c0_86], %268 {strides = array<i32>} : memref<128x128xf32, #tpu.memory_space<vmem>>, vector<1x128xf32>,
    %271 = arith.index_cast %c7_i32 : i32 to index
    %c0_87 = arith.constant 0 : index
    %272 = vector.load %arg10[%271, %c0_87] : memref<128x384xf32, #tpu.memory_space<vmem>>, vector<1x384xf32>
    %c0_88 = arith.constant 0 : index
    %c0_89 = arith.constant 0 : index
    %273 = vector.load %arg5[%c0_88, %c0_89] : memref<128x384xf32, #tpu.memory_space<vmem>>, vector<128x384xf32>
    %cst_90 = arith.constant dense<0.000000e+00> : vector<1x384xf32>
    %274 = tpu.matmul %268, %273, %cst_90 {dimension_numbers = #tpu.dot_dimension_numbers<[1], [0], [0], [1], [0, 0, 1, 1], [], []>} : vector<1x128xf32>, vector<128x384xf32>, vector<1x384xf32> -> vector<1x384xf32>
    %275 = arith.addf %274, %6 : vector<1x384xf32>
    %276 = vector.extract_strided_slice %272 {offsets = [0, 0], sizes = [1, 128], strides = [1, 1]} : vector<1x384xf32> to vector<1x128xf32>
    %277 = vector.extract_strided_slice %275 {offsets = [0, 0], sizes = [1, 128], strides = [1, 1]} : vector<1x384xf32> to vector<1x128xf32>
    %278 = arith.addf %276, %277 : vector<1x128xf32>
    %279 = arith.negf %278 : vector<1x128xf32>
    %280 = math.exp %279 : vector<1x128xf32>
    %cst_91 = arith.constant 1.000000e+00 : f32
    %281 = vector.broadcast %cst_91 : f32 to vector<1x128xf32>
    %282 = arith.addf %281, %280 : vector<1x128xf32>
    %283 = arith.divf %281, %282 : vector<1x128xf32>
    %284 = vector.extract_strided_slice %272 {offsets = [0, 128], sizes = [1, 128], strides = [1, 1]} : vector<1x384xf32> to vector<1x128xf32>
    %285 = vector.extract_strided_slice %275 {offsets = [0, 128], sizes = [1, 128], strides = [1, 1]} : vector<1x384xf32> to vector<1x128xf32>
    %286 = arith.addf %284, %285 : vector<1x128xf32>
    %287 = arith.negf %286 : vector<1x128xf32>
    %288 = math.exp %287 : vector<1x128xf32>
    %cst_92 = arith.constant 1.000000e+00 : f32
    %289 = vector.broadcast %cst_92 : f32 to vector<1x128xf32>
    %290 = arith.addf %289, %288 : vector<1x128xf32>
    %291 = arith.divf %289, %290 : vector<1x128xf32>
    %292 = vector.extract_strided_slice %272 {offsets = [0, 256], sizes = [1, 128], strides = [1, 1]} : vector<1x384xf32> to vector<1x128xf32>
    %293 = vector.extract_strided_slice %275 {offsets = [0, 256], sizes = [1, 128], strides = [1, 1]} : vector<1x384xf32> to vector<1x128xf32>
    %294 = arith.mulf %283, %293 : vector<1x128xf32>
    %295 = arith.addf %292, %294 : vector<1x128xf32>
    %296 = math.tanh %295 : vector<1x128xf32>
    %cst_93 = arith.constant 1.000000e+00 : f32
    %297 = vector.broadcast %cst_93 : f32 to vector<1x128xf32>
    %298 = arith.subf %297, %291 : vector<1x128xf32>
    %299 = arith.mulf %298, %296 : vector<1x128xf32>
    %300 = arith.mulf %291, %268 : vector<1x128xf32>
    %301 = arith.addf %299, %300 : vector<1x128xf32>
    %c8_i32 = arith.constant 8 : i32
    %302 = arith.index_cast %c8_i32 : i32 to index
    %c0_94 = arith.constant 0 : index
    %303 = vector.load %arg11[%302, %c0_94] : memref<128x128xf32, #tpu.memory_space<vmem>>, vector<1x128xf32>
    tpu.vector_store %arg11[%302, %c0_94], %301 {strides = array<i32>} : memref<128x128xf32, #tpu.memory_space<vmem>>, vector<1x128xf32>,
    %304 = arith.index_cast %c8_i32 : i32 to index
    %c0_95 = arith.constant 0 : index
    %305 = vector.load %arg10[%304, %c0_95] : memref<128x384xf32, #tpu.memory_space<vmem>>, vector<1x384xf32>
    %c0_96 = arith.constant 0 : index
    %c0_97 = arith.constant 0 : index
    %306 = vector.load %arg5[%c0_96, %c0_97] : memref<128x384xf32, #tpu.memory_space<vmem>>, vector<128x384xf32>
    %cst_98 = arith.constant dense<0.000000e+00> : vector<1x384xf32>
    %307 = tpu.matmul %301, %306, %cst_98 {dimension_numbers = #tpu.dot_dimension_numbers<[1], [0], [0], [1], [0, 0, 1, 1], [], []>} : vector<1x128xf32>, vector<128x384xf32>, vector<1x384xf32> -> vector<1x384xf32>
    %308 = arith.addf %307, %6 : vector<1x384xf32>
    %309 = vector.extract_strided_slice %305 {offsets = [0, 0], sizes = [1, 128], strides = [1, 1]} : vector<1x384xf32> to vector<1x128xf32>
    %310 = vector.extract_strided_slice %308 {offsets = [0, 0], sizes = [1, 128], strides = [1, 1]} : vector<1x384xf32> to vector<1x128xf32>
    %311 = arith.addf %309, %310 : vector<1x128xf32>
    %312 = arith.negf %311 : vector<1x128xf32>
    %313 = math.exp %312 : vector<1x128xf32>
    %cst_99 = arith.constant 1.000000e+00 : f32
    %314 = vector.broadcast %cst_99 : f32 to vector<1x128xf32>
    %315 = arith.addf %314, %313 : vector<1x128xf32>
    %316 = arith.divf %314, %315 : vector<1x128xf32>
    %317 = vector.extract_strided_slice %305 {offsets = [0, 128], sizes = [1, 128], strides = [1, 1]} : vector<1x384xf32> to vector<1x128xf32>
    %318 = vector.extract_strided_slice %308 {offsets = [0, 128], sizes = [1, 128], strides = [1, 1]} : vector<1x384xf32> to vector<1x128xf32>
    %319 = arith.addf %317, %318 : vector<1x128xf32>
    %320 = arith.negf %319 : vector<1x128xf32>
    %321 = math.exp %320 : vector<1x128xf32>
    %cst_100 = arith.constant 1.000000e+00 : f32
    %322 = vector.broadcast %cst_100 : f32 to vector<1x128xf32>
    %323 = arith.addf %322, %321 : vector<1x128xf32>
    %324 = arith.divf %322, %323 : vector<1x128xf32>
    %325 = vector.extract_strided_slice %305 {offsets = [0, 256], sizes = [1, 128], strides = [1, 1]} : vector<1x384xf32> to vector<1x128xf32>
    %326 = vector.extract_strided_slice %308 {offsets = [0, 256], sizes = [1, 128], strides = [1, 1]} : vector<1x384xf32> to vector<1x128xf32>
    %327 = arith.mulf %316, %326 : vector<1x128xf32>
    %328 = arith.addf %325, %327 : vector<1x128xf32>
    %329 = math.tanh %328 : vector<1x128xf32>
    %cst_101 = arith.constant 1.000000e+00 : f32
    %330 = vector.broadcast %cst_101 : f32 to vector<1x128xf32>
    %331 = arith.subf %330, %324 : vector<1x128xf32>
    %332 = arith.mulf %331, %329 : vector<1x128xf32>
    %333 = arith.mulf %324, %301 : vector<1x128xf32>
    %334 = arith.addf %332, %333 : vector<1x128xf32>
    %c9_i32 = arith.constant 9 : i32
    %335 = arith.index_cast %c9_i32 : i32 to index
    %c0_102 = arith.constant 0 : index
    %336 = vector.load %arg11[%335, %c0_102] : memref<128x128xf32, #tpu.memory_space<vmem>>, vector<1x128xf32>
    tpu.vector_store %arg11[%335, %c0_102], %334 {strides = array<i32>} : memref<128x128xf32, #tpu.memory_space<vmem>>, vector<1x128xf32>,
    %337 = arith.index_cast %c9_i32 : i32 to index
    %c0_103 = arith.constant 0 : index
    %338 = vector.load %arg10[%337, %c0_103] : memref<128x384xf32, #tpu.memory_space<vmem>>, vector<1x384xf32>
    %c0_104 = arith.constant 0 : index
    %c0_105 = arith.constant 0 : index
    %339 = vector.load %arg5[%c0_104, %c0_105] : memref<128x384xf32, #tpu.memory_space<vmem>>, vector<128x384xf32>
    %cst_106 = arith.constant dense<0.000000e+00> : vector<1x384xf32>
    %340 = tpu.matmul %334, %339, %cst_106 {dimension_numbers = #tpu.dot_dimension_numbers<[1], [0], [0], [1], [0, 0, 1, 1], [], []>} : vector<1x128xf32>, vector<128x384xf32>, vector<1x384xf32> -> vector<1x384xf32>
    %341 = arith.addf %340, %6 : vector<1x384xf32>
    %342 = vector.extract_strided_slice %338 {offsets = [0, 0], sizes = [1, 128], strides = [1, 1]} : vector<1x384xf32> to vector<1x128xf32>
    %343 = vector.extract_strided_slice %341 {offsets = [0, 0], sizes = [1, 128], strides = [1, 1]} : vector<1x384xf32> to vector<1x128xf32>
    %344 = arith.addf %342, %343 : vector<1x128xf32>
    %345 = arith.negf %344 : vector<1x128xf32>
    %346 = math.exp %345 : vector<1x128xf32>
    %cst_107 = arith.constant 1.000000e+00 : f32
    %347 = vector.broadcast %cst_107 : f32 to vector<1x128xf32>
    %348 = arith.addf %347, %346 : vector<1x128xf32>
    %349 = arith.divf %347, %348 : vector<1x128xf32>
    %350 = vector.extract_strided_slice %338 {offsets = [0, 128], sizes = [1, 128], strides = [1, 1]} : vector<1x384xf32> to vector<1x128xf32>
    %351 = vector.extract_strided_slice %341 {offsets = [0, 128], sizes = [1, 128], strides = [1, 1]} : vector<1x384xf32> to vector<1x128xf32>
    %352 = arith.addf %350, %351 : vector<1x128xf32>
    %353 = arith.negf %352 : vector<1x128xf32>
    %354 = math.exp %353 : vector<1x128xf32>
    %cst_108 = arith.constant 1.000000e+00 : f32
    %355 = vector.broadcast %cst_108 : f32 to vector<1x128xf32>
    %356 = arith.addf %355, %354 : vector<1x128xf32>
    %357 = arith.divf %355, %356 : vector<1x128xf32>
    %358 = vector.extract_strided_slice %338 {offsets = [0, 256], sizes = [1, 128], strides = [1, 1]} : vector<1x384xf32> to vector<1x128xf32>
    %359 = vector.extract_strided_slice %341 {offsets = [0, 256], sizes = [1, 128], strides = [1, 1]} : vector<1x384xf32> to vector<1x128xf32>
    %360 = arith.mulf %349, %359 : vector<1x128xf32>
    %361 = arith.addf %358, %360 : vector<1x128xf32>
    %362 = math.tanh %361 : vector<1x128xf32>
    %cst_109 = arith.constant 1.000000e+00 : f32
    %363 = vector.broadcast %cst_109 : f32 to vector<1x128xf32>
    %364 = arith.subf %363, %357 : vector<1x128xf32>
    %365 = arith.mulf %364, %362 : vector<1x128xf32>
    %366 = arith.mulf %357, %334 : vector<1x128xf32>
    %367 = arith.addf %365, %366 : vector<1x128xf32>
    %c10_i32 = arith.constant 10 : i32
    %368 = arith.index_cast %c10_i32 : i32 to index
    %c0_110 = arith.constant 0 : index
    %369 = vector.load %arg11[%368, %c0_110] : memref<128x128xf32, #tpu.memory_space<vmem>>, vector<1x128xf32>
    tpu.vector_store %arg11[%368, %c0_110], %367 {strides = array<i32>} : memref<128x128xf32, #tpu.memory_space<vmem>>, vector<1x128xf32>,
    %370 = arith.index_cast %c10_i32 : i32 to index
    %c0_111 = arith.constant 0 : index
    %371 = vector.load %arg10[%370, %c0_111] : memref<128x384xf32, #tpu.memory_space<vmem>>, vector<1x384xf32>
    %c0_112 = arith.constant 0 : index
    %c0_113 = arith.constant 0 : index
    %372 = vector.load %arg5[%c0_112, %c0_113] : memref<128x384xf32, #tpu.memory_space<vmem>>, vector<128x384xf32>
    %cst_114 = arith.constant dense<0.000000e+00> : vector<1x384xf32>
    %373 = tpu.matmul %367, %372, %cst_114 {dimension_numbers = #tpu.dot_dimension_numbers<[1], [0], [0], [1], [0, 0, 1, 1], [], []>} : vector<1x128xf32>, vector<128x384xf32>, vector<1x384xf32> -> vector<1x384xf32>
    %374 = arith.addf %373, %6 : vector<1x384xf32>
    %375 = vector.extract_strided_slice %371 {offsets = [0, 0], sizes = [1, 128], strides = [1, 1]} : vector<1x384xf32> to vector<1x128xf32>
    %376 = vector.extract_strided_slice %374 {offsets = [0, 0], sizes = [1, 128], strides = [1, 1]} : vector<1x384xf32> to vector<1x128xf32>
    %377 = arith.addf %375, %376 : vector<1x128xf32>
    %378 = arith.negf %377 : vector<1x128xf32>
    %379 = math.exp %378 : vector<1x128xf32>
    %cst_115 = arith.constant 1.000000e+00 : f32
    %380 = vector.broadcast %cst_115 : f32 to vector<1x128xf32>
    %381 = arith.addf %380, %379 : vector<1x128xf32>
    %382 = arith.divf %380, %381 : vector<1x128xf32>
    %383 = vector.extract_strided_slice %371 {offsets = [0, 128], sizes = [1, 128], strides = [1, 1]} : vector<1x384xf32> to vector<1x128xf32>
    %384 = vector.extract_strided_slice %374 {offsets = [0, 128], sizes = [1, 128], strides = [1, 1]} : vector<1x384xf32> to vector<1x128xf32>
    %385 = arith.addf %383, %384 : vector<1x128xf32>
    %386 = arith.negf %385 : vector<1x128xf32>
    %387 = math.exp %386 : vector<1x128xf32>
    %cst_116 = arith.constant 1.000000e+00 : f32
    %388 = vector.broadcast %cst_116 : f32 to vector<1x128xf32>
    %389 = arith.addf %388, %387 : vector<1x128xf32>
    %390 = arith.divf %388, %389 : vector<1x128xf32>
    %391 = vector.extract_strided_slice %371 {offsets = [0, 256], sizes = [1, 128], strides = [1, 1]} : vector<1x384xf32> to vector<1x128xf32>
    %392 = vector.extract_strided_slice %374 {offsets = [0, 256], sizes = [1, 128], strides = [1, 1]} : vector<1x384xf32> to vector<1x128xf32>
    %393 = arith.mulf %382, %392 : vector<1x128xf32>
    %394 = arith.addf %391, %393 : vector<1x128xf32>
    %395 = math.tanh %394 : vector<1x128xf32>
    %cst_117 = arith.constant 1.000000e+00 : f32
    %396 = vector.broadcast %cst_117 : f32 to vector<1x128xf32>
    %397 = arith.subf %396, %390 : vector<1x128xf32>
    %398 = arith.mulf %397, %395 : vector<1x128xf32>
    %399 = arith.mulf %390, %367 : vector<1x128xf32>
    %400 = arith.addf %398, %399 : vector<1x128xf32>
    %c11_i32 = arith.constant 11 : i32
    %401 = arith.index_cast %c11_i32 : i32 to index
    %c0_118 = arith.constant 0 : index
    %402 = vector.load %arg11[%401, %c0_118] : memref<128x128xf32, #tpu.memory_space<vmem>>, vector<1x128xf32>
    tpu.vector_store %arg11[%401, %c0_118], %400 {strides = array<i32>} : memref<128x128xf32, #tpu.memory_space<vmem>>, vector<1x128xf32>,
    %403 = arith.index_cast %c11_i32 : i32 to index
    %c0_119 = arith.constant 0 : index
    %404 = vector.load %arg10[%403, %c0_119] : memref<128x384xf32, #tpu.memory_space<vmem>>, vector<1x384xf32>
    %c0_120 = arith.constant 0 : index
    %c0_121 = arith.constant 0 : index
    %405 = vector.load %arg5[%c0_120, %c0_121] : memref<128x384xf32, #tpu.memory_space<vmem>>, vector<128x384xf32>
    %cst_122 = arith.constant dense<0.000000e+00> : vector<1x384xf32>
    %406 = tpu.matmul %400, %405, %cst_122 {dimension_numbers = #tpu.dot_dimension_numbers<[1], [0], [0], [1], [0, 0, 1, 1], [], []>} : vector<1x128xf32>, vector<128x384xf32>, vector<1x384xf32> -> vector<1x384xf32>
    %407 = arith.addf %406, %6 : vector<1x384xf32>
    %408 = vector.extract_strided_slice %404 {offsets = [0, 0], sizes = [1, 128], strides = [1, 1]} : vector<1x384xf32> to vector<1x128xf32>
    %409 = vector.extract_strided_slice %407 {offsets = [0, 0], sizes = [1, 128], strides = [1, 1]} : vector<1x384xf32> to vector<1x128xf32>
    %410 = arith.addf %408, %409 : vector<1x128xf32>
    %411 = arith.negf %410 : vector<1x128xf32>
    %412 = math.exp %411 : vector<1x128xf32>
    %cst_123 = arith.constant 1.000000e+00 : f32
    %413 = vector.broadcast %cst_123 : f32 to vector<1x128xf32>
    %414 = arith.addf %413, %412 : vector<1x128xf32>
    %415 = arith.divf %413, %414 : vector<1x128xf32>
    %416 = vector.extract_strided_slice %404 {offsets = [0, 128], sizes = [1, 128], strides = [1, 1]} : vector<1x384xf32> to vector<1x128xf32>
    %417 = vector.extract_strided_slice %407 {offsets = [0, 128], sizes = [1, 128], strides = [1, 1]} : vector<1x384xf32> to vector<1x128xf32>
    %418 = arith.addf %416, %417 : vector<1x128xf32>
    %419 = arith.negf %418 : vector<1x128xf32>
    %420 = math.exp %419 : vector<1x128xf32>
    %cst_124 = arith.constant 1.000000e+00 : f32
    %421 = vector.broadcast %cst_124 : f32 to vector<1x128xf32>
    %422 = arith.addf %421, %420 : vector<1x128xf32>
    %423 = arith.divf %421, %422 : vector<1x128xf32>
    %424 = vector.extract_strided_slice %404 {offsets = [0, 256], sizes = [1, 128], strides = [1, 1]} : vector<1x384xf32> to vector<1x128xf32>
    %425 = vector.extract_strided_slice %407 {offsets = [0, 256], sizes = [1, 128], strides = [1, 1]} : vector<1x384xf32> to vector<1x128xf32>
    %426 = arith.mulf %415, %425 : vector<1x128xf32>
    %427 = arith.addf %424, %426 : vector<1x128xf32>
    %428 = math.tanh %427 : vector<1x128xf32>
    %cst_125 = arith.constant 1.000000e+00 : f32
    %429 = vector.broadcast %cst_125 : f32 to vector<1x128xf32>
    %430 = arith.subf %429, %423 : vector<1x128xf32>
    %431 = arith.mulf %430, %428 : vector<1x128xf32>
    %432 = arith.mulf %423, %400 : vector<1x128xf32>
    %433 = arith.addf %431, %432 : vector<1x128xf32>
    %c12_i32 = arith.constant 12 : i32
    %434 = arith.index_cast %c12_i32 : i32 to index
    %c0_126 = arith.constant 0 : index
    %435 = vector.load %arg11[%434, %c0_126] : memref<128x128xf32, #tpu.memory_space<vmem>>, vector<1x128xf32>
    tpu.vector_store %arg11[%434, %c0_126], %433 {strides = array<i32>} : memref<128x128xf32, #tpu.memory_space<vmem>>, vector<1x128xf32>,
    %436 = arith.index_cast %c12_i32 : i32 to index
    %c0_127 = arith.constant 0 : index
    %437 = vector.load %arg10[%436, %c0_127] : memref<128x384xf32, #tpu.memory_space<vmem>>, vector<1x384xf32>
    %c0_128 = arith.constant 0 : index
    %c0_129 = arith.constant 0 : index
    %438 = vector.load %arg5[%c0_128, %c0_129] : memref<128x384xf32, #tpu.memory_space<vmem>>, vector<128x384xf32>
    %cst_130 = arith.constant dense<0.000000e+00> : vector<1x384xf32>
    %439 = tpu.matmul %433, %438, %cst_130 {dimension_numbers = #tpu.dot_dimension_numbers<[1], [0], [0], [1], [0, 0, 1, 1], [], []>} : vector<1x128xf32>, vector<128x384xf32>, vector<1x384xf32> -> vector<1x384xf32>
    %440 = arith.addf %439, %6 : vector<1x384xf32>
    %441 = vector.extract_strided_slice %437 {offsets = [0, 0], sizes = [1, 128], strides = [1, 1]} : vector<1x384xf32> to vector<1x128xf32>
    %442 = vector.extract_strided_slice %440 {offsets = [0, 0], sizes = [1, 128], strides = [1, 1]} : vector<1x384xf32> to vector<1x128xf32>
    %443 = arith.addf %441, %442 : vector<1x128xf32>
    %444 = arith.negf %443 : vector<1x128xf32>
    %445 = math.exp %444 : vector<1x128xf32>
    %cst_131 = arith.constant 1.000000e+00 : f32
    %446 = vector.broadcast %cst_131 : f32 to vector<1x128xf32>
    %447 = arith.addf %446, %445 : vector<1x128xf32>
    %448 = arith.divf %446, %447 : vector<1x128xf32>
    %449 = vector.extract_strided_slice %437 {offsets = [0, 128], sizes = [1, 128], strides = [1, 1]} : vector<1x384xf32> to vector<1x128xf32>
    %450 = vector.extract_strided_slice %440 {offsets = [0, 128], sizes = [1, 128], strides = [1, 1]} : vector<1x384xf32> to vector<1x128xf32>
    %451 = arith.addf %449, %450 : vector<1x128xf32>
    %452 = arith.negf %451 : vector<1x128xf32>
    %453 = math.exp %452 : vector<1x128xf32>
    %cst_132 = arith.constant 1.000000e+00 : f32
    %454 = vector.broadcast %cst_132 : f32 to vector<1x128xf32>
    %455 = arith.addf %454, %453 : vector<1x128xf32>
    %456 = arith.divf %454, %455 : vector<1x128xf32>
    %457 = vector.extract_strided_slice %437 {offsets = [0, 256], sizes = [1, 128], strides = [1, 1]} : vector<1x384xf32> to vector<1x128xf32>
    %458 = vector.extract_strided_slice %440 {offsets = [0, 256], sizes = [1, 128], strides = [1, 1]} : vector<1x384xf32> to vector<1x128xf32>
    %459 = arith.mulf %448, %458 : vector<1x128xf32>
    %460 = arith.addf %457, %459 : vector<1x128xf32>
    %461 = math.tanh %460 : vector<1x128xf32>
    %cst_133 = arith.constant 1.000000e+00 : f32
    %462 = vector.broadcast %cst_133 : f32 to vector<1x128xf32>
    %463 = arith.subf %462, %456 : vector<1x128xf32>
    %464 = arith.mulf %463, %461 : vector<1x128xf32>
    %465 = arith.mulf %456, %433 : vector<1x128xf32>
    %466 = arith.addf %464, %465 : vector<1x128xf32>
    %c13_i32 = arith.constant 13 : i32
    %467 = arith.index_cast %c13_i32 : i32 to index
    %c0_134 = arith.constant 0 : index
    %468 = vector.load %arg11[%467, %c0_134] : memref<128x128xf32, #tpu.memory_space<vmem>>, vector<1x128xf32>
    tpu.vector_store %arg11[%467, %c0_134], %466 {strides = array<i32>} : memref<128x128xf32, #tpu.memory_space<vmem>>, vector<1x128xf32>,
    %469 = arith.index_cast %c13_i32 : i32 to index
    %c0_135 = arith.constant 0 : index
    %470 = vector.load %arg10[%469, %c0_135] : memref<128x384xf32, #tpu.memory_space<vmem>>, vector<1x384xf32>
    %c0_136 = arith.constant 0 : index
    %c0_137 = arith.constant 0 : index
    %471 = vector.load %arg5[%c0_136, %c0_137] : memref<128x384xf32, #tpu.memory_space<vmem>>, vector<128x384xf32>
    %cst_138 = arith.constant dense<0.000000e+00> : vector<1x384xf32>
    %472 = tpu.matmul %466, %471, %cst_138 {dimension_numbers = #tpu.dot_dimension_numbers<[1], [0], [0], [1], [0, 0, 1, 1], [], []>} : vector<1x128xf32>, vector<128x384xf32>, vector<1x384xf32> -> vector<1x384xf32>
    %473 = arith.addf %472, %6 : vector<1x384xf32>
    %474 = vector.extract_strided_slice %470 {offsets = [0, 0], sizes = [1, 128], strides = [1, 1]} : vector<1x384xf32> to vector<1x128xf32>
    %475 = vector.extract_strided_slice %473 {offsets = [0, 0], sizes = [1, 128], strides = [1, 1]} : vector<1x384xf32> to vector<1x128xf32>
    %476 = arith.addf %474, %475 : vector<1x128xf32>
    %477 = arith.negf %476 : vector<1x128xf32>
    %478 = math.exp %477 : vector<1x128xf32>
    %cst_139 = arith.constant 1.000000e+00 : f32
    %479 = vector.broadcast %cst_139 : f32 to vector<1x128xf32>
    %480 = arith.addf %479, %478 : vector<1x128xf32>
    %481 = arith.divf %479, %480 : vector<1x128xf32>
    %482 = vector.extract_strided_slice %470 {offsets = [0, 128], sizes = [1, 128], strides = [1, 1]} : vector<1x384xf32> to vector<1x128xf32>
    %483 = vector.extract_strided_slice %473 {offsets = [0, 128], sizes = [1, 128], strides = [1, 1]} : vector<1x384xf32> to vector<1x128xf32>
    %484 = arith.addf %482, %483 : vector<1x128xf32>
    %485 = arith.negf %484 : vector<1x128xf32>
    %486 = math.exp %485 : vector<1x128xf32>
    %cst_140 = arith.constant 1.000000e+00 : f32
    %487 = vector.broadcast %cst_140 : f32 to vector<1x128xf32>
    %488 = arith.addf %487, %486 : vector<1x128xf32>
    %489 = arith.divf %487, %488 : vector<1x128xf32>
    %490 = vector.extract_strided_slice %470 {offsets = [0, 256], sizes = [1, 128], strides = [1, 1]} : vector<1x384xf32> to vector<1x128xf32>
    %491 = vector.extract_strided_slice %473 {offsets = [0, 256], sizes = [1, 128], strides = [1, 1]} : vector<1x384xf32> to vector<1x128xf32>
    %492 = arith.mulf %481, %491 : vector<1x128xf32>
    %493 = arith.addf %490, %492 : vector<1x128xf32>
    %494 = math.tanh %493 : vector<1x128xf32>
    %cst_141 = arith.constant 1.000000e+00 : f32
    %495 = vector.broadcast %cst_141 : f32 to vector<1x128xf32>
    %496 = arith.subf %495, %489 : vector<1x128xf32>
    %497 = arith.mulf %496, %494 : vector<1x128xf32>
    %498 = arith.mulf %489, %466 : vector<1x128xf32>
    %499 = arith.addf %497, %498 : vector<1x128xf32>
    %c14_i32 = arith.constant 14 : i32
    %500 = arith.index_cast %c14_i32 : i32 to index
    %c0_142 = arith.constant 0 : index
    %501 = vector.load %arg11[%500, %c0_142] : memref<128x128xf32, #tpu.memory_space<vmem>>, vector<1x128xf32>
    tpu.vector_store %arg11[%500, %c0_142], %499 {strides = array<i32>} : memref<128x128xf32, #tpu.memory_space<vmem>>, vector<1x128xf32>,
    %502 = arith.index_cast %c14_i32 : i32 to index
    %c0_143 = arith.constant 0 : index
    %503 = vector.load %arg10[%502, %c0_143] : memref<128x384xf32, #tpu.memory_space<vmem>>, vector<1x384xf32>
    %c0_144 = arith.constant 0 : index
    %c0_145 = arith.constant 0 : index
    %504 = vector.load %arg5[%c0_144, %c0_145] : memref<128x384xf32, #tpu.memory_space<vmem>>, vector<128x384xf32>
    %cst_146 = arith.constant dense<0.000000e+00> : vector<1x384xf32>
    %505 = tpu.matmul %499, %504, %cst_146 {dimension_numbers = #tpu.dot_dimension_numbers<[1], [0], [0], [1], [0, 0, 1, 1], [], []>} : vector<1x128xf32>, vector<128x384xf32>, vector<1x384xf32> -> vector<1x384xf32>
    %506 = arith.addf %505, %6 : vector<1x384xf32>
    %507 = vector.extract_strided_slice %503 {offsets = [0, 0], sizes = [1, 128], strides = [1, 1]} : vector<1x384xf32> to vector<1x128xf32>
    %508 = vector.extract_strided_slice %506 {offsets = [0, 0], sizes = [1, 128], strides = [1, 1]} : vector<1x384xf32> to vector<1x128xf32>
    %509 = arith.addf %507, %508 : vector<1x128xf32>
    %510 = arith.negf %509 : vector<1x128xf32>
    %511 = math.exp %510 : vector<1x128xf32>
    %cst_147 = arith.constant 1.000000e+00 : f32
    %512 = vector.broadcast %cst_147 : f32 to vector<1x128xf32>
    %513 = arith.addf %512, %511 : vector<1x128xf32>
    %514 = arith.divf %512, %513 : vector<1x128xf32>
    %515 = vector.extract_strided_slice %503 {offsets = [0, 128], sizes = [1, 128], strides = [1, 1]} : vector<1x384xf32> to vector<1x128xf32>
    %516 = vector.extract_strided_slice %506 {offsets = [0, 128], sizes = [1, 128], strides = [1, 1]} : vector<1x384xf32> to vector<1x128xf32>
    %517 = arith.addf %515, %516 : vector<1x128xf32>
    %518 = arith.negf %517 : vector<1x128xf32>
    %519 = math.exp %518 : vector<1x128xf32>
    %cst_148 = arith.constant 1.000000e+00 : f32
    %520 = vector.broadcast %cst_148 : f32 to vector<1x128xf32>
    %521 = arith.addf %520, %519 : vector<1x128xf32>
    %522 = arith.divf %520, %521 : vector<1x128xf32>
    %523 = vector.extract_strided_slice %503 {offsets = [0, 256], sizes = [1, 128], strides = [1, 1]} : vector<1x384xf32> to vector<1x128xf32>
    %524 = vector.extract_strided_slice %506 {offsets = [0, 256], sizes = [1, 128], strides = [1, 1]} : vector<1x384xf32> to vector<1x128xf32>
    %525 = arith.mulf %514, %524 : vector<1x128xf32>
    %526 = arith.addf %523, %525 : vector<1x128xf32>
    %527 = math.tanh %526 : vector<1x128xf32>
    %cst_149 = arith.constant 1.000000e+00 : f32
    %528 = vector.broadcast %cst_149 : f32 to vector<1x128xf32>
    %529 = arith.subf %528, %522 : vector<1x128xf32>
    %530 = arith.mulf %529, %527 : vector<1x128xf32>
    %531 = arith.mulf %522, %499 : vector<1x128xf32>
    %532 = arith.addf %530, %531 : vector<1x128xf32>
    %c15_i32 = arith.constant 15 : i32
    %533 = arith.index_cast %c15_i32 : i32 to index
    %c0_150 = arith.constant 0 : index
    %534 = vector.load %arg11[%533, %c0_150] : memref<128x128xf32, #tpu.memory_space<vmem>>, vector<1x128xf32>
    tpu.vector_store %arg11[%533, %c0_150], %532 {strides = array<i32>} : memref<128x128xf32, #tpu.memory_space<vmem>>, vector<1x128xf32>,
    %535 = arith.index_cast %c15_i32 : i32 to index
    %c0_151 = arith.constant 0 : index
    %536 = vector.load %arg10[%535, %c0_151] : memref<128x384xf32, #tpu.memory_space<vmem>>, vector<1x384xf32>
    %c0_152 = arith.constant 0 : index
    %c0_153 = arith.constant 0 : index
    %537 = vector.load %arg5[%c0_152, %c0_153] : memref<128x384xf32, #tpu.memory_space<vmem>>, vector<128x384xf32>
    %cst_154 = arith.constant dense<0.000000e+00> : vector<1x384xf32>
    %538 = tpu.matmul %532, %537, %cst_154 {dimension_numbers = #tpu.dot_dimension_numbers<[1], [0], [0], [1], [0, 0, 1, 1], [], []>} : vector<1x128xf32>, vector<128x384xf32>, vector<1x384xf32> -> vector<1x384xf32>
    %539 = arith.addf %538, %6 : vector<1x384xf32>
    %540 = vector.extract_strided_slice %536 {offsets = [0, 0], sizes = [1, 128], strides = [1, 1]} : vector<1x384xf32> to vector<1x128xf32>
    %541 = vector.extract_strided_slice %539 {offsets = [0, 0], sizes = [1, 128], strides = [1, 1]} : vector<1x384xf32> to vector<1x128xf32>
    %542 = arith.addf %540, %541 : vector<1x128xf32>
    %543 = arith.negf %542 : vector<1x128xf32>
    %544 = math.exp %543 : vector<1x128xf32>
    %cst_155 = arith.constant 1.000000e+00 : f32
    %545 = vector.broadcast %cst_155 : f32 to vector<1x128xf32>
    %546 = arith.addf %545, %544 : vector<1x128xf32>
    %547 = arith.divf %545, %546 : vector<1x128xf32>
    %548 = vector.extract_strided_slice %536 {offsets = [0, 128], sizes = [1, 128], strides = [1, 1]} : vector<1x384xf32> to vector<1x128xf32>
    %549 = vector.extract_strided_slice %539 {offsets = [0, 128], sizes = [1, 128], strides = [1, 1]} : vector<1x384xf32> to vector<1x128xf32>
    %550 = arith.addf %548, %549 : vector<1x128xf32>
    %551 = arith.negf %550 : vector<1x128xf32>
    %552 = math.exp %551 : vector<1x128xf32>
    %cst_156 = arith.constant 1.000000e+00 : f32
    %553 = vector.broadcast %cst_156 : f32 to vector<1x128xf32>
    %554 = arith.addf %553, %552 : vector<1x128xf32>
    %555 = arith.divf %553, %554 : vector<1x128xf32>
    %556 = vector.extract_strided_slice %536 {offsets = [0, 256], sizes = [1, 128], strides = [1, 1]} : vector<1x384xf32> to vector<1x128xf32>
    %557 = vector.extract_strided_slice %539 {offsets = [0, 256], sizes = [1, 128], strides = [1, 1]} : vector<1x384xf32> to vector<1x128xf32>
    %558 = arith.mulf %547, %557 : vector<1x128xf32>
    %559 = arith.addf %556, %558 : vector<1x128xf32>
    %560 = math.tanh %559 : vector<1x128xf32>
    %cst_157 = arith.constant 1.000000e+00 : f32
    %561 = vector.broadcast %cst_157 : f32 to vector<1x128xf32>
    %562 = arith.subf %561, %555 : vector<1x128xf32>
    %563 = arith.mulf %562, %560 : vector<1x128xf32>
    %564 = arith.mulf %555, %532 : vector<1x128xf32>
    %565 = arith.addf %563, %564 : vector<1x128xf32>
    %c16_i32 = arith.constant 16 : i32
    %566 = arith.index_cast %c16_i32 : i32 to index
    %c0_158 = arith.constant 0 : index
    %567 = vector.load %arg11[%566, %c0_158] : memref<128x128xf32, #tpu.memory_space<vmem>>, vector<1x128xf32>
    tpu.vector_store %arg11[%566, %c0_158], %565 {strides = array<i32>} : memref<128x128xf32, #tpu.memory_space<vmem>>, vector<1x128xf32>,
    %568 = arith.index_cast %c16_i32 : i32 to index
    %c0_159 = arith.constant 0 : index
    %569 = vector.load %arg10[%568, %c0_159] : memref<128x384xf32, #tpu.memory_space<vmem>>, vector<1x384xf32>
    %c0_160 = arith.constant 0 : index
    %c0_161 = arith.constant 0 : index
    %570 = vector.load %arg5[%c0_160, %c0_161] : memref<128x384xf32, #tpu.memory_space<vmem>>, vector<128x384xf32>
    %cst_162 = arith.constant dense<0.000000e+00> : vector<1x384xf32>
    %571 = tpu.matmul %565, %570, %cst_162 {dimension_numbers = #tpu.dot_dimension_numbers<[1], [0], [0], [1], [0, 0, 1, 1], [], []>} : vector<1x128xf32>, vector<128x384xf32>, vector<1x384xf32> -> vector<1x384xf32>
    %572 = arith.addf %571, %6 : vector<1x384xf32>
    %573 = vector.extract_strided_slice %569 {offsets = [0, 0], sizes = [1, 128], strides = [1, 1]} : vector<1x384xf32> to vector<1x128xf32>
    %574 = vector.extract_strided_slice %572 {offsets = [0, 0], sizes = [1, 128], strides = [1, 1]} : vector<1x384xf32> to vector<1x128xf32>
    %575 = arith.addf %573, %574 : vector<1x128xf32>
    %576 = arith.negf %575 : vector<1x128xf32>
    %577 = math.exp %576 : vector<1x128xf32>
    %cst_163 = arith.constant 1.000000e+00 : f32
    %578 = vector.broadcast %cst_163 : f32 to vector<1x128xf32>
    %579 = arith.addf %578, %577 : vector<1x128xf32>
    %580 = arith.divf %578, %579 : vector<1x128xf32>
    %581 = vector.extract_strided_slice %569 {offsets = [0, 128], sizes = [1, 128], strides = [1, 1]} : vector<1x384xf32> to vector<1x128xf32>
    %582 = vector.extract_strided_slice %572 {offsets = [0, 128], sizes = [1, 128], strides = [1, 1]} : vector<1x384xf32> to vector<1x128xf32>
    %583 = arith.addf %581, %582 : vector<1x128xf32>
    %584 = arith.negf %583 : vector<1x128xf32>
    %585 = math.exp %584 : vector<1x128xf32>
    %cst_164 = arith.constant 1.000000e+00 : f32
    %586 = vector.broadcast %cst_164 : f32 to vector<1x128xf32>
    %587 = arith.addf %586, %585 : vector<1x128xf32>
    %588 = arith.divf %586, %587 : vector<1x128xf32>
    %589 = vector.extract_strided_slice %569 {offsets = [0, 256], sizes = [1, 128], strides = [1, 1]} : vector<1x384xf32> to vector<1x128xf32>
    %590 = vector.extract_strided_slice %572 {offsets = [0, 256], sizes = [1, 128], strides = [1, 1]} : vector<1x384xf32> to vector<1x128xf32>
    %591 = arith.mulf %580, %590 : vector<1x128xf32>
    %592 = arith.addf %589, %591 : vector<1x128xf32>
    %593 = math.tanh %592 : vector<1x128xf32>
    %cst_165 = arith.constant 1.000000e+00 : f32
    %594 = vector.broadcast %cst_165 : f32 to vector<1x128xf32>
    %595 = arith.subf %594, %588 : vector<1x128xf32>
    %596 = arith.mulf %595, %593 : vector<1x128xf32>
    %597 = arith.mulf %588, %565 : vector<1x128xf32>
    %598 = arith.addf %596, %597 : vector<1x128xf32>
    %c17_i32 = arith.constant 17 : i32
    %599 = arith.index_cast %c17_i32 : i32 to index
    %c0_166 = arith.constant 0 : index
    %600 = vector.load %arg11[%599, %c0_166] : memref<128x128xf32, #tpu.memory_space<vmem>>, vector<1x128xf32>
    tpu.vector_store %arg11[%599, %c0_166], %598 {strides = array<i32>} : memref<128x128xf32, #tpu.memory_space<vmem>>, vector<1x128xf32>,
    %601 = arith.index_cast %c17_i32 : i32 to index
    %c0_167 = arith.constant 0 : index
    %602 = vector.load %arg10[%601, %c0_167] : memref<128x384xf32, #tpu.memory_space<vmem>>, vector<1x384xf32>
    %c0_168 = arith.constant 0 : index
    %c0_169 = arith.constant 0 : index
    %603 = vector.load %arg5[%c0_168, %c0_169] : memref<128x384xf32, #tpu.memory_space<vmem>>, vector<128x384xf32>
    %cst_170 = arith.constant dense<0.000000e+00> : vector<1x384xf32>
    %604 = tpu.matmul %598, %603, %cst_170 {dimension_numbers = #tpu.dot_dimension_numbers<[1], [0], [0], [1], [0, 0, 1, 1], [], []>} : vector<1x128xf32>, vector<128x384xf32>, vector<1x384xf32> -> vector<1x384xf32>
    %605 = arith.addf %604, %6 : vector<1x384xf32>
    %606 = vector.extract_strided_slice %602 {offsets = [0, 0], sizes = [1, 128], strides = [1, 1]} : vector<1x384xf32> to vector<1x128xf32>
    %607 = vector.extract_strided_slice %605 {offsets = [0, 0], sizes = [1, 128], strides = [1, 1]} : vector<1x384xf32> to vector<1x128xf32>
    %608 = arith.addf %606, %607 : vector<1x128xf32>
    %609 = arith.negf %608 : vector<1x128xf32>
    %610 = math.exp %609 : vector<1x128xf32>
    %cst_171 = arith.constant 1.000000e+00 : f32
    %611 = vector.broadcast %cst_171 : f32 to vector<1x128xf32>
    %612 = arith.addf %611, %610 : vector<1x128xf32>
    %613 = arith.divf %611, %612 : vector<1x128xf32>
    %614 = vector.extract_strided_slice %602 {offsets = [0, 128], sizes = [1, 128], strides = [1, 1]} : vector<1x384xf32> to vector<1x128xf32>
    %615 = vector.extract_strided_slice %605 {offsets = [0, 128], sizes = [1, 128], strides = [1, 1]} : vector<1x384xf32> to vector<1x128xf32>
    %616 = arith.addf %614, %615 : vector<1x128xf32>
    %617 = arith.negf %616 : vector<1x128xf32>
    %618 = math.exp %617 : vector<1x128xf32>
    %cst_172 = arith.constant 1.000000e+00 : f32
    %619 = vector.broadcast %cst_172 : f32 to vector<1x128xf32>
    %620 = arith.addf %619, %618 : vector<1x128xf32>
    %621 = arith.divf %619, %620 : vector<1x128xf32>
    %622 = vector.extract_strided_slice %602 {offsets = [0, 256], sizes = [1, 128], strides = [1, 1]} : vector<1x384xf32> to vector<1x128xf32>
    %623 = vector.extract_strided_slice %605 {offsets = [0, 256], sizes = [1, 128], strides = [1, 1]} : vector<1x384xf32> to vector<1x128xf32>
    %624 = arith.mulf %613, %623 : vector<1x128xf32>
    %625 = arith.addf %622, %624 : vector<1x128xf32>
    %626 = math.tanh %625 : vector<1x128xf32>
    %cst_173 = arith.constant 1.000000e+00 : f32
    %627 = vector.broadcast %cst_173 : f32 to vector<1x128xf32>
    %628 = arith.subf %627, %621 : vector<1x128xf32>
    %629 = arith.mulf %628, %626 : vector<1x128xf32>
    %630 = arith.mulf %621, %598 : vector<1x128xf32>
    %631 = arith.addf %629, %630 : vector<1x128xf32>
    %c18_i32 = arith.constant 18 : i32
    %632 = arith.index_cast %c18_i32 : i32 to index
    %c0_174 = arith.constant 0 : index
    %633 = vector.load %arg11[%632, %c0_174] : memref<128x128xf32, #tpu.memory_space<vmem>>, vector<1x128xf32>
    tpu.vector_store %arg11[%632, %c0_174], %631 {strides = array<i32>} : memref<128x128xf32, #tpu.memory_space<vmem>>, vector<1x128xf32>,
    %634 = arith.index_cast %c18_i32 : i32 to index
    %c0_175 = arith.constant 0 : index
    %635 = vector.load %arg10[%634, %c0_175] : memref<128x384xf32, #tpu.memory_space<vmem>>, vector<1x384xf32>
    %c0_176 = arith.constant 0 : index
    %c0_177 = arith.constant 0 : index
    %636 = vector.load %arg5[%c0_176, %c0_177] : memref<128x384xf32, #tpu.memory_space<vmem>>, vector<128x384xf32>
    %cst_178 = arith.constant dense<0.000000e+00> : vector<1x384xf32>
    %637 = tpu.matmul %631, %636, %cst_178 {dimension_numbers = #tpu.dot_dimension_numbers<[1], [0], [0], [1], [0, 0, 1, 1], [], []>} : vector<1x128xf32>, vector<128x384xf32>, vector<1x384xf32> -> vector<1x384xf32>
    %638 = arith.addf %637, %6 : vector<1x384xf32>
    %639 = vector.extract_strided_slice %635 {offsets = [0, 0], sizes = [1, 128], strides = [1, 1]} : vector<1x384xf32> to vector<1x128xf32>
    %640 = vector.extract_strided_slice %638 {offsets = [0, 0], sizes = [1, 128], strides = [1, 1]} : vector<1x384xf32> to vector<1x128xf32>
    %641 = arith.addf %639, %640 : vector<1x128xf32>
    %642 = arith.negf %641 : vector<1x128xf32>
    %643 = math.exp %642 : vector<1x128xf32>
    %cst_179 = arith.constant 1.000000e+00 : f32
    %644 = vector.broadcast %cst_179 : f32 to vector<1x128xf32>
    %645 = arith.addf %644, %643 : vector<1x128xf32>
    %646 = arith.divf %644, %645 : vector<1x128xf32>
    %647 = vector.extract_strided_slice %635 {offsets = [0, 128], sizes = [1, 128], strides = [1, 1]} : vector<1x384xf32> to vector<1x128xf32>
    %648 = vector.extract_strided_slice %638 {offsets = [0, 128], sizes = [1, 128], strides = [1, 1]} : vector<1x384xf32> to vector<1x128xf32>
    %649 = arith.addf %647, %648 : vector<1x128xf32>
    %650 = arith.negf %649 : vector<1x128xf32>
    %651 = math.exp %650 : vector<1x128xf32>
    %cst_180 = arith.constant 1.000000e+00 : f32
    %652 = vector.broadcast %cst_180 : f32 to vector<1x128xf32>
    %653 = arith.addf %652, %651 : vector<1x128xf32>
    %654 = arith.divf %652, %653 : vector<1x128xf32>
    %655 = vector.extract_strided_slice %635 {offsets = [0, 256], sizes = [1, 128], strides = [1, 1]} : vector<1x384xf32> to vector<1x128xf32>
    %656 = vector.extract_strided_slice %638 {offsets = [0, 256], sizes = [1, 128], strides = [1, 1]} : vector<1x384xf32> to vector<1x128xf32>
    %657 = arith.mulf %646, %656 : vector<1x128xf32>
    %658 = arith.addf %655, %657 : vector<1x128xf32>
    %659 = math.tanh %658 : vector<1x128xf32>
    %cst_181 = arith.constant 1.000000e+00 : f32
    %660 = vector.broadcast %cst_181 : f32 to vector<1x128xf32>
    %661 = arith.subf %660, %654 : vector<1x128xf32>
    %662 = arith.mulf %661, %659 : vector<1x128xf32>
    %663 = arith.mulf %654, %631 : vector<1x128xf32>
    %664 = arith.addf %662, %663 : vector<1x128xf32>
    %c19_i32 = arith.constant 19 : i32
    %665 = arith.index_cast %c19_i32 : i32 to index
    %c0_182 = arith.constant 0 : index
    %666 = vector.load %arg11[%665, %c0_182] : memref<128x128xf32, #tpu.memory_space<vmem>>, vector<1x128xf32>
    tpu.vector_store %arg11[%665, %c0_182], %664 {strides = array<i32>} : memref<128x128xf32, #tpu.memory_space<vmem>>, vector<1x128xf32>,
    %667 = arith.index_cast %c19_i32 : i32 to index
    %c0_183 = arith.constant 0 : index
    %668 = vector.load %arg10[%667, %c0_183] : memref<128x384xf32, #tpu.memory_space<vmem>>, vector<1x384xf32>
    %c0_184 = arith.constant 0 : index
    %c0_185 = arith.constant 0 : index
    %669 = vector.load %arg5[%c0_184, %c0_185] : memref<128x384xf32, #tpu.memory_space<vmem>>, vector<128x384xf32>
    %cst_186 = arith.constant dense<0.000000e+00> : vector<1x384xf32>
    %670 = tpu.matmul %664, %669, %cst_186 {dimension_numbers = #tpu.dot_dimension_numbers<[1], [0], [0], [1], [0, 0, 1, 1], [], []>} : vector<1x128xf32>, vector<128x384xf32>, vector<1x384xf32> -> vector<1x384xf32>
    %671 = arith.addf %670, %6 : vector<1x384xf32>
    %672 = vector.extract_strided_slice %668 {offsets = [0, 0], sizes = [1, 128], strides = [1, 1]} : vector<1x384xf32> to vector<1x128xf32>
    %673 = vector.extract_strided_slice %671 {offsets = [0, 0], sizes = [1, 128], strides = [1, 1]} : vector<1x384xf32> to vector<1x128xf32>
    %674 = arith.addf %672, %673 : vector<1x128xf32>
    %675 = arith.negf %674 : vector<1x128xf32>
    %676 = math.exp %675 : vector<1x128xf32>
    %cst_187 = arith.constant 1.000000e+00 : f32
    %677 = vector.broadcast %cst_187 : f32 to vector<1x128xf32>
    %678 = arith.addf %677, %676 : vector<1x128xf32>
    %679 = arith.divf %677, %678 : vector<1x128xf32>
    %680 = vector.extract_strided_slice %668 {offsets = [0, 128], sizes = [1, 128], strides = [1, 1]} : vector<1x384xf32> to vector<1x128xf32>
    %681 = vector.extract_strided_slice %671 {offsets = [0, 128], sizes = [1, 128], strides = [1, 1]} : vector<1x384xf32> to vector<1x128xf32>
    %682 = arith.addf %680, %681 : vector<1x128xf32>
    %683 = arith.negf %682 : vector<1x128xf32>
    %684 = math.exp %683 : vector<1x128xf32>
    %cst_188 = arith.constant 1.000000e+00 : f32
    %685 = vector.broadcast %cst_188 : f32 to vector<1x128xf32>
    %686 = arith.addf %685, %684 : vector<1x128xf32>
    %687 = arith.divf %685, %686 : vector<1x128xf32>
    %688 = vector.extract_strided_slice %668 {offsets = [0, 256], sizes = [1, 128], strides = [1, 1]} : vector<1x384xf32> to vector<1x128xf32>
    %689 = vector.extract_strided_slice %671 {offsets = [0, 256], sizes = [1, 128], strides = [1, 1]} : vector<1x384xf32> to vector<1x128xf32>
    %690 = arith.mulf %679, %689 : vector<1x128xf32>
    %691 = arith.addf %688, %690 : vector<1x128xf32>
    %692 = math.tanh %691 : vector<1x128xf32>
    %cst_189 = arith.constant 1.000000e+00 : f32
    %693 = vector.broadcast %cst_189 : f32 to vector<1x128xf32>
    %694 = arith.subf %693, %687 : vector<1x128xf32>
    %695 = arith.mulf %694, %692 : vector<1x128xf32>
    %696 = arith.mulf %687, %664 : vector<1x128xf32>
    %697 = arith.addf %695, %696 : vector<1x128xf32>
    %c20_i32 = arith.constant 20 : i32
    %698 = arith.index_cast %c20_i32 : i32 to index
    %c0_190 = arith.constant 0 : index
    %699 = vector.load %arg11[%698, %c0_190] : memref<128x128xf32, #tpu.memory_space<vmem>>, vector<1x128xf32>
    tpu.vector_store %arg11[%698, %c0_190], %697 {strides = array<i32>} : memref<128x128xf32, #tpu.memory_space<vmem>>, vector<1x128xf32>,
    %700 = arith.index_cast %c20_i32 : i32 to index
    %c0_191 = arith.constant 0 : index
    %701 = vector.load %arg10[%700, %c0_191] : memref<128x384xf32, #tpu.memory_space<vmem>>, vector<1x384xf32>
    %c0_192 = arith.constant 0 : index
    %c0_193 = arith.constant 0 : index
    %702 = vector.load %arg5[%c0_192, %c0_193] : memref<128x384xf32, #tpu.memory_space<vmem>>, vector<128x384xf32>
    %cst_194 = arith.constant dense<0.000000e+00> : vector<1x384xf32>
    %703 = tpu.matmul %697, %702, %cst_194 {dimension_numbers = #tpu.dot_dimension_numbers<[1], [0], [0], [1], [0, 0, 1, 1], [], []>} : vector<1x128xf32>, vector<128x384xf32>, vector<1x384xf32> -> vector<1x384xf32>
    %704 = arith.addf %703, %6 : vector<1x384xf32>
    %705 = vector.extract_strided_slice %701 {offsets = [0, 0], sizes = [1, 128], strides = [1, 1]} : vector<1x384xf32> to vector<1x128xf32>
    %706 = vector.extract_strided_slice %704 {offsets = [0, 0], sizes = [1, 128], strides = [1, 1]} : vector<1x384xf32> to vector<1x128xf32>
    %707 = arith.addf %705, %706 : vector<1x128xf32>
    %708 = arith.negf %707 : vector<1x128xf32>
    %709 = math.exp %708 : vector<1x128xf32>
    %cst_195 = arith.constant 1.000000e+00 : f32
    %710 = vector.broadcast %cst_195 : f32 to vector<1x128xf32>
    %711 = arith.addf %710, %709 : vector<1x128xf32>
    %712 = arith.divf %710, %711 : vector<1x128xf32>
    %713 = vector.extract_strided_slice %701 {offsets = [0, 128], sizes = [1, 128], strides = [1, 1]} : vector<1x384xf32> to vector<1x128xf32>
    %714 = vector.extract_strided_slice %704 {offsets = [0, 128], sizes = [1, 128], strides = [1, 1]} : vector<1x384xf32> to vector<1x128xf32>
    %715 = arith.addf %713, %714 : vector<1x128xf32>
    %716 = arith.negf %715 : vector<1x128xf32>
    %717 = math.exp %716 : vector<1x128xf32>
    %cst_196 = arith.constant 1.000000e+00 : f32
    %718 = vector.broadcast %cst_196 : f32 to vector<1x128xf32>
    %719 = arith.addf %718, %717 : vector<1x128xf32>
    %720 = arith.divf %718, %719 : vector<1x128xf32>
    %721 = vector.extract_strided_slice %701 {offsets = [0, 256], sizes = [1, 128], strides = [1, 1]} : vector<1x384xf32> to vector<1x128xf32>
    %722 = vector.extract_strided_slice %704 {offsets = [0, 256], sizes = [1, 128], strides = [1, 1]} : vector<1x384xf32> to vector<1x128xf32>
    %723 = arith.mulf %712, %722 : vector<1x128xf32>
    %724 = arith.addf %721, %723 : vector<1x128xf32>
    %725 = math.tanh %724 : vector<1x128xf32>
    %cst_197 = arith.constant 1.000000e+00 : f32
    %726 = vector.broadcast %cst_197 : f32 to vector<1x128xf32>
    %727 = arith.subf %726, %720 : vector<1x128xf32>
    %728 = arith.mulf %727, %725 : vector<1x128xf32>
    %729 = arith.mulf %720, %697 : vector<1x128xf32>
    %730 = arith.addf %728, %729 : vector<1x128xf32>
    %c21_i32 = arith.constant 21 : i32
    %731 = arith.index_cast %c21_i32 : i32 to index
    %c0_198 = arith.constant 0 : index
    %732 = vector.load %arg11[%731, %c0_198] : memref<128x128xf32, #tpu.memory_space<vmem>>, vector<1x128xf32>
    tpu.vector_store %arg11[%731, %c0_198], %730 {strides = array<i32>} : memref<128x128xf32, #tpu.memory_space<vmem>>, vector<1x128xf32>,
    %733 = arith.index_cast %c21_i32 : i32 to index
    %c0_199 = arith.constant 0 : index
    %734 = vector.load %arg10[%733, %c0_199] : memref<128x384xf32, #tpu.memory_space<vmem>>, vector<1x384xf32>
    %c0_200 = arith.constant 0 : index
    %c0_201 = arith.constant 0 : index
    %735 = vector.load %arg5[%c0_200, %c0_201] : memref<128x384xf32, #tpu.memory_space<vmem>>, vector<128x384xf32>
    %cst_202 = arith.constant dense<0.000000e+00> : vector<1x384xf32>
    %736 = tpu.matmul %730, %735, %cst_202 {dimension_numbers = #tpu.dot_dimension_numbers<[1], [0], [0], [1], [0, 0, 1, 1], [], []>} : vector<1x128xf32>, vector<128x384xf32>, vector<1x384xf32> -> vector<1x384xf32>
    %737 = arith.addf %736, %6 : vector<1x384xf32>
    %738 = vector.extract_strided_slice %734 {offsets = [0, 0], sizes = [1, 128], strides = [1, 1]} : vector<1x384xf32> to vector<1x128xf32>
    %739 = vector.extract_strided_slice %737 {offsets = [0, 0], sizes = [1, 128], strides = [1, 1]} : vector<1x384xf32> to vector<1x128xf32>
    %740 = arith.addf %738, %739 : vector<1x128xf32>
    %741 = arith.negf %740 : vector<1x128xf32>
    %742 = math.exp %741 : vector<1x128xf32>
    %cst_203 = arith.constant 1.000000e+00 : f32
    %743 = vector.broadcast %cst_203 : f32 to vector<1x128xf32>
    %744 = arith.addf %743, %742 : vector<1x128xf32>
    %745 = arith.divf %743, %744 : vector<1x128xf32>
    %746 = vector.extract_strided_slice %734 {offsets = [0, 128], sizes = [1, 128], strides = [1, 1]} : vector<1x384xf32> to vector<1x128xf32>
    %747 = vector.extract_strided_slice %737 {offsets = [0, 128], sizes = [1, 128], strides = [1, 1]} : vector<1x384xf32> to vector<1x128xf32>
    %748 = arith.addf %746, %747 : vector<1x128xf32>
    %749 = arith.negf %748 : vector<1x128xf32>
    %750 = math.exp %749 : vector<1x128xf32>
    %cst_204 = arith.constant 1.000000e+00 : f32
    %751 = vector.broadcast %cst_204 : f32 to vector<1x128xf32>
    %752 = arith.addf %751, %750 : vector<1x128xf32>
    %753 = arith.divf %751, %752 : vector<1x128xf32>
    %754 = vector.extract_strided_slice %734 {offsets = [0, 256], sizes = [1, 128], strides = [1, 1]} : vector<1x384xf32> to vector<1x128xf32>
    %755 = vector.extract_strided_slice %737 {offsets = [0, 256], sizes = [1, 128], strides = [1, 1]} : vector<1x384xf32> to vector<1x128xf32>
    %756 = arith.mulf %745, %755 : vector<1x128xf32>
    %757 = arith.addf %754, %756 : vector<1x128xf32>
    %758 = math.tanh %757 : vector<1x128xf32>
    %cst_205 = arith.constant 1.000000e+00 : f32
    %759 = vector.broadcast %cst_205 : f32 to vector<1x128xf32>
    %760 = arith.subf %759, %753 : vector<1x128xf32>
    %761 = arith.mulf %760, %758 : vector<1x128xf32>
    %762 = arith.mulf %753, %730 : vector<1x128xf32>
    %763 = arith.addf %761, %762 : vector<1x128xf32>
    %c22_i32 = arith.constant 22 : i32
    %764 = arith.index_cast %c22_i32 : i32 to index
    %c0_206 = arith.constant 0 : index
    %765 = vector.load %arg11[%764, %c0_206] : memref<128x128xf32, #tpu.memory_space<vmem>>, vector<1x128xf32>
    tpu.vector_store %arg11[%764, %c0_206], %763 {strides = array<i32>} : memref<128x128xf32, #tpu.memory_space<vmem>>, vector<1x128xf32>,
    %766 = arith.index_cast %c22_i32 : i32 to index
    %c0_207 = arith.constant 0 : index
    %767 = vector.load %arg10[%766, %c0_207] : memref<128x384xf32, #tpu.memory_space<vmem>>, vector<1x384xf32>
    %c0_208 = arith.constant 0 : index
    %c0_209 = arith.constant 0 : index
    %768 = vector.load %arg5[%c0_208, %c0_209] : memref<128x384xf32, #tpu.memory_space<vmem>>, vector<128x384xf32>
    %cst_210 = arith.constant dense<0.000000e+00> : vector<1x384xf32>
    %769 = tpu.matmul %763, %768, %cst_210 {dimension_numbers = #tpu.dot_dimension_numbers<[1], [0], [0], [1], [0, 0, 1, 1], [], []>} : vector<1x128xf32>, vector<128x384xf32>, vector<1x384xf32> -> vector<1x384xf32>
    %770 = arith.addf %769, %6 : vector<1x384xf32>
    %771 = vector.extract_strided_slice %767 {offsets = [0, 0], sizes = [1, 128], strides = [1, 1]} : vector<1x384xf32> to vector<1x128xf32>
    %772 = vector.extract_strided_slice %770 {offsets = [0, 0], sizes = [1, 128], strides = [1, 1]} : vector<1x384xf32> to vector<1x128xf32>
    %773 = arith.addf %771, %772 : vector<1x128xf32>
    %774 = arith.negf %773 : vector<1x128xf32>
    %775 = math.exp %774 : vector<1x128xf32>
    %cst_211 = arith.constant 1.000000e+00 : f32
    %776 = vector.broadcast %cst_211 : f32 to vector<1x128xf32>
    %777 = arith.addf %776, %775 : vector<1x128xf32>
    %778 = arith.divf %776, %777 : vector<1x128xf32>
    %779 = vector.extract_strided_slice %767 {offsets = [0, 128], sizes = [1, 128], strides = [1, 1]} : vector<1x384xf32> to vector<1x128xf32>
    %780 = vector.extract_strided_slice %770 {offsets = [0, 128], sizes = [1, 128], strides = [1, 1]} : vector<1x384xf32> to vector<1x128xf32>
    %781 = arith.addf %779, %780 : vector<1x128xf32>
    %782 = arith.negf %781 : vector<1x128xf32>
    %783 = math.exp %782 : vector<1x128xf32>
    %cst_212 = arith.constant 1.000000e+00 : f32
    %784 = vector.broadcast %cst_212 : f32 to vector<1x128xf32>
    %785 = arith.addf %784, %783 : vector<1x128xf32>
    %786 = arith.divf %784, %785 : vector<1x128xf32>
    %787 = vector.extract_strided_slice %767 {offsets = [0, 256], sizes = [1, 128], strides = [1, 1]} : vector<1x384xf32> to vector<1x128xf32>
    %788 = vector.extract_strided_slice %770 {offsets = [0, 256], sizes = [1, 128], strides = [1, 1]} : vector<1x384xf32> to vector<1x128xf32>
    %789 = arith.mulf %778, %788 : vector<1x128xf32>
    %790 = arith.addf %787, %789 : vector<1x128xf32>
    %791 = math.tanh %790 : vector<1x128xf32>
    %cst_213 = arith.constant 1.000000e+00 : f32
    %792 = vector.broadcast %cst_213 : f32 to vector<1x128xf32>
    %793 = arith.subf %792, %786 : vector<1x128xf32>
    %794 = arith.mulf %793, %791 : vector<1x128xf32>
    %795 = arith.mulf %786, %763 : vector<1x128xf32>
    %796 = arith.addf %794, %795 : vector<1x128xf32>
    %c23_i32 = arith.constant 23 : i32
    %797 = arith.index_cast %c23_i32 : i32 to index
    %c0_214 = arith.constant 0 : index
    %798 = vector.load %arg11[%797, %c0_214] : memref<128x128xf32, #tpu.memory_space<vmem>>, vector<1x128xf32>
    tpu.vector_store %arg11[%797, %c0_214], %796 {strides = array<i32>} : memref<128x128xf32, #tpu.memory_space<vmem>>, vector<1x128xf32>,
    %799 = arith.index_cast %c23_i32 : i32 to index
    %c0_215 = arith.constant 0 : index
    %800 = vector.load %arg10[%799, %c0_215] : memref<128x384xf32, #tpu.memory_space<vmem>>, vector<1x384xf32>
    %c0_216 = arith.constant 0 : index
    %c0_217 = arith.constant 0 : index
    %801 = vector.load %arg5[%c0_216, %c0_217] : memref<128x384xf32, #tpu.memory_space<vmem>>, vector<128x384xf32>
    %cst_218 = arith.constant dense<0.000000e+00> : vector<1x384xf32>
    %802 = tpu.matmul %796, %801, %cst_218 {dimension_numbers = #tpu.dot_dimension_numbers<[1], [0], [0], [1], [0, 0, 1, 1], [], []>} : vector<1x128xf32>, vector<128x384xf32>, vector<1x384xf32> -> vector<1x384xf32>
    %803 = arith.addf %802, %6 : vector<1x384xf32>
    %804 = vector.extract_strided_slice %800 {offsets = [0, 0], sizes = [1, 128], strides = [1, 1]} : vector<1x384xf32> to vector<1x128xf32>
    %805 = vector.extract_strided_slice %803 {offsets = [0, 0], sizes = [1, 128], strides = [1, 1]} : vector<1x384xf32> to vector<1x128xf32>
    %806 = arith.addf %804, %805 : vector<1x128xf32>
    %807 = arith.negf %806 : vector<1x128xf32>
    %808 = math.exp %807 : vector<1x128xf32>
    %cst_219 = arith.constant 1.000000e+00 : f32
    %809 = vector.broadcast %cst_219 : f32 to vector<1x128xf32>
    %810 = arith.addf %809, %808 : vector<1x128xf32>
    %811 = arith.divf %809, %810 : vector<1x128xf32>
    %812 = vector.extract_strided_slice %800 {offsets = [0, 128], sizes = [1, 128], strides = [1, 1]} : vector<1x384xf32> to vector<1x128xf32>
    %813 = vector.extract_strided_slice %803 {offsets = [0, 128], sizes = [1, 128], strides = [1, 1]} : vector<1x384xf32> to vector<1x128xf32>
    %814 = arith.addf %812, %813 : vector<1x128xf32>
    %815 = arith.negf %814 : vector<1x128xf32>
    %816 = math.exp %815 : vector<1x128xf32>
    %cst_220 = arith.constant 1.000000e+00 : f32
    %817 = vector.broadcast %cst_220 : f32 to vector<1x128xf32>
    %818 = arith.addf %817, %816 : vector<1x128xf32>
    %819 = arith.divf %817, %818 : vector<1x128xf32>
    %820 = vector.extract_strided_slice %800 {offsets = [0, 256], sizes = [1, 128], strides = [1, 1]} : vector<1x384xf32> to vector<1x128xf32>
    %821 = vector.extract_strided_slice %803 {offsets = [0, 256], sizes = [1, 128], strides = [1, 1]} : vector<1x384xf32> to vector<1x128xf32>
    %822 = arith.mulf %811, %821 : vector<1x128xf32>
    %823 = arith.addf %820, %822 : vector<1x128xf32>
    %824 = math.tanh %823 : vector<1x128xf32>
    %cst_221 = arith.constant 1.000000e+00 : f32
    %825 = vector.broadcast %cst_221 : f32 to vector<1x128xf32>
    %826 = arith.subf %825, %819 : vector<1x128xf32>
    %827 = arith.mulf %826, %824 : vector<1x128xf32>
    %828 = arith.mulf %819, %796 : vector<1x128xf32>
    %829 = arith.addf %827, %828 : vector<1x128xf32>
    %c24_i32 = arith.constant 24 : i32
    %830 = arith.index_cast %c24_i32 : i32 to index
    %c0_222 = arith.constant 0 : index
    %831 = vector.load %arg11[%830, %c0_222] : memref<128x128xf32, #tpu.memory_space<vmem>>, vector<1x128xf32>
    tpu.vector_store %arg11[%830, %c0_222], %829 {strides = array<i32>} : memref<128x128xf32, #tpu.memory_space<vmem>>, vector<1x128xf32>,
    %832 = arith.index_cast %c24_i32 : i32 to index
    %c0_223 = arith.constant 0 : index
    %833 = vector.load %arg10[%832, %c0_223] : memref<128x384xf32, #tpu.memory_space<vmem>>, vector<1x384xf32>
    %c0_224 = arith.constant 0 : index
    %c0_225 = arith.constant 0 : index
    %834 = vector.load %arg5[%c0_224, %c0_225] : memref<128x384xf32, #tpu.memory_space<vmem>>, vector<128x384xf32>
    %cst_226 = arith.constant dense<0.000000e+00> : vector<1x384xf32>
    %835 = tpu.matmul %829, %834, %cst_226 {dimension_numbers = #tpu.dot_dimension_numbers<[1], [0], [0], [1], [0, 0, 1, 1], [], []>} : vector<1x128xf32>, vector<128x384xf32>, vector<1x384xf32> -> vector<1x384xf32>
    %836 = arith.addf %835, %6 : vector<1x384xf32>
    %837 = vector.extract_strided_slice %833 {offsets = [0, 0], sizes = [1, 128], strides = [1, 1]} : vector<1x384xf32> to vector<1x128xf32>
    %838 = vector.extract_strided_slice %836 {offsets = [0, 0], sizes = [1, 128], strides = [1, 1]} : vector<1x384xf32> to vector<1x128xf32>
    %839 = arith.addf %837, %838 : vector<1x128xf32>
    %840 = arith.negf %839 : vector<1x128xf32>
    %841 = math.exp %840 : vector<1x128xf32>
    %cst_227 = arith.constant 1.000000e+00 : f32
    %842 = vector.broadcast %cst_227 : f32 to vector<1x128xf32>
    %843 = arith.addf %842, %841 : vector<1x128xf32>
    %844 = arith.divf %842, %843 : vector<1x128xf32>
    %845 = vector.extract_strided_slice %833 {offsets = [0, 128], sizes = [1, 128], strides = [1, 1]} : vector<1x384xf32> to vector<1x128xf32>
    %846 = vector.extract_strided_slice %836 {offsets = [0, 128], sizes = [1, 128], strides = [1, 1]} : vector<1x384xf32> to vector<1x128xf32>
    %847 = arith.addf %845, %846 : vector<1x128xf32>
    %848 = arith.negf %847 : vector<1x128xf32>
    %849 = math.exp %848 : vector<1x128xf32>
    %cst_228 = arith.constant 1.000000e+00 : f32
    %850 = vector.broadcast %cst_228 : f32 to vector<1x128xf32>
    %851 = arith.addf %850, %849 : vector<1x128xf32>
    %852 = arith.divf %850, %851 : vector<1x128xf32>
    %853 = vector.extract_strided_slice %833 {offsets = [0, 256], sizes = [1, 128], strides = [1, 1]} : vector<1x384xf32> to vector<1x128xf32>
    %854 = vector.extract_strided_slice %836 {offsets = [0, 256], sizes = [1, 128], strides = [1, 1]} : vector<1x384xf32> to vector<1x128xf32>
    %855 = arith.mulf %844, %854 : vector<1x128xf32>
    %856 = arith.addf %853, %855 : vector<1x128xf32>
    %857 = math.tanh %856 : vector<1x128xf32>
    %cst_229 = arith.constant 1.000000e+00 : f32
    %858 = vector.broadcast %cst_229 : f32 to vector<1x128xf32>
    %859 = arith.subf %858, %852 : vector<1x128xf32>
    %860 = arith.mulf %859, %857 : vector<1x128xf32>
    %861 = arith.mulf %852, %829 : vector<1x128xf32>
    %862 = arith.addf %860, %861 : vector<1x128xf32>
    %c25_i32 = arith.constant 25 : i32
    %863 = arith.index_cast %c25_i32 : i32 to index
    %c0_230 = arith.constant 0 : index
    %864 = vector.load %arg11[%863, %c0_230] : memref<128x128xf32, #tpu.memory_space<vmem>>, vector<1x128xf32>
    tpu.vector_store %arg11[%863, %c0_230], %862 {strides = array<i32>} : memref<128x128xf32, #tpu.memory_space<vmem>>, vector<1x128xf32>,
    %865 = arith.index_cast %c25_i32 : i32 to index
    %c0_231 = arith.constant 0 : index
    %866 = vector.load %arg10[%865, %c0_231] : memref<128x384xf32, #tpu.memory_space<vmem>>, vector<1x384xf32>
    %c0_232 = arith.constant 0 : index
    %c0_233 = arith.constant 0 : index
    %867 = vector.load %arg5[%c0_232, %c0_233] : memref<128x384xf32, #tpu.memory_space<vmem>>, vector<128x384xf32>
    %cst_234 = arith.constant dense<0.000000e+00> : vector<1x384xf32>
    %868 = tpu.matmul %862, %867, %cst_234 {dimension_numbers = #tpu.dot_dimension_numbers<[1], [0], [0], [1], [0, 0, 1, 1], [], []>} : vector<1x128xf32>, vector<128x384xf32>, vector<1x384xf32> -> vector<1x384xf32>
    %869 = arith.addf %868, %6 : vector<1x384xf32>
    %870 = vector.extract_strided_slice %866 {offsets = [0, 0], sizes = [1, 128], strides = [1, 1]} : vector<1x384xf32> to vector<1x128xf32>
    %871 = vector.extract_strided_slice %869 {offsets = [0, 0], sizes = [1, 128], strides = [1, 1]} : vector<1x384xf32> to vector<1x128xf32>
    %872 = arith.addf %870, %871 : vector<1x128xf32>
    %873 = arith.negf %872 : vector<1x128xf32>
    %874 = math.exp %873 : vector<1x128xf32>
    %cst_235 = arith.constant 1.000000e+00 : f32
    %875 = vector.broadcast %cst_235 : f32 to vector<1x128xf32>
    %876 = arith.addf %875, %874 : vector<1x128xf32>
    %877 = arith.divf %875, %876 : vector<1x128xf32>
    %878 = vector.extract_strided_slice %866 {offsets = [0, 128], sizes = [1, 128], strides = [1, 1]} : vector<1x384xf32> to vector<1x128xf32>
    %879 = vector.extract_strided_slice %869 {offsets = [0, 128], sizes = [1, 128], strides = [1, 1]} : vector<1x384xf32> to vector<1x128xf32>
    %880 = arith.addf %878, %879 : vector<1x128xf32>
    %881 = arith.negf %880 : vector<1x128xf32>
    %882 = math.exp %881 : vector<1x128xf32>
    %cst_236 = arith.constant 1.000000e+00 : f32
    %883 = vector.broadcast %cst_236 : f32 to vector<1x128xf32>
    %884 = arith.addf %883, %882 : vector<1x128xf32>
    %885 = arith.divf %883, %884 : vector<1x128xf32>
    %886 = vector.extract_strided_slice %866 {offsets = [0, 256], sizes = [1, 128], strides = [1, 1]} : vector<1x384xf32> to vector<1x128xf32>
    %887 = vector.extract_strided_slice %869 {offsets = [0, 256], sizes = [1, 128], strides = [1, 1]} : vector<1x384xf32> to vector<1x128xf32>
    %888 = arith.mulf %877, %887 : vector<1x128xf32>
    %889 = arith.addf %886, %888 : vector<1x128xf32>
    %890 = math.tanh %889 : vector<1x128xf32>
    %cst_237 = arith.constant 1.000000e+00 : f32
    %891 = vector.broadcast %cst_237 : f32 to vector<1x128xf32>
    %892 = arith.subf %891, %885 : vector<1x128xf32>
    %893 = arith.mulf %892, %890 : vector<1x128xf32>
    %894 = arith.mulf %885, %862 : vector<1x128xf32>
    %895 = arith.addf %893, %894 : vector<1x128xf32>
    %c26_i32 = arith.constant 26 : i32
    %896 = arith.index_cast %c26_i32 : i32 to index
    %c0_238 = arith.constant 0 : index
    %897 = vector.load %arg11[%896, %c0_238] : memref<128x128xf32, #tpu.memory_space<vmem>>, vector<1x128xf32>
    tpu.vector_store %arg11[%896, %c0_238], %895 {strides = array<i32>} : memref<128x128xf32, #tpu.memory_space<vmem>>, vector<1x128xf32>,
    %898 = arith.index_cast %c26_i32 : i32 to index
    %c0_239 = arith.constant 0 : index
    %899 = vector.load %arg10[%898, %c0_239] : memref<128x384xf32, #tpu.memory_space<vmem>>, vector<1x384xf32>
    %c0_240 = arith.constant 0 : index
    %c0_241 = arith.constant 0 : index
    %900 = vector.load %arg5[%c0_240, %c0_241] : memref<128x384xf32, #tpu.memory_space<vmem>>, vector<128x384xf32>
    %cst_242 = arith.constant dense<0.000000e+00> : vector<1x384xf32>
    %901 = tpu.matmul %895, %900, %cst_242 {dimension_numbers = #tpu.dot_dimension_numbers<[1], [0], [0], [1], [0, 0, 1, 1], [], []>} : vector<1x128xf32>, vector<128x384xf32>, vector<1x384xf32> -> vector<1x384xf32>
    %902 = arith.addf %901, %6 : vector<1x384xf32>
    %903 = vector.extract_strided_slice %899 {offsets = [0, 0], sizes = [1, 128], strides = [1, 1]} : vector<1x384xf32> to vector<1x128xf32>
    %904 = vector.extract_strided_slice %902 {offsets = [0, 0], sizes = [1, 128], strides = [1, 1]} : vector<1x384xf32> to vector<1x128xf32>
    %905 = arith.addf %903, %904 : vector<1x128xf32>
    %906 = arith.negf %905 : vector<1x128xf32>
    %907 = math.exp %906 : vector<1x128xf32>
    %cst_243 = arith.constant 1.000000e+00 : f32
    %908 = vector.broadcast %cst_243 : f32 to vector<1x128xf32>
    %909 = arith.addf %908, %907 : vector<1x128xf32>
    %910 = arith.divf %908, %909 : vector<1x128xf32>
    %911 = vector.extract_strided_slice %899 {offsets = [0, 128], sizes = [1, 128], strides = [1, 1]} : vector<1x384xf32> to vector<1x128xf32>
    %912 = vector.extract_strided_slice %902 {offsets = [0, 128], sizes = [1, 128], strides = [1, 1]} : vector<1x384xf32> to vector<1x128xf32>
    %913 = arith.addf %911, %912 : vector<1x128xf32>
    %914 = arith.negf %913 : vector<1x128xf32>
    %915 = math.exp %914 : vector<1x128xf32>
    %cst_244 = arith.constant 1.000000e+00 : f32
    %916 = vector.broadcast %cst_244 : f32 to vector<1x128xf32>
    %917 = arith.addf %916, %915 : vector<1x128xf32>
    %918 = arith.divf %916, %917 : vector<1x128xf32>
    %919 = vector.extract_strided_slice %899 {offsets = [0, 256], sizes = [1, 128], strides = [1, 1]} : vector<1x384xf32> to vector<1x128xf32>
    %920 = vector.extract_strided_slice %902 {offsets = [0, 256], sizes = [1, 128], strides = [1, 1]} : vector<1x384xf32> to vector<1x128xf32>
    %921 = arith.mulf %910, %920 : vector<1x128xf32>
    %922 = arith.addf %919, %921 : vector<1x128xf32>
    %923 = math.tanh %922 : vector<1x128xf32>
    %cst_245 = arith.constant 1.000000e+00 : f32
    %924 = vector.broadcast %cst_245 : f32 to vector<1x128xf32>
    %925 = arith.subf %924, %918 : vector<1x128xf32>
    %926 = arith.mulf %925, %923 : vector<1x128xf32>
    %927 = arith.mulf %918, %895 : vector<1x128xf32>
    %928 = arith.addf %926, %927 : vector<1x128xf32>
    %c27_i32 = arith.constant 27 : i32
    %929 = arith.index_cast %c27_i32 : i32 to index
    %c0_246 = arith.constant 0 : index
    %930 = vector.load %arg11[%929, %c0_246] : memref<128x128xf32, #tpu.memory_space<vmem>>, vector<1x128xf32>
    tpu.vector_store %arg11[%929, %c0_246], %928 {strides = array<i32>} : memref<128x128xf32, #tpu.memory_space<vmem>>, vector<1x128xf32>,
    %931 = arith.index_cast %c27_i32 : i32 to index
    %c0_247 = arith.constant 0 : index
    %932 = vector.load %arg10[%931, %c0_247] : memref<128x384xf32, #tpu.memory_space<vmem>>, vector<1x384xf32>
    %c0_248 = arith.constant 0 : index
    %c0_249 = arith.constant 0 : index
    %933 = vector.load %arg5[%c0_248, %c0_249] : memref<128x384xf32, #tpu.memory_space<vmem>>, vector<128x384xf32>
    %cst_250 = arith.constant dense<0.000000e+00> : vector<1x384xf32>
    %934 = tpu.matmul %928, %933, %cst_250 {dimension_numbers = #tpu.dot_dimension_numbers<[1], [0], [0], [1], [0, 0, 1, 1], [], []>} : vector<1x128xf32>, vector<128x384xf32>, vector<1x384xf32> -> vector<1x384xf32>
    %935 = arith.addf %934, %6 : vector<1x384xf32>
    %936 = vector.extract_strided_slice %932 {offsets = [0, 0], sizes = [1, 128], strides = [1, 1]} : vector<1x384xf32> to vector<1x128xf32>
    %937 = vector.extract_strided_slice %935 {offsets = [0, 0], sizes = [1, 128], strides = [1, 1]} : vector<1x384xf32> to vector<1x128xf32>
    %938 = arith.addf %936, %937 : vector<1x128xf32>
    %939 = arith.negf %938 : vector<1x128xf32>
    %940 = math.exp %939 : vector<1x128xf32>
    %cst_251 = arith.constant 1.000000e+00 : f32
    %941 = vector.broadcast %cst_251 : f32 to vector<1x128xf32>
    %942 = arith.addf %941, %940 : vector<1x128xf32>
    %943 = arith.divf %941, %942 : vector<1x128xf32>
    %944 = vector.extract_strided_slice %932 {offsets = [0, 128], sizes = [1, 128], strides = [1, 1]} : vector<1x384xf32> to vector<1x128xf32>
    %945 = vector.extract_strided_slice %935 {offsets = [0, 128], sizes = [1, 128], strides = [1, 1]} : vector<1x384xf32> to vector<1x128xf32>
    %946 = arith.addf %944, %945 : vector<1x128xf32>
    %947 = arith.negf %946 : vector<1x128xf32>
    %948 = math.exp %947 : vector<1x128xf32>
    %cst_252 = arith.constant 1.000000e+00 : f32
    %949 = vector.broadcast %cst_252 : f32 to vector<1x128xf32>
    %950 = arith.addf %949, %948 : vector<1x128xf32>
    %951 = arith.divf %949, %950 : vector<1x128xf32>
    %952 = vector.extract_strided_slice %932 {offsets = [0, 256], sizes = [1, 128], strides = [1, 1]} : vector<1x384xf32> to vector<1x128xf32>
    %953 = vector.extract_strided_slice %935 {offsets = [0, 256], sizes = [1, 128], strides = [1, 1]} : vector<1x384xf32> to vector<1x128xf32>
    %954 = arith.mulf %943, %953 : vector<1x128xf32>
    %955 = arith.addf %952, %954 : vector<1x128xf32>
    %956 = math.tanh %955 : vector<1x128xf32>
    %cst_253 = arith.constant 1.000000e+00 : f32
    %957 = vector.broadcast %cst_253 : f32 to vector<1x128xf32>
    %958 = arith.subf %957, %951 : vector<1x128xf32>
    %959 = arith.mulf %958, %956 : vector<1x128xf32>
    %960 = arith.mulf %951, %928 : vector<1x128xf32>
    %961 = arith.addf %959, %960 : vector<1x128xf32>
    %c28_i32 = arith.constant 28 : i32
    %962 = arith.index_cast %c28_i32 : i32 to index
    %c0_254 = arith.constant 0 : index
    %963 = vector.load %arg11[%962, %c0_254] : memref<128x128xf32, #tpu.memory_space<vmem>>, vector<1x128xf32>
    tpu.vector_store %arg11[%962, %c0_254], %961 {strides = array<i32>} : memref<128x128xf32, #tpu.memory_space<vmem>>, vector<1x128xf32>,
    %964 = arith.index_cast %c28_i32 : i32 to index
    %c0_255 = arith.constant 0 : index
    %965 = vector.load %arg10[%964, %c0_255] : memref<128x384xf32, #tpu.memory_space<vmem>>, vector<1x384xf32>
    %c0_256 = arith.constant 0 : index
    %c0_257 = arith.constant 0 : index
    %966 = vector.load %arg5[%c0_256, %c0_257] : memref<128x384xf32, #tpu.memory_space<vmem>>, vector<128x384xf32>
    %cst_258 = arith.constant dense<0.000000e+00> : vector<1x384xf32>
    %967 = tpu.matmul %961, %966, %cst_258 {dimension_numbers = #tpu.dot_dimension_numbers<[1], [0], [0], [1], [0, 0, 1, 1], [], []>} : vector<1x128xf32>, vector<128x384xf32>, vector<1x384xf32> -> vector<1x384xf32>
    %968 = arith.addf %967, %6 : vector<1x384xf32>
    %969 = vector.extract_strided_slice %965 {offsets = [0, 0], sizes = [1, 128], strides = [1, 1]} : vector<1x384xf32> to vector<1x128xf32>
    %970 = vector.extract_strided_slice %968 {offsets = [0, 0], sizes = [1, 128], strides = [1, 1]} : vector<1x384xf32> to vector<1x128xf32>
    %971 = arith.addf %969, %970 : vector<1x128xf32>
    %972 = arith.negf %971 : vector<1x128xf32>
    %973 = math.exp %972 : vector<1x128xf32>
    %cst_259 = arith.constant 1.000000e+00 : f32
    %974 = vector.broadcast %cst_259 : f32 to vector<1x128xf32>
    %975 = arith.addf %974, %973 : vector<1x128xf32>
    %976 = arith.divf %974, %975 : vector<1x128xf32>
    %977 = vector.extract_strided_slice %965 {offsets = [0, 128], sizes = [1, 128], strides = [1, 1]} : vector<1x384xf32> to vector<1x128xf32>
    %978 = vector.extract_strided_slice %968 {offsets = [0, 128], sizes = [1, 128], strides = [1, 1]} : vector<1x384xf32> to vector<1x128xf32>
    %979 = arith.addf %977, %978 : vector<1x128xf32>
    %980 = arith.negf %979 : vector<1x128xf32>
    %981 = math.exp %980 : vector<1x128xf32>
    %cst_260 = arith.constant 1.000000e+00 : f32
    %982 = vector.broadcast %cst_260 : f32 to vector<1x128xf32>
    %983 = arith.addf %982, %981 : vector<1x128xf32>
    %984 = arith.divf %982, %983 : vector<1x128xf32>
    %985 = vector.extract_strided_slice %965 {offsets = [0, 256], sizes = [1, 128], strides = [1, 1]} : vector<1x384xf32> to vector<1x128xf32>
    %986 = vector.extract_strided_slice %968 {offsets = [0, 256], sizes = [1, 128], strides = [1, 1]} : vector<1x384xf32> to vector<1x128xf32>
    %987 = arith.mulf %976, %986 : vector<1x128xf32>
    %988 = arith.addf %985, %987 : vector<1x128xf32>
    %989 = math.tanh %988 : vector<1x128xf32>
    %cst_261 = arith.constant 1.000000e+00 : f32
    %990 = vector.broadcast %cst_261 : f32 to vector<1x128xf32>
    %991 = arith.subf %990, %984 : vector<1x128xf32>
    %992 = arith.mulf %991, %989 : vector<1x128xf32>
    %993 = arith.mulf %984, %961 : vector<1x128xf32>
    %994 = arith.addf %992, %993 : vector<1x128xf32>
    %c29_i32 = arith.constant 29 : i32
    %995 = arith.index_cast %c29_i32 : i32 to index
    %c0_262 = arith.constant 0 : index
    %996 = vector.load %arg11[%995, %c0_262] : memref<128x128xf32, #tpu.memory_space<vmem>>, vector<1x128xf32>
    tpu.vector_store %arg11[%995, %c0_262], %994 {strides = array<i32>} : memref<128x128xf32, #tpu.memory_space<vmem>>, vector<1x128xf32>,
    %997 = arith.index_cast %c29_i32 : i32 to index
    %c0_263 = arith.constant 0 : index
    %998 = vector.load %arg10[%997, %c0_263] : memref<128x384xf32, #tpu.memory_space<vmem>>, vector<1x384xf32>
    %c0_264 = arith.constant 0 : index
    %c0_265 = arith.constant 0 : index
    %999 = vector.load %arg5[%c0_264, %c0_265] : memref<128x384xf32, #tpu.memory_space<vmem>>, vector<128x384xf32>
    %cst_266 = arith.constant dense<0.000000e+00> : vector<1x384xf32>
    %1000 = tpu.matmul %994, %999, %cst_266 {dimension_numbers = #tpu.dot_dimension_numbers<[1], [0], [0], [1], [0, 0, 1, 1], [], []>} : vector<1x128xf32>, vector<128x384xf32>, vector<1x384xf32> -> vector<1x384xf32>
    %1001 = arith.addf %1000, %6 : vector<1x384xf32>
    %1002 = vector.extract_strided_slice %998 {offsets = [0, 0], sizes = [1, 128], strides = [1, 1]} : vector<1x384xf32> to vector<1x128xf32>
    %1003 = vector.extract_strided_slice %1001 {offsets = [0, 0], sizes = [1, 128], strides = [1, 1]} : vector<1x384xf32> to vector<1x128xf32>
    %1004 = arith.addf %1002, %1003 : vector<1x128xf32>
    %1005 = arith.negf %1004 : vector<1x128xf32>
    %1006 = math.exp %1005 : vector<1x128xf32>
    %cst_267 = arith.constant 1.000000e+00 : f32
    %1007 = vector.broadcast %cst_267 : f32 to vector<1x128xf32>
    %1008 = arith.addf %1007, %1006 : vector<1x128xf32>
    %1009 = arith.divf %1007, %1008 : vector<1x128xf32>
    %1010 = vector.extract_strided_slice %998 {offsets = [0, 128], sizes = [1, 128], strides = [1, 1]} : vector<1x384xf32> to vector<1x128xf32>
    %1011 = vector.extract_strided_slice %1001 {offsets = [0, 128], sizes = [1, 128], strides = [1, 1]} : vector<1x384xf32> to vector<1x128xf32>
    %1012 = arith.addf %1010, %1011 : vector<1x128xf32>
    %1013 = arith.negf %1012 : vector<1x128xf32>
    %1014 = math.exp %1013 : vector<1x128xf32>
    %cst_268 = arith.constant 1.000000e+00 : f32
    %1015 = vector.broadcast %cst_268 : f32 to vector<1x128xf32>
    %1016 = arith.addf %1015, %1014 : vector<1x128xf32>
    %1017 = arith.divf %1015, %1016 : vector<1x128xf32>
    %1018 = vector.extract_strided_slice %998 {offsets = [0, 256], sizes = [1, 128], strides = [1, 1]} : vector<1x384xf32> to vector<1x128xf32>
    %1019 = vector.extract_strided_slice %1001 {offsets = [0, 256], sizes = [1, 128], strides = [1, 1]} : vector<1x384xf32> to vector<1x128xf32>
    %1020 = arith.mulf %1009, %1019 : vector<1x128xf32>
    %1021 = arith.addf %1018, %1020 : vector<1x128xf32>
    %1022 = math.tanh %1021 : vector<1x128xf32>
    %cst_269 = arith.constant 1.000000e+00 : f32
    %1023 = vector.broadcast %cst_269 : f32 to vector<1x128xf32>
    %1024 = arith.subf %1023, %1017 : vector<1x128xf32>
    %1025 = arith.mulf %1024, %1022 : vector<1x128xf32>
    %1026 = arith.mulf %1017, %994 : vector<1x128xf32>
    %1027 = arith.addf %1025, %1026 : vector<1x128xf32>
    %c30_i32 = arith.constant 30 : i32
    %1028 = arith.index_cast %c30_i32 : i32 to index
    %c0_270 = arith.constant 0 : index
    %1029 = vector.load %arg11[%1028, %c0_270] : memref<128x128xf32, #tpu.memory_space<vmem>>, vector<1x128xf32>
    tpu.vector_store %arg11[%1028, %c0_270], %1027 {strides = array<i32>} : memref<128x128xf32, #tpu.memory_space<vmem>>, vector<1x128xf32>,
    %1030 = arith.index_cast %c30_i32 : i32 to index
    %c0_271 = arith.constant 0 : index
    %1031 = vector.load %arg10[%1030, %c0_271] : memref<128x384xf32, #tpu.memory_space<vmem>>, vector<1x384xf32>
    %c0_272 = arith.constant 0 : index
    %c0_273 = arith.constant 0 : index
    %1032 = vector.load %arg5[%c0_272, %c0_273] : memref<128x384xf32, #tpu.memory_space<vmem>>, vector<128x384xf32>
    %cst_274 = arith.constant dense<0.000000e+00> : vector<1x384xf32>
    %1033 = tpu.matmul %1027, %1032, %cst_274 {dimension_numbers = #tpu.dot_dimension_numbers<[1], [0], [0], [1], [0, 0, 1, 1], [], []>} : vector<1x128xf32>, vector<128x384xf32>, vector<1x384xf32> -> vector<1x384xf32>
    %1034 = arith.addf %1033, %6 : vector<1x384xf32>
    %1035 = vector.extract_strided_slice %1031 {offsets = [0, 0], sizes = [1, 128], strides = [1, 1]} : vector<1x384xf32> to vector<1x128xf32>
    %1036 = vector.extract_strided_slice %1034 {offsets = [0, 0], sizes = [1, 128], strides = [1, 1]} : vector<1x384xf32> to vector<1x128xf32>
    %1037 = arith.addf %1035, %1036 : vector<1x128xf32>
    %1038 = arith.negf %1037 : vector<1x128xf32>
    %1039 = math.exp %1038 : vector<1x128xf32>
    %cst_275 = arith.constant 1.000000e+00 : f32
    %1040 = vector.broadcast %cst_275 : f32 to vector<1x128xf32>
    %1041 = arith.addf %1040, %1039 : vector<1x128xf32>
    %1042 = arith.divf %1040, %1041 : vector<1x128xf32>
    %1043 = vector.extract_strided_slice %1031 {offsets = [0, 128], sizes = [1, 128], strides = [1, 1]} : vector<1x384xf32> to vector<1x128xf32>
    %1044 = vector.extract_strided_slice %1034 {offsets = [0, 128], sizes = [1, 128], strides = [1, 1]} : vector<1x384xf32> to vector<1x128xf32>
    %1045 = arith.addf %1043, %1044 : vector<1x128xf32>
    %1046 = arith.negf %1045 : vector<1x128xf32>
    %1047 = math.exp %1046 : vector<1x128xf32>
    %cst_276 = arith.constant 1.000000e+00 : f32
    %1048 = vector.broadcast %cst_276 : f32 to vector<1x128xf32>
    %1049 = arith.addf %1048, %1047 : vector<1x128xf32>
    %1050 = arith.divf %1048, %1049 : vector<1x128xf32>
    %1051 = vector.extract_strided_slice %1031 {offsets = [0, 256], sizes = [1, 128], strides = [1, 1]} : vector<1x384xf32> to vector<1x128xf32>
    %1052 = vector.extract_strided_slice %1034 {offsets = [0, 256], sizes = [1, 128], strides = [1, 1]} : vector<1x384xf32> to vector<1x128xf32>
    %1053 = arith.mulf %1042, %1052 : vector<1x128xf32>
    %1054 = arith.addf %1051, %1053 : vector<1x128xf32>
    %1055 = math.tanh %1054 : vector<1x128xf32>
    %cst_277 = arith.constant 1.000000e+00 : f32
    %1056 = vector.broadcast %cst_277 : f32 to vector<1x128xf32>
    %1057 = arith.subf %1056, %1050 : vector<1x128xf32>
    %1058 = arith.mulf %1057, %1055 : vector<1x128xf32>
    %1059 = arith.mulf %1050, %1027 : vector<1x128xf32>
    %1060 = arith.addf %1058, %1059 : vector<1x128xf32>
    %c31_i32 = arith.constant 31 : i32
    %1061 = arith.index_cast %c31_i32 : i32 to index
    %c0_278 = arith.constant 0 : index
    %1062 = vector.load %arg11[%1061, %c0_278] : memref<128x128xf32, #tpu.memory_space<vmem>>, vector<1x128xf32>
    tpu.vector_store %arg11[%1061, %c0_278], %1060 {strides = array<i32>} : memref<128x128xf32, #tpu.memory_space<vmem>>, vector<1x128xf32>,
    %1063 = arith.index_cast %c31_i32 : i32 to index
    %c0_279 = arith.constant 0 : index
    %1064 = vector.load %arg10[%1063, %c0_279] : memref<128x384xf32, #tpu.memory_space<vmem>>, vector<1x384xf32>
    %c0_280 = arith.constant 0 : index
    %c0_281 = arith.constant 0 : index
    %1065 = vector.load %arg5[%c0_280, %c0_281] : memref<128x384xf32, #tpu.memory_space<vmem>>, vector<128x384xf32>
    %cst_282 = arith.constant dense<0.000000e+00> : vector<1x384xf32>
    %1066 = tpu.matmul %1060, %1065, %cst_282 {dimension_numbers = #tpu.dot_dimension_numbers<[1], [0], [0], [1], [0, 0, 1, 1], [], []>} : vector<1x128xf32>, vector<128x384xf32>, vector<1x384xf32> -> vector<1x384xf32>
    %1067 = arith.addf %1066, %6 : vector<1x384xf32>
    %1068 = vector.extract_strided_slice %1064 {offsets = [0, 0], sizes = [1, 128], strides = [1, 1]} : vector<1x384xf32> to vector<1x128xf32>
    %1069 = vector.extract_strided_slice %1067 {offsets = [0, 0], sizes = [1, 128], strides = [1, 1]} : vector<1x384xf32> to vector<1x128xf32>
    %1070 = arith.addf %1068, %1069 : vector<1x128xf32>
    %1071 = arith.negf %1070 : vector<1x128xf32>
    %1072 = math.exp %1071 : vector<1x128xf32>
    %cst_283 = arith.constant 1.000000e+00 : f32
    %1073 = vector.broadcast %cst_283 : f32 to vector<1x128xf32>
    %1074 = arith.addf %1073, %1072 : vector<1x128xf32>
    %1075 = arith.divf %1073, %1074 : vector<1x128xf32>
    %1076 = vector.extract_strided_slice %1064 {offsets = [0, 128], sizes = [1, 128], strides = [1, 1]} : vector<1x384xf32> to vector<1x128xf32>
    %1077 = vector.extract_strided_slice %1067 {offsets = [0, 128], sizes = [1, 128], strides = [1, 1]} : vector<1x384xf32> to vector<1x128xf32>
    %1078 = arith.addf %1076, %1077 : vector<1x128xf32>
    %1079 = arith.negf %1078 : vector<1x128xf32>
    %1080 = math.exp %1079 : vector<1x128xf32>
    %cst_284 = arith.constant 1.000000e+00 : f32
    %1081 = vector.broadcast %cst_284 : f32 to vector<1x128xf32>
    %1082 = arith.addf %1081, %1080 : vector<1x128xf32>
    %1083 = arith.divf %1081, %1082 : vector<1x128xf32>
    %1084 = vector.extract_strided_slice %1064 {offsets = [0, 256], sizes = [1, 128], strides = [1, 1]} : vector<1x384xf32> to vector<1x128xf32>
    %1085 = vector.extract_strided_slice %1067 {offsets = [0, 256], sizes = [1, 128], strides = [1, 1]} : vector<1x384xf32> to vector<1x128xf32>
    %1086 = arith.mulf %1075, %1085 : vector<1x128xf32>
    %1087 = arith.addf %1084, %1086 : vector<1x128xf32>
    %1088 = math.tanh %1087 : vector<1x128xf32>
    %cst_285 = arith.constant 1.000000e+00 : f32
    %1089 = vector.broadcast %cst_285 : f32 to vector<1x128xf32>
    %1090 = arith.subf %1089, %1083 : vector<1x128xf32>
    %1091 = arith.mulf %1090, %1088 : vector<1x128xf32>
    %1092 = arith.mulf %1083, %1060 : vector<1x128xf32>
    %1093 = arith.addf %1091, %1092 : vector<1x128xf32>
    %c32_i32 = arith.constant 32 : i32
    %cst_286 = arith.constant dense<0.000000e+00> : vector<1x128xf32>
    %1094 = tpu.matmul %1, %11, %cst_286 {dimension_numbers = #tpu.dot_dimension_numbers<[1], [1], [0], [0], [0, 0, 1, 0], [], []>} : vector<1x128xf32>, vector<128x128xf32>, vector<1x128xf32> -> vector<1x128xf32>
    %c0_287 = arith.constant 0 : index
    %c0_288 = arith.constant 0 : index
    %1095 = vector.load %arg11[%c0_287, %c0_288] : memref<128x128xf32, #tpu.memory_space<vmem>>, vector<128x128xf32>
    %cst_289 = arith.constant dense<0.000000e+00> : vector<1x128xf32>
    %1096 = tpu.matmul %2, %1095, %cst_289 {dimension_numbers = #tpu.dot_dimension_numbers<[1], [1], [0], [0], [0, 0, 1, 0], [], []>} : vector<1x128xf32>, vector<128x128xf32>, vector<1x128xf32> -> vector<1x128xf32>
    %1097 = arith.addf %1094, %1096 : vector<1x128xf32>
    %1098 = vector.broadcast %3 : vector<1x1xf32> to vector<1x128xf32>
    %1099 = arith.addf %1097, %1098 : vector<1x128xf32>
    %c0_290 = arith.constant 0 : index
    %c0_291 = arith.constant 0 : index
    %1100 = vector.load %arg8[%c0_290, %c0_291] : memref<1x128xf32, #tpu.memory_space<vmem>>, vector<1x128xf32>
    tpu.vector_store %arg8[%c0_290, %c0_291], %1099 {strides = array<i32>} : memref<1x128xf32, #tpu.memory_space<vmem>>, vector<1x128xf32>,
    %c0_292 = arith.constant 0 : index
    %c0_293 = arith.constant 0 : index
    %1101 = vector.load %arg9[%c0_292, %c0_293] : memref<1x128xf32, #tpu.memory_space<vmem>>, vector<1x128xf32>
    tpu.vector_store %arg9[%c0_292, %c0_293], %1093 {strides = array<i32>} : memref<1x128xf32, #tpu.memory_space<vmem>>, vector<1x128xf32>,
    return
  }
}

</mosaic_0001>

<bundles_post_ra>
// kernel: tpu_custom_call.1
= control target key start
LH: loop header
LB: loop body
LE: loop exit
PB: predicated region body
PF: predicated region fallthrough
CT: control target
= control target key end

     0   :  { %15 = vsyncpa [#allocation5], 0  ;;  %s10720_s0 = inlined_call_operand.vmem [shape: f32[128,128], index: 0, kind: input, shape index: {}]   ;;  %s10721_s1 = inlined_call_operand.vmem [shape: f32[128,1], index: 1, kind: input, shape index: {}]   ;;  %s10722_s2 = inlined_call_operand.hbm [shape: f32[128,128], index: 2, kind: input, shape index: {}]   ;;  %s10723_s3 = inlined_call_operand.hbm [shape: f32[4,128], index: 3, kind: input, shape index: {}]   ;;  %s10724_s4 = inlined_call_operand.hbm [shape: f32[256,384], index: 4, kind: input, shape index: {}]   ;;  %s10725_s5 = inlined_call_operand.hbm [shape: f32[128,384], index: 5, kind: input, shape index: {}]   ;;  %s10726_s6 = inlined_call_operand.hbm [shape: f32[3,384], index: 6, kind: input, shape index: {}]   ;;  %s10727_s7 = inlined_call_operand.vmem [shape: f32[1,128], index: 7, kind: input, shape index: {}]   ;;  %s10728_s8 = inlined_call_operand.hbm [shape: f32[1,128], index: 8, kind: output, shape index: {0}]   ;;  %s10729_s9 = inlined_call_operand.hbm [shape: f32[1,128], index: 9, kind: output, shape index: {1}]  }
   0x1   :  { %16 = vsyncpa [#allocation8], 0 }
   0x2   :  { %17 = vsyncpa [#allocation11], 0 }
   0x3   :  { %18 = vsyncpa [#allocation6], 0  ;;  %s42_s11 = sshll.u32 %s10723_s3, 4  ;;  %s43_s11 = int_to_ptr.hbm [resolvable:$true] %s42_s11 }
   0x4   :  { %19 = vsyncpa [#allocation15], 0  ;;  %s7224_s12 = smov [#allocation7]   ;;  %s65_s16 = sshll.u32 %s10725_s5, 4  ;;  %s66_s16 = int_to_ptr.hbm [resolvable:$true] %s65_s16 }
   0x5   :  { %s44_s13 = sshll.u32 %s7224_s12, 4  ;;  %s7225_s17 = smov [#allocation10]   ;;  %s45_s13 = int_to_ptr.vmem [resolvable:$true] %s44_s13 }
   0x6   :  { %47 = dma.hbm_to_vmem [thread:$0]  %s43_s11, 64, %s45_s13, [#allocation8]  }
   0x7   :  { %s67_s18 = sshll.u32 %s7225_s17, 4  ;;  %s28_s21 = sshll.u32 %s10722_s2, 4  ;;  %s68_s18 = int_to_ptr.vmem [resolvable:$true] %s67_s18  ;;  %s29_s21 = int_to_ptr.hbm [resolvable:$true] %s28_s21 }
   0x8   :  { %s7226_s3 = smov 384   ;;  %s7227_s22 = smov 24  }
   0x9   :  { %73 = dma.hbm_to_vmem [thread:$0]  %s66_s16, 6144, %s68_s18, [#allocation11], %s7226_s3, %s7226_s3, %s7227_s22  }
   0xa   :  { %s7228_s23 = smov [#allocation4]   ;;  %s52_s27 = sshll.u32 %s10724_s4, 4  ;;  %s53_s27 = int_to_ptr.hbm [resolvable:$true] %s52_s27 }
   0xb   :  { %s30_s24 = sshll.u32 %s7228_s23, 4  ;;  %s7229_s5 = smov 128   ;;  %s31_s24 = int_to_ptr.vmem [resolvable:$true] %s30_s24 }
   0xc   :  { %s7230_s28 = smov 8   ;;  %s7231_s29 = smov [#allocation9]  }
   0xd   :  { %36 = dma.hbm_to_vmem [thread:$0]  %s29_s21, 2048, %s31_s24, [#allocation5], %s7229_s5, %s7229_s5, %s7230_s28  }
   0xe   :  { %s54_s30 = sshll.u32 %s7231_s29, 4  ;;  %s79_s11 = sshll.u32 %s10726_s6, 4  ;;  %s55_s30 = int_to_ptr.vmem [resolvable:$true] %s54_s30  ;;  %s80_s11 = int_to_ptr.hbm [resolvable:$true] %s79_s11 }
   0xf   :  { %60 = dma.hbm_to_vmem [thread:$0]  %s53_s27, 12288, %s55_s30, [#allocation8], %s7226_s3, %s7226_s3, %s7227_s22  }
  0x10   :  { %s7232_s12 = smov [#allocation12]  }
  0x11   :  { %s81_s13 = sshll.u32 %s7232_s12, 4  ;;  %s82_s13 = int_to_ptr.vmem [resolvable:$true] %s81_s13 }
  0x12   :  { %84 = dma.hbm_to_vmem [thread:$0]  %s80_s11, 192, %s82_s13, [#allocation11]  }
  0x13   :  { %7214 = dma.done.wait [#allocation5], 2048  }
  0x14   :  { %7215 = vsyncadd [#allocation5], 4294965248 }
  0x15   :  { %7216 = dma.done.wait [#allocation8], 12352  }
  0x16   :  { %7217 = vsyncadd [#allocation8], 4294954944 }
  0x17   :  { %7218 = dma.done.wait [#allocation11], 6336  }
  0x18   :  { %7219 = vsyncadd [#allocation11], 4294960960  ;;  %v7233_v0 = vmov 0   ;;  %v7234_v1 = vmov 0.0   ;;  %v147_v2 = vld [vmem:[#allocation4 + $0x78] sm:$0xff]  ;;  %v146_v3 = vld [vmem:[#allocation4 + $0x70] sm:$0xff] }
  0x19   :  { %6723 = vset.pattern.permute.xlu2 %v7233_v0  ;;  %6722 = vset.pattern.permute.xlu1 %v7233_v0  ;;  %1258 = vst [vmem:[#allocation3] sm:$0xff] %v7234_v1  ;;  %v7310_v4 = vld [vmem:[%s10721_s1 + $0x78] sm:$0xff]  ;;  %v7316_v5 = vld [vmem:[%s10721_s1 + $0x70] sm:$0xff]  ;;  %v7321_v6 = vld [vmem:[%s10721_s1 + $0x60] sm:$0xff]  ;;  %s6568_s25 = sshll.u32 %s10728_s8, 4  ;;  %s7236_s8 = smov [#allocation14]   ;;  %s6569_s25 = int_to_ptr.hbm [resolvable:$true] %s6568_s25 }
  0x1a   :  { %6721 = vset.pattern.permute.xlu0 %v7233_v0  ;;  %1259 = vst [vmem:[#allocation3 + $0x8] sm:$0xff] %v7234_v1  ;;  %149 = vmatpush.msra.mxu0 %v147_v2  ;;  %vm245_vm0 = vcmp.ge.f32.partialorder %v7310_v4, 0.5  ;;  %vm244_vm1 = vcmp.ge.f32.partialorder %v7316_v5, 0.5  ;;  %vm242_vm2 = vcmp.ge.f32.partialorder %v7321_v6, 0.5  ;;  %v145_v8 = vld [vmem:[#allocation4 + $0x68] sm:$0xff]  ;;  %v144_v12 = vld [vmem:[#allocation4 + $0x60] sm:$0xff] }
  0x1b   :  { %1260 = vst [vmem:[#allocation3 + $0x10] sm:$0xff] %v7234_v1  ;;  %6676 = vmatpush.msra.mxu2 %v147_v2  ;;  %v7324_v7 = vsel %vm245_vm0, 1.0, %v7234_v1  ;;  %v7330_v10 = vsel %vm244_vm1, 1.0, %v7234_v1  ;;  %v7333_v11 = vsel %vm242_vm2, 1.0, %v7234_v1  ;;  %v7338_v13 = vld [vmem:[%s10721_s1 + $0x68] sm:$0xff]  ;;  %v7351_v17 = vld [vmem:[%s10721_s1] sm:$0xff] }
  0x1c   :  { %1261 = vst [vmem:[#allocation3 + $0x18] sm:$0xff] %v7234_v1  ;;  %150 = vmatpush.msra.mxu0 %v146_v3  ;;  %v437_v9 = vsub.f32 1.0, %v7324_v7  ;;  %v436_v14 = vsub.f32 1.0, %v7330_v10  ;;  %v434_v15 = vsub.f32 1.0, %v7333_v11  ;;  %vm243_vm3 = vcmp.ge.f32.partialorder %v7338_v13, 0.5  ;;  %v7346_v16 = vld [vmem:[%s10721_s1 + $0x8] sm:$0xff] }
  0x1d   :  { %1262 = vst [vmem:[#allocation3 + $0x20] sm:$0xff] %v7234_v1  ;;  %6677 = vmatpush.msra.mxu2 %v146_v3  ;;  %vm231_vm4 = vcmp.ge.f32.partialorder %v7346_v16, 0.5  ;;  %vm230_vm5 = vcmp.ge.f32.partialorder %v7351_v17, 0.5  ;;  %v143_v18 = vld [vmem:[#allocation4 + $0x58] sm:$0xff]  ;;  %v7359_v20 = vsel %vm243_vm3, 1.0, %v7234_v1  ;;  %v142_v22 = vld [vmem:[#allocation4 + $0x50] sm:$0xff] }
  0x1e   :  { %515 = vperm.xlu2 %6723, %v437_v9   ;;  %151 = vmatpush.msra.mxu0 %v145_v8  ;;  %v7356_v19 = vsel %vm231_vm4, 1.0, %v7234_v1  ;;  %v7362_v21 = vsel %vm230_vm5, 1.0, %v7234_v1  ;;  %v7368_v24 = vld [vmem:[%s10721_s1 + $0x10] sm:$0xff]  ;;  %v7373_v25 = vld [vmem:[%s10721_s1 + $0x20] sm:$0xff]  ;;  %v435_v26 = vsub.f32 1.0, %v7359_v20  ;;  %v7380_v28 = vld [vmem:[%s10721_s1 + $0x18] sm:$0xff] }
  0x1f   :  { %510 = vperm.xlu1 %6722, %v436_v14   ;;  %500 = vperm.xlu0 %6721, %v434_v15   ;;  %v423_v23 = vsub.f32 1.0, %v7356_v19  ;;  %v422_v27 = vsub.f32 1.0, %v7362_v21  ;;  %v141_v29 = vld [vmem:[#allocation4 + $0x48] sm:$0xff]  ;;  %vm232_vm6 = vcmp.ge.f32.partialorder %v7368_v24, 0.5  ;;  %vm234_vm7 = vcmp.ge.f32.partialorder %v7373_v25, 0.5  ;;  %v140_v30 = vld [vmem:[#allocation4 + $0x40] sm:$0xff] }
  0x20   :  { %6678 = vmatpush.msra.mxu2 %v145_v8  ;;  %152 = vmatpush.msra.mxu0 %v144_v12  ;;  %vm233_vm8 = vcmp.ge.f32.partialorder %v7380_v28, 0.5  ;;  %v7386_v31 = vsel %vm232_vm6, 1.0, %v7234_v1  ;;  %v7389_v32 = vsel %vm234_vm7, 1.0, %v7234_v1  ;;  %v139_v33 = vld [vmem:[#allocation4 + $0x38] sm:$0xff]  ;;  %v7397_v35 = vld [vmem:[%s10721_s1 + $0x28] sm:$0xff]  ;;  %v138_v36 = vld [vmem:[#allocation4 + $0x30] sm:$0xff] }
  0x21   :  { %v7392_v34 = vsel %vm233_vm8, 1.0, %v7234_v1  ;;  %v424_v37 = vsub.f32 1.0, %v7386_v31  ;;  %v426_v38 = vsub.f32 1.0, %v7389_v32  ;;  %v7404_v39 = vld [vmem:[%s10721_s1 + $0x38] sm:$0xff]  ;;  %v7409_v40 = vld [vmem:[%s10721_s1 + $0x30] sm:$0xff]  ;;  %v137_v42 = vld [vmem:[#allocation4 + $0x28] sm:$0xff] }
  0x22   :  { %6679 = vmatpush.msra.mxu2 %v144_v12  ;;  %153 = vmatpush.msra.mxu0 %v143_v18  ;;  %v425_v41 = vsub.f32 1.0, %v7392_v34  ;;  %vm235_vm9 = vcmp.ge.f32.partialorder %v7397_v35, 0.5  ;;  %vm237_vm10 = vcmp.ge.f32.partialorder %v7404_v39, 0.5  ;;  %vm236_vm11 = vcmp.ge.f32.partialorder %v7409_v40, 0.5  ;;  %v136_v43 = vld [vmem:[#allocation4 + $0x20] sm:$0xff]  ;;  %v135_v45 = vld [vmem:[#allocation4 + $0x18] sm:$0xff] }
  0x23   :  { %v7416_v44 = vsel %vm235_vm9, 1.0, %v7234_v1  ;;  %v6603_v46 = vsel %vm237_vm10, 1.0, %v7234_v1  ;;  %v6602_v47 = vsel %vm236_vm11, 1.0, %v7234_v1  ;;  %v7423_v48 = vld [vmem:[%s10721_s1 + $0x40] sm:$0xff]  ;;  %v134_v49 = vld [vmem:[#allocation4 + $0x10] sm:$0xff]  ;;  %v7434_v52 = vld [vmem:[%s10721_s1 + $0x48] sm:$0xff] }
  0x24   :  { %6680 = vmatpush.msra.mxu2 %v143_v18  ;;  %154 = vmatpush.msra.mxu0 %v142_v22  ;;  %v427_v50 = vsub.f32 1.0, %v7416_v44  ;;  %v7429_v51 = vld [vmem:[%s10721_s1 + $0x50] sm:$0xff]  ;;  %v429_v53 = vsub.f32 1.0, %v6603_v46  ;;  %v428_v54 = vsub.f32 1.0, %v6602_v47  ;;  %vm238_vm12 = vcmp.ge.f32.partialorder %v7423_v48, 0.5  ;;  %v133_v55 = vld [vmem:[#allocation4 + $0x8] sm:$0xff] }
  0x25   :  { %vm240_vm13 = vcmp.ge.f32.partialorder %v7429_v51, 0.5  ;;  %vm239_vm14 = vcmp.ge.f32.partialorder %v7434_v52, 0.5  ;;  %v132_v56 = vld [vmem:[#allocation4] sm:$0xff]  ;;  %v6604_v57 = vsel %vm238_vm12, 1.0, %v7234_v1  ;;  %v7451_v62 = vld [vmem:[%s10721_s1 + $0x58] sm:$0xff]  ;;  %v117_v8 = vld [vmem:[%s10720_s0 + $0x8] sm:$0xff] }
  0x26   :  { %6681 = vmatpush.msra.mxu2 %v142_v22  ;;  %445 = vperm.xlu2 %6723, %v423_v23   ;;  %v116_v58 = vld [vmem:[%s10720_s0] sm:$0xff]  ;;  %v6606_v60 = vsel %vm240_vm13, 1.0, %v7234_v1  ;;  %v6605_v61 = vsel %vm239_vm14, 1.0, %v7234_v1  ;;  %v430_v63 = vsub.f32 1.0, %v6604_v57  ;;  %vm241_vm15 = vcmp.ge.f32.partialorder %v7451_v62, 0.5  ;;  %v129_v9 = vld [vmem:[%s10720_s0 + $0x68] sm:$0xff] }
  0x27   :  { %505 = vperm.xlu0 %6721, %v435_v26   ;;  %440 = vperm.xlu1 %6722, %v422_v27   ;;  %v128_v59 = vld [vmem:[%s10720_s0 + $0x60] sm:$0xff]  ;;  %v432_v0 = vsub.f32 1.0, %v6606_v60  ;;  %v431_v2 = vsub.f32 1.0, %v6605_v61  ;;  %v6607_v3 = vsel %vm241_vm15, 1.0, %v7234_v1  ;;  %v118_v1 = vld [vmem:[%s10720_s0 + $0x10] sm:$0xff]  ;;  %v119_v15 = vld [vmem:[%s10720_s0 + $0x18] sm:$0xff] }
  0x28   :  { %155 = vmatpush.msra.mxu0 %v141_v29  ;;  %6682 = vmatpush.msra.mxu2 %v141_v29  ;;  %v433_v12 = vsub.f32 1.0, %v6607_v3  ;;  %v130_v14 = vld [vmem:[%s10720_s0 + $0x70] sm:$0xff]  ;;  %v131_v18 = vld [vmem:[%s10720_s0 + $0x78] sm:$0xff]  ;;  %s6577_s26 = sshll.u32 %s7236_s8, 4  ;;  %s6579_s28 = sshll.u32 %s10729_s9, 4  ;;  %s6578_s26 = int_to_ptr.vmem [resolvable:$true] %s6577_s26  ;;  %s6580_s28 = int_to_ptr.hbm [resolvable:$true] %s6579_s28 }
  0x29   :  { %v122_v22 = vld [vmem:[%s10720_s0 + $0x30] sm:$0xff]  ;;  %v577_v27 = vld [vmem:[#allocation9 + $0x2d8] sm:$0xff] }
  0x2a   :  { %156 = vmatpush.msra.mxu0 %v140_v30  ;;  %6683 = vmatpush.msra.mxu2 %v140_v30  ;;  %v580_v23 = vld [vmem:[#allocation9 + $0x2f0] sm:$0xff]  ;;  %v574_v30 = vld [vmem:[#allocation9 + $0x2c0] sm:$0xff] }
  0x2b   :  { %v576_v26 = vld [vmem:[#allocation9 + $0x2d0] sm:$0xff] }
  0x2c   :  { %157 = vmatpush.msra.mxu0 %v139_v33  ;;  %6684 = vmatpush.msra.mxu2 %v139_v33  ;;  %v416_v29 = vld [vmem:[#allocation9 + $0x150] sm:$0xff]  ;;  %v410_v33 = vld [vmem:[#allocation9 + $0x120] sm:$0xff] }
  0x2e   :  { %158 = vmatpush.msra.mxu0 %v138_v36  ;;  %6685 = vmatpush.msra.mxu2 %v138_v36  ;;  %v568_v36 = vld [vmem:[#allocation9 + $0x290] sm:$0xff] }
  0x2f   :  { %450 = vperm.xlu0 %6721, %v424_v37   ;;  %460 = vperm.xlu2 %6723, %v426_v38   ;;  %v564_v37 = vld [vmem:[#allocation9 + $0x270] sm:$0xff]  ;;  %v565_v38 = vld [vmem:[#allocation9 + $0x278] sm:$0xff] }
  0x30   :  { %455 = vperm.xlu1 %6722, %v425_v41   ;;  %159 = vmatpush.msra.mxu0 %v137_v42  ;;  %v561_v41 = vld [vmem:[#allocation9 + $0x258] sm:$0xff] }
  0x31   :  { %6686 = vmatpush.msra.mxu2 %v137_v42 }
  0x32   :  { %160 = vmatpush.msra.mxu0 %v136_v43 }
  0x33   :  { %6687 = vmatpush.msra.mxu2 %v136_v43  ;;  %v126_v43 = vld [vmem:[%s10720_s0 + $0x50] sm:$0xff] }
  0x34   :  { %161 = vmatpush.msra.mxu0 %v135_v45 }
  0x35   :  { %6688 = vmatpush.msra.mxu2 %v135_v45  ;;  %v401_v45 = vld [vmem:[#allocation9 + $0xd8] sm:$0xff] }
  0x36   :  { %162 = vmatpush.msra.mxu0 %v134_v49 }
  0x37   :  { %6689 = vmatpush.msra.mxu2 %v134_v49  ;;  %465 = vperm.xlu0 %6721, %v427_v50   ;;  %v556_v49 = vld [vmem:[#allocation9 + $0x230] sm:$0xff]  ;;  %v395_v50 = vld [vmem:[#allocation9 + $0xa8] sm:$0xff] }
  0x38   :  { %475 = vperm.xlu2 %6723, %v429_v53   ;;  %470 = vperm.xlu1 %6722, %v428_v54   ;;  %v553_v53 = vld [vmem:[#allocation9 + $0x218] sm:$0xff] }
  0x39   :  { %163 = vmatpush.msra.mxu0 %v133_v55  ;;  %6690 = vmatpush.msra.mxu2 %v133_v55 }
  0x3b   :  { %164 = vmatpush.msra.mxu0 %v132_v56  ;;  %6691 = vmatpush.msra.mxu2 %v132_v56  ;;  %v127_v56 = vld [vmem:[%s10720_s0 + $0x58] sm:$0xff] }
  0x3c   :  { %165 = vmatmul.f32.vlgmr.msra.gmra.mxu0 %v116_v58  ;;  %201 = vmatmul.f32.vlgmr.msra.gmra.mxu2 %v128_v59  ;;  %v550_v58 = vld [vmem:[#allocation9 + $0x200] sm:$0xff]  ;;  %v389_v59 = vld [vmem:[#allocation9 + $0x78] sm:$0xff] }
  0x3d   :  { %647 = vmatpush.msrb.mxu2 %v580_v23  ;;  %v578_v23 = vld [vmem:[#allocation9 + $0x2e0] sm:$0xff] }
  0x3f   :  { %480 = vperm.xlu0 %6721, %v430_v63   ;;  %648 = vmatpush.msrb.mxu2 %v577_v27  ;;  %v543_v63 = vld [vmem:[#allocation9 + $0x1c8] sm:$0xff] }
  0x40   :  { %490 = vperm.xlu2 %6723, %v432_v0   ;;  %485 = vperm.xlu1 %6722, %v431_v2   ;;  %v544_v0 = vld [vmem:[#allocation9 + $0x1d0] sm:$0xff] }
  0x41   :  { %649 = vmatpush.msrb.mxu2 %v574_v30  ;;  %v566_v30 = vld [vmem:[#allocation9 + $0x280] sm:$0xff] }
  0x44   :  { %168 = vmatmul.f32.gmra.mxu0 %v117_v8  ;;  %204 = vmatmul.f32.gmra.mxu2 %v129_v9  ;;  %v383_v8 = vld [vmem:[#allocation9 + $0x48] sm:$0xff] }
  0x47   :  { %495 = vperm.xlu0 %6721, %v433_v12   ;;  %v541_v12 = vld [vmem:[#allocation9 + $0x1b8] sm:$0xff] }
  0x48   :  { %285 = vperm.xlu2 %6723, %v7356_v19   ;;  %280 = vperm.xlu1 %6722, %v7362_v21   ;;  %v120_v19 = vld [vmem:[%s10720_s0 + $0x20] sm:$0xff]  ;;  %v121_v21 = vld [vmem:[%s10720_s0 + $0x28] sm:$0xff] }
  0x4c   :  { %171 = vmatmul.f32.gmra.mxu0 %v118_v1  ;;  %207 = vmatmul.f32.gmra.mxu2 %v130_v14  ;;  %v110_v1 = vld [vmem:[#allocation7 + $0x3] sm:$0x1]  ;;  %v538_v14 = vld [vmem:[#allocation9 + $0x1a0] sm:$0xff] }
  0x4f   :  { %290 = vperm.xlu0 %6721, %v7386_v31   ;;  %v413_v31 = vld [vmem:[#allocation9 + $0x138] sm:$0xff] }
  0x50   :  { %300 = vperm.xlu2 %6723, %v7389_v32   ;;  %295 = vperm.xlu1 %6722, %v7392_v34   ;;  %v570_v32 = vld [vmem:[#allocation9 + $0x2a0] sm:$0xff]  ;;  %v567_v34 = vld [vmem:[#allocation9 + $0x288] sm:$0xff] }
  0x54   :  { %174 = vmatmul.f32.gmra.mxu0 %v119_v15  ;;  %210 = vmatmul.f32.gmra.mxu2 %v131_v18  ;;  %v377_v15 = vld [vmem:[#allocation9 + $0x18] sm:$0xff]  ;;  %v534_v18 = vld [vmem:[#allocation9 + $0x180] sm:$0xff] }
  0x57   :  { %305 = vperm.xlu0 %6721, %v7416_v44   ;;  %v562_v44 = vld [vmem:[#allocation9 + $0x260] sm:$0xff] }
  0x58   :  { %315 = vperm.xlu2 %6723, %v6603_v46   ;;  %310 = vperm.xlu1 %6722, %v6602_v47   ;;  %v559_v46 = vld [vmem:[#allocation9 + $0x248] sm:$0xff]  ;;  %v398_v47 = vld [vmem:[#allocation9 + $0xc0] sm:$0xff] }
  0x5c   :  { %177 = vmatmul.f32.gmra.mxu0 %v120_v19  ;;  %v535_v19 = vld [vmem:[#allocation9 + $0x188] sm:$0xff] }
  0x5f   :  { %974 = vperm.xlu0 %6721, %v7351_v17   ;;  %v123_v17 = vld [vmem:[%s10720_s0 + $0x38] sm:$0xff] }
  0x60   :  { %325 = vperm.xlu2 %6723, %v6605_v61   ;;  %320 = vperm.xlu1 %6722, %v6604_v57   ;;  %v547_v61 = vld [vmem:[#allocation9 + $0x1e8] sm:$0xff] }
  0x64   :  { %180 = vmatmul.f32.gmra.mxu0 %v121_v21  ;;  %v374_v21 = vld [vmem:[#allocation9] sm:$0xff] }
  0x67   :  { %330 = vperm.xlu0 %6721, %v6606_v60   ;;  %v546_v60 = vld [vmem:[#allocation9 + $0x1e0] sm:$0xff] }
  0x68   :  { %340 = vperm.xlu2 %6723, %v7333_v11   ;;  %335 = vperm.xlu1 %6722, %v6607_v3  }
  0x6c   :  { %183 = vmatmul.f32.gmra.mxu0 %v122_v22 }
  0x6f   :  { %345 = vperm.xlu0 %6721, %v7359_v20   ;;  %v124_v20 = vld [vmem:[%s10720_s0 + $0x40] sm:$0xff] }
  0x70   :  { %355 = vperm.xlu2 %6723, %v7324_v7   ;;  %350 = vperm.xlu1 %6722, %v7330_v10   ;;  %v579_v7 = vld [vmem:[#allocation9 + $0x2e8] sm:$0xff] }
  0x71   :  { %v419_v10 = vld [vmem:[#allocation9 + $0x168] sm:$0xff]  ;;  %582 = vmatpush.msra.mxu1 %v579_v7  ;;  %6692 = vmatpush.msra.mxu3 %v579_v7  ;;  %v581_v7 = vld [vmem:[#allocation9 + $0x2f8] sm:$0xff] }
  0x72   :  { %777 = vmatpush.msrb.mxu0 %v419_v10 }
  0x73   :  { %583 = vmatpush.msra.mxu1 %v576_v26  ;;  %6693 = vmatpush.msra.mxu3 %v576_v26  ;;  %v575_v26 = vld [vmem:[#allocation9 + $0x2c8] sm:$0xff] }
  0x74   :  { %186 = vmatmul.f32.gmra.mxu0 %v123_v17 }
  0x75   :  { %778 = vmatpush.msrb.mxu0 %v416_v29 }
  0x77   :  { %979 = vperm.xlu0 %6721, %v7346_v16   ;;  %v573_v16 = vld [vmem:[#allocation9 + $0x2b8] sm:$0xff]  ;;  %779 = vmatpush.msrb.mxu0 %v413_v31 }
  0x78   :  { %989 = vperm.xlu2 %6723, %v7380_v28   ;;  %984 = vperm.xlu1 %6722, %v7368_v24   ;;  %v7499_v11 = vpop.permute.xlu2 %515  ;;  %v125_v28 = vld [vmem:[%s10720_s0 + $0x48] sm:$0xff] }
  0x79   :  { %584 = vmatpush.msra.mxu1 %v573_v16  ;;  %6694 = vmatpush.msra.mxu3 %v573_v16  ;;  %v572_v16 = vld [vmem:[#allocation9 + $0x2b0] sm:$0xff] }
  0x7a   :  { %780 = vmatpush.msrb.mxu0 %v410_v33 }
  0x7b   :  { %585 = vmatpush.msra.mxu1 %v570_v32  ;;  %6695 = vmatpush.msra.mxu3 %v570_v32  ;;  %v563_v32 = vld [vmem:[#allocation9 + $0x268] sm:$0xff] }
  0x7c   :  { %189 = vmatmul.f32.gmra.mxu0 %v124_v20 }
  0x7d   :  { %586 = vmatpush.msra.mxu1 %v567_v34  ;;  %6696 = vmatpush.msra.mxu3 %v567_v34  ;;  %v560_v34 = vld [vmem:[#allocation9 + $0x250] sm:$0xff] }
  0x7f   :  { %994 = vperm.xlu0 %6721, %v7373_v25   ;;  %v571_v25 = vld [vmem:[#allocation9 + $0x2a8] sm:$0xff]  ;;  %587 = vmatpush.msra.mxu1 %v564_v37 }
  0x80   :  { %1004 = vperm.xlu2 %6723, %v7409_v40   ;;  %999 = vperm.xlu1 %6722, %v7397_v35   ;;  %v7507_v24 = vpop.permute.xlu2 %445  ;;  %v407_v35 = vld [vmem:[#allocation9 + $0x108] sm:$0xff]  ;;  %v404_v40 = vld [vmem:[#allocation9 + $0xf0] sm:$0xff] }
  0x81   :  { %650 = vmatpush.msrb.mxu2 %v571_v25  ;;  %781 = vmatpush.msrb.mxu0 %v407_v35  ;;  %v7559_v35 = vld [vmem:[#allocation7] ss:$0 sm:$0xff] }
  0x82   :  { %588 = vmatpush.msra.mxu1 %v561_v41  ;;  %6697 = vmatpush.msra.mxu3 %v564_v37  ;;  %v554_v37 = vld [vmem:[#allocation9 + $0x220] sm:$0xff] }
  0x83   :  { %651 = vmatpush.msrb.mxu2 %v568_v36  ;;  %782 = vmatpush.msrb.mxu0 %v404_v40  ;;  %v557_v36 = vld [vmem:[#allocation9 + $0x238] sm:$0xff] }
  0x84   :  { %192 = vmatmul.f32.gmra.mxu0 %v125_v28  ;;  %6698 = vmatpush.msra.mxu3 %v561_v41  ;;  %v569_v28 = vld [vmem:[#allocation9 + $0x298] sm:$0xff]  ;;  %v551_v41 = vld [vmem:[#allocation9 + $0x208] sm:$0xff] }
  0x85   :  { %652 = vmatpush.msrb.mxu2 %v565_v38  ;;  %783 = vmatpush.msrb.mxu0 %v401_v45 }
  0x87   :  { %1009 = vperm.xlu0 %6721, %v7404_v39   ;;  %v558_v39 = vld [vmem:[#allocation9 + $0x240] sm:$0xff]  ;;  %653 = vmatpush.msrb.mxu2 %v562_v44 }
  0x88   :  { %1019 = vperm.xlu2 %6723, %v7434_v52   ;;  %1014 = vperm.xlu1 %6722, %v7423_v48   ;;  %v555_v48 = vld [vmem:[#allocation9 + $0x228] sm:$0xff]  ;;  %v552_v52 = vld [vmem:[#allocation9 + $0x210] sm:$0xff] }
  0x89   :  { %v7515_v42 = vpop.permute.xlu2 %460  ;;  %589 = vmatpush.msra.mxu1 %v558_v39  ;;  %654 = vmatpush.msrb.mxu2 %v559_v46 }
  0x8a   :  { %784 = vmatpush.msrb.mxu0 %v398_v47  ;;  %6699 = vmatpush.msra.mxu3 %v558_v39  ;;  %v421_v39 = vld [vmem:[#allocation9 + $0x178] sm:$0xff] }
  0x8b   :  { %590 = vmatpush.msra.mxu1 %v555_v48  ;;  %655 = vmatpush.msrb.mxu2 %v556_v49  ;;  %v545_v49 = vld [vmem:[#allocation9 + $0x1d8] sm:$0xff] }
  0x8c   :  { %195 = vmatmul.f32.gmra.mxu0 %v126_v43  ;;  %6700 = vmatpush.msra.mxu3 %v555_v48  ;;  %v548_v48 = vld [vmem:[#allocation9 + $0x1f0] sm:$0xff] }
  0x8d   :  { %785 = vmatpush.msrb.mxu0 %v395_v50  ;;  %591 = vmatpush.msra.mxu1 %v552_v52 }
  0x8e   :  { %656 = vmatpush.msrb.mxu2 %v553_v53  ;;  %6701 = vmatpush.msra.mxu3 %v552_v52  ;;  %v542_v53 = vld [vmem:[#allocation9 + $0x1c0] sm:$0xff] }
  0x8f   :  { %1024 = vperm.xlu0 %6721, %v7429_v51   ;;  %v392_v51 = vld [vmem:[#allocation9 + $0x90] sm:$0xff] }
  0x90   :  { %1034 = vperm.xlu2 %6723, %v7321_v6   ;;  %1029 = vperm.xlu1 %6722, %v7451_v62   ;;  %v549_v6 = vld [vmem:[#allocation9 + $0x1f8] sm:$0xff]  ;;  %v386_v62 = vld [vmem:[#allocation9 + $0x60] sm:$0xff] }
  0x91   :  { %v7523_v54 = vpop.permute.xlu1 %510  ;;  %v7525_v55 = vpop.permute.xlu0 %500  ;;  %786 = vmatpush.msrb.mxu0 %v392_v51  ;;  %592 = vmatpush.msra.mxu1 %v549_v6 }
  0x92   :  { %v7530_v57 = vpop.permute.xlu2 %475  ;;  %657 = vmatpush.msrb.mxu2 %v550_v58  ;;  %6702 = vmatpush.msra.mxu3 %v549_v6 }
  0x93   :  { %787 = vmatpush.msrb.mxu0 %v389_v59  ;;  %593 = vmatpush.msra.mxu1 %v546_v60 }
  0x94   :  { %198 = vmatmul.f32.gmra.mxu0 %v127_v56  ;;  %658 = vmatpush.msrb.mxu2 %v547_v61  ;;  %v539_v61 = vld [vmem:[#allocation9 + $0x1a8] sm:$0xff] }
  0x95   :  { %788 = vmatpush.msrb.mxu0 %v386_v62  ;;  %594 = vmatpush.msra.mxu1 %v543_v63  ;;  %v418_v62 = vld [vmem:[#allocation9 + $0x160] sm:$0xff] }
  0x96   :  { %659 = vmatpush.msrb.mxu2 %v544_v0  ;;  %6703 = vmatpush.msra.mxu3 %v546_v60 }
  0x97   :  { %1039 = vperm.xlu0 %6721, %v7338_v13   ;;  %v540_v13 = vld [vmem:[#allocation9 + $0x1b0] sm:$0xff]  ;;  %789 = vmatpush.msrb.mxu0 %v383_v8  ;;  %v1322_v8 = vld [vmem:[#allocation10 + $0x168] sm:$0xff] }
  0x98   :  { %1049 = vperm.xlu2 %6723, %v7310_v4   ;;  %1044 = vperm.xlu1 %6722, %v7316_v5   ;;  %v380_v4 = vld [vmem:[#allocation9 + $0x30] sm:$0xff]  ;;  %v537_v5 = vld [vmem:[#allocation9 + $0x198] sm:$0xff] }
  0x99   :  { %v7535_v2 = vpop.permute.xlu0 %505  ;;  %v7537_v3 = vpop.permute.xlu1 %440  ;;  %595 = vmatpush.msra.mxu1 %v540_v13  ;;  %660 = vmatpush.msrb.mxu2 %v541_v12 }
  0x9a   :  { %v7539_v9 = vpop.permute.xlu2 %490  ;;  %790 = vmatpush.msrb.mxu0 %v380_v4  ;;  %6704 = vmatpush.msra.mxu3 %v543_v63 }
  0x9b   :  { %596 = vmatpush.msra.mxu1 %v537_v5  ;;  %661 = vmatpush.msrb.mxu2 %v538_v14 }
  0x9c   :  { %791 = vmatpush.msrb.mxu0 %v377_v15  ;;  %6705 = vmatpush.msra.mxu3 %v540_v13  ;;  %v415_v15 = vld [vmem:[#allocation9 + $0x148] sm:$0xff] }
  0x9d   :  { %597 = vmatpush.msra.mxu1 %v534_v18  ;;  %662 = vmatpush.msrb.mxu2 %v535_v19 }
  0x9e   :  { %792 = vmatpush.msrb.mxu0 %v374_v21  ;;  %6706 = vmatpush.msra.mxu3 %v537_v5 }
  0x9f   :  { %6555 = vperm.xlu0 %6721, %v110_v1   ;;  %907 = vmatpush.msra.mxu2 %v421_v39 }
  0xa0   :  { %6707 = vmatpush.msra.mxu3 %v534_v18  ;;  %v7618_v18 = vld [vmem:[#allocation12] ss:$4 sm:$0x7] }
  0xa1   :  { %v7541_v22 = vpop.permute.xlu0 %450  ;;  %908 = vmatpush.msra.mxu2 %v418_v62  ;;  %v409_v62 = vld [vmem:[#allocation9 + $0x118] sm:$0xff] }
  0xa2   :  { %v7543_v17 = vpop.permute.xlu2 %285  ;;  %v7545_v20 = vpop.permute.xlu1 %455  ;;  %712 = vmatpush.msrb.mxu3 %v581_v7  ;;  %v7634_v7 = vperm.slane %v7618_v18, 2 }
  0xa3   :  { %909 = vmatpush.msra.mxu2 %v415_v15 }
  0xa4   :  { %713 = vmatpush.msrb.mxu3 %v578_v23 }
  0xa6   :  { %714 = vmatpush.msrb.mxu3 %v575_v26 }
  0xa8   :  { %715 = vmatpush.msrb.mxu3 %v572_v16 }
  0xa9   :  { %v7547_v10 = vpop.permute.xlu0 %465 }
  0xaa   :  { %v7549_v27 = vpop.permute.xlu2 %300  ;;  %v7551_v29 = vpop.permute.xlu1 %470  ;;  %716 = vmatpush.msrb.mxu3 %v569_v28 }
  0xac   :  { %717 = vmatpush.msrb.mxu3 %v566_v30 }
  0xae   :  { %718 = vmatpush.msrb.mxu3 %v563_v32 }
  0xb0   :  { %719 = vmatpush.msrb.mxu3 %v560_v34 }
  0xb1   :  { %v7553_v31 = vpop.permute.xlu0 %480 }
  0xb2   :  { %v7555_v25 = vpop.permute.xlu2 %315  ;;  %v7557_v33 = vpop.permute.xlu1 %485  ;;  %720 = vmatpush.msrb.mxu3 %v557_v36 }
  0xb4   :  { %721 = vmatpush.msrb.mxu3 %v554_v37  ;;  %v412_v37 = vld [vmem:[#allocation9 + $0x130] sm:$0xff] }
  0xb5   :  { %910 = vmatpush.msra.mxu2 %v412_v37  ;;  %v414_v37 = vld [vmem:[#allocation9 + $0x140] sm:$0xff] }
  0xb6   :  { %722 = vmatpush.msrb.mxu3 %v551_v41 }
  0xb7   :  { %911 = vmatpush.msra.mxu2 %v409_v62  ;;  %v408_v62 = vld [vmem:[#allocation9 + $0x110] sm:$0xff] }
  0xb8   :  { %723 = vmatpush.msrb.mxu3 %v548_v48 }
  0xb9   :  { %v166_v38 = vpop.f32.mrf.mxu0  ;;  %v7561_v40 = vpop.permute.xlu0 %495 }
  0xba   :  { %v7564_v43 = vadd.f32 %v7559_v35, %v166_v38  ;;  %v7566_v44 = vpop.permute.xlu2 %325  ;;  %v281_v45 = vpop.permute.xlu1 %280  ;;  %724 = vmatpush.msrb.mxu3 %v545_v49  ;;  %v1316_v49 = vld [vmem:[#allocation10 + $0x138] sm:$0xff] }
  0xbc   :  { %10746 = vst [vmem:[#allocation21_spill] sm:$0xff] %v7564_v43  ;;  %v7569_v46 = vmul.f32 %v281_v45, %v7564_v43  ;;  %v7573_v47 = vmul.f32 %v7537_v3, %v7564_v43  ;;  %725 = vmatpush.msrb.mxu3 %v542_v53  ;;  %v536_v3 = vld [vmem:[#allocation9 + $0x190] sm:$0xff] }
  0xbe   :  { %598 = vmatmul.f32.vlgmr.msra.gmra.mxu1 %v7573_v47  ;;  %663 = vmatmul.f32.vlgmr.msrb.gmra.mxu2 %v7573_v47 }
  0xbf   :  { %793 = vmatmul.f32.vlgmr.msrb.gmra.mxu0 %v7569_v46  ;;  %v202_v50 = vpop.f32.mrf.mxu2  ;;  %726 = vmatpush.msrb.mxu3 %v539_v61 }
  0xc0   :  { %v7579_v52 = vadd.f32 %v7559_v35, %v202_v50 }
  0xc1   :  { %v169_v56 = vpop.f32.mrf.mxu0  ;;  %v291_v51 = vpop.permute.xlu0 %290  ;;  %727 = vmatpush.msrb.mxu3 %v536_v3 }
  0xc2   :  { %10747 = vst [vmem:[#allocation22_spill] sm:$0xff] %v7579_v52  ;;  %v7582_v6 = vadd.f32 %v7559_v35, %v169_v56  ;;  %v7584_v58 = vpop.permute.xlu2 %340  ;;  %v296_v59 = vpop.permute.xlu1 %295  ;;  %v7588_v60 = vmul.f32 %v7525_v55, %v7579_v52 }
  0xc4   :  { %10748 = vst [vmem:[#allocation23_spill] sm:$0xff] %v7582_v6  ;;  %634 = vmatmul.f32.vlgmr.msra.gmra.mxu3 %v7588_v60  ;;  %v7593_v63 = vmul.f32 %v7507_v24, %v7582_v6  ;;  %v7597_v0 = vmul.f32 %v7543_v17, %v7582_v6  ;;  %v1319_v17 = vld [vmem:[#allocation10 + $0x150] sm:$0xff] }
  0xc5   :  { %1332 = vmatpush.msra.mxu3 %v1322_v8  ;;  %v400_v6 = vld [vmem:[#allocation9 + $0xd0] sm:$0xff] }
  0xc6   :  { %601 = vmatmul.f32.gmra.mxu1 %v7593_v63  ;;  %666 = vmatmul.f32.gmra.mxu2 %v7593_v63 }
  0xc7   :  { %796 = vmatmul.f32.gmra.mxu0 %v7597_v0  ;;  %v205_v55 = vpop.f32.mrf.mxu2  ;;  %1333 = vmatpush.msra.mxu3 %v1319_v17 }
  0xc8   :  { %v7603_v13 = vadd.f32 %v7559_v35, %v205_v55  ;;  %v1313_v55 = vld [vmem:[#allocation10 + $0x120] sm:$0xff] }
  0xc9   :  { %v172_v24 = vpop.f32.mrf.mxu0  ;;  %v7605_v12 = vpop.permute.xlu0 %305  ;;  %1334 = vmatpush.msra.mxu3 %v1316_v49 }
  0xca   :  { %10749 = vst [vmem:[#allocation24_spill] sm:$0xff] %v7603_v13  ;;  %v7608_v4 = vadd.f32 %v7559_v35, %v172_v24  ;;  %v7610_v1 = vpop.permute.xlu2 %355  ;;  %v7612_v5 = vpop.permute.xlu1 %310  ;;  %v7616_v14 = vmul.f32 %v7535_v2, %v7603_v13  ;;  %v7631_v2 = vperm.slane %v7618_v18, 1 }
  0xcb   :  { %1335 = vmatpush.msra.mxu3 %v1313_v55 }
  0xcc   :  { %10750 = vst [vmem:[#allocation25_spill] sm:$0xff] %v7608_v4  ;;  %637 = vmatmul.f32.gmra.mxu3 %v7616_v14  ;;  %v7623_v19 = vmul.f32 %v7541_v22, %v7608_v4  ;;  %v7626_v21 = vmul.f32 %v291_v51, %v7608_v4 }
  0xce   :  { %604 = vmatmul.f32.gmra.mxu1 %v7623_v19  ;;  %669 = vmatmul.f32.gmra.mxu2 %v7623_v19 }
  0xcf   :  { %799 = vmatmul.f32.gmra.mxu0 %v7626_v21  ;;  %v208_v23 = vpop.f32.mrf.mxu2 }
  0xd0   :  { %v7638_v22 = vadd.f32 %v7559_v35, %v208_v23 }
  0xd1   :  { %v175_v26 = vpop.f32.mrf.mxu0  ;;  %v7640_v16 = vpop.permute.xlu0 %974 }
  0xd2   :  { %10751 = vst [vmem:[#allocation26_spill] sm:$0xff] %v7638_v22  ;;  %v7643_v28 = vadd.f32 %v7559_v35, %v175_v26  ;;  %v7645_v30 = vpop.permute.xlu2 %989  ;;  %v7649_v32 = vmul.f32 %v7631_v2, %v7640_v16  ;;  %v7653_v34 = vmul.f32 %v7634_v7, %v7640_v16  ;;  %v7655_v36 = vpop.permute.xlu1 %320  ;;  %v7667_v45 = vmul.f32 %v7523_v54, %v7638_v22  ;;  %v406_v26 = vld [vmem:[#allocation9 + $0x100] sm:$0xff] }
  0xd3   :  { %v7659_v38 = vmul.f32 %v7631_v2, %v7645_v30  ;;  %v7663_v41 = vmul.f32 %v7634_v7, %v7645_v30  ;;  %912 = vmatpush.msra.mxu2 %v406_v26  ;;  %v403_v26 = vld [vmem:[#allocation9 + $0xe8] sm:$0xff] }
  0xd4   :  { %10752 = vst [vmem:[#allocation27_spill] sm:$0xff] %v7643_v28  ;;  %v7671_v39 = vmul.f32 %v7545_v20, %v7643_v28  ;;  %v7674_v48 = vmul.f32 %v296_v59, %v7643_v28  ;;  %640 = vmatmul.f32.gmra.mxu3 %v7667_v45  ;;  %v1311_v28 = vld [vmem:[#allocation10 + $0x110] sm:$0xff] }
  0xd5   :  { %913 = vmatpush.msra.mxu2 %v403_v26 }
  0xd6   :  { %607 = vmatmul.f32.gmra.mxu1 %v7671_v39  ;;  %672 = vmatmul.f32.gmra.mxu2 %v7671_v39 }
  0xd7   :  { %802 = vmatmul.f32.gmra.mxu0 %v7674_v48  ;;  %v211_v50 = vpop.f32.mrf.mxu2  ;;  %914 = vmatpush.msra.mxu2 %v400_v6 }
  0xd8   :  { %v7681_v54 = vadd.f32 %v7559_v35, %v211_v50 }
  0xd9   :  { %v178_v53 = vpop.f32.mrf.mxu0  ;;  %v7683_v20 = vpop.permute.xlu0 %330 }
  0xda   :  { %10753 = vst [vmem:[#allocation28_spill] sm:$0xff] %v7681_v54  ;;  %v7686_v56 = vadd.f32 %v7559_v35, %v178_v53  ;;  %v1005_v51 = vpop.permute.xlu2 %1004  ;;  %v7688_v59 = vpop.permute.xlu1 %335  ;;  %v7692_v61 = vmul.f32 %v7499_v11, %v7681_v54  ;;  %v420_v11 = vld [vmem:[#allocation9 + $0x170] sm:$0xff]  ;;  %v1310_v53 = vld [vmem:[#allocation10 + $0x108] sm:$0xff] }
  0xdb   :  { %842 = vmatpush.msrb.mxu1 %v420_v11  ;;  %v411_v51 = vld [vmem:[#allocation9 + $0x128] sm:$0xff]  ;;  %1336 = vmatpush.msra.mxu3 %v1310_v53  ;;  %v405_v11 = vld [vmem:[#allocation9 + $0xf8] sm:$0xff] }
  0xdc   :  { %10754 = vst [vmem:[#allocation29_spill] sm:$0xff] %v7686_v56  ;;  %v7696_v3 = vmul.f32 %v7515_v42, %v7686_v56  ;;  %v7700_v8 = vmul.f32 %v7549_v27, %v7686_v56  ;;  %643 = vmatmul.f32.gmra.mxu3 %v7692_v61  ;;  %v417_v42 = vld [vmem:[#allocation9 + $0x158] sm:$0xff] }
  0xdd   :  { %843 = vmatpush.msrb.mxu1 %v417_v42 }
  0xde   :  { %610 = vmatmul.f32.gmra.mxu1 %v7696_v3  ;;  %675 = vmatmul.f32.gmra.mxu2 %v7696_v3 }
  0xdf   :  { %805 = vmatmul.f32.gmra.mxu0 %v7700_v8  ;;  %844 = vmatpush.msrb.mxu1 %v414_v37 }
  0xe1   :  { %v181_v24 = vpop.f32.mrf.mxu0  ;;  %v7706_v15 = vpop.permute.xlu0 %345  ;;  %845 = vmatpush.msrb.mxu1 %v411_v51 }
  0xe2   :  { %v7709_v17 = vadd.f32 %v7559_v35, %v181_v24  ;;  %v1020_v27 = vpop.permute.xlu2 %1019  ;;  %v7711_v23 = vpop.permute.xlu1 %350 }
  0xe3   :  { %846 = vmatpush.msrb.mxu1 %v408_v62  ;;  %v402_v62 = vld [vmem:[#allocation9 + $0xe0] sm:$0xff] }
  0xe4   :  { %10755 = vst [vmem:[#allocation30_spill] sm:$0xff] %v7709_v17  ;;  %v7715_v49 = vmul.f32 %v7547_v10, %v7709_v17  ;;  %v7719_v50 = vmul.f32 %v7605_v12, %v7709_v17  ;;  %728 = vmatmul.f32.vlgmr.msrb.gmra.mxu3 %v7573_v47 }
  0xe5   :  { %847 = vmatpush.msrb.mxu1 %v405_v11 }
  0xe6   :  { %613 = vmatmul.f32.gmra.mxu1 %v7715_v49  ;;  %678 = vmatmul.f32.gmra.mxu2 %v7715_v49 }
  0xe7   :  { %808 = vmatmul.f32.gmra.mxu0 %v7719_v50  ;;  %848 = vmatpush.msrb.mxu1 %v402_v62 }
  0xe9   :  { %v184_v10 = vpop.f32.mrf.mxu0  ;;  %v7725_v55 = vpop.permute.xlu0 %979 }
  0xea   :  { %v7728_v12 = vadd.f32 %v7559_v35, %v184_v10  ;;  %v1035_v24 = vpop.permute.xlu2 %1034  ;;  %v7732_v47 = vmul.f32 %v7631_v2, %v7725_v55  ;;  %v7736_v42 = vmul.f32 %v7634_v7, %v7725_v55  ;;  %v7738_v27 = vpop.permute.xlu1 %984 }
  0xeb   :  { %v7742_v37 = vmul.f32 %v7631_v2, %v7738_v27  ;;  %v7746_v53 = vmul.f32 %v7634_v7, %v7738_v27  ;;  %v1307_v24 = vld [vmem:[#allocation10 + $0xf0] sm:$0xff]  ;;  %v399_v2 = vld [vmem:[#allocation9 + $0xc8] sm:$0xff] }
  0xec   :  { %10756 = vst [vmem:[#allocation31_spill] sm:$0xff] %v7728_v12  ;;  %v7750_v51 = vmul.f32 %v7551_v29, %v7728_v12  ;;  %v7754_v10 = vmul.f32 %v7612_v5, %v7728_v12  ;;  %731 = vmatmul.f32.gmra.mxu3 %v7593_v63  ;;  %v396_v29 = vld [vmem:[#allocation9 + $0xb0] sm:$0xff]  ;;  %849 = vmatpush.msrb.mxu1 %v399_v2  ;;  %v393_v63 = vld [vmem:[#allocation9 + $0x98] sm:$0xff] }
  0xed   :  { %1337 = vmatpush.msra.mxu3 %v1307_v24  ;;  %v390_v24 = vld [vmem:[#allocation9 + $0x80] sm:$0xff]  ;;  %v7772_v2 = vld [vmem:[#allocation10 + $0xd8] sm:$0xff] }
  0xee   :  { %616 = vmatmul.f32.gmra.mxu1 %v7750_v51  ;;  %681 = vmatmul.f32.gmra.mxu2 %v7750_v51 }
  0xef   :  { %811 = vmatmul.f32.gmra.mxu0 %v7754_v10  ;;  %850 = vmatpush.msrb.mxu1 %v396_v29 }
  0xf0   :  { %1338 = vmatpush.msra.mxu3 %v7772_v2 }
  0xf1   :  { %v187_v7 = vpop.f32.mrf.mxu0  ;;  %v995_v26 = vpop.permute.xlu0 %994  ;;  %851 = vmatpush.msrb.mxu1 %v393_v63 }
  0xf2   :  { %v7761_v5 = vadd.f32 %v7559_v35, %v187_v7  ;;  %v1050_v11 = vpop.permute.xlu2 %1049  ;;  %v1000_v43 = vpop.permute.xlu1 %999  ;;  %v381_v26 = vld [vmem:[#allocation9 + $0x38] sm:$0xff] }
  0xf3   :  { %v387_v43 = vld [vmem:[#allocation9 + $0x68] sm:$0xff]  ;;  %852 = vmatpush.msrb.mxu1 %v390_v24  ;;  %v378_v24 = vld [vmem:[#allocation9 + $0x20] sm:$0xff] }
  0xf4   :  { %10757 = vst [vmem:[#allocation32_spill] sm:$0xff] %v7761_v5  ;;  %v7765_v4 = vmul.f32 %v7530_v57, %v7761_v5  ;;  %v7769_v62 = vmul.f32 %v7555_v25, %v7761_v5  ;;  %734 = vmatmul.f32.gmra.mxu3 %v7623_v19  ;;  %v397_v57 = vld [vmem:[#allocation9 + $0xb8] sm:$0xff]  ;;  %v384_v25 = vld [vmem:[#allocation9 + $0x50] sm:$0xff] }
  0xf5   :  { %915 = vmatpush.msra.mxu2 %v397_v57  ;;  %853 = vmatpush.msrb.mxu1 %v387_v43  ;;  %v7790_v57 = vld [vmem:[#allocation10 + $0xc0] sm:$0xff]  ;;  %v375_v43 = vld [vmem:[#allocation9 + $0x8] sm:$0xff] }
  0xf6   :  { %619 = vmatmul.f32.gmra.mxu1 %v7765_v4  ;;  %684 = vmatmul.f32.gmra.mxu2 %v7765_v4 }
  0xf7   :  { %814 = vmatmul.f32.gmra.mxu0 %v7769_v62  ;;  %854 = vmatpush.msrb.mxu1 %v384_v25 }
  0xf8   :  { %1339 = vmatpush.msra.mxu3 %v7790_v57 }
  0xf9   :  { %v190_v6 = vpop.f32.mrf.mxu0  ;;  %v1010_v29 = vpop.permute.xlu0 %1009  ;;  %855 = vmatpush.msrb.mxu1 %v381_v26  ;;  %v7808_v26 = vld [vmem:[#allocation10 + $0xa8] sm:$0xff] }
  0xfa   :  { %v7779_v19 = vadd.f32 %v7559_v35, %v190_v6  ;;  %v1015_v7 = vpop.permute.xlu1 %1014  ;;  %1340 = vmatpush.msra.mxu3 %v7808_v26 }
  0xfb   :  { %856 = vmatpush.msrb.mxu1 %v378_v24  ;;  %v391_v24 = vld [vmem:[#allocation9 + $0x88] sm:$0xff] }
  0xfc   :  { %10758 = vst [vmem:[#allocation33_spill] sm:$0xff] %v7779_v19  ;;  %v7783_v11 = vmul.f32 %v7553_v31, %v7779_v19  ;;  %v7787_v63 = vmul.f32 %v7655_v36, %v7779_v19  ;;  %737 = vmatmul.f32.gmra.mxu3 %v7671_v39  ;;  %v394_v31 = vld [vmem:[#allocation9 + $0xa0] sm:$0xff] }
  0xfd   :  { %916 = vmatpush.msra.mxu2 %v394_v31  ;;  %857 = vmatpush.msrb.mxu1 %v375_v43  ;;  %v1309_v19 = vld [vmem:[#allocation10 + $0x100] sm:$0xff] }
  0xfe   :  { %622 = vmatmul.f32.gmra.mxu1 %v7783_v11  ;;  %687 = vmatmul.f32.gmra.mxu2 %v7783_v11 }
  0xff   :  { %817 = vmatmul.f32.gmra.mxu0 %v7787_v63  ;;  %917 = vmatpush.msra.mxu2 %v391_v24 }
 0x101   :  { %v193_v36 = vpop.f32.mrf.mxu0  ;;  %v1025_v25 = vpop.permute.xlu0 %1024 }
 0x102   :  { %v7797_v39 = vadd.f32 %v7559_v35, %v193_v36  ;;  %v1030_v6 = vpop.permute.xlu1 %1029  ;;  %v7826_v25 = vld [vmem:[#allocation10 + $0x90] sm:$0xff] }
 0x103   :  { %1341 = vmatpush.msra.mxu3 %v7826_v25  ;;  %v388_v6 = vld [vmem:[#allocation9 + $0x70] sm:$0xff] }
 0x104   :  { %10759 = vst [vmem:[#allocation34_spill] sm:$0xff] %v7797_v39  ;;  %v7801_v29 = vmul.f32 %v7557_v33, %v7797_v39  ;;  %v7805_v7 = vmul.f32 %v7566_v44, %v7797_v39  ;;  %740 = vmatmul.f32.gmra.mxu3 %v7696_v3  ;;  %918 = vmatpush.msra.mxu2 %v388_v6  ;;  %v7859_v6 = vld [vmem:[#allocation10 + $0x48] sm:$0xff] }
 0x106   :  { %625 = vmatmul.f32.gmra.mxu1 %v7801_v29  ;;  %690 = vmatmul.f32.gmra.mxu2 %v7801_v29 }
 0x107   :  { %820 = vmatmul.f32.gmra.mxu0 %v7805_v7 }
 0x109   :  { %v196_v33 = vpop.f32.mrf.mxu0  ;;  %v1040_v43 = vpop.permute.xlu0 %1039 }
 0x10a   :  { %v7815_v31 = vadd.f32 %v7559_v35, %v196_v33  ;;  %v1045_v44 = vpop.permute.xlu1 %1044  ;;  %v7844_v33 = vld [vmem:[#allocation10 + $0x78] sm:$0xff]  ;;  %v382_v43 = vld [vmem:[#allocation9 + $0x40] sm:$0xff] }
 0x10b   :  { %1342 = vmatpush.msra.mxu3 %v7844_v33  ;;  %v376_v44 = vld [vmem:[#allocation9 + $0x10] sm:$0xff] }
 0x10c   :  { %10760 = vst [vmem:[#allocation35_spill] sm:$0xff] %v7815_v31  ;;  %v7819_v3 = vmul.f32 %v7539_v9, %v7815_v31  ;;  %v7823_v36 = vmul.f32 %v7683_v20, %v7815_v31  ;;  %743 = vmatmul.f32.gmra.mxu3 %v7715_v49 }
 0x10e   :  { %628 = vmatmul.f32.gmra.mxu1 %v7819_v3  ;;  %693 = vmatmul.f32.gmra.mxu2 %v7819_v3 }
 0x10f   :  { %823 = vmatmul.f32.gmra.mxu0 %v7823_v36 }
 0x111   :  { %v199_v9 = vpop.f32.mrf.mxu0 }
 0x112   :  { %v7833_v24 = vadd.f32 %v7559_v35, %v199_v9  ;;  %v385_v35 = vld [vmem:[#allocation9 + $0x58] sm:$0xff]  ;;  %v7863_v9 = vld [vmem:[#allocation10 + $0x30] sm:$0xff] }
 0x113   :  { %919 = vmatpush.msra.mxu2 %v385_v35  ;;  %v7876_v35 = vld [vmem:[#allocation10] sm:$0xff] }
 0x114   :  { %10761 = vst [vmem:[#allocation36_spill] sm:$0xff] %v7833_v24  ;;  %v7837_v20 = vmul.f32 %v7561_v40, %v7833_v24  ;;  %v7841_v49 = vmul.f32 %v7688_v59, %v7833_v24  ;;  %746 = vmatmul.f32.gmra.mxu3 %v7750_v51  ;;  %v379_v40 = vld [vmem:[#allocation9 + $0x28] sm:$0xff]  ;;  %v7850_v59 = vld [vmem:[#allocation10 + $0x60] sm:$0xff]  ;;  %v7854_v51 = vmul.f32 %v7584_v58, %v7579_v52  ;;  %v7867_v58 = vld [vmem:[#allocation10 + $0x18] sm:$0xff] }
 0x115   :  { %920 = vmatpush.msra.mxu2 %v382_v43  ;;  %1343 = vmatpush.msra.mxu3 %v7850_v59  ;;  %v1323_v43 = vld [vmem:[#allocation10 + $0x170] sm:$0xff]  ;;  %v1294_v24 = vld [vmem:[#allocation10 + $0x88] sm:$0xff] }
 0x116   :  { %631 = vmatmul.f32.gmra.mxu1 %v7837_v20  ;;  %696 = vmatmul.f32.gmra.mxu2 %v7837_v20 }
 0x117   :  { %826 = vmatmul.f32.gmra.mxu0 %v7841_v49  ;;  %921 = vmatpush.msra.mxu2 %v379_v40  ;;  %v1320_v40 = vld [vmem:[#allocation10 + $0x158] sm:$0xff] }
 0x118   :  { %1344 = vmatpush.msra.mxu3 %v7859_v6  ;;  %1515 = vmatpush.msra.mxu0 %v1323_v43 }
 0x119   :  { %922 = vmatpush.msra.mxu2 %v376_v44  ;;  %v1314_v44 = vld [vmem:[#allocation10 + $0x128] sm:$0xff] }
 0x11a   :  { %1345 = vmatpush.msra.mxu3 %v7863_v9  ;;  %1516 = vmatpush.msra.mxu0 %v1320_v40 }
 0x11c   :  { %749 = vmatmul.f32.gmra.mxu3 %v7765_v4  ;;  %v7871_v4 = vmul.f32 %v7706_v15, %v7603_v13  ;;  %v1317_v15 = vld [vmem:[#allocation10 + $0x140] sm:$0xff] }
 0x11d   :  { %1346 = vmatpush.msra.mxu3 %v7867_v58  ;;  %1517 = vmatpush.msra.mxu0 %v1317_v15 }
 0x11e   :  { %699 = vmatmul.f32.gmra.mxu2 %v7588_v60  ;;  %858 = vmatmul.f32.vlgmr.msrb.gmra.mxu1 %v7569_v46 }
 0x11f   :  { %829 = vmatmul.f32.gmra.mxu0 %v7854_v51  ;;  %1347 = vmatpush.msra.mxu3 %v7876_v35 }
 0x120   :  { %1518 = vmatpush.msra.mxu0 %v1314_v44 }
 0x121   :  { %1352 = vmatpush.msrb.mxu3 %v1323_v43  ;;  %v1308_v43 = vld [vmem:[#allocation10 + $0xf8] sm:$0xff] }
 0x122   :  { %1519 = vmatpush.msra.mxu0 %v1311_v28 }
 0x123   :  { %1353 = vmatpush.msrb.mxu3 %v1320_v40  ;;  %v1302_v40 = vld [vmem:[#allocation10 + $0xc8] sm:$0xff] }
 0x124   :  { %752 = vmatmul.f32.gmra.mxu3 %v7783_v11  ;;  %v7883_v11 = vmul.f32 %v7711_v23, %v7638_v22  ;;  %1520 = vmatpush.msra.mxu0 %v1308_v43  ;;  %v7892_v23 = vmul.f32 %v7610_v1, %v7681_v54  ;;  %v1299_v1 = vld [vmem:[#allocation10 + $0xb0] sm:$0xff] }
 0x125   :  { %1354 = vmatpush.msrb.mxu3 %v1317_v15  ;;  %v7900_v15 = vld [vmem:[#allocation12 + $0x1] ss:$4 sm:$0x7] }
 0x126   :  { %702 = vmatmul.f32.gmra.mxu2 %v7616_v14  ;;  %861 = vmatmul.f32.gmra.mxu1 %v7597_v0 }
 0x127   :  { %832 = vmatmul.f32.gmra.mxu0 %v7871_v4  ;;  %1355 = vmatpush.msrb.mxu3 %v1314_v44 }
 0x129   :  { %1356 = vmatpush.msrb.mxu3 %v1311_v28  ;;  %v7898_v28 = vperm.slane %v7618_v18, 0  ;;  %v1296_v18 = vld [vmem:[#allocation10 + $0x98] sm:$0xff] }
 0x12b   :  { %1357 = vmatpush.msrb.mxu3 %v1308_v43  ;;  %v1059_v56 = vmul.f32 %v7898_v28, %v7640_v16  ;;  %v7905_v43 = vperm.slane %v7900_v15, 0  ;;  %v1290_v16 = vld [vmem:[#allocation10 + $0x68] sm:$0xff] }
 0x12c   :  { %755 = vmatmul.f32.gmra.mxu3 %v7801_v29  ;;  %v1305_v29 = vld [vmem:[#allocation10 + $0xe0] sm:$0xff] }
 0x12d   :  { %1521 = vmatpush.msra.mxu0 %v1305_v29  ;;  %1358 = vmatpush.msrb.mxu3 %v1305_v29 }
 0x12e   :  { %705 = vmatmul.f32.gmra.mxu2 %v7667_v45  ;;  %864 = vmatmul.f32.gmra.mxu1 %v7626_v21 }
 0x12f   :  { %835 = vmatmul.f32.gmra.mxu0 %v7883_v11  ;;  %1359 = vmatpush.msrb.mxu3 %v1302_v40 }
 0x130   :  { %1522 = vmatpush.msra.mxu0 %v1302_v40  ;;  %v1293_v40 = vld [vmem:[#allocation10 + $0x80] sm:$0xff] }
 0x131   :  { %1360 = vmatpush.msrb.mxu3 %v1299_v1 }
 0x132   :  { %1523 = vmatpush.msra.mxu0 %v1299_v1 }
 0x133   :  { %1361 = vmatpush.msrb.mxu3 %v1296_v18 }
 0x134   :  { %758 = vmatmul.f32.gmra.mxu3 %v7819_v3  ;;  %1524 = vmatpush.msra.mxu0 %v1296_v18 }
 0x135   :  { %1362 = vmatpush.msrb.mxu3 %v1293_v40 }
 0x136   :  { %708 = vmatmul.f32.gmra.mxu2 %v7692_v61  ;;  %867 = vmatmul.f32.gmra.mxu1 %v7674_v48 }
 0x137   :  { %838 = vmatmul.f32.gmra.mxu0 %v7892_v23  ;;  %1363 = vmatpush.msrb.mxu3 %v1290_v16 }
 0x138   :  { %1525 = vmatpush.msra.mxu0 %v1293_v40  ;;  %v1284_v40 = vld [vmem:[#allocation10 + $0x38] sm:$0xff] }
 0x13a   :  { %1526 = vmatpush.msra.mxu0 %v1290_v16  ;;  %v7936_v16 = vld [vmem:[#allocation10 + $0x130] sm:$0xff] }
 0x13b   :  { %v599_v3 = vpop.f32.mrf.mxu1 }
 0x13c   :  { %v794_v44 = vpop.f32.mrf.mxu0  ;;  %761 = vmatmul.f32.gmra.mxu3 %v7837_v20 }
 0x13d   :  { %v795_v17 = vadd.f32 %v794_v44, %v599_v3 }
 0x13e   :  { %870 = vmatmul.f32.gmra.mxu1 %v7700_v8  ;;  %923 = vmatmul.f32.vlgmr.msra.gmra.mxu2 %v7569_v46  ;;  %v7916_v46 = vld [vmem:[%s10727_s7] sm:$0x1]  ;;  %s7235_s7 = smov [#allocation13]  }
 0x13f   :  { %v1107_v29 = vadd.f32 %v1059_v56, %v795_v17  ;;  %v7918_v56 = vld [vmem:[#allocation10 + $0x178] sm:$0xff]  ;;  %v1062_v17 = vmul.f32 %v7898_v28, %v7725_v55  ;;  %1275 = vst [vmem:[#allocation3] sm:$0x1] %v7916_v46  ;;  %s6566_s1 = sshll.u32 %s7235_s7, 4  ;;  %s6567_s1 = int_to_ptr.vmem [resolvable:$true] %s6566_s1 }
 0x140   :  { %1535 = vmatpush.msra.mxu1 %v7918_v56 }
 0x141   :  { %v1162_v12 = vadd.f32 %v7905_v43, %v1107_v29  ;;  %v7911_v5 = vpop.f32.mrf.mxu2  ;;  %v7927_v29 = vld [vmem:[#allocation10 + $0x160] sm:$0xff] }
 0x142   :  { %1536 = vmatpush.msra.mxu1 %v7927_v29 }
 0x143   :  { %1210 = vst [vmem:[#allocation2] sm:$0xff] %v1162_v12  ;;  %v602_v3 = vpop.f32.mrf.mxu1  ;;  %v1287_v12 = vld [vmem:[#allocation10 + $0x50] sm:$0xff] }
 0x144   :  { %v797_v20 = vpop.f32.mrf.mxu0  ;;  %764 = vmatmul.f32.gmra.mxu3 %v7588_v60  ;;  %1527 = vmatpush.msra.mxu0 %v1287_v12 }
 0x145   :  { %v798_v1 = vadd.f32 %v797_v20, %v602_v3  ;;  %1364 = vmatpush.msrb.mxu3 %v1287_v12  ;;  %v7933_v3 = vld [vmem:[#allocation10 + $0x148] sm:$0xff]  ;;  %v1281_v20 = vld [vmem:[#allocation10 + $0x20] sm:$0xff] }
 0x146   :  { %873 = vmatmul.f32.gmra.mxu1 %v7719_v50  ;;  %926 = vmatmul.f32.gmra.mxu2 %v7597_v0 }
 0x147   :  { %v1110_v44 = vadd.f32 %v1062_v17, %v798_v1  ;;  %v635_v18 = vpop.f32.mrf.mxu3  ;;  %1528 = vmatpush.msra.mxu0 %v1284_v40  ;;  %1537 = vmatpush.msra.mxu1 %v7933_v3  ;;  %v1278_v1 = vld [vmem:[#allocation10 + $0x8] sm:$0xff] }
 0x148   :  { %1365 = vmatpush.msrb.mxu3 %v1284_v40  ;;  %v7944_v18 = vld [vmem:[#allocation10 + $0x118] sm:$0xff] }
 0x149   :  { %v1165_v60 = vadd.f32 %v7905_v43, %v1110_v44  ;;  %v7931_v55 = vpop.f32.mrf.mxu2  ;;  %1529 = vmatpush.msra.mxu0 %v1281_v20  ;;  %1538 = vmatpush.msra.mxu1 %v7936_v16  ;;  %v1065_v44 = vmul.f32 %v7898_v28, %v7738_v27 }
 0x14a   :  { %1366 = vmatpush.msrb.mxu3 %v1281_v20  ;;  %v1300_v20 = vld [vmem:[#allocation10 + $0xb8] sm:$0xff] }
 0x14b   :  { %1213 = vst [vmem:[#allocation2 + $0x18] sm:$0xff] %v1165_v60  ;;  %v605_v0 = vpop.f32.mrf.mxu1  ;;  %1530 = vmatpush.msra.mxu0 %v1278_v1  ;;  %1539 = vmatpush.msra.mxu1 %v7944_v18 }
 0x14c   :  { %v800_v17 = vpop.f32.mrf.mxu0  ;;  %767 = vmatmul.f32.gmra.mxu3 %v7616_v14  ;;  %v1306_v14 = vld [vmem:[#allocation10 + $0xe8] sm:$0xff] }
 0x14d   :  { %v801_v12 = vadd.f32 %v800_v17, %v605_v0  ;;  %1367 = vmatpush.msrb.mxu3 %v1278_v1  ;;  %1540 = vmatpush.msra.mxu1 %v1309_v19  ;;  %v1068_v17 = vmul.f32 %v7898_v28, %v7645_v30  ;;  %v1291_v28 = vld [vmem:[#allocation10 + $0x70] sm:$0xff] }
 0x14e   :  { %876 = vmatmul.f32.gmra.mxu1 %v7754_v10  ;;  %929 = vmatmul.f32.gmra.mxu2 %v7626_v21  ;;  %v1303_v21 = vld [vmem:[#allocation10 + $0xd0] sm:$0xff] }
 0x14f   :  { %v1113_v40 = vadd.f32 %v1065_v44, %v801_v12  ;;  %v638_v60 = vpop.f32.mrf.mxu3  ;;  %1541 = vmatpush.msra.mxu1 %v1306_v14 }
 0x151   :  { %v1168_v39 = vadd.f32 %v7905_v43, %v1113_v40  ;;  %v7948_v31 = vpop.f32.mrf.mxu2  ;;  %1542 = vmatpush.msra.mxu1 %v1303_v21 }
 0x153   :  { %1216 = vst [vmem:[#allocation2 + $0x30] sm:$0xff] %v1168_v39  ;;  %v608_v27 = vpop.f32.mrf.mxu1  ;;  %1543 = vmatpush.msra.mxu1 %v1300_v20  ;;  %v1297_v39 = vld [vmem:[#allocation10 + $0xa0] sm:$0xff] }
 0x154   :  { %v803_v0 = vpop.f32.mrf.mxu0  ;;  %770 = vmatmul.f32.gmra.mxu3 %v7667_v45 }
 0x155   :  { %v804_v44 = vadd.f32 %v803_v0, %v608_v27  ;;  %1544 = vmatpush.msra.mxu1 %v1297_v39 }
 0x156   :  { %879 = vmatmul.f32.gmra.mxu1 %v7769_v62  ;;  %932 = vmatmul.f32.gmra.mxu2 %v7674_v48  ;;  %v1288_v48 = vld [vmem:[#allocation10 + $0x58] sm:$0xff] }
 0x157   :  { %v1116_v1 = vadd.f32 %v1068_v17, %v804_v44  ;;  %v641_v12 = vpop.f32.mrf.mxu3  ;;  %1545 = vmatpush.msra.mxu1 %v1294_v24  ;;  %v1282_v17 = vld [vmem:[#allocation10 + $0x28] sm:$0xff] }
 0x158   :  { %v1279_v12 = vld [vmem:[#allocation10 + $0x10] sm:$0xff] }
 0x159   :  { %v1171_v40 = vadd.f32 %v7905_v43, %v1116_v1  ;;  %v7956_v60 = vpop.f32.mrf.mxu2  ;;  %1546 = vmatpush.msra.mxu1 %v1291_v28  ;;  %v1285_v43 = vld [vmem:[#allocation10 + $0x40] sm:$0xff] }
 0x15b   :  { %1219 = vst [vmem:[#allocation2 + $0x48] sm:$0xff] %v1171_v40  ;;  %v611_v30 = vpop.f32.mrf.mxu1  ;;  %1547 = vmatpush.msra.mxu1 %v1288_v48 }
 0x15c   :  { %v806_v45 = vpop.f32.mrf.mxu0  ;;  %773 = vmatmul.f32.gmra.mxu3 %v7692_v61 }
 0x15d   :  { %1548 = vmatpush.msra.mxu1 %v1285_v43 }
 0x15e   :  { %882 = vmatmul.f32.gmra.mxu1 %v7787_v63  ;;  %935 = vmatmul.f32.gmra.mxu2 %v7700_v8 }
 0x15f   :  { %v644_v27 = vpop.f32.mrf.mxu3  ;;  %1549 = vmatpush.msra.mxu1 %v1282_v17 }
 0x161   :  { %v676_v0 = vpop.f32.mrf.mxu2  ;;  %1550 = vmatpush.msra.mxu1 %v1279_v12 }
 0x163   :  { %v614_v44 = vpop.f32.mrf.mxu1 }
 0x164   :  { %v809_v1 = vpop.f32.mrf.mxu0  ;;  %1348 = vmatmul.f32.vlgmr.msra.gmra.mxu3 %v7916_v46 }
 0x165   :  { %1372 = vmatpush.msra.mxu3 %v7918_v56 }
 0x166   :  { %885 = vmatmul.f32.gmra.mxu1 %v7805_v7  ;;  %938 = vmatmul.f32.gmra.mxu2 %v7719_v50 }
 0x167   :  { %1373 = vmatpush.msra.mxu3 %v7927_v29  ;;  %v7966_v61 = vpop.f32.mrf.mxu3 }
 0x169   :  { %v679_v8 = vpop.f32.mrf.mxu2  ;;  %1374 = vmatpush.msra.mxu3 %v7933_v3 }
 0x16b   :  { %v617_v40 = vpop.f32.mrf.mxu1  ;;  %1375 = vmatpush.msra.mxu3 %v7936_v16 }
 0x16c   :  { %v812_v30 = vpop.f32.mrf.mxu0  ;;  %1368 = vmatmul.f32.vlgmr.msrb.gmra.mxu3 %v7916_v46 }
 0x16d   :  { %1376 = vmatpush.msra.mxu3 %v7944_v18 }
 0x16e   :  { %888 = vmatmul.f32.gmra.mxu1 %v7823_v36  ;;  %941 = vmatmul.f32.gmra.mxu2 %v7754_v10 }
 0x16f   :  { %1377 = vmatpush.msra.mxu3 %v1309_v19  ;;  %v7974_v50 = vpop.f32.mrf.mxu3 }
 0x171   :  { %v682_v56 = vpop.f32.mrf.mxu2  ;;  %1378 = vmatpush.msra.mxu3 %v1306_v14 }
 0x173   :  { %v620_v29 = vpop.f32.mrf.mxu1  ;;  %1379 = vmatpush.msra.mxu3 %v1303_v21 }
 0x174   :  { %v815_v3 = vpop.f32.mrf.mxu0 }
 0x175   :  { %1380 = vmatpush.msra.mxu3 %v1300_v20 }
 0x176   :  { %891 = vmatmul.f32.gmra.mxu1 %v7841_v49  ;;  %944 = vmatmul.f32.gmra.mxu2 %v7769_v62 }
 0x177   :  { %1381 = vmatpush.msra.mxu3 %v1297_v39  ;;  %v7978_v16 = vpop.f32.mrf.mxu3 }
 0x179   :  { %v685_v18 = vpop.f32.mrf.mxu2  ;;  %1382 = vmatpush.msra.mxu3 %v1294_v24 }
 0x17b   :  { %v623_v45 = vpop.f32.mrf.mxu1  ;;  %1383 = vmatpush.msra.mxu3 %v1291_v28 }
 0x17c   :  { %v818_v10 = vpop.f32.mrf.mxu0 }
 0x17d   :  { %1384 = vmatpush.msra.mxu3 %v1288_v48 }
 0x17e   :  { %894 = vmatmul.f32.gmra.mxu1 %v7854_v51  ;;  %947 = vmatmul.f32.gmra.mxu2 %v7787_v63 }
 0x17f   :  { %1385 = vmatpush.msra.mxu3 %v1285_v43  ;;  %v7982_v19 = vpop.f32.mrf.mxu3 }
 0x181   :  { %v688_v14 = vpop.f32.mrf.mxu2  ;;  %1386 = vmatpush.msra.mxu3 %v1282_v17 }
 0x183   :  { %v626_v21 = vpop.f32.mrf.mxu1  ;;  %1387 = vmatpush.msra.mxu3 %v1279_v12  ;;  %v1157_v12 = vperm.slane %v7900_v15, 1 }
 0x184   :  { %v821_v62 = vpop.f32.mrf.mxu0  ;;  %1388 = vmatmul.f32.vlgmr.msra.gmra.mxu3 %v7916_v46 }
 0x186   :  { %897 = vmatmul.f32.gmra.mxu1 %v7871_v4  ;;  %950 = vmatmul.f32.gmra.mxu2 %v7805_v7 }
 0x187   :  { %v741_v24 = vpop.f32.mrf.mxu3 }
 0x189   :  { %v691_v20 = vpop.f32.mrf.mxu2 }
 0x18b   :  { %v629_v39 = vpop.f32.mrf.mxu1 }
 0x18c   :  { %v824_v28 = vpop.f32.mrf.mxu0 }
 0x18e   :  { %900 = vmatmul.f32.gmra.mxu1 %v7883_v11  ;;  %953 = vmatmul.f32.gmra.mxu2 %v7823_v36 }
 0x18f   :  { %v744_v63 = vpop.f32.mrf.mxu3 }
 0x191   :  { %v694_v48 = vpop.f32.mrf.mxu2 }
 0x193   :  { %v632_v27 = vpop.f32.mrf.mxu1 }
 0x194   :  { %v827_v43 = vpop.f32.mrf.mxu0  ;;  %v1158_v27 = vperm.slane %v7900_v15, 2 }
 0x196   :  { %903 = vmatmul.f32.gmra.mxu1 %v7892_v23  ;;  %956 = vmatmul.f32.gmra.mxu2 %v7841_v49 }
 0x197   :  { %v747_v0 = vpop.f32.mrf.mxu3 }
 0x199   :  { %v697_v17 = vpop.f32.mrf.mxu2 }
 0x19b   :  { %v859_v44 = vpop.f32.mrf.mxu1 }
 0x19c   :  { %v830_v7 = vpop.f32.mrf.mxu0  ;;  %v860_v1 = vadd.f32 %v859_v44, %v7911_v5 }
 0x19e   :  { %v1108_v8 = vadd.f32 %v7649_v32, %v860_v1  ;;  %959 = vmatmul.f32.gmra.mxu2 %v7854_v51 }
 0x19f   :  { %v750_v40 = vpop.f32.mrf.mxu3 }
 0x1a0   :  { %v1163_v36 = vadd.f32 %v1157_v12, %v1108_v8 }
 0x1a1   :  { %v700_v30 = vpop.f32.mrf.mxu2 }
 0x1a2   :  { %1211 = vst [vmem:[#allocation2 + $0x8] sm:$0xff] %v1163_v36 }
 0x1a3   :  { %v862_v56 = vpop.f32.mrf.mxu1 }
 0x1a4   :  { %v833_v29 = vpop.f32.mrf.mxu0  ;;  %v863_v49 = vadd.f32 %v862_v56, %v7931_v55 }
 0x1a5   :  { %v8012_v29 = vld [vmem:[#allocation10 + $0x168] sm:$0xff] }
 0x1a6   :  { %v1111_v3 = vadd.f32 %v7732_v47, %v863_v49  ;;  %962 = vmatmul.f32.gmra.mxu2 %v7871_v4  ;;  %1495 = vmatpush.msrb.mxu3 %v8012_v29  ;;  %v8017_v49 = vld [vmem:[#allocation10 + $0x150] sm:$0xff] }
 0x1a7   :  { %v753_v5 = vpop.f32.mrf.mxu3  ;;  %1658 = vmatpush.msrb.mxu2 %v8012_v29  ;;  %1821 = vmatpush.msrb.mxu1 %v8012_v29 }
 0x1a8   :  { %v1166_v18 = vadd.f32 %v1157_v12, %v1111_v3  ;;  %1496 = vmatpush.msrb.mxu3 %v8017_v49  ;;  %v8032_v5 = vld [vmem:[#allocation10 + $0x108] sm:$0xff] }
 0x1a9   :  { %v703_v45 = vpop.f32.mrf.mxu2  ;;  %1659 = vmatpush.msrb.mxu2 %v8017_v49  ;;  %1822 = vmatpush.msrb.mxu1 %v8017_v49 }
 0x1aa   :  { %1214 = vst [vmem:[#allocation2 + $0x20] sm:$0xff] %v1166_v18  ;;  %v115_v18 = vld [vmem:[#allocation12 + $0x2] ss:$4 sm:$0x7] }
 0x1ab   :  { %v865_v10 = vpop.f32.mrf.mxu1 }
 0x1ac   :  { %v836_v32 = vpop.f32.mrf.mxu0  ;;  %v866_v51 = vadd.f32 %v865_v10, %v7948_v31  ;;  %v8037_v10 = vld [vmem:[#allocation10 + $0xf0] sm:$0xff] }
 0x1ad   :  { %v8040_v32 = vperm.slane %v115_v18, 0 }
 0x1ae   :  { %v1114_v14 = vadd.f32 %v7742_v37, %v866_v51  ;;  %965 = vmatmul.f32.gmra.mxu2 %v7883_v11 }
 0x1af   :  { %v756_v62 = vpop.f32.mrf.mxu3 }
 0x1b0   :  { %v1169_v21 = vadd.f32 %v1157_v12, %v1114_v14 }
 0x1b1   :  { %v706_v24 = vpop.f32.mrf.mxu2 }
 0x1b2   :  { %1217 = vst [vmem:[#allocation2 + $0x38] sm:$0xff] %v1169_v21 }
 0x1b3   :  { %v868_v55 = vpop.f32.mrf.mxu1 }
 0x1b4   :  { %v839_v47 = vpop.f32.mrf.mxu0  ;;  %v869_v4 = vadd.f32 %v868_v55, %v7956_v60 }
 0x1b6   :  { %v1117_v20 = vadd.f32 %v7659_v38, %v869_v4  ;;  %968 = vmatmul.f32.gmra.mxu2 %v7892_v23  ;;  %v8052_v4 = vperm.slane %v115_v18, 1 }
 0x1b7   :  { %v759_v28 = vpop.f32.mrf.mxu3 }
 0x1b8   :  { %v1172_v39 = vadd.f32 %v1157_v12, %v1117_v20 }
 0x1b9   :  { %v709_v63 = vpop.f32.mrf.mxu2 }
 0x1ba   :  { %1220 = vst [vmem:[#allocation2 + $0x50] sm:$0xff] %v1172_v39 }
 0x1bb   :  { %v871_v31 = vpop.f32.mrf.mxu1 }
 0x1bf   :  { %v762_v37 = vpop.f32.mrf.mxu3 }
 0x1c1   :  { %v924_v48 = vpop.f32.mrf.mxu2 }
 0x1c2   :  { %v925_v11 = vadd.f32 %v924_v48, %v7966_v61 }
 0x1c3   :  { %v874_v43 = vpop.f32.mrf.mxu1 }
 0x1c4   :  { %v1109_v0 = vadd.f32 %v7653_v34, %v925_v11 }
 0x1c6   :  { %v1164_v17 = vadd.f32 %v1158_v27, %v1109_v0 }
 0x1c7   :  { %v765_v60 = vpop.f32.mrf.mxu3 }
 0x1c8   :  { %1212 = vst [vmem:[#allocation2 + $0x10] sm:$0xff] %v1164_v17 }
 0x1c9   :  { %v927_v38 = vpop.f32.mrf.mxu2 }
 0x1ca   :  { %v928_v23 = vadd.f32 %v927_v38, %v7974_v50  ;;  %v8063_v38 = vperm.slane %v115_v18, 2 }
 0x1cb   :  { %v877_v44 = vpop.f32.mrf.mxu1 }
 0x1cc   :  { %v1112_v7 = vadd.f32 %v7736_v42, %v928_v23 }
 0x1ce   :  { %v1167_v1 = vadd.f32 %v1158_v27, %v1112_v7 }
 0x1cf   :  { %v768_v12 = vpop.f32.mrf.mxu3  ;;  %v8048_v21 = vld [vmem:[#allocation2] ss:$8 sm:$0x7] }
 0x1d0   :  { %1215 = vst [vmem:[#allocation2 + $0x28] sm:$0xff] %v1167_v1 }
 0x1d1   :  { %v930_v8 = vpop.f32.mrf.mxu2 }
 0x1d2   :  { %v931_v61 = vadd.f32 %v930_v8, %v7978_v16  ;;  %v8022_v16 = vld [vmem:[#allocation10 + $0x138] sm:$0xff] }
 0x1d3   :  { %v880_v36 = vpop.f32.mrf.mxu1  ;;  %1497 = vmatpush.msrb.mxu3 %v8022_v16  ;;  %1660 = vmatpush.msrb.mxu2 %v8022_v16 }
 0x1d4   :  { %v1115_v15 = vadd.f32 %v7746_v53, %v931_v61  ;;  %1823 = vmatpush.msrb.mxu1 %v8022_v16 }
 0x1d6   :  { %v1170_v40 = vadd.f32 %v1158_v27, %v1115_v15  ;;  %v1436_v15 = vrot.slane %v8048_v21, 2 }
 0x1d7   :  { %v771_v34 = vpop.f32.mrf.mxu3 }
 0x1d8   :  { %1218 = vst [vmem:[#allocation2 + $0x40] sm:$0xff] %v1170_v40 }
 0x1d9   :  { %v933_v30 = vpop.f32.mrf.mxu2 }
 0x1da   :  { %v934_v56 = vadd.f32 %v933_v30, %v7982_v19 }
 0x1db   :  { %v883_v50 = vpop.f32.mrf.mxu1 }
 0x1dc   :  { %v1118_v42 = vadd.f32 %v7663_v41, %v934_v56  ;;  %v8027_v41 = vld [vmem:[#allocation10 + $0x120] sm:$0xff] }
 0x1dd   :  { %1498 = vmatpush.msrb.mxu3 %v8027_v41  ;;  %1661 = vmatpush.msrb.mxu2 %v8027_v41 }
 0x1de   :  { %v1173_v53 = vadd.f32 %v1158_v27, %v1118_v42  ;;  %1824 = vmatpush.msrb.mxu1 %v8027_v41 }
 0x1df   :  { %v774_v19 = vpop.f32.mrf.mxu3  ;;  %1499 = vmatpush.msrb.mxu3 %v8032_v5  ;;  %1662 = vmatpush.msrb.mxu2 %v8032_v5 }
 0x1e0   :  { %1221 = vst [vmem:[#allocation2 + $0x58] sm:$0xff] %v1173_v53  ;;  %1825 = vmatpush.msrb.mxu1 %v8032_v5 }
 0x1e1   :  { %v936_v3 = vpop.f32.mrf.mxu2  ;;  %1500 = vmatpush.msrb.mxu3 %v8037_v10  ;;  %1663 = vmatpush.msrb.mxu2 %v8037_v10 }
 0x1e2   :  { %1826 = vmatpush.msrb.mxu1 %v8037_v10 }
 0x1e3   :  { %v886_v45 = vpop.f32.mrf.mxu1  ;;  %1501 = vmatpush.msrb.mxu3 %v7772_v2 }
 0x1e5   :  { %1502 = vmatpush.msrb.mxu3 %v7790_v57  ;;  %v1413_v57 = vrot.slane %v8048_v21, 1 }
 0x1e7   :  { %v1349_v51 = vpop.f32.mrf.mxu3  ;;  %1503 = vmatpush.msrb.mxu3 %v7808_v26 }
 0x1e8   :  { %v1350_v14 = vadd.f32 %v1349_v51, %v8040_v32 }
 0x1e9   :  { %v939_v62 = vpop.f32.mrf.mxu2  ;;  %1504 = vmatpush.msrb.mxu3 %v7826_v25 }
 0x1ea   :  { %v1392_v24 = vadd.f32 %v1350_v14, %v8048_v21 }
 0x1eb   :  { %v889_v55 = vpop.f32.mrf.mxu1  ;;  %1505 = vmatpush.msrb.mxu3 %v7844_v33 }
 0x1ec   :  { %v6612_v47 = vmul.f32 -1.442695, %v1392_v24 }
 0x1ed   :  { %1506 = vmatpush.msrb.mxu3 %v7850_v59 }
 0x1ee   :  { %6725 = vpow2.f32 %v6612_v47 }
 0x1ef   :  { %v1369_v2 = vpop.f32.mrf.mxu3  ;;  %1507 = vmatpush.msrb.mxu3 %v7859_v6 }
 0x1f0   :  { %v1370_v20 = vadd.f32 %v1369_v2, %v8052_v4  ;;  %v8074_v2 = vld [vmem:[#allocation10 + $0xd8] sm:$0xff] }
 0x1f1   :  { %v942_v39 = vpop.f32.mrf.mxu2  ;;  %1508 = vmatpush.msrb.mxu3 %v7863_v9  ;;  %1664 = vmatpush.msrb.mxu2 %v8074_v2 }
 0x1f2   :  { %v1415_v28 = vadd.f32 %v1413_v57, %v1370_v20  ;;  %v8076_v20 = vld [vmem:[#allocation10 + $0xc0] sm:$0xff]  ;;  %1827 = vmatpush.msrb.mxu1 %v8074_v2  ;;  %v8084_v39 = vld [vmem:[#allocation10 + $0x90] sm:$0xff] }
 0x1f3   :  { %v892_v63 = vpop.f32.mrf.mxu1  ;;  %1509 = vmatpush.msrb.mxu3 %v7867_v58  ;;  %1665 = vmatpush.msrb.mxu2 %v8076_v20 }
 0x1f4   :  { %v6726_v26 = vpop.eup %6725  ;;  %v6613_v31 = vmul.f32 -1.442695, %v1415_v28  ;;  %1828 = vmatpush.msrb.mxu1 %v8076_v20 }
 0x1f5   :  { %v1396_v25 = vadd.f32 1.0, %v6726_v26  ;;  %1510 = vmatpush.msrb.mxu3 %v7876_v35 }
 0x1f6   :  { %6727 = vpow2.f32 %v6613_v31  ;;  %v8090_v31 = vld [vmem:[#allocation10 + $0x170] sm:$0xff] }
 0x1f7   :  { %6729 = vrcp.f32 %v1396_v25  ;;  %v1408_v0 = vand.u32 2147483648, %v1396_v25  ;;  %v1406_v9 = vand.u32 2147483647, %v1396_v25  ;;  %vm1402_vm1 = vweird.f32 %v1396_v25  ;;  %1678 = vmatpush.msra.mxu3 %v8090_v31 }
 0x1f9   :  { %v945_v33 = vpop.f32.mrf.mxu2  ;;  %v1409_v35 = vor.u32 1.1754944e-38, %v1408_v0  ;;  %vm1407_vm3 = vcmp.eq.f32.partialorder %v1406_v9, 8.507059e+37  ;;  %v8118_v0 = vld [vmem:[#allocation10 + $0x118] sm:$0xff] }
 0x1fa   :  { %v8096_v33 = vld [vmem:[#allocation10 + $0x158] sm:$0xff] }
 0x1fb   :  { %v895_v37 = vpop.f32.mrf.mxu1  ;;  %1679 = vmatpush.msra.mxu3 %v8096_v33 }
 0x1fc   :  { %v6728_v48 = vpop.eup %6727  ;;  %v8098_v37 = vld [vmem:[#allocation10 + $0x160] sm:$0xff] }
 0x1fd   :  { %v6730_v59 = vpop.eup %6729  ;;  %v1419_v11 = vadd.f32 1.0, %v6728_v48  ;;  %v8102_v48 = vld [vmem:[#allocation10 + $0x140] sm:$0xff] }
 0x1fe   :  { %v1398_v27 = vmul.f32 %v6730_v59, %v1396_v25  ;;  %vm1403_vm0 = vweird.f32 %v6730_v59  ;;  %v8092_v25 = vld [vmem:[#allocation10 + $0x178] sm:$0xff]  ;;  %1680 = vmatpush.msra.mxu3 %v8102_v48 }
 0x1ff   :  { %6731 = vrcp.f32 %v1419_v11  ;;  %vm1404_vm2 = vmor %vm1402_vm1, %vm1403_vm0  ;;  %v1431_v36 = vand.u32 2147483648, %v1419_v11  ;;  %v1429_v50 = vand.u32 2147483647, %v1419_v11  ;;  %vm1425_vm5 = vweird.f32 %v1419_v11  ;;  %1698 = vmatpush.msrb.mxu0 %v8092_v25 }
 0x200   :  { %v1399_v43 = vsub.f32 1.0, %v1398_v27  ;;  %v8110_v27 = vld [vmem:[#allocation10 + $0x130] sm:$0xff] }
 0x201   :  { %v948_v6 = vpop.f32.mrf.mxu2  ;;  %v1432_v19 = vor.u32 1.1754944e-38, %v1431_v36  ;;  %vm1430_vm7 = vcmp.eq.f32.partialorder %v1429_v50, 8.507059e+37  ;;  %1699 = vmatpush.msrb.mxu0 %v8098_v37  ;;  %v8155_v50 = vld [vmem:[#allocation10 + $0xb8] sm:$0xff] }
 0x202   :  { %v1400_v60 = vmul.f32 %v6730_v59, %v1399_v43  ;;  %v8112_v43 = vld [vmem:[#allocation2 + $0x1] ss:$8 sm:$0x7]  ;;  %v8116_v6 = vld [vmem:[#allocation10 + $0x110] sm:$0xff] }
 0x203   :  { %v898_v17 = vpop.f32.mrf.mxu1  ;;  %v1576_v9 = vrot.slane %v8112_v43, 1 }
 0x204   :  { %v1401_v58 = vadd.f32 %v6730_v59, %v1400_v60 }
 0x205   :  { %v6732_v23 = vpop.eup %6731 }
 0x206   :  { %v1421_v44 = vmul.f32 %v6732_v23, %v1419_v11  ;;  %v1405_v7 = vsel %vm1404_vm2, %v6730_v59, %v1401_v58  ;;  %vm1426_vm4 = vweird.f32 %v6732_v23  ;;  %v8104_v59 = vld [vmem:[#allocation10 + $0x148] sm:$0xff]  ;;  %v8124_v58 = vld [vmem:[#allocation10 + $0xf8] sm:$0xff] }
 0x207   :  { %v1389_v1 = vpop.f32.mrf.mxu3  ;;  %v1410_v12 = vsel %vm1407_vm3, %v1409_v35, %v1405_v7  ;;  %vm1427_vm6 = vmor %vm1425_vm5, %vm1426_vm4  ;;  %1700 = vmatpush.msrb.mxu0 %v8104_v59  ;;  %v8108_v11 = vld [vmem:[#allocation10 + $0x128] sm:$0xff] }
 0x208   :  { %v1422_v8 = vsub.f32 1.0, %v1421_v44  ;;  %v1390_v61 = vadd.f32 %v1389_v1, %v8063_v38  ;;  %1681 = vmatpush.msra.mxu3 %v8108_v11  ;;  %v8130_v44 = vld [vmem:[#allocation10 + $0xe0] sm:$0xff]  ;;  %v8132_v7 = vld [vmem:[#allocation10 + $0xe8] sm:$0xff] }
 0x209   :  { %v951_v40 = vpop.f32.mrf.mxu2  ;;  %1701 = vmatpush.msrb.mxu0 %v8110_v27 }
 0x20a   :  { %v1423_v34 = vmul.f32 %v6732_v23, %v1422_v8  ;;  %v1435_v30 = vmul.f32 %v1410_v12, %v1390_v61  ;;  %1682 = vmatpush.msra.mxu3 %v8116_v6  ;;  %v8136_v12 = vld [vmem:[#allocation10 + $0xc8] sm:$0xff]  ;;  %v8138_v8 = vld [vmem:[#allocation10 + $0xd0] sm:$0xff]  ;;  %v8145_v40 = vld [vmem:[#allocation10 + $0x60] sm:$0xff] }
 0x20b   :  { %v901_v56 = vpop.f32.mrf.mxu1  ;;  %1702 = vmatpush.msrb.mxu0 %v8118_v0 }
 0x20c   :  { %v1424_v42 = vadd.f32 %v6732_v23, %v1423_v34  ;;  %v1438_v53 = vadd.f32 %v1436_v15, %v1435_v30  ;;  %1683 = vmatpush.msra.mxu3 %v8124_v58  ;;  %v8143_v15 = vld [vmem:[#allocation10 + $0x78] sm:$0xff]  ;;  %v8148_v34 = vld [vmem:[#allocation10 + $0x48] sm:$0xff]  ;;  %v8150_v30 = vld [vmem:[#allocation10 + $0xb0] sm:$0xff] }
 0x20e   :  { %v1428_v3 = vsel %vm1427_vm6, %v6732_v23, %v1424_v42  ;;  %6733 = vtanh.f32 %v1438_v53  ;;  %v8126_v23 = vld [vmem:[#allocation10 + $0x100] sm:$0xff]  ;;  %1684 = vmatpush.msra.mxu3 %v8130_v44  ;;  %v8157_v42 = vld [vmem:[#allocation10 + $0x98] sm:$0xff] }
 0x20f   :  { %v1433_v18 = vsel %vm1430_vm7, %v1432_v19, %v1428_v3  ;;  %1703 = vmatpush.msrb.mxu0 %v8126_v23  ;;  %v8159_v53 = vld [vmem:[#allocation10 + $0xa0] sm:$0xff] }
 0x210   :  { %v1440_v14 = vsub.f32 1.0, %v1433_v18  ;;  %v1442_v24 = vmul.f32 %v1433_v18, %v7916_v46  ;;  %v8080_v46 = vld [vmem:[#allocation10 + $0xa8] sm:$0xff]  ;;  %1685 = vmatpush.msra.mxu3 %v8136_v12  ;;  %v8163_v19 = vld [vmem:[#allocation10 + $0x80] sm:$0xff]  ;;  %v8165_v18 = vld [vmem:[#allocation10 + $0x30] sm:$0xff] }
 0x211   :  { %v954_v45 = vpop.f32.mrf.mxu2  ;;  %1666 = vmatpush.msrb.mxu2 %v8080_v46  ;;  %1829 = vmatpush.msrb.mxu1 %v8080_v46 }
 0x212   :  { %1704 = vmatpush.msrb.mxu0 %v8132_v7  ;;  %1686 = vmatpush.msra.mxu3 %v8150_v30  ;;  %v8168_v45 = vld [vmem:[#allocation10 + $0x88] sm:$0xff] }
 0x213   :  { %v904_v51 = vpop.f32.mrf.mxu1  ;;  %1667 = vmatpush.msrb.mxu2 %v8084_v39  ;;  %1830 = vmatpush.msrb.mxu1 %v8084_v39 }
 0x214   :  { %v6734_v62 = vpop.eup %6733  ;;  %1705 = vmatpush.msrb.mxu0 %v8138_v8  ;;  %1687 = vmatpush.msra.mxu3 %v8157_v42  ;;  %v8173_v51 = vld [vmem:[#allocation10 + $0x68] sm:$0xff] }
 0x215   :  { %v1441_v21 = vmul.f32 %v6734_v62, %v1440_v14  ;;  %1668 = vmatpush.msrb.mxu2 %v8143_v15  ;;  %1831 = vmatpush.msrb.mxu1 %v8143_v15  ;;  %v8175_v62 = vld [vmem:[#allocation10 + $0x18] sm:$0xff] }
 0x216   :  { %1706 = vmatpush.msrb.mxu0 %v8155_v50  ;;  %1688 = vmatpush.msra.mxu3 %v8163_v19 }
 0x217   :  { %v8068_v55 = vadd.f32 %v1442_v24, %v1441_v21  ;;  %1669 = vmatpush.msrb.mxu2 %v8145_v40  ;;  %1832 = vmatpush.msrb.mxu1 %v8145_v40  ;;  %v8178_v21 = vld [vmem:[#allocation10 + $0x70] sm:$0xff] }
 0x218   :  { %1707 = vmatpush.msrb.mxu0 %v8159_v53  ;;  %1689 = vmatpush.msra.mxu3 %v8173_v51 }
 0x219   :  { %1511 = vmatmul.f32.vlgmr.msrb.gmra.mxu3 %v8068_v55  ;;  %1531 = vmatmul.f32.vlgmr.msra.gmra.mxu0 %v8068_v55  ;;  %v957_v47 = vpop.f32.mrf.mxu2  ;;  %1444 = vst [vmem:[#allocation3 + $0x1] sm:$0x1] %v8068_v55 }
 0x21a   :  { %1551 = vmatmul.f32.vlgmr.msra.gmra.mxu1 %v8068_v55  ;;  %1670 = vmatpush.msrb.mxu2 %v8148_v34  ;;  %v8185_v47 = vld [vmem:[#allocation10 + $0x50] sm:$0xff] }
 0x21b   :  { %1833 = vmatpush.msrb.mxu1 %v8148_v34  ;;  %1708 = vmatpush.msrb.mxu0 %v8168_v45 }
 0x21c   :  { %1671 = vmatpush.msrb.mxu2 %v8165_v18  ;;  %1690 = vmatpush.msra.mxu3 %v8185_v47 }
 0x21d   :  { %1834 = vmatpush.msrb.mxu1 %v8165_v18  ;;  %1709 = vmatpush.msrb.mxu0 %v8178_v21 }
 0x21e   :  { %1672 = vmatpush.msrb.mxu2 %v8175_v62 }
 0x21f   :  { %1835 = vmatpush.msrb.mxu1 %v8175_v62 }
 0x221   :  { %v960_v57 = vpop.f32.mrf.mxu2 }
 0x222   :  { %v8188_v57 = vld [vmem:[#allocation10] sm:$0xff] }
 0x223   :  { %1673 = vmatpush.msrb.mxu2 %v8188_v57  ;;  %1836 = vmatpush.msrb.mxu1 %v8188_v57 }
 0x225   :  { %1841 = vmatpush.msra.mxu2 %v8090_v31  ;;  %2004 = vmatpush.msra.mxu1 %v8090_v31 }
 0x227   :  { %1842 = vmatpush.msra.mxu2 %v8096_v33  ;;  %2005 = vmatpush.msra.mxu1 %v8096_v33 }
 0x229   :  { %v963_v28 = vpop.f32.mrf.mxu2  ;;  %1843 = vmatpush.msra.mxu2 %v8102_v48  ;;  %2006 = vmatpush.msra.mxu1 %v8102_v48 }
 0x22a   :  { %v8190_v28 = vld [vmem:[#allocation10 + $0x58] sm:$0xff] }
 0x22b   :  { %1710 = vmatpush.msrb.mxu0 %v8190_v28  ;;  %1844 = vmatpush.msra.mxu2 %v8108_v11 }
 0x22c   :  { %2007 = vmatpush.msra.mxu1 %v8108_v11 }
 0x22d   :  { %1845 = vmatpush.msra.mxu2 %v8116_v6 }
 0x22e   :  { %2008 = vmatpush.msra.mxu1 %v8116_v6 }
 0x22f   :  { %1846 = vmatpush.msra.mxu2 %v8124_v58 }
 0x230   :  { %2009 = vmatpush.msra.mxu1 %v8124_v58 }
 0x231   :  { %v966_v63 = vpop.f32.mrf.mxu2  ;;  %1847 = vmatpush.msra.mxu2 %v8130_v44 }
 0x232   :  { %v8195_v63 = vld [vmem:[#allocation10 + $0x38] sm:$0xff]  ;;  %2010 = vmatpush.msra.mxu1 %v8130_v44 }
 0x233   :  { %1691 = vmatpush.msra.mxu3 %v8195_v63  ;;  %1848 = vmatpush.msra.mxu2 %v8136_v12 }
 0x234   :  { %2011 = vmatpush.msra.mxu1 %v8136_v12 }
 0x235   :  { %1849 = vmatpush.msra.mxu2 %v8150_v30 }
 0x236   :  { %2012 = vmatpush.msra.mxu1 %v8150_v30 }
 0x237   :  { %1850 = vmatpush.msra.mxu2 %v8157_v42 }
 0x238   :  { %2013 = vmatpush.msra.mxu1 %v8157_v42 }
 0x239   :  { %v969_v26 = vpop.f32.mrf.mxu2  ;;  %1851 = vmatpush.msra.mxu2 %v8163_v19 }
 0x23a   :  { %v8199_v26 = vld [vmem:[#allocation10 + $0x40] sm:$0xff]  ;;  %2014 = vmatpush.msra.mxu1 %v8163_v19 }
 0x23b   :  { %1711 = vmatpush.msrb.mxu0 %v8199_v26  ;;  %1852 = vmatpush.msra.mxu2 %v8173_v51 }
 0x23c   :  { %2015 = vmatpush.msra.mxu1 %v8173_v51 }
 0x23d   :  { %1853 = vmatpush.msra.mxu2 %v8185_v47 }
 0x23e   :  { %2016 = vmatpush.msra.mxu1 %v8185_v47 }
 0x23f   :  { %1854 = vmatpush.msra.mxu2 %v8195_v63 }
 0x240   :  { %2017 = vmatpush.msra.mxu1 %v8195_v63 }
 0x296   :  { %v1532_v17 = vpop.f32.mrf.mxu0 }
 0x297   :  { %v1533_v60 = vadd.f32 %v1532_v17, %v8052_v4  ;;  %v8204_v17 = vld [vmem:[#allocation10 + $0x20] sm:$0xff] }
 0x298   :  { %1692 = vmatpush.msra.mxu3 %v8204_v17  ;;  %1855 = vmatpush.msra.mxu2 %v8204_v17 }
 0x299   :  { %v1578_v35 = vadd.f32 %v1576_v9, %v1533_v60  ;;  %v8207_v9 = vld [vmem:[#allocation10 + $0x28] sm:$0xff]  ;;  %2018 = vmatpush.msra.mxu1 %v8204_v17 }
 0x29a   :  { %1712 = vmatpush.msrb.mxu0 %v8207_v9 }
 0x29b   :  { %v6615_v1 = vmul.f32 -1.442695, %v1578_v35 }
 0x29c   :  { %v1512_v61 = vpop.f32.mrf.mxu3 }
 0x29d   :  { %6735 = vpow2.f32 %v6615_v1  ;;  %v1513_v36 = vadd.f32 %v1512_v61, %v8040_v32  ;;  %v8211_v1 = vld [vmem:[#allocation10 + $0x8] sm:$0xff]  ;;  %v8215_v61 = vld [vmem:[#allocation10 + $0x10] sm:$0xff] }
 0x29e   :  { %1693 = vmatpush.msra.mxu3 %v8211_v1  ;;  %1713 = vmatpush.msrb.mxu0 %v8215_v61 }
 0x29f   :  { %v1555_v56 = vadd.f32 %v1513_v36, %v8112_v43  ;;  %1856 = vmatpush.msra.mxu2 %v8211_v1  ;;  %2019 = vmatpush.msra.mxu1 %v8211_v1 }
 0x2a0   :  { %1861 = vmatpush.msrb.mxu3 %v8092_v25  ;;  %1984 = vmatpush.msra.mxu0 %v8012_v29 }
 0x2a1   :  { %v6614_v3 = vmul.f32 -1.442695, %v1555_v56 }
 0x2a2   :  { %1862 = vmatpush.msrb.mxu3 %v8098_v37  ;;  %1985 = vmatpush.msra.mxu0 %v8017_v49 }
 0x2a3   :  { %v6736_v14 = vpop.eup %6735  ;;  %6737 = vpow2.f32 %v6614_v3 }
 0x2a4   :  { %v8181_v24 = vadd.f32 1.0, %v6736_v14  ;;  %1863 = vmatpush.msrb.mxu3 %v8104_v59  ;;  %1986 = vmatpush.msra.mxu0 %v8022_v16 }
 0x2a6   :  { %6739 = vrcp.f32 %v8181_v24  ;;  %1864 = vmatpush.msrb.mxu3 %v8110_v27  ;;  %1987 = vmatpush.msra.mxu0 %v8027_v41  ;;  %vm1588_vm13 = vweird.f32 %v8181_v24 }
 0x2a8   :  { %1865 = vmatpush.msrb.mxu3 %v8118_v0  ;;  %1988 = vmatpush.msra.mxu0 %v8032_v5 }
 0x2a9   :  { %v6738_v60 = vpop.eup %6737 }
 0x2aa   :  { %v1559_v35 = vadd.f32 1.0, %v6738_v60  ;;  %1866 = vmatpush.msrb.mxu3 %v8126_v23  ;;  %1989 = vmatpush.msra.mxu0 %v8037_v10  ;;  %v1594_v10 = vand.u32 2147483648, %v8181_v24 }
 0x2ac   :  { %6741 = vrcp.f32 %v1559_v35  ;;  %v8220_v36 = vpop.eup %6739  ;;  %v1571_v49 = vand.u32 2147483648, %v1559_v35  ;;  %v1569_v13 = vand.u32 2147483647, %v1559_v35  ;;  %vm1565_vm9 = vweird.f32 %v1559_v35  ;;  %1867 = vmatpush.msrb.mxu3 %v8132_v7  ;;  %1990 = vmatpush.msra.mxu0 %v8074_v2 }
 0x2ad   :  { %v1584_v56 = vmul.f32 %v8220_v36, %v8181_v24  ;;  %vm1589_vm12 = vweird.f32 %v8220_v36 }
 0x2ae   :  { %vm1570_vm11 = vcmp.eq.f32.partialorder %v1569_v13, 8.507059e+37  ;;  %1868 = vmatpush.msrb.mxu3 %v8138_v8  ;;  %1991 = vmatpush.msra.mxu0 %v8076_v20  ;;  %v1592_v13 = vand.u32 2147483647, %v8181_v24  ;;  %vm1590_vm14 = vmor %vm1588_vm13, %vm1589_vm12  ;;  %v1595_v20 = vor.u32 1.1754944e-38, %v1594_v10 }
 0x2af   :  { %v1585_v29 = vsub.f32 1.0, %v1584_v56  ;;  %v1552_v56 = vpop.f32.mrf.mxu1 }
 0x2b0   :  { %v1553_v5 = vadd.f32 %v1552_v56, %v8063_v38  ;;  %1869 = vmatpush.msrb.mxu3 %v8155_v50  ;;  %1992 = vmatpush.msra.mxu0 %v8080_v46  ;;  %vm1593_vm15 = vcmp.eq.f32.partialorder %v1592_v13, 8.507059e+37 }
 0x2b1   :  { %v1586_v16 = vmul.f32 %v8220_v36, %v1585_v29 }
 0x2b2   :  { %v6742_v3 = vpop.eup %6741  ;;  %1870 = vmatpush.msrb.mxu3 %v8159_v53  ;;  %1993 = vmatpush.msra.mxu0 %v8084_v39 }
 0x2b3   :  { %v1561_v14 = vmul.f32 %v6742_v3, %v1559_v35  ;;  %vm1566_vm8 = vweird.f32 %v6742_v3  ;;  %v1587_v35 = vadd.f32 %v8220_v36, %v1586_v16 }
 0x2b4   :  { %vm1567_vm10 = vmor %vm1565_vm9, %vm1566_vm8  ;;  %1871 = vmatpush.msrb.mxu3 %v8168_v45  ;;  %1994 = vmatpush.msra.mxu0 %v8143_v15 }
 0x2b5   :  { %v1562_v60 = vsub.f32 1.0, %v1561_v14  ;;  %v1572_v14 = vor.u32 1.1754944e-38, %v1571_v49 }
 0x2b6   :  { %1872 = vmatpush.msrb.mxu3 %v8178_v21  ;;  %1995 = vmatpush.msra.mxu0 %v8145_v40 }
 0x2b7   :  { %v1563_v52 = vmul.f32 %v6742_v3, %v1562_v60  ;;  %v1599_v60 = vrot.slane %v8112_v43, 2  ;;  %v1591_v43 = vsel %vm1590_vm14, %v8220_v36, %v1587_v35 }
 0x2b8   :  { %v1596_v24 = vsel %vm1593_vm15, %v1595_v20, %v1591_v43  ;;  %1873 = vmatpush.msrb.mxu3 %v8190_v28  ;;  %1996 = vmatpush.msra.mxu0 %v8148_v34 }
 0x2b9   :  { %v1564_v41 = vadd.f32 %v6742_v3, %v1563_v52  ;;  %v1603_v46 = vsub.f32 1.0, %v1596_v24 }
 0x2ba   :  { %1874 = vmatpush.msrb.mxu3 %v8199_v26  ;;  %1997 = vmatpush.msra.mxu0 %v8165_v18 }
 0x2bb   :  { %v1568_v29 = vsel %vm1567_vm10, %v6742_v3, %v1564_v41  ;;  %v1605_v3 = vmul.f32 %v1596_v24, %v8068_v55  ;;  %v1609_v55 = vld [vmem:[#allocation2 + $0x2] ss:$8 sm:$0x7] }
 0x2bc   :  { %v1573_v52 = vsel %vm1570_vm11, %v1572_v14, %v1568_v29  ;;  %1875 = vmatpush.msrb.mxu3 %v8207_v9  ;;  %1998 = vmatpush.msra.mxu0 %v8175_v62  ;;  %v1762_v24 = vrot.slane %v1609_v55, 2 }
 0x2bd   :  { %v1598_v49 = vmul.f32 %v1573_v52, %v1553_v5 }
 0x2be   :  { %1876 = vmatpush.msrb.mxu3 %v8215_v61  ;;  %1999 = vmatpush.msra.mxu0 %v8188_v57 }
 0x2bf   :  { %v1601_v2 = vadd.f32 %v1599_v60, %v1598_v49 }
 0x2c1   :  { %6743 = vtanh.f32 %v1601_v2 }
 0x2c7   :  { %v6744_v39 = vpop.eup %6743 }
 0x2c8   :  { %v1604_v36 = vmul.f32 %v6744_v39, %v1603_v46 }
 0x2ca   :  { %v8291_v16 = vadd.f32 %v1605_v3, %v1604_v36 }
 0x2cc   :  { %1607 = vst [vmem:[#allocation3 + $0x2] sm:$0x1] %v8291_v16  ;;  %1674 = vmatmul.f32.vlgmr.msrb.gmra.mxu2 %v8291_v16  ;;  %1694 = vmatmul.f32.vlgmr.msra.gmra.mxu3 %v8291_v16 }
 0x2cd   :  { %1714 = vmatmul.f32.vlgmr.msrb.gmra.mxu0 %v8291_v16  ;;  %2024 = vmatpush.msrb.mxu2 %v8092_v25 }
 0x2ce   :  { %2167 = vmatpush.msrb.mxu0 %v8090_v31 }
 0x2cf   :  { %2025 = vmatpush.msrb.mxu2 %v8098_v37 }
 0x2d0   :  { %2168 = vmatpush.msrb.mxu0 %v8096_v33 }
 0x2d1   :  { %2026 = vmatpush.msrb.mxu2 %v8104_v59 }
 0x2d2   :  { %2169 = vmatpush.msrb.mxu0 %v8102_v48 }
 0x2d3   :  { %2027 = vmatpush.msrb.mxu2 %v8110_v27 }
 0x2d4   :  { %2170 = vmatpush.msrb.mxu0 %v8108_v11 }
 0x2d5   :  { %2028 = vmatpush.msrb.mxu2 %v8118_v0 }
 0x2d6   :  { %2171 = vmatpush.msrb.mxu0 %v8116_v6  ;;  %v1739_v6 = vrot.slane %v1609_v55, 1 }
 0x2d7   :  { %2029 = vmatpush.msrb.mxu2 %v8126_v23 }
 0x2d8   :  { %2172 = vmatpush.msrb.mxu0 %v8124_v58 }
 0x2d9   :  { %2030 = vmatpush.msrb.mxu2 %v8132_v7 }
 0x2da   :  { %2173 = vmatpush.msrb.mxu0 %v8130_v44 }
 0x2db   :  { %2031 = vmatpush.msrb.mxu2 %v8138_v8 }
 0x2dc   :  { %2174 = vmatpush.msrb.mxu0 %v8136_v12 }
 0x2dd   :  { %2032 = vmatpush.msrb.mxu2 %v8155_v50 }
 0x2de   :  { %2175 = vmatpush.msrb.mxu0 %v8150_v30 }
 0x2df   :  { %2033 = vmatpush.msrb.mxu2 %v8159_v53 }
 0x2e0   :  { %2176 = vmatpush.msrb.mxu0 %v8157_v42 }
 0x2e1   :  { %2034 = vmatpush.msrb.mxu2 %v8168_v45 }
 0x2e2   :  { %2177 = vmatpush.msrb.mxu0 %v8163_v19 }
 0x2e3   :  { %2035 = vmatpush.msrb.mxu2 %v8178_v21 }
 0x2e4   :  { %2178 = vmatpush.msrb.mxu0 %v8173_v51 }
 0x2e5   :  { %2036 = vmatpush.msrb.mxu2 %v8190_v28 }
 0x2e6   :  { %2179 = vmatpush.msrb.mxu0 %v8185_v47 }
 0x2e7   :  { %2037 = vmatpush.msrb.mxu2 %v8199_v26 }
 0x2e8   :  { %2180 = vmatpush.msrb.mxu0 %v8195_v63 }
 0x2e9   :  { %2038 = vmatpush.msrb.mxu2 %v8207_v9 }
 0x2ea   :  { %2181 = vmatpush.msrb.mxu0 %v8204_v17 }
 0x2eb   :  { %2039 = vmatpush.msrb.mxu2 %v8215_v61 }
 0x2ec   :  { %2182 = vmatpush.msrb.mxu0 %v8211_v1 }
 0x34a   :  { %v1715_v52 = vpop.f32.mrf.mxu0 }
 0x34b   :  { %v1716_v49 = vadd.f32 %v1715_v52, %v8063_v38 }
 0x34f   :  { %v1675_v31 = vpop.f32.mrf.mxu2  ;;  %v1695_v33 = vpop.f32.mrf.mxu3 }
 0x350   :  { %v1676_v48 = vadd.f32 %v1675_v31, %v8040_v32  ;;  %v1696_v11 = vadd.f32 %v1695_v33, %v8052_v4 }
 0x352   :  { %v1718_v58 = vadd.f32 %v1676_v48, %v1609_v55  ;;  %v1741_v44 = vadd.f32 %v1739_v6, %v1696_v11 }
 0x354   :  { %v6616_v12 = vmul.f32 -1.442695, %v1718_v58  ;;  %v6617_v34 = vmul.f32 -1.442695, %v1741_v44 }
 0x356   :  { %6745 = vpow2.f32 %v6616_v12 }
 0x357   :  { %6747 = vpow2.f32 %v6617_v34 }
 0x35c   :  { %v6746_v30 = vpop.eup %6745 }
 0x35d   :  { %v6748_v42 = vpop.eup %6747  ;;  %v1722_v19 = vadd.f32 1.0, %v6746_v30 }
 0x35e   :  { %v1745_v51 = vadd.f32 1.0, %v6748_v42 }
 0x35f   :  { %6749 = vrcp.f32 %v1722_v19  ;;  %v1734_v41 = vand.u32 2147483648, %v1722_v19  ;;  %v1732_v29 = vand.u32 2147483647, %v1722_v19  ;;  %vm1728_vm1 = vweird.f32 %v1722_v19 }
 0x360   :  { %6751 = vrcp.f32 %v1745_v51  ;;  %v1757_v46 = vand.u32 2147483648, %v1745_v51  ;;  %vm1751_vm5 = vweird.f32 %v1745_v51  ;;  %v1755_v39 = vand.u32 2147483647, %v1745_v51 }
 0x361   :  { %v1735_v60 = vor.u32 1.1754944e-38, %v1734_v41  ;;  %vm1733_vm3 = vcmp.eq.f32.partialorder %v1732_v29, 8.507059e+37 }
 0x362   :  { %v1758_v31 = vor.u32 1.1754944e-38, %v1757_v46  ;;  %vm1756_vm7 = vcmp.eq.f32.partialorder %v1755_v39, 8.507059e+37  ;;  %v8371_v39 = vld [vmem:[#allocation10 + $0x168] sm:$0xff] }
 0x363   :  { %2147 = vmatpush.msra.mxu3 %v8371_v39 }
 0x365   :  { %v6750_v47 = vpop.eup %6749 }
 0x366   :  { %v6752_v63 = vpop.eup %6751  ;;  %v1724_v17 = vmul.f32 %v6750_v47, %v1722_v19  ;;  %vm1729_vm0 = vweird.f32 %v6750_v47 }
 0x367   :  { %v1747_v1 = vmul.f32 %v6752_v63, %v1745_v51  ;;  %vm1730_vm2 = vmor %vm1728_vm1, %vm1729_vm0  ;;  %vm1752_vm4 = vweird.f32 %v6752_v63 }
 0x368   :  { %v1725_v56 = vsub.f32 1.0, %v1724_v17  ;;  %vm1753_vm6 = vmor %vm1751_vm5, %vm1752_vm4 }
 0x369   :  { %v1748_v14 = vsub.f32 1.0, %v1747_v1 }
 0x36a   :  { %v1726_v5 = vmul.f32 %v6750_v47, %v1725_v56 }
 0x36b   :  { %v1749_v35 = vmul.f32 %v6752_v63, %v1748_v14 }
 0x36c   :  { %v1727_v10 = vadd.f32 %v6750_v47, %v1726_v5 }
 0x36d   :  { %v1750_v43 = vadd.f32 %v6752_v63, %v1749_v35 }
 0x36e   :  { %v1731_v13 = vsel %vm1730_vm2, %v6750_v47, %v1727_v10 }
 0x36f   :  { %v1736_v2 = vsel %vm1733_vm3, %v1735_v60, %v1731_v13  ;;  %v1754_v3 = vsel %vm1753_vm6, %v6752_v63, %v1750_v43 }
 0x370   :  { %v1761_v20 = vmul.f32 %v1736_v2, %v1716_v49  ;;  %v1759_v33 = vsel %vm1756_vm7, %v1758_v31, %v1754_v3  ;;  %v8380_v3 = vld [vmem:[#allocation10 + $0x138] sm:$0xff]  ;;  %v8385_v31 = vld [vmem:[#allocation10 + $0x120] sm:$0xff] }
 0x371   :  { %v1766_v48 = vsub.f32 1.0, %v1759_v33  ;;  %v1768_v58 = vmul.f32 %v1759_v33, %v8291_v16  ;;  %v8390_v33 = vld [vmem:[#allocation10 + $0x108] sm:$0xff] }
 0x372   :  { %v1764_v36 = vadd.f32 %v1762_v24, %v1761_v20 }
 0x374   :  { %6753 = vtanh.f32 %v1764_v36  ;;  %v8375_v36 = vld [vmem:[#allocation10 + $0x150] sm:$0xff] }
 0x375   :  { %2148 = vmatpush.msra.mxu3 %v8375_v36 }
 0x377   :  { %2149 = vmatpush.msra.mxu3 %v8380_v3 }
 0x379   :  { %2150 = vmatpush.msra.mxu3 %v8385_v31 }
 0x37a   :  { %v6754_v11 = vpop.eup %6753 }
 0x37b   :  { %v1767_v6 = vmul.f32 %v6754_v11, %v1766_v48  ;;  %2151 = vmatpush.msra.mxu3 %v8390_v33  ;;  %v8395_v48 = vld [vmem:[#allocation10 + $0xf0] sm:$0xff] }
 0x37c   :  { %v8400_v11 = vld [vmem:[#allocation2 + $0x4] ss:$8 sm:$0x7] }
 0x37d   :  { %v8339_v44 = vadd.f32 %v1768_v58, %v1767_v6  ;;  %2152 = vmatpush.msra.mxu3 %v8395_v48  ;;  %v8402_v6 = vld [vmem:[#allocation10 + $0xd8] sm:$0xff] }
 0x37f   :  { %1770 = vst [vmem:[#allocation3 + $0x3] sm:$0x1] %v8339_v44  ;;  %1837 = vmatmul.f32.vlgmr.msrb.gmra.mxu1 %v8339_v44  ;;  %1857 = vmatmul.f32.vlgmr.msra.gmra.mxu2 %v8339_v44 }
 0x380   :  { %1877 = vmatmul.f32.vlgmr.msrb.gmra.mxu3 %v8339_v44  ;;  %2187 = vmatpush.msrb.mxu1 %v8092_v25 }
 0x381   :  { %2310 = vmatpush.msra.mxu2 %v8371_v39  ;;  %2153 = vmatpush.msra.mxu3 %v8402_v6 }
 0x382   :  { %2188 = vmatpush.msrb.mxu1 %v8098_v37 }
 0x383   :  { %2311 = vmatpush.msra.mxu2 %v8375_v36 }
 0x384   :  { %2189 = vmatpush.msrb.mxu1 %v8104_v59  ;;  %v1772_v59 = vld [vmem:[#allocation2 + $0x3] ss:$8 sm:$0x7] }
 0x385   :  { %v1925_v41 = vrot.slane %v1772_v59, 2  ;;  %2312 = vmatpush.msra.mxu2 %v8380_v3 }
 0x386   :  { %2190 = vmatpush.msrb.mxu1 %v8110_v27 }
 0x387   :  { %2313 = vmatpush.msra.mxu2 %v8385_v31 }
 0x388   :  { %2191 = vmatpush.msrb.mxu1 %v8118_v0 }
 0x389   :  { %2314 = vmatpush.msra.mxu2 %v8390_v33 }
 0x38a   :  { %2192 = vmatpush.msrb.mxu1 %v8126_v23 }
 0x38b   :  { %2315 = vmatpush.msra.mxu2 %v8395_v48 }
 0x38c   :  { %2193 = vmatpush.msrb.mxu1 %v8132_v7 }
 0x38d   :  { %2316 = vmatpush.msra.mxu2 %v8402_v6 }
 0x38e   :  { %2194 = vmatpush.msrb.mxu1 %v8138_v8  ;;  %v1902_v8 = vrot.slane %v1772_v59, 1 }
 0x390   :  { %2195 = vmatpush.msrb.mxu1 %v8155_v50 }
 0x392   :  { %2196 = vmatpush.msrb.mxu1 %v8159_v53 }
 0x394   :  { %2197 = vmatpush.msrb.mxu1 %v8168_v45 }
 0x396   :  { %2198 = vmatpush.msrb.mxu1 %v8178_v21 }
 0x398   :  { %2199 = vmatpush.msrb.mxu1 %v8190_v28 }
 0x39a   :  { %2200 = vmatpush.msrb.mxu1 %v8199_v26 }
 0x39c   :  { %2201 = vmatpush.msrb.mxu1 %v8207_v9 }
 0x39e   :  { %2202 = vmatpush.msrb.mxu1 %v8215_v61 }
 0x3fc   :  { %v1838_v25 = vpop.f32.mrf.mxu1 }
 0x3fd   :  { %v1839_v37 = vadd.f32 %v1838_v25, %v8040_v32  ;;  %v8407_v25 = vld [vmem:[#allocation10 + $0xc0] sm:$0xff] }
 0x3fe   :  { %2154 = vmatpush.msra.mxu3 %v8407_v25  ;;  %2317 = vmatpush.msra.mxu2 %v8407_v25 }
 0x3ff   :  { %v1881_v27 = vadd.f32 %v1839_v37, %v1772_v59 }
 0x401   :  { %v6618_v0 = vmul.f32 -1.442695, %v1881_v27  ;;  %v2065_v27 = vrot.slane %v8400_v11, 1 }
 0x402   :  { %v1858_v23 = vpop.f32.mrf.mxu2 }
 0x403   :  { %6755 = vpow2.f32 %v6618_v0  ;;  %v1859_v7 = vadd.f32 %v1858_v23, %v8052_v4  ;;  %v1878_v42 = vpop.f32.mrf.mxu3  ;;  %v8415_v0 = vld [vmem:[#allocation10 + $0xa8] sm:$0xff] }
 0x404   :  { %v1879_v17 = vadd.f32 %v1878_v42, %v8063_v38  ;;  %2155 = vmatpush.msra.mxu3 %v8415_v0  ;;  %2318 = vmatpush.msra.mxu2 %v8415_v0 }
 0x405   :  { %v1904_v50 = vadd.f32 %v1902_v8, %v1859_v7  ;;  %v8421_v8 = vld [vmem:[#allocation10 + $0x90] sm:$0xff] }
 0x406   :  { %2156 = vmatpush.msra.mxu3 %v8421_v8  ;;  %2319 = vmatpush.msra.mxu2 %v8421_v8 }
 0x407   :  { %v6619_v53 = vmul.f32 -1.442695, %v1904_v50 }
 0x408   :  { %2157 = vmatpush.msra.mxu3 %v8143_v15 }
 0x409   :  { %v6756_v45 = vpop.eup %6755  ;;  %6757 = vpow2.f32 %v6619_v53 }
 0x40a   :  { %v1885_v21 = vadd.f32 1.0, %v6756_v45  ;;  %2158 = vmatpush.msra.mxu3 %v8145_v40  ;;  %v8429_v45 = vld [vmem:[#allocation10 + $0x48] sm:$0xff] }
 0x40c   :  { %6759 = vrcp.f32 %v1885_v21  ;;  %v1897_v55 = vand.u32 2147483648, %v1885_v21  ;;  %v1895_v34 = vand.u32 2147483647, %v1885_v21  ;;  %vm1891_vm9 = vweird.f32 %v1885_v21  ;;  %2159 = vmatpush.msra.mxu3 %v8429_v45 }
 0x40e   :  { %v1898_v47 = vor.u32 1.1754944e-38, %v1897_v55  ;;  %vm1896_vm11 = vcmp.eq.f32.partialorder %v1895_v34, 8.507059e+37  ;;  %2160 = vmatpush.msra.mxu3 %v8165_v18 }
 0x40f   :  { %v6758_v28 = vpop.eup %6757 }
 0x410   :  { %v1908_v26 = vadd.f32 1.0, %v6758_v28  ;;  %2161 = vmatpush.msra.mxu3 %v8175_v62 }
 0x412   :  { %v6760_v9 = vpop.eup %6759  ;;  %6761 = vrcp.f32 %v1908_v26  ;;  %v1920_v5 = vand.u32 2147483648, %v1908_v26  ;;  %v1918_v52 = vand.u32 2147483647, %v1908_v26  ;;  %vm1914_vm13 = vweird.f32 %v1908_v26  ;;  %2162 = vmatpush.msra.mxu3 %v8188_v57 }
 0x413   :  { %v1887_v61 = vmul.f32 %v6760_v9, %v1885_v21  ;;  %vm1892_vm8 = vweird.f32 %v6760_v9 }
 0x414   :  { %vm1893_vm10 = vmor %vm1891_vm9, %vm1892_vm8  ;;  %v1921_v60 = vor.u32 1.1754944e-38, %v1920_v5  ;;  %vm1919_vm15 = vcmp.eq.f32.partialorder %v1918_v52, 8.507059e+37 }
 0x415   :  { %v1888_v16 = vsub.f32 1.0, %v1887_v61 }
 0x417   :  { %v1889_v12 = vmul.f32 %v6760_v9, %v1888_v16 }
 0x418   :  { %v6762_v30 = vpop.eup %6761 }
 0x419   :  { %v1910_v19 = vmul.f32 %v6762_v30, %v1908_v26  ;;  %v1890_v51 = vadd.f32 %v6760_v9, %v1889_v12  ;;  %vm1915_vm12 = vweird.f32 %v6762_v30 }
 0x41a   :  { %vm1916_vm14 = vmor %vm1914_vm13, %vm1915_vm12 }
 0x41b   :  { %v1911_v63 = vsub.f32 1.0, %v1910_v19  ;;  %v1894_v1 = vsel %vm1893_vm10, %v6760_v9, %v1890_v51 }
 0x41c   :  { %v1899_v56 = vsel %vm1896_vm11, %v1898_v47, %v1894_v1 }
 0x41d   :  { %v1912_v14 = vmul.f32 %v6762_v30, %v1911_v63  ;;  %v1924_v29 = vmul.f32 %v1899_v56, %v1879_v17 }
 0x41f   :  { %v1913_v35 = vadd.f32 %v6762_v30, %v1912_v14  ;;  %v1927_v10 = vadd.f32 %v1925_v41, %v1924_v29  ;;  %v2088_v41 = vrot.slane %v8400_v11, 2 }
 0x421   :  { %v1917_v49 = vsel %vm1916_vm14, %v6762_v30, %v1913_v35  ;;  %6763 = vtanh.f32 %v1927_v10 }
 0x422   :  { %v1922_v13 = vsel %vm1919_vm15, %v1921_v60, %v1917_v49 }
 0x423   :  { %v1929_v2 = vsub.f32 1.0, %v1922_v13  ;;  %v1931_v24 = vmul.f32 %v1922_v13, %v8339_v44 }
 0x427   :  { %v6764_v43 = vpop.eup %6763 }
 0x428   :  { %v1930_v20 = vmul.f32 %v6764_v43, %v1929_v2  ;;  %v8444_v43 = vld [vmem:[#allocation10 + $0x170] sm:$0xff] }
 0x429   :  { %2330 = vmatpush.msrb.mxu3 %v8444_v43 }
 0x42a   :  { %v8365_v46 = vadd.f32 %v1931_v24, %v1930_v20  ;;  %v8446_v20 = vld [vmem:[#allocation10 + $0x178] sm:$0xff] }
 0x42b   :  { %v8450_v24 = vld [vmem:[#allocation10 + $0x158] sm:$0xff] }
 0x42c   :  { %1933 = vst [vmem:[#allocation3 + $0x4] sm:$0x1] %v8365_v46  ;;  %2000 = vmatmul.f32.vlgmr.msra.gmra.mxu0 %v8365_v46  ;;  %2020 = vmatmul.f32.vlgmr.msra.gmra.mxu1 %v8365_v46 }
 0x42d   :  { %2040 = vmatmul.f32.vlgmr.msrb.gmra.mxu2 %v8365_v46  ;;  %2473 = vmatpush.msra.mxu1 %v8371_v39 }
 0x42e   :  { %2350 = vmatpush.msra.mxu0 %v8446_v20  ;;  %2331 = vmatpush.msrb.mxu3 %v8450_v24 }
 0x42f   :  { %2474 = vmatpush.msra.mxu1 %v8375_v36 }
 0x431   :  { %2475 = vmatpush.msra.mxu1 %v8380_v3 }
 0x433   :  { %2476 = vmatpush.msra.mxu1 %v8385_v31 }
 0x435   :  { %2477 = vmatpush.msra.mxu1 %v8390_v33 }
 0x437   :  { %2478 = vmatpush.msra.mxu1 %v8395_v48 }
 0x439   :  { %2479 = vmatpush.msra.mxu1 %v8402_v6 }
 0x43b   :  { %2480 = vmatpush.msra.mxu1 %v8407_v25 }
 0x43d   :  { %2481 = vmatpush.msra.mxu1 %v8415_v0 }
 0x43f   :  { %2482 = vmatpush.msra.mxu1 %v8421_v8 }
 0x4a9   :  { %v2001_v58 = vpop.f32.mrf.mxu0  ;;  %v2021_v44 = vpop.f32.mrf.mxu1 }
 0x4aa   :  { %v2002_v37 = vadd.f32 %v2001_v58, %v8040_v32  ;;  %v2022_v59 = vadd.f32 %v2021_v44, %v8052_v4  ;;  %v8458_v58 = vld [vmem:[#allocation10 + $0x148] sm:$0xff] }
 0x4ab   :  { %v8460_v44 = vld [vmem:[#allocation2 + $0x5] ss:$8 sm:$0x7] }
 0x4ac   :  { %v2044_v23 = vadd.f32 %v2002_v37, %v8400_v11  ;;  %v2067_v7 = vadd.f32 %v2065_v27, %v2022_v59  ;;  %v8456_v11 = vld [vmem:[#allocation10 + $0x140] sm:$0xff]  ;;  %v8464_v37 = vld [vmem:[#allocation10 + $0x128] sm:$0xff]  ;;  %v8466_v59 = vld [vmem:[#allocation10 + $0x130] sm:$0xff] }
 0x4ad   :  { %2332 = vmatpush.msrb.mxu3 %v8456_v11 }
 0x4ae   :  { %v6620_v50 = vmul.f32 -1.442695, %v2044_v23  ;;  %v6621_v53 = vmul.f32 -1.442695, %v2067_v7  ;;  %v2228_v7 = vrot.slane %v8460_v44, 1 }
 0x4af   :  { %2333 = vmatpush.msrb.mxu3 %v8464_v37 }
 0x4b0   :  { %6765 = vpow2.f32 %v6620_v50  ;;  %v2041_v19 = vpop.f32.mrf.mxu2  ;;  %v8472_v50 = vld [vmem:[#allocation10 + $0x110] sm:$0xff] }
 0x4b1   :  { %6767 = vpow2.f32 %v6621_v53  ;;  %v2042_v47 = vadd.f32 %v2041_v19, %v8063_v38  ;;  %v8474_v53 = vld [vmem:[#allocation10 + $0x118] sm:$0xff]  ;;  %2334 = vmatpush.msrb.mxu3 %v8472_v50  ;;  %v8504_v19 = vld [vmem:[#allocation10 + $0xa0] sm:$0xff] }
 0x4b6   :  { %v6766_v21 = vpop.eup %6765 }
 0x4b7   :  { %v6768_v28 = vpop.eup %6767  ;;  %v2048_v26 = vadd.f32 1.0, %v6766_v21 }
 0x4b8   :  { %v2071_v9 = vadd.f32 1.0, %v6768_v28  ;;  %v8478_v28 = vld [vmem:[#allocation10 + $0xf8] sm:$0xff] }
 0x4b9   :  { %6769 = vrcp.f32 %v2048_v26  ;;  %v2060_v34 = vand.u32 2147483648, %v2048_v26  ;;  %v2058_v42 = vand.u32 2147483647, %v2048_v26  ;;  %vm2054_vm1 = vweird.f32 %v2048_v26  ;;  %2335 = vmatpush.msrb.mxu3 %v8478_v28 }
 0x4ba   :  { %6771 = vrcp.f32 %v2071_v9  ;;  %v2083_v1 = vand.u32 2147483648, %v2071_v9  ;;  %vm2077_vm5 = vweird.f32 %v2071_v9  ;;  %v2081_v14 = vand.u32 2147483647, %v2071_v9 }
 0x4bb   :  { %v2061_v62 = vor.u32 1.1754944e-38, %v2060_v34  ;;  %vm2059_vm3 = vcmp.eq.f32.partialorder %v2058_v42, 8.507059e+37  ;;  %v8495_v34 = vld [vmem:[#allocation10 + $0xb0] sm:$0xff] }
 0x4bc   :  { %v2084_v52 = vor.u32 1.1754944e-38, %v2083_v1  ;;  %vm2082_vm7 = vcmp.eq.f32.partialorder %v2081_v14, 8.507059e+37  ;;  %v8521_v1 = vld [vmem:[#allocation10 + $0x68] sm:$0xff]  ;;  %v8530_v14 = vld [vmem:[#allocation10 + $0x30] sm:$0xff] }
 0x4bf   :  { %v6770_v15 = vpop.eup %6769 }
 0x4c0   :  { %v6772_v61 = vpop.eup %6771  ;;  %v2050_v16 = vmul.f32 %v6770_v15, %v2048_v26  ;;  %vm2055_vm0 = vweird.f32 %v6770_v15  ;;  %v8480_v26 = vld [vmem:[#allocation10 + $0x100] sm:$0xff] }
 0x4c1   :  { %v2073_v40 = vmul.f32 %v6772_v61, %v2071_v9  ;;  %vm2056_vm2 = vmor %vm2054_vm1, %vm2055_vm0  ;;  %vm2078_vm4 = vweird.f32 %v6772_v61 }
 0x4c2   :  { %v2051_v55 = vsub.f32 1.0, %v2050_v16  ;;  %vm2079_vm6 = vmor %vm2077_vm5, %vm2078_vm4 }
 0x4c3   :  { %v2074_v12 = vsub.f32 1.0, %v2073_v40 }
 0x4c4   :  { %v2052_v30 = vmul.f32 %v6770_v15, %v2051_v55  ;;  %v8491_v55 = vld [vmem:[#allocation10 + $0xc8] sm:$0xff] }
 0x4c5   :  { %v2075_v18 = vmul.f32 %v6772_v61, %v2074_v12  ;;  %v8493_v12 = vld [vmem:[#allocation10 + $0xd0] sm:$0xff] }
 0x4c6   :  { %v2053_v51 = vadd.f32 %v6770_v15, %v2052_v30  ;;  %v8499_v30 = vld [vmem:[#allocation10 + $0xb8] sm:$0xff] }
 0x4c7   :  { %v2076_v17 = vadd.f32 %v6772_v61, %v2075_v18  ;;  %v8502_v18 = vld [vmem:[#allocation10 + $0x98] sm:$0xff] }
 0x4c8   :  { %v2057_v63 = vsel %vm2056_vm2, %v6770_v15, %v2053_v51  ;;  %v8484_v15 = vld [vmem:[#allocation10 + $0xe0] sm:$0xff]  ;;  %v8506_v51 = vld [vmem:[#allocation10 + $0x78] sm:$0xff] }
 0x4c9   :  { %v2062_v57 = vsel %vm2059_vm3, %v2061_v62, %v2057_v63  ;;  %v2080_v29 = vsel %vm2079_vm6, %v6772_v61, %v2076_v17  ;;  %v8486_v61 = vld [vmem:[#allocation10 + $0xe8] sm:$0xff]  ;;  %2336 = vmatpush.msrb.mxu3 %v8484_v15  ;;  %v8510_v62 = vld [vmem:[#allocation10 + $0x60] sm:$0xff]  ;;  %2320 = vmatpush.msra.mxu2 %v8506_v51 }
 0x4ca   :  { %v2087_v56 = vmul.f32 %v2062_v57, %v2042_v47  ;;  %v2085_v35 = vsel %vm2082_vm7, %v2084_v52, %v2080_v29  ;;  %v8513_v63 = vld [vmem:[#allocation10 + $0x80] sm:$0xff]  ;;  %v8515_v57 = vld [vmem:[#allocation10 + $0x88] sm:$0xff]  ;;  %2483 = vmatpush.msra.mxu1 %v8506_v51  ;;  %v8535_v29 = vld [vmem:[#allocation10 + $0x58] sm:$0xff] }
 0x4cb   :  { %v2092_v10 = vsub.f32 1.0, %v2085_v35  ;;  %v2094_v13 = vmul.f32 %v2085_v35, %v8365_v46  ;;  %v8452_v46 = vld [vmem:[#allocation10 + $0x160] sm:$0xff]  ;;  %2337 = vmatpush.msrb.mxu3 %v8491_v55  ;;  %2321 = vmatpush.msra.mxu2 %v8510_v62  ;;  %v8540_v52 = vld [vmem:[#allocation10 + $0x18] sm:$0xff] }
 0x4cc   :  { %v2090_v5 = vadd.f32 %v2088_v41, %v2087_v56  ;;  %2351 = vmatpush.msra.mxu0 %v8452_v46  ;;  %v8523_v56 = vld [vmem:[#allocation10 + $0x70] sm:$0xff]  ;;  %2484 = vmatpush.msra.mxu1 %v8510_v62  ;;  %v8544_v35 = vld [vmem:[#allocation10 + $0x38] sm:$0xff] }
 0x4cd   :  { %2338 = vmatpush.msrb.mxu3 %v8495_v34  ;;  %2322 = vmatpush.msra.mxu2 %v8429_v45 }
 0x4ce   :  { %6773 = vtanh.f32 %v2090_v5  ;;  %2352 = vmatpush.msra.mxu0 %v8458_v58  ;;  %v8533_v5 = vld [vmem:[#allocation10 + $0x50] sm:$0xff]  ;;  %2485 = vmatpush.msra.mxu1 %v8429_v45 }
 0x4cf   :  { %2339 = vmatpush.msrb.mxu3 %v8502_v18  ;;  %2323 = vmatpush.msra.mxu2 %v8530_v14 }
 0x4d0   :  { %2353 = vmatpush.msra.mxu0 %v8466_v59  ;;  %2486 = vmatpush.msra.mxu1 %v8530_v14 }
 0x4d1   :  { %2340 = vmatpush.msrb.mxu3 %v8513_v63  ;;  %2324 = vmatpush.msra.mxu2 %v8540_v52 }
 0x4d2   :  { %2354 = vmatpush.msra.mxu0 %v8474_v53  ;;  %2487 = vmatpush.msra.mxu1 %v8540_v52 }
 0x4d3   :  { %2341 = vmatpush.msrb.mxu3 %v8521_v1 }
 0x4d4   :  { %v6774_v60 = vpop.eup %6773  ;;  %2355 = vmatpush.msra.mxu0 %v8480_v26 }
 0x4d5   :  { %v2093_v49 = vmul.f32 %v6774_v60, %v2092_v10  ;;  %v8546_v10 = vld [vmem:[#allocation10 + $0x40] sm:$0xff]  ;;  %2342 = vmatpush.msrb.mxu3 %v8533_v5 }
 0x4d6   :  { %2356 = vmatpush.msra.mxu0 %v8486_v61  ;;  %v8551_v60 = vld [vmem:[#allocation10] sm:$0xff] }
 0x4d7   :  { %v8438_v2 = vadd.f32 %v2094_v13, %v2093_v49  ;;  %v8554_v13 = vld [vmem:[#allocation10 + $0x20] sm:$0xff]  ;;  %2343 = vmatpush.msrb.mxu3 %v8544_v35  ;;  %2325 = vmatpush.msra.mxu2 %v8551_v60 }
 0x4d8   :  { %2357 = vmatpush.msra.mxu0 %v8493_v12  ;;  %2488 = vmatpush.msra.mxu1 %v8551_v60 }
 0x4d9   :  { %2096 = vst [vmem:[#allocation3 + $0x5] sm:$0x1] %v8438_v2  ;;  %2163 = vmatmul.f32.vlgmr.msra.gmra.mxu3 %v8438_v2  ;;  %2183 = vmatmul.f32.vlgmr.msrb.gmra.mxu0 %v8438_v2 }
 0x4da   :  { %2203 = vmatmul.f32.vlgmr.msrb.gmra.mxu1 %v8438_v2  ;;  %2358 = vmatpush.msra.mxu0 %v8499_v30 }
 0x4db   :  { %2344 = vmatpush.msrb.mxu3 %v8554_v13  ;;  %2493 = vmatpush.msrb.mxu2 %v8444_v43 }
 0x4dc   :  { %2359 = vmatpush.msra.mxu0 %v8504_v19  ;;  %2656 = vmatpush.msrb.mxu1 %v8444_v43 }
 0x4dd   :  { %2494 = vmatpush.msrb.mxu2 %v8450_v24 }
 0x4de   :  { %2360 = vmatpush.msra.mxu0 %v8515_v57  ;;  %2657 = vmatpush.msrb.mxu1 %v8450_v24 }
 0x4df   :  { %2495 = vmatpush.msrb.mxu2 %v8456_v11 }
 0x4e0   :  { %2361 = vmatpush.msra.mxu0 %v8523_v56  ;;  %2658 = vmatpush.msrb.mxu1 %v8456_v11 }
 0x4e1   :  { %2496 = vmatpush.msrb.mxu2 %v8464_v37 }
 0x4e2   :  { %2362 = vmatpush.msra.mxu0 %v8535_v29  ;;  %2659 = vmatpush.msrb.mxu1 %v8464_v37 }
 0x4e3   :  { %2497 = vmatpush.msrb.mxu2 %v8472_v50 }
 0x4e4   :  { %2363 = vmatpush.msra.mxu0 %v8546_v10  ;;  %2660 = vmatpush.msrb.mxu1 %v8472_v50 }
 0x4e5   :  { %2498 = vmatpush.msrb.mxu2 %v8478_v28 }
 0x4e6   :  { %2661 = vmatpush.msrb.mxu1 %v8478_v28 }
 0x4e7   :  { %2499 = vmatpush.msrb.mxu2 %v8484_v15 }
 0x4e8   :  { %2662 = vmatpush.msrb.mxu1 %v8484_v15 }
 0x4e9   :  { %2500 = vmatpush.msrb.mxu2 %v8491_v55 }
 0x4ea   :  { %2663 = vmatpush.msrb.mxu1 %v8491_v55 }
 0x4eb   :  { %2501 = vmatpush.msrb.mxu2 %v8495_v34 }
 0x4ec   :  { %2664 = vmatpush.msrb.mxu1 %v8495_v34 }
 0x4ed   :  { %2502 = vmatpush.msrb.mxu2 %v8502_v18 }
 0x4ee   :  { %2665 = vmatpush.msrb.mxu1 %v8502_v18 }
 0x4ef   :  { %2503 = vmatpush.msrb.mxu2 %v8513_v63 }
 0x4f0   :  { %2666 = vmatpush.msrb.mxu1 %v8513_v63 }
 0x4f1   :  { %2504 = vmatpush.msrb.mxu2 %v8521_v1 }
 0x4f2   :  { %2667 = vmatpush.msrb.mxu1 %v8521_v1 }
 0x4f3   :  { %2505 = vmatpush.msrb.mxu2 %v8533_v5 }
 0x4f4   :  { %2668 = vmatpush.msrb.mxu1 %v8533_v5 }
 0x4f5   :  { %2506 = vmatpush.msrb.mxu2 %v8544_v35 }
 0x4f6   :  { %2669 = vmatpush.msrb.mxu1 %v8544_v35 }
 0x4f7   :  { %2507 = vmatpush.msrb.mxu2 %v8554_v13 }
 0x4f8   :  { %2670 = vmatpush.msrb.mxu1 %v8554_v13 }
 0x556   :  { %v2184_v27 = vpop.f32.mrf.mxu0 }
 0x557   :  { %v2185_v23 = vadd.f32 %v2184_v27, %v8052_v4  ;;  %v8556_v27 = vld [vmem:[#allocation10 + $0x28] sm:$0xff] }
 0x558   :  { %2364 = vmatpush.msra.mxu0 %v8556_v27 }
 0x559   :  { %v2230_v21 = vadd.f32 %v2228_v7, %v2185_v23  ;;  %v8562_v7 = vld [vmem:[#allocation10 + $0x8] sm:$0xff] }
 0x55a   :  { %2345 = vmatpush.msrb.mxu3 %v8562_v7  ;;  %2508 = vmatpush.msrb.mxu2 %v8562_v7 }
 0x55b   :  { %v6623_v9 = vmul.f32 -1.442695, %v2230_v21  ;;  %v8564_v21 = vld [vmem:[#allocation10 + $0x10] sm:$0xff]  ;;  %2671 = vmatpush.msrb.mxu1 %v8562_v7 }
 0x55c   :  { %v2164_v16 = vpop.f32.mrf.mxu3  ;;  %2365 = vmatpush.msra.mxu0 %v8564_v21  ;;  %2513 = vmatpush.msra.mxu3 %v8446_v20 }
 0x55d   :  { %6775 = vpow2.f32 %v6623_v9  ;;  %v2165_v40 = vadd.f32 %v2164_v16, %v8040_v32 }
 0x55e   :  { %2636 = vmatpush.msrb.mxu0 %v8371_v39  ;;  %2514 = vmatpush.msra.mxu3 %v8452_v46 }
 0x55f   :  { %v2207_v42 = vadd.f32 %v2165_v40, %v8460_v44 }
 0x560   :  { %2637 = vmatpush.msrb.mxu0 %v8375_v36  ;;  %2515 = vmatpush.msra.mxu3 %v8458_v58 }
 0x561   :  { %v6622_v47 = vmul.f32 -1.442695, %v2207_v42 }
 0x562   :  { %2638 = vmatpush.msrb.mxu0 %v8380_v3  ;;  %2516 = vmatpush.msra.mxu3 %v8466_v59 }
 0x563   :  { %v6776_v17 = vpop.eup %6775  ;;  %6777 = vpow2.f32 %v6622_v47 }
 0x564   :  { %v8526_v41 = vadd.f32 1.0, %v6776_v17  ;;  %2639 = vmatpush.msrb.mxu0 %v8385_v31  ;;  %2517 = vmatpush.msra.mxu3 %v8474_v53 }
 0x566   :  { %6779 = vrcp.f32 %v8526_v41  ;;  %2640 = vmatpush.msrb.mxu0 %v8390_v33  ;;  %2518 = vmatpush.msra.mxu3 %v8480_v26  ;;  %vm2240_vm13 = vweird.f32 %v8526_v41 }
 0x568   :  { %2641 = vmatpush.msrb.mxu0 %v8395_v48  ;;  %2519 = vmatpush.msra.mxu3 %v8486_v61  ;;  %v2246_v48 = vand.u32 2147483648, %v8526_v41 }
 0x569   :  { %v6778_v49 = vpop.eup %6777 }
 0x56a   :  { %v2211_v23 = vadd.f32 1.0, %v6778_v49  ;;  %2642 = vmatpush.msrb.mxu0 %v8402_v6  ;;  %2520 = vmatpush.msra.mxu3 %v8493_v12 }
 0x56c   :  { %6781 = vrcp.f32 %v2211_v23  ;;  %v8569_v9 = vpop.eup %6779  ;;  %v2223_v17 = vand.u32 2147483648, %v2211_v23  ;;  %v2221_v49 = vand.u32 2147483647, %v2211_v23  ;;  %vm2217_vm9 = vweird.f32 %v2211_v23  ;;  %2643 = vmatpush.msrb.mxu0 %v8407_v25  ;;  %2521 = vmatpush.msra.mxu3 %v8499_v30 }
 0x56d   :  { %v2236_v16 = vmul.f32 %v8569_v9, %v8526_v41  ;;  %vm2241_vm12 = vweird.f32 %v8569_v9 }
 0x56e   :  { %v2224_v31 = vor.u32 1.1754944e-38, %v2223_v17  ;;  %vm2222_vm11 = vcmp.eq.f32.partialorder %v2221_v49, 8.507059e+37  ;;  %v2251_v17 = vrot.slane %v8460_v44, 2  ;;  %vm2242_vm14 = vmor %vm2240_vm13, %vm2241_vm12  ;;  %2644 = vmatpush.msrb.mxu0 %v8415_v0  ;;  %v2247_v49 = vor.u32 1.1754944e-38, %v2246_v48  ;;  %2522 = vmatpush.msra.mxu3 %v8504_v19 }
 0x56f   :  { %v2237_v47 = vsub.f32 1.0, %v2236_v16  ;;  %v2204_v16 = vpop.f32.mrf.mxu1 }
 0x570   :  { %2645 = vmatpush.msrb.mxu0 %v8421_v8  ;;  %2523 = vmatpush.msra.mxu3 %v8515_v57 }
 0x571   :  { %v2238_v3 = vmul.f32 %v8569_v9, %v2237_v47 }
 0x572   :  { %v6782_v40 = vpop.eup %6781  ;;  %2646 = vmatpush.msrb.mxu0 %v8506_v51  ;;  %2524 = vmatpush.msra.mxu3 %v8523_v56 }
 0x573   :  { %v2213_v42 = vmul.f32 %v6782_v40, %v2211_v23  ;;  %vm2218_vm8 = vweird.f32 %v6782_v40  ;;  %v2239_v23 = vadd.f32 %v8569_v9, %v2238_v3 }
 0x574   :  { %vm2219_vm10 = vmor %vm2217_vm9, %vm2218_vm8  ;;  %2647 = vmatpush.msrb.mxu0 %v8510_v62  ;;  %2525 = vmatpush.msra.mxu3 %v8535_v29 }
 0x575   :  { %v2214_v39 = vsub.f32 1.0, %v2213_v42  ;;  %v2243_v44 = vsel %vm2242_vm14, %v8569_v9, %v2239_v23 }
 0x576   :  { %2648 = vmatpush.msrb.mxu0 %v8429_v45  ;;  %2526 = vmatpush.msra.mxu3 %v8546_v10  ;;  %v2261_v45 = vld [vmem:[#allocation2 + $0x6] ss:$8 sm:$0x7] }
 0x577   :  { %v2215_v36 = vmul.f32 %v6782_v40, %v2214_v39  ;;  %v2205_v39 = vadd.f32 %v2204_v16, %v8063_v38 }
 0x578   :  { %2649 = vmatpush.msrb.mxu0 %v8530_v14  ;;  %2527 = vmatpush.msra.mxu3 %v8556_v27 }
 0x579   :  { %v2216_v42 = vadd.f32 %v6782_v40, %v2215_v36 }
 0x57a   :  { %2528 = vmatpush.msra.mxu3 %v8564_v21  ;;  %2650 = vmatpush.msrb.mxu0 %v8540_v52 }
 0x57b   :  { %v2220_v47 = vsel %vm2219_vm10, %v6782_v40, %v2216_v42  ;;  %v2244_v40 = vand.u32 2147483647, %v8526_v41 }
 0x57c   :  { %v2225_v33 = vsel %vm2222_vm11, %v2224_v31, %v2220_v47  ;;  %2651 = vmatpush.msrb.mxu0 %v8551_v60 }
 0x57d   :  { %v2250_v36 = vmul.f32 %v2225_v33, %v2205_v39  ;;  %vm2245_vm15 = vcmp.eq.f32.partialorder %v2244_v40, 8.507059e+37 }
 0x57e   :  { %v2248_v25 = vsel %vm2245_vm15, %v2247_v49, %v2243_v44 }
 0x57f   :  { %v2253_v6 = vadd.f32 %v2251_v17, %v2250_v36  ;;  %v2255_v0 = vsub.f32 1.0, %v2248_v25  ;;  %v2257_v9 = vmul.f32 %v2248_v25, %v8438_v2  ;;  %v2414_v25 = vrot.slane %v2261_v45, 2 }
 0x581   :  { %6783 = vtanh.f32 %v2253_v6 }
 0x587   :  { %v6784_v8 = vpop.eup %6783 }
 0x588   :  { %v2256_v41 = vmul.f32 %v6784_v8, %v2255_v0 }
 0x58a   :  { %v8641_v3 = vadd.f32 %v2257_v9, %v2256_v41 }
 0x58c   :  { %2259 = vst [vmem:[#allocation3 + $0x6] sm:$0x1] %v8641_v3  ;;  %2326 = vmatmul.f32.vlgmr.msra.gmra.mxu2 %v8641_v3  ;;  %2346 = vmatmul.f32.vlgmr.msrb.gmra.mxu3 %v8641_v3 }
 0x58d   :  { %2366 = vmatmul.f32.vlgmr.msra.gmra.mxu0 %v8641_v3  ;;  %2676 = vmatpush.msra.mxu2 %v8446_v20 }
 0x58e   :  { %2819 = vmatpush.msra.mxu0 %v8444_v43 }
 0x58f   :  { %2677 = vmatpush.msra.mxu2 %v8452_v46 }
 0x590   :  { %2820 = vmatpush.msra.mxu0 %v8450_v24 }
 0x591   :  { %2678 = vmatpush.msra.mxu2 %v8458_v58 }
 0x592   :  { %2821 = vmatpush.msra.mxu0 %v8456_v11 }
 0x593   :  { %2679 = vmatpush.msra.mxu2 %v8466_v59 }
 0x594   :  { %2822 = vmatpush.msra.mxu0 %v8464_v37  ;;  %v2391_v37 = vrot.slane %v2261_v45, 1 }
 0x595   :  { %2680 = vmatpush.msra.mxu2 %v8474_v53 }
 0x596   :  { %2823 = vmatpush.msra.mxu0 %v8472_v50 }
 0x597   :  { %2681 = vmatpush.msra.mxu2 %v8480_v26 }
 0x598   :  { %2824 = vmatpush.msra.mxu0 %v8478_v28 }
 0x599   :  { %2682 = vmatpush.msra.mxu2 %v8486_v61 }
 0x59a   :  { %2825 = vmatpush.msra.mxu0 %v8484_v15 }
 0x59b   :  { %2683 = vmatpush.msra.mxu2 %v8493_v12 }
 0x59c   :  { %2826 = vmatpush.msra.mxu0 %v8491_v55 }
 0x59d   :  { %2684 = vmatpush.msra.mxu2 %v8499_v30 }
 0x59e   :  { %2827 = vmatpush.msra.mxu0 %v8495_v34 }
 0x59f   :  { %2685 = vmatpush.msra.mxu2 %v8504_v19 }
 0x5a0   :  { %2828 = vmatpush.msra.mxu0 %v8502_v18 }
 0x5a1   :  { %2686 = vmatpush.msra.mxu2 %v8515_v57 }
 0x5a2   :  { %2829 = vmatpush.msra.mxu0 %v8513_v63 }
 0x5a3   :  { %2687 = vmatpush.msra.mxu2 %v8523_v56 }
 0x5a4   :  { %2830 = vmatpush.msra.mxu0 %v8521_v1 }
 0x5a5   :  { %2688 = vmatpush.msra.mxu2 %v8535_v29 }
 0x5a6   :  { %2831 = vmatpush.msra.mxu0 %v8533_v5 }
 0x5a7   :  { %2689 = vmatpush.msra.mxu2 %v8546_v10 }
 0x5a8   :  { %2832 = vmatpush.msra.mxu0 %v8544_v35 }
 0x5a9   :  { %2690 = vmatpush.msra.mxu2 %v8556_v27 }
 0x5aa   :  { %2833 = vmatpush.msra.mxu0 %v8554_v13 }
 0x5ab   :  { %2691 = vmatpush.msra.mxu2 %v8564_v21 }
 0x5ac   :  { %2834 = vmatpush.msra.mxu0 %v8562_v7 }
 0x60a   :  { %v2367_v33 = vpop.f32.mrf.mxu0 }
 0x60b   :  { %v2368_v36 = vadd.f32 %v2367_v33, %v8063_v38 }
 0x60f   :  { %v2327_v2 = vpop.f32.mrf.mxu2  ;;  %v2347_v43 = vpop.f32.mrf.mxu3 }
 0x610   :  { %v2328_v24 = vadd.f32 %v2327_v2, %v8040_v32  ;;  %v2348_v11 = vadd.f32 %v2347_v43, %v8052_v4 }
 0x612   :  { %v2370_v50 = vadd.f32 %v2328_v24, %v2261_v45  ;;  %v2393_v28 = vadd.f32 %v2391_v37, %v2348_v11 }
 0x614   :  { %v6624_v15 = vmul.f32 -1.442695, %v2370_v50  ;;  %v6625_v55 = vmul.f32 -1.442695, %v2393_v28 }
 0x616   :  { %6785 = vpow2.f32 %v6624_v15 }
 0x617   :  { %6787 = vpow2.f32 %v6625_v55 }
 0x61c   :  { %v6786_v34 = vpop.eup %6785 }
 0x61d   :  { %v6788_v18 = vpop.eup %6787  ;;  %v2374_v63 = vadd.f32 1.0, %v6786_v34 }
 0x61e   :  { %v2397_v1 = vadd.f32 1.0, %v6788_v18 }
 0x61f   :  { %6789 = vrcp.f32 %v2374_v63  ;;  %v2386_v42 = vand.u32 2147483648, %v2374_v63  ;;  %v2384_v47 = vand.u32 2147483647, %v2374_v63  ;;  %vm2380_vm1 = vweird.f32 %v2374_v63 }
 0x620   :  { %6791 = vrcp.f32 %v2397_v1  ;;  %v2409_v0 = vand.u32 2147483648, %v2397_v1  ;;  %vm2403_vm5 = vweird.f32 %v2397_v1  ;;  %v2407_v8 = vand.u32 2147483647, %v2397_v1 }
 0x621   :  { %v2387_v17 = vor.u32 1.1754944e-38, %v2386_v42  ;;  %vm2385_vm3 = vcmp.eq.f32.partialorder %v2384_v47, 8.507059e+37 }
 0x622   :  { %v2410_v2 = vor.u32 1.1754944e-38, %v2409_v0  ;;  %vm2408_vm7 = vcmp.eq.f32.partialorder %v2407_v8, 8.507059e+37  ;;  %v8723_v8 = vld [vmem:[#allocation10 + $0x168] sm:$0xff] }
 0x623   :  { %2799 = vmatpush.msrb.mxu3 %v8723_v8 }
 0x625   :  { %v6790_v5 = vpop.eup %6789 }
 0x626   :  { %v6792_v35 = vpop.eup %6791  ;;  %v2376_v13 = vmul.f32 %v6790_v5, %v2374_v63  ;;  %vm2381_vm0 = vweird.f32 %v6790_v5 }
 0x627   :  { %v2399_v7 = vmul.f32 %v6792_v35, %v2397_v1  ;;  %vm2382_vm2 = vmor %vm2380_vm1, %vm2381_vm0  ;;  %vm2404_vm4 = vweird.f32 %v6792_v35 }
 0x628   :  { %v2377_v16 = vsub.f32 1.0, %v2376_v13  ;;  %vm2405_vm6 = vmor %vm2403_vm5, %vm2404_vm4 }
 0x629   :  { %v2400_v31 = vsub.f32 1.0, %v2399_v7 }
 0x62a   :  { %v2378_v39 = vmul.f32 %v6790_v5, %v2377_v16 }
 0x62b   :  { %v2401_v23 = vmul.f32 %v6792_v35, %v2400_v31 }
 0x62c   :  { %v2379_v48 = vadd.f32 %v6790_v5, %v2378_v39 }
 0x62d   :  { %v2402_v44 = vadd.f32 %v6792_v35, %v2401_v23 }
 0x62e   :  { %v2383_v40 = vsel %vm2382_vm2, %v6790_v5, %v2379_v48 }
 0x62f   :  { %v2388_v6 = vsel %vm2385_vm3, %v2387_v17, %v2383_v40  ;;  %v2406_v9 = vsel %vm2405_vm6, %v6792_v35, %v2402_v44 }
 0x630   :  { %v2413_v49 = vmul.f32 %v2388_v6, %v2368_v36  ;;  %v2411_v43 = vsel %vm2408_vm7, %v2410_v2, %v2406_v9  ;;  %v8732_v9 = vld [vmem:[#allocation10 + $0x138] sm:$0xff]  ;;  %v8737_v2 = vld [vmem:[#allocation10 + $0x120] sm:$0xff] }
 0x631   :  { %v2418_v24 = vsub.f32 1.0, %v2411_v43  ;;  %v2420_v50 = vmul.f32 %v2411_v43, %v8641_v3  ;;  %v8742_v43 = vld [vmem:[#allocation10 + $0x108] sm:$0xff] }
 0x632   :  { %v2416_v41 = vadd.f32 %v2414_v25, %v2413_v49 }
 0x634   :  { %6793 = vtanh.f32 %v2416_v41  ;;  %v8727_v41 = vld [vmem:[#allocation10 + $0x150] sm:$0xff] }
 0x635   :  { %2800 = vmatpush.msrb.mxu3 %v8727_v41 }
 0x637   :  { %2801 = vmatpush.msrb.mxu3 %v8732_v9 }
 0x639   :  { %2802 = vmatpush.msrb.mxu3 %v8737_v2 }
 0x63a   :  { %v6794_v11 = vpop.eup %6793 }
 0x63b   :  { %v2419_v37 = vmul.f32 %v6794_v11, %v2418_v24  ;;  %v8745_v24 = vld [vmem:[#allocation2 + $0x18] ss:$8 sm:$0x7]  ;;  %2803 = vmatpush.msrb.mxu3 %v8742_v43 }
 0x63c   :  { %v8749_v11 = vld [vmem:[#allocation10 + $0xf0] sm:$0xff] }
 0x63d   :  { %v8691_v28 = vadd.f32 %v2420_v50, %v2419_v37  ;;  %2804 = vmatpush.msrb.mxu3 %v8749_v11 }
 0x63f   :  { %2422 = vst [vmem:[#allocation3 + $0x7] sm:$0x1] %v8691_v28  ;;  %2489 = vmatmul.f32.vlgmr.msra.gmra.mxu1 %v8691_v28  ;;  %2509 = vmatmul.f32.vlgmr.msrb.gmra.mxu2 %v8691_v28 }
 0x640   :  { %2529 = vmatmul.f32.vlgmr.msra.gmra.mxu3 %v8691_v28  ;;  %2839 = vmatpush.msra.mxu1 %v8446_v20 }
 0x641   :  { %2962 = vmatpush.msrb.mxu2 %v8723_v8 }
 0x642   :  { %2840 = vmatpush.msra.mxu1 %v8452_v46 }
 0x643   :  { %2963 = vmatpush.msrb.mxu2 %v8727_v41 }
 0x644   :  { %2841 = vmatpush.msra.mxu1 %v8458_v58  ;;  %v2424_v58 = vld [vmem:[#allocation2 + $0x7] ss:$8 sm:$0x7] }
 0x645   :  { %v2577_v42 = vrot.slane %v2424_v58, 2  ;;  %2964 = vmatpush.msrb.mxu2 %v8732_v9 }
 0x646   :  { %2842 = vmatpush.msra.mxu1 %v8466_v59 }
 0x647   :  { %2965 = vmatpush.msrb.mxu2 %v8737_v2 }
 0x648   :  { %2843 = vmatpush.msra.mxu1 %v8474_v53 }
 0x649   :  { %2966 = vmatpush.msrb.mxu2 %v8742_v43 }
 0x64a   :  { %2844 = vmatpush.msra.mxu1 %v8480_v26 }
 0x64b   :  { %2967 = vmatpush.msrb.mxu2 %v8749_v11 }
 0x64c   :  { %2845 = vmatpush.msra.mxu1 %v8486_v61 }
 0x64e   :  { %2846 = vmatpush.msra.mxu1 %v8493_v12  ;;  %v2554_v12 = vrot.slane %v2424_v58, 1 }
 0x650   :  { %2847 = vmatpush.msra.mxu1 %v8499_v30 }
 0x652   :  { %2848 = vmatpush.msra.mxu1 %v8504_v19 }
 0x654   :  { %2849 = vmatpush.msra.mxu1 %v8515_v57 }
 0x656   :  { %2850 = vmatpush.msra.mxu1 %v8523_v56 }
 0x658   :  { %2851 = vmatpush.msra.mxu1 %v8535_v29 }
 0x65a   :  { %2852 = vmatpush.msra.mxu1 %v8546_v10 }
 0x65c   :  { %2853 = vmatpush.msra.mxu1 %v8556_v27 }
 0x65e   :  { %2854 = vmatpush.msra.mxu1 %v8564_v21 }
 0x6bc   :  { %v2490_v20 = vpop.f32.mrf.mxu1 }
 0x6bd   :  { %v2491_v46 = vadd.f32 %v2490_v20, %v8040_v32 }
 0x6bf   :  { %v2533_v59 = vadd.f32 %v2491_v46, %v2424_v58  ;;  %v2717_v46 = vrot.slane %v8745_v24, 1  ;;  %v8757_v58 = vld [vmem:[#allocation10 + $0xd8] sm:$0xff] }
 0x6c0   :  { %2805 = vmatpush.msrb.mxu3 %v8757_v58  ;;  %2968 = vmatpush.msrb.mxu2 %v8757_v58 }
 0x6c1   :  { %v6626_v53 = vmul.f32 -1.442695, %v2533_v59 }
 0x6c2   :  { %v2510_v26 = vpop.f32.mrf.mxu2 }
 0x6c3   :  { %6795 = vpow2.f32 %v6626_v53  ;;  %v2511_v61 = vadd.f32 %v2510_v26, %v8052_v4  ;;  %v2530_v18 = vpop.f32.mrf.mxu3  ;;  %v8763_v26 = vld [vmem:[#allocation10 + $0xc0] sm:$0xff] }
 0x6c4   :  { %v2531_v13 = vadd.f32 %v2530_v18, %v8063_v38  ;;  %2806 = vmatpush.msrb.mxu3 %v8763_v26  ;;  %2969 = vmatpush.msrb.mxu2 %v8763_v26 }
 0x6c5   :  { %v2556_v30 = vadd.f32 %v2554_v12, %v2511_v61 }
 0x6c7   :  { %v6627_v19 = vmul.f32 -1.442695, %v2556_v30  ;;  %v8768_v30 = vld [vmem:[#allocation10 + $0xa8] sm:$0xff] }
 0x6c8   :  { %2807 = vmatpush.msrb.mxu3 %v8768_v30  ;;  %2970 = vmatpush.msrb.mxu2 %v8768_v30 }
 0x6c9   :  { %v6796_v57 = vpop.eup %6795  ;;  %6797 = vpow2.f32 %v6627_v19  ;;  %v8773_v19 = vld [vmem:[#allocation10 + $0x90] sm:$0xff] }
 0x6ca   :  { %v2537_v56 = vadd.f32 1.0, %v6796_v57  ;;  %2808 = vmatpush.msrb.mxu3 %v8773_v19  ;;  %2971 = vmatpush.msrb.mxu2 %v8773_v19  ;;  %v8781_v57 = vld [vmem:[#allocation10 + $0x48] sm:$0xff] }
 0x6cc   :  { %6799 = vrcp.f32 %v2537_v56  ;;  %v2549_v45 = vand.u32 2147483648, %v2537_v56  ;;  %v2547_v55 = vand.u32 2147483647, %v2537_v56  ;;  %vm2543_vm9 = vweird.f32 %v2537_v56  ;;  %2809 = vmatpush.msrb.mxu3 %v8506_v51 }
 0x6ce   :  { %v2550_v5 = vor.u32 1.1754944e-38, %v2549_v45  ;;  %vm2548_vm11 = vcmp.eq.f32.partialorder %v2547_v55, 8.507059e+37  ;;  %2810 = vmatpush.msrb.mxu3 %v8510_v62 }
 0x6cf   :  { %v6798_v29 = vpop.eup %6797 }
 0x6d0   :  { %v2560_v10 = vadd.f32 1.0, %v6798_v29  ;;  %2811 = vmatpush.msrb.mxu3 %v8781_v57 }
 0x6d2   :  { %v6800_v27 = vpop.eup %6799  ;;  %6801 = vrcp.f32 %v2560_v10  ;;  %v2572_v39 = vand.u32 2147483648, %v2560_v10  ;;  %v2570_v33 = vand.u32 2147483647, %v2560_v10  ;;  %vm2566_vm13 = vweird.f32 %v2560_v10  ;;  %2812 = vmatpush.msrb.mxu3 %v8530_v14 }
 0x6d3   :  { %v2539_v21 = vmul.f32 %v6800_v27, %v2537_v56  ;;  %vm2544_vm8 = vweird.f32 %v6800_v27 }
 0x6d4   :  { %vm2545_vm10 = vmor %vm2543_vm9, %vm2544_vm8  ;;  %v2573_v17 = vor.u32 1.1754944e-38, %v2572_v39  ;;  %vm2571_vm15 = vcmp.eq.f32.partialorder %v2570_v33, 8.507059e+37  ;;  %2813 = vmatpush.msrb.mxu3 %v8540_v52 }
 0x6d5   :  { %v2540_v3 = vsub.f32 1.0, %v2539_v21 }
 0x6d6   :  { %2814 = vmatpush.msrb.mxu3 %v8551_v60 }
 0x6d7   :  { %v2541_v15 = vmul.f32 %v6800_v27, %v2540_v3 }
 0x6d8   :  { %v6802_v34 = vpop.eup %6801 }
 0x6d9   :  { %v2562_v63 = vmul.f32 %v6802_v34, %v2560_v10  ;;  %v2542_v1 = vadd.f32 %v6800_v27, %v2541_v15  ;;  %vm2567_vm12 = vweird.f32 %v6802_v34 }
 0x6da   :  { %vm2568_vm14 = vmor %vm2566_vm13, %vm2567_vm12 }
 0x6db   :  { %v2563_v35 = vsub.f32 1.0, %v2562_v63  ;;  %v2546_v7 = vsel %vm2545_vm10, %v6800_v27, %v2542_v1 }
 0x6dc   :  { %v2551_v16 = vsel %vm2548_vm11, %v2550_v5, %v2546_v7 }
 0x6dd   :  { %v2564_v31 = vmul.f32 %v6802_v34, %v2563_v35  ;;  %v2576_v47 = vmul.f32 %v2551_v16, %v2531_v13 }
 0x6df   :  { %v2565_v23 = vadd.f32 %v6802_v34, %v2564_v31  ;;  %v2579_v48 = vadd.f32 %v2577_v42, %v2576_v47  ;;  %v2740_v42 = vrot.slane %v8745_v24, 2 }
 0x6e1   :  { %v2569_v36 = vsel %vm2568_vm14, %v6802_v34, %v2565_v23  ;;  %6803 = vtanh.f32 %v2579_v48 }
 0x6e2   :  { %v2574_v40 = vsel %vm2571_vm15, %v2573_v17, %v2569_v36 }
 0x6e3   :  { %v2581_v6 = vsub.f32 1.0, %v2574_v40  ;;  %v2583_v25 = vmul.f32 %v2574_v40, %v8691_v28 }
 0x6e7   :  { %v6804_v44 = vpop.eup %6803 }
 0x6e8   :  { %v2582_v49 = vmul.f32 %v6804_v44, %v2581_v6  ;;  %v8796_v44 = vld [vmem:[#allocation10 + $0x170] sm:$0xff] }
 0x6e9   :  { %2982 = vmatpush.msra.mxu3 %v8796_v44 }
 0x6ea   :  { %v8717_v0 = vadd.f32 %v2583_v25, %v2582_v49  ;;  %v8798_v49 = vld [vmem:[#allocation10 + $0x178] sm:$0xff] }
 0x6eb   :  { %v8802_v25 = vld [vmem:[#allocation10 + $0x158] sm:$0xff] }
 0x6ec   :  { %2585 = vst [vmem:[#allocation3 + $0x8] sm:$0x1] %v8717_v0  ;;  %2652 = vmatmul.f32.vlgmr.msrb.gmra.mxu0 %v8717_v0  ;;  %2672 = vmatmul.f32.vlgmr.msrb.gmra.mxu1 %v8717_v0 }
 0x6ed   :  { %2692 = vmatmul.f32.vlgmr.msra.gmra.mxu2 %v8717_v0  ;;  %3125 = vmatpush.msrb.mxu1 %v8723_v8 }
 0x6ee   :  { %3002 = vmatpush.msrb.mxu0 %v8798_v49  ;;  %2983 = vmatpush.msra.mxu3 %v8802_v25 }
 0x6ef   :  { %3126 = vmatpush.msrb.mxu1 %v8727_v41 }
 0x6f1   :  { %3127 = vmatpush.msrb.mxu1 %v8732_v9 }
 0x6f3   :  { %3128 = vmatpush.msrb.mxu1 %v8737_v2 }
 0x6f5   :  { %3129 = vmatpush.msrb.mxu1 %v8742_v43 }
 0x6f7   :  { %3130 = vmatpush.msrb.mxu1 %v8749_v11 }
 0x6f9   :  { %3131 = vmatpush.msrb.mxu1 %v8757_v58 }
 0x6fb   :  { %3132 = vmatpush.msrb.mxu1 %v8763_v26 }
 0x6fd   :  { %3133 = vmatpush.msrb.mxu1 %v8768_v30 }
 0x6ff   :  { %3134 = vmatpush.msrb.mxu1 %v8773_v19 }
 0x769   :  { %v2653_v37 = vpop.f32.mrf.mxu0  ;;  %v2673_v50 = vpop.f32.mrf.mxu1 }
 0x76a   :  { %v2654_v28 = vadd.f32 %v2653_v37, %v8040_v32  ;;  %v2674_v20 = vadd.f32 %v2673_v50, %v8052_v4  ;;  %v8810_v37 = vld [vmem:[#allocation10 + $0x140] sm:$0xff]  ;;  %v8812_v50 = vld [vmem:[#allocation10 + $0x148] sm:$0xff] }
 0x76b   :  { %2984 = vmatpush.msra.mxu3 %v8810_v37 }
 0x76c   :  { %v2696_v59 = vadd.f32 %v2654_v28, %v8745_v24  ;;  %v2719_v53 = vadd.f32 %v2717_v46, %v2674_v20  ;;  %v8806_v24 = vld [vmem:[#allocation2 + $0x19] ss:$8 sm:$0x7] }
 0x76d   :  { %v2880_v46 = vrot.slane %v8806_v24, 1 }
 0x76e   :  { %v6628_v61 = vmul.f32 -1.442695, %v2696_v59  ;;  %v6629_v12 = vmul.f32 -1.442695, %v2719_v53  ;;  %v8818_v59 = vld [vmem:[#allocation10 + $0x128] sm:$0xff]  ;;  %v8820_v53 = vld [vmem:[#allocation10 + $0x130] sm:$0xff] }
 0x76f   :  { %2985 = vmatpush.msra.mxu3 %v8818_v59 }
 0x770   :  { %6805 = vpow2.f32 %v6628_v61  ;;  %v2693_v1 = vpop.f32.mrf.mxu2 }
 0x771   :  { %6807 = vpow2.f32 %v6629_v12  ;;  %v2694_v52 = vadd.f32 %v2693_v1, %v8063_v38  ;;  %v8824_v12 = vld [vmem:[#allocation10 + $0x110] sm:$0xff]  ;;  %v8856_v1 = vld [vmem:[#allocation10 + $0x60] sm:$0xff] }
 0x772   :  { %2986 = vmatpush.msra.mxu3 %v8824_v12 }
 0x776   :  { %v6806_v56 = vpop.eup %6805 }
 0x777   :  { %v6808_v29 = vpop.eup %6807  ;;  %v2700_v10 = vadd.f32 1.0, %v6806_v56  ;;  %v8826_v56 = vld [vmem:[#allocation10 + $0x118] sm:$0xff] }
 0x778   :  { %v2723_v27 = vadd.f32 1.0, %v6808_v29 }
 0x779   :  { %6809 = vrcp.f32 %v2700_v10  ;;  %v2712_v55 = vand.u32 2147483648, %v2700_v10  ;;  %v2710_v18 = vand.u32 2147483647, %v2700_v10  ;;  %vm2706_vm1 = vweird.f32 %v2700_v10 }
 0x77a   :  { %6811 = vrcp.f32 %v2723_v27  ;;  %v2735_v7 = vand.u32 2147483648, %v2723_v27  ;;  %vm2729_vm5 = vweird.f32 %v2723_v27  ;;  %v2733_v31 = vand.u32 2147483647, %v2723_v27 }
 0x77b   :  { %v2713_v14 = vor.u32 1.1754944e-38, %v2712_v55  ;;  %vm2711_vm3 = vcmp.eq.f32.partialorder %v2710_v18, 8.507059e+37  ;;  %v8850_v18 = vld [vmem:[#allocation10 + $0xb8] sm:$0xff] }
 0x77c   :  { %v2736_v33 = vor.u32 1.1754944e-38, %v2735_v7  ;;  %vm2734_vm7 = vcmp.eq.f32.partialorder %v2733_v31, 8.507059e+37  ;;  %v8880_v31 = vld [vmem:[#allocation10 + $0x70] sm:$0xff] }
 0x77f   :  { %v6810_v21 = vpop.eup %6809 }
 0x780   :  { %v6812_v51 = vpop.eup %6811  ;;  %v2702_v3 = vmul.f32 %v6810_v21, %v2700_v10  ;;  %vm2707_vm0 = vweird.f32 %v6810_v21  ;;  %v8830_v10 = vld [vmem:[#allocation10 + $0xf8] sm:$0xff] }
 0x781   :  { %v2725_v62 = vmul.f32 %v6812_v51, %v2723_v27  ;;  %vm2708_vm2 = vmor %vm2706_vm1, %vm2707_vm0  ;;  %vm2730_vm4 = vweird.f32 %v6812_v51  ;;  %v8832_v27 = vld [vmem:[#allocation10 + $0x100] sm:$0xff]  ;;  %2987 = vmatpush.msra.mxu3 %v8830_v10 }
 0x782   :  { %v2703_v45 = vsub.f32 1.0, %v2702_v3  ;;  %vm2731_vm6 = vmor %vm2729_vm5, %vm2730_vm4  ;;  %v8837_v3 = vld [vmem:[#allocation10 + $0xe0] sm:$0xff] }
 0x783   :  { %v2726_v15 = vsub.f32 1.0, %v2725_v62  ;;  %v8839_v62 = vld [vmem:[#allocation10 + $0xe8] sm:$0xff]  ;;  %2988 = vmatpush.msra.mxu3 %v8837_v3 }
 0x784   :  { %v2704_v34 = vmul.f32 %v6810_v21, %v2703_v45  ;;  %v8841_v45 = vld [vmem:[#allocation10 + $0xc8] sm:$0xff] }
 0x785   :  { %v2727_v63 = vmul.f32 %v6812_v51, %v2726_v15  ;;  %v8845_v15 = vld [vmem:[#allocation10 + $0xd0] sm:$0xff]  ;;  %2989 = vmatpush.msra.mxu3 %v8841_v45 }
 0x786   :  { %v2705_v5 = vadd.f32 %v6810_v21, %v2704_v34  ;;  %v8848_v34 = vld [vmem:[#allocation10 + $0xb0] sm:$0xff] }
 0x787   :  { %v2728_v13 = vadd.f32 %v6812_v51, %v2727_v63  ;;  %v8852_v63 = vld [vmem:[#allocation10 + $0x78] sm:$0xff]  ;;  %2990 = vmatpush.msra.mxu3 %v8848_v34 }
 0x788   :  { %v2709_v35 = vsel %vm2708_vm2, %v6810_v21, %v2705_v5  ;;  %2972 = vmatpush.msrb.mxu2 %v8852_v63  ;;  %3135 = vmatpush.msrb.mxu1 %v8852_v63 }
 0x789   :  { %v2714_v60 = vsel %vm2711_vm3, %v2713_v14, %v2709_v35  ;;  %v2732_v47 = vsel %vm2731_vm6, %v6812_v51, %v2728_v13  ;;  %v8858_v14 = vld [vmem:[#allocation10 + $0x98] sm:$0xff]  ;;  %v8868_v13 = vld [vmem:[#allocation10 + $0x88] sm:$0xff] }
 0x78a   :  { %v2739_v16 = vmul.f32 %v2714_v60, %v2694_v52  ;;  %v2737_v23 = vsel %vm2734_vm7, %v2736_v33, %v2732_v47  ;;  %v8860_v52 = vld [vmem:[#allocation10 + $0xa0] sm:$0xff]  ;;  %2973 = vmatpush.msrb.mxu2 %v8856_v1  ;;  %3136 = vmatpush.msrb.mxu1 %v8856_v1  ;;  %v8889_v47 = vld [vmem:[#allocation10 + $0x50] sm:$0xff]  ;;  %v8891_v33 = vld [vmem:[#allocation10 + $0x58] sm:$0xff] }
 0x78b   :  { %v2744_v48 = vsub.f32 1.0, %v2737_v23  ;;  %v2746_v40 = vmul.f32 %v2737_v23, %v8717_v0  ;;  %v8804_v0 = vld [vmem:[#allocation10 + $0x160] sm:$0xff]  ;;  %2991 = vmatpush.msra.mxu3 %v8858_v14 }
 0x78c   :  { %v2742_v39 = vadd.f32 %v2740_v42, %v2739_v16  ;;  %3003 = vmatpush.msrb.mxu0 %v8804_v0  ;;  %v8866_v60 = vld [vmem:[#allocation10 + $0x80] sm:$0xff]  ;;  %v8876_v16 = vld [vmem:[#allocation10 + $0x30] sm:$0xff]  ;;  %v8878_v42 = vld [vmem:[#allocation10 + $0x68] sm:$0xff]  ;;  %2974 = vmatpush.msrb.mxu2 %v8781_v57 }
 0x78d   :  { %3137 = vmatpush.msrb.mxu1 %v8781_v57  ;;  %2992 = vmatpush.msra.mxu3 %v8866_v60  ;;  %v8897_v23 = vld [vmem:[#allocation10] sm:$0xff] }
 0x78e   :  { %6813 = vtanh.f32 %v2742_v39  ;;  %3004 = vmatpush.msrb.mxu0 %v8812_v50  ;;  %v8886_v39 = vld [vmem:[#allocation10 + $0x18] sm:$0xff]  ;;  %2975 = vmatpush.msrb.mxu2 %v8876_v16 }
 0x78f   :  { %3138 = vmatpush.msrb.mxu1 %v8876_v16  ;;  %2993 = vmatpush.msra.mxu3 %v8878_v42 }
 0x790   :  { %3005 = vmatpush.msrb.mxu0 %v8820_v53  ;;  %2976 = vmatpush.msrb.mxu2 %v8886_v39 }
 0x791   :  { %3139 = vmatpush.msrb.mxu1 %v8886_v39  ;;  %2994 = vmatpush.msra.mxu3 %v8889_v47 }
 0x792   :  { %3006 = vmatpush.msrb.mxu0 %v8826_v56  ;;  %2977 = vmatpush.msrb.mxu2 %v8897_v23 }
 0x793   :  { %3140 = vmatpush.msrb.mxu1 %v8897_v23 }
 0x794   :  { %v6814_v17 = vpop.eup %6813  ;;  %3007 = vmatpush.msrb.mxu0 %v8832_v27  ;;  %3145 = vmatpush.msra.mxu2 %v8796_v44 }
 0x795   :  { %v2745_v36 = vmul.f32 %v6814_v17, %v2744_v48  ;;  %v8899_v17 = vld [vmem:[#allocation10 + $0x38] sm:$0xff] }
 0x796   :  { %3008 = vmatpush.msrb.mxu0 %v8839_v62  ;;  %2995 = vmatpush.msra.mxu3 %v8899_v17 }
 0x797   :  { %v8790_v6 = vadd.f32 %v2746_v40, %v2745_v36  ;;  %v8901_v36 = vld [vmem:[#allocation10 + $0x40] sm:$0xff]  ;;  %3146 = vmatpush.msra.mxu2 %v8802_v25 }
 0x798   :  { %3009 = vmatpush.msrb.mxu0 %v8845_v15 }
 0x799   :  { %2748 = vst [vmem:[#allocation3 + $0x9] sm:$0x1] %v8790_v6  ;;  %2815 = vmatmul.f32.vlgmr.msrb.gmra.mxu3 %v8790_v6  ;;  %2835 = vmatmul.f32.vlgmr.msra.gmra.mxu0 %v8790_v6 }
 0x79a   :  { %2855 = vmatmul.f32.vlgmr.msra.gmra.mxu1 %v8790_v6  ;;  %3010 = vmatpush.msrb.mxu0 %v8850_v18 }
 0x79b   :  { %3308 = vmatpush.msra.mxu1 %v8796_v44  ;;  %3147 = vmatpush.msra.mxu2 %v8810_v37 }
 0x79c   :  { %3011 = vmatpush.msrb.mxu0 %v8860_v52 }
 0x79d   :  { %3309 = vmatpush.msra.mxu1 %v8802_v25  ;;  %3148 = vmatpush.msra.mxu2 %v8818_v59 }
 0x79e   :  { %3012 = vmatpush.msrb.mxu0 %v8868_v13 }
 0x79f   :  { %3310 = vmatpush.msra.mxu1 %v8810_v37  ;;  %3149 = vmatpush.msra.mxu2 %v8824_v12 }
 0x7a0   :  { %3013 = vmatpush.msrb.mxu0 %v8880_v31 }
 0x7a1   :  { %3311 = vmatpush.msra.mxu1 %v8818_v59  ;;  %3150 = vmatpush.msra.mxu2 %v8830_v10 }
 0x7a2   :  { %3014 = vmatpush.msrb.mxu0 %v8891_v33 }
 0x7a3   :  { %3312 = vmatpush.msra.mxu1 %v8824_v12  ;;  %3151 = vmatpush.msra.mxu2 %v8837_v3 }
 0x7a4   :  { %3015 = vmatpush.msrb.mxu0 %v8901_v36 }
 0x7a5   :  { %3313 = vmatpush.msra.mxu1 %v8830_v10  ;;  %3152 = vmatpush.msra.mxu2 %v8841_v45 }
 0x7a7   :  { %3314 = vmatpush.msra.mxu1 %v8837_v3  ;;  %3153 = vmatpush.msra.mxu2 %v8848_v34 }
 0x7a9   :  { %3315 = vmatpush.msra.mxu1 %v8841_v45  ;;  %3154 = vmatpush.msra.mxu2 %v8858_v14 }
 0x7ab   :  { %3316 = vmatpush.msra.mxu1 %v8848_v34  ;;  %3155 = vmatpush.msra.mxu2 %v8866_v60 }
 0x7ad   :  { %3317 = vmatpush.msra.mxu1 %v8858_v14  ;;  %3156 = vmatpush.msra.mxu2 %v8878_v42 }
 0x7af   :  { %3318 = vmatpush.msra.mxu1 %v8866_v60  ;;  %3157 = vmatpush.msra.mxu2 %v8889_v47 }
 0x7b1   :  { %3319 = vmatpush.msra.mxu1 %v8878_v42  ;;  %3158 = vmatpush.msra.mxu2 %v8899_v17 }
 0x7b3   :  { %3320 = vmatpush.msra.mxu1 %v8889_v47 }
 0x7b5   :  { %3321 = vmatpush.msra.mxu1 %v8899_v17 }
 0x816   :  { %v2836_v28 = vpop.f32.mrf.mxu0 }
 0x817   :  { %v2837_v20 = vadd.f32 %v2836_v28, %v8052_v4  ;;  %v8907_v28 = vld [vmem:[#allocation10 + $0x20] sm:$0xff] }
 0x818   :  { %2996 = vmatpush.msra.mxu3 %v8907_v28  ;;  %3159 = vmatpush.msra.mxu2 %v8907_v28 }
 0x819   :  { %v2882_v61 = vadd.f32 %v2880_v46, %v2837_v20  ;;  %v8909_v20 = vld [vmem:[#allocation10 + $0x28] sm:$0xff]  ;;  %3322 = vmatpush.msra.mxu1 %v8907_v28 }
 0x81a   :  { %3016 = vmatpush.msrb.mxu0 %v8909_v20 }
 0x81b   :  { %v6631_v29 = vmul.f32 -1.442695, %v2882_v61  ;;  %v8917_v61 = vld [vmem:[#allocation10 + $0x8] sm:$0xff] }
 0x81c   :  { %v2816_v21 = vpop.f32.mrf.mxu3  ;;  %2997 = vmatpush.msra.mxu3 %v8917_v61  ;;  %3160 = vmatpush.msra.mxu2 %v8917_v61 }
 0x81d   :  { %6815 = vpow2.f32 %v6631_v29  ;;  %v2817_v51 = vadd.f32 %v2816_v21, %v8040_v32  ;;  %v8919_v29 = vld [vmem:[#allocation10 + $0x10] sm:$0xff]  ;;  %3323 = vmatpush.msra.mxu1 %v8917_v61 }
 0x81e   :  { %3017 = vmatpush.msrb.mxu0 %v8919_v29  ;;  %3165 = vmatpush.msrb.mxu3 %v8798_v49 }
 0x81f   :  { %v2859_v55 = vadd.f32 %v2817_v51, %v8806_v24 }
 0x820   :  { %3288 = vmatpush.msra.mxu0 %v8723_v8  ;;  %3166 = vmatpush.msrb.mxu3 %v8804_v0 }
 0x821   :  { %v6630_v5 = vmul.f32 -1.442695, %v2859_v55 }
 0x822   :  { %3289 = vmatpush.msra.mxu0 %v8727_v41  ;;  %3167 = vmatpush.msrb.mxu3 %v8812_v50 }
 0x823   :  { %v6816_v35 = vpop.eup %6815  ;;  %6817 = vpow2.f32 %v6630_v5 }
 0x824   :  { %v8872_v7 = vadd.f32 1.0, %v6816_v35  ;;  %3290 = vmatpush.msra.mxu0 %v8732_v9  ;;  %3168 = vmatpush.msrb.mxu3 %v8820_v53 }
 0x826   :  { %6819 = vrcp.f32 %v8872_v7  ;;  %3291 = vmatpush.msra.mxu0 %v8737_v2  ;;  %3169 = vmatpush.msrb.mxu3 %v8826_v56  ;;  %vm2892_vm13 = vweird.f32 %v8872_v7 }
 0x828   :  { %3292 = vmatpush.msra.mxu0 %v8742_v43  ;;  %3170 = vmatpush.msrb.mxu3 %v8832_v27  ;;  %v2898_v43 = vand.u32 2147483648, %v8872_v7 }
 0x829   :  { %v6818_v48 = vpop.eup %6817 }
 0x82a   :  { %v2863_v40 = vadd.f32 1.0, %v6818_v48  ;;  %3293 = vmatpush.msra.mxu0 %v8749_v11  ;;  %3171 = vmatpush.msrb.mxu3 %v8839_v62 }
 0x82c   :  { %6821 = vrcp.f32 %v2863_v40  ;;  %v8915_v46 = vpop.eup %6819  ;;  %v2875_v48 = vand.u32 2147483648, %v2863_v40  ;;  %v2873_v22 = vand.u32 2147483647, %v2863_v40  ;;  %vm2869_vm9 = vweird.f32 %v2863_v40  ;;  %3294 = vmatpush.msra.mxu0 %v8757_v58  ;;  %3172 = vmatpush.msrb.mxu3 %v8845_v15 }
 0x82d   :  { %v2888_v21 = vmul.f32 %v8915_v46, %v8872_v7  ;;  %vm2893_vm12 = vweird.f32 %v8915_v46 }
 0x82e   :  { %v2876_v9 = vor.u32 1.1754944e-38, %v2875_v48  ;;  %vm2874_vm11 = vcmp.eq.f32.partialorder %v2873_v22, 8.507059e+37  ;;  %v2903_v48 = vrot.slane %v8806_v24, 2  ;;  %v2896_v22 = vand.u32 2147483647, %v8872_v7  ;;  %vm2894_vm14 = vmor %vm2892_vm13, %vm2893_vm12  ;;  %3295 = vmatpush.msra.mxu0 %v8763_v26  ;;  %3173 = vmatpush.msrb.mxu3 %v8850_v18 }
 0x82f   :  { %v2889_v5 = vsub.f32 1.0, %v2888_v21  ;;  %v2856_v21 = vpop.f32.mrf.mxu1 }
 0x830   :  { %vm2897_vm15 = vcmp.eq.f32.partialorder %v2896_v22, 8.507059e+37  ;;  %3296 = vmatpush.msra.mxu0 %v8768_v30  ;;  %3174 = vmatpush.msrb.mxu3 %v8860_v52 }
 0x831   :  { %v2890_v41 = vmul.f32 %v8915_v46, %v2889_v5 }
 0x832   :  { %v6822_v51 = vpop.eup %6821  ;;  %3297 = vmatpush.msra.mxu0 %v8773_v19  ;;  %3175 = vmatpush.msrb.mxu3 %v8868_v13 }
 0x833   :  { %v2865_v55 = vmul.f32 %v6822_v51, %v2863_v40  ;;  %vm2870_vm8 = vweird.f32 %v6822_v51  ;;  %v2891_v40 = vadd.f32 %v8915_v46, %v2890_v41 }
 0x834   :  { %vm2871_vm10 = vmor %vm2869_vm9, %vm2870_vm8  ;;  %3298 = vmatpush.msra.mxu0 %v8852_v63  ;;  %3176 = vmatpush.msrb.mxu3 %v8880_v31 }
 0x835   :  { %v2866_v35 = vsub.f32 1.0, %v2865_v55  ;;  %v2895_v24 = vsel %vm2894_vm14, %v8915_v46, %v2891_v40 }
 0x836   :  { %3299 = vmatpush.msra.mxu0 %v8856_v1  ;;  %3177 = vmatpush.msrb.mxu3 %v8891_v33 }
 0x837   :  { %v2867_v8 = vmul.f32 %v6822_v51, %v2866_v35  ;;  %v2857_v35 = vadd.f32 %v2856_v21, %v8063_v38 }
 0x838   :  { %3300 = vmatpush.msra.mxu0 %v8781_v57  ;;  %3178 = vmatpush.msrb.mxu3 %v8901_v36  ;;  %v2913_v57 = vld [vmem:[#allocation2 + $0x1a] ss:$8 sm:$0x7] }
 0x839   :  { %v2868_v55 = vadd.f32 %v6822_v51, %v2867_v8 }
 0x83a   :  { %3179 = vmatpush.msrb.mxu3 %v8909_v20  ;;  %3301 = vmatpush.msra.mxu0 %v8876_v16 }
 0x83b   :  { %v2872_v5 = vsel %vm2871_vm10, %v6822_v51, %v2868_v55  ;;  %v2899_v51 = vor.u32 1.1754944e-38, %v2898_v43 }
 0x83c   :  { %v2877_v2 = vsel %vm2874_vm11, %v2876_v9, %v2872_v5  ;;  %3180 = vmatpush.msrb.mxu3 %v8919_v29  ;;  %3302 = vmatpush.msra.mxu0 %v8886_v39 }
 0x83d   :  { %v2902_v8 = vmul.f32 %v2877_v2, %v2857_v35  ;;  %v2900_v58 = vsel %vm2897_vm15, %v2899_v51, %v2895_v24  ;;  %v3066_v51 = vrot.slane %v2913_v57, 2 }
 0x83e   :  { %v2907_v26 = vsub.f32 1.0, %v2900_v58  ;;  %v2909_v46 = vmul.f32 %v2900_v58, %v8790_v6  ;;  %3303 = vmatpush.msra.mxu0 %v8897_v23 }
 0x83f   :  { %v2905_v11 = vadd.f32 %v2903_v48, %v2902_v8 }
 0x841   :  { %6823 = vtanh.f32 %v2905_v11 }
 0x847   :  { %v6824_v30 = vpop.eup %6823 }
 0x848   :  { %v2908_v7 = vmul.f32 %v6824_v30, %v2907_v26 }
 0x84a   :  { %v8991_v19 = vadd.f32 %v2909_v46, %v2908_v7 }
 0x84c   :  { %2911 = vst [vmem:[#allocation3 + $0xa] sm:$0x1] %v8991_v19  ;;  %2978 = vmatmul.f32.vlgmr.msrb.gmra.mxu2 %v8991_v19  ;;  %2998 = vmatmul.f32.vlgmr.msra.gmra.mxu3 %v8991_v19 }
 0x84d   :  { %3018 = vmatmul.f32.vlgmr.msrb.gmra.mxu0 %v8991_v19  ;;  %3328 = vmatpush.msrb.mxu2 %v8798_v49 }
 0x84e   :  { %3471 = vmatpush.msrb.mxu0 %v8796_v44 }
 0x84f   :  { %3329 = vmatpush.msrb.mxu2 %v8804_v0 }
 0x850   :  { %3472 = vmatpush.msrb.mxu0 %v8802_v25 }
 0x851   :  { %3330 = vmatpush.msrb.mxu2 %v8812_v50 }
 0x852   :  { %3473 = vmatpush.msrb.mxu0 %v8810_v37 }
 0x853   :  { %3331 = vmatpush.msrb.mxu2 %v8820_v53 }
 0x854   :  { %3474 = vmatpush.msrb.mxu0 %v8818_v59  ;;  %v3043_v59 = vrot.slane %v2913_v57, 1 }
 0x855   :  { %3332 = vmatpush.msrb.mxu2 %v8826_v56 }
 0x856   :  { %3475 = vmatpush.msrb.mxu0 %v8824_v12 }
 0x857   :  { %3333 = vmatpush.msrb.mxu2 %v8832_v27 }
 0x858   :  { %3476 = vmatpush.msrb.mxu0 %v8830_v10 }
 0x859   :  { %3334 = vmatpush.msrb.mxu2 %v8839_v62 }
 0x85a   :  { %3477 = vmatpush.msrb.mxu0 %v8837_v3 }
 0x85b   :  { %3335 = vmatpush.msrb.mxu2 %v8845_v15 }
 0x85c   :  { %3478 = vmatpush.msrb.mxu0 %v8841_v45 }
 0x85d   :  { %3336 = vmatpush.msrb.mxu2 %v8850_v18 }
 0x85e   :  { %3479 = vmatpush.msrb.mxu0 %v8848_v34 }
 0x85f   :  { %3337 = vmatpush.msrb.mxu2 %v8860_v52 }
 0x860   :  { %3480 = vmatpush.msrb.mxu0 %v8858_v14 }
 0x861   :  { %3338 = vmatpush.msrb.mxu2 %v8868_v13 }
 0x862   :  { %3481 = vmatpush.msrb.mxu0 %v8866_v60 }
 0x863   :  { %3339 = vmatpush.msrb.mxu2 %v8880_v31 }
 0x864   :  { %3482 = vmatpush.msrb.mxu0 %v8878_v42 }
 0x865   :  { %3340 = vmatpush.msrb.mxu2 %v8891_v33 }
 0x866   :  { %3483 = vmatpush.msrb.mxu0 %v8889_v47 }
 0x867   :  { %3341 = vmatpush.msrb.mxu2 %v8901_v36 }
 0x868   :  { %3484 = vmatpush.msrb.mxu0 %v8899_v17 }
 0x869   :  { %3342 = vmatpush.msrb.mxu2 %v8909_v20 }
 0x86a   :  { %3485 = vmatpush.msrb.mxu0 %v8907_v28 }
 0x86b   :  { %3343 = vmatpush.msrb.mxu2 %v8919_v29 }
 0x86c   :  { %3486 = vmatpush.msrb.mxu0 %v8917_v61 }
 0x8ca   :  { %v3019_v5 = vpop.f32.mrf.mxu0 }
 0x8cb   :  { %v3020_v48 = vadd.f32 %v3019_v5, %v8063_v38 }
 0x8cf   :  { %v2979_v6 = vpop.f32.mrf.mxu2  ;;  %v2999_v44 = vpop.f32.mrf.mxu3 }
 0x8d0   :  { %v2980_v25 = vadd.f32 %v2979_v6, %v8040_v32  ;;  %v3000_v37 = vadd.f32 %v2999_v44, %v8052_v4 }
 0x8d2   :  { %v3022_v12 = vadd.f32 %v2980_v25, %v2913_v57  ;;  %v3045_v10 = vadd.f32 %v3043_v59, %v3000_v37 }
 0x8d4   :  { %v6632_v3 = vmul.f32 -1.442695, %v3022_v12  ;;  %v6633_v45 = vmul.f32 -1.442695, %v3045_v10 }
 0x8d6   :  { %6825 = vpow2.f32 %v6632_v3 }
 0x8d7   :  { %6827 = vpow2.f32 %v6633_v45 }
 0x8dc   :  { %v6826_v34 = vpop.eup %6825 }
 0x8dd   :  { %v6828_v14 = vpop.eup %6827  ;;  %v3026_v60 = vadd.f32 1.0, %v6826_v34 }
 0x8de   :  { %v3049_v42 = vadd.f32 1.0, %v6828_v14 }
 0x8df   :  { %6829 = vrcp.f32 %v3026_v60  ;;  %v3038_v21 = vand.u32 2147483648, %v3026_v60  ;;  %v3036_v35 = vand.u32 2147483647, %v3026_v60  ;;  %vm3032_vm1 = vweird.f32 %v3026_v60 }
 0x8e0   :  { %6831 = vrcp.f32 %v3049_v42  ;;  %v3061_v58 = vand.u32 2147483648, %v3049_v42  ;;  %vm3055_vm5 = vweird.f32 %v3049_v42  ;;  %v3059_v26 = vand.u32 2147483647, %v3049_v42 }
 0x8e1   :  { %v3039_v43 = vor.u32 1.1754944e-38, %v3038_v21  ;;  %vm3037_vm3 = vcmp.eq.f32.partialorder %v3036_v35, 8.507059e+37 }
 0x8e2   :  { %v3062_v46 = vor.u32 1.1754944e-38, %v3061_v58  ;;  %vm3060_vm7 = vcmp.eq.f32.partialorder %v3059_v26, 8.507059e+37  ;;  %v9075_v58 = vld [vmem:[#allocation10 + $0x168] sm:$0xff]  ;;  %v9079_v26 = vld [vmem:[#allocation10 + $0x150] sm:$0xff] }
 0x8e3   :  { %3451 = vmatpush.msra.mxu3 %v9075_v58 }
 0x8e5   :  { %v6830_v47 = vpop.eup %6829  ;;  %3452 = vmatpush.msra.mxu3 %v9079_v26 }
 0x8e6   :  { %v6832_v17 = vpop.eup %6831  ;;  %v3028_v28 = vmul.f32 %v6830_v47, %v3026_v60  ;;  %vm3033_vm0 = vweird.f32 %v6830_v47 }
 0x8e7   :  { %v3051_v61 = vmul.f32 %v6832_v17, %v3049_v42  ;;  %vm3034_vm2 = vmor %vm3032_vm1, %vm3033_vm0  ;;  %vm3056_vm4 = vweird.f32 %v6832_v17 }
 0x8e8   :  { %v3029_v41 = vsub.f32 1.0, %v3028_v28  ;;  %vm3057_vm6 = vmor %vm3055_vm5, %vm3056_vm4 }
 0x8e9   :  { %v3052_v55 = vsub.f32 1.0, %v3051_v61 }
 0x8ea   :  { %v3030_v9 = vmul.f32 %v6830_v47, %v3029_v41 }
 0x8eb   :  { %v3053_v2 = vmul.f32 %v6832_v17, %v3052_v55 }
 0x8ec   :  { %v3031_v40 = vadd.f32 %v6830_v47, %v3030_v9 }
 0x8ed   :  { %v3054_v11 = vadd.f32 %v6832_v17, %v3053_v2 }
 0x8ee   :  { %v3035_v8 = vsel %vm3034_vm2, %v6830_v47, %v3031_v40 }
 0x8ef   :  { %v3040_v22 = vsel %vm3037_vm3, %v3039_v43, %v3035_v8  ;;  %v3058_v7 = vsel %vm3057_vm6, %v6832_v17, %v3054_v11 }
 0x8f0   :  { %v3065_v24 = vmul.f32 %v3040_v22, %v3020_v48  ;;  %v3063_v6 = vsel %vm3060_vm7, %v3062_v46, %v3058_v7  ;;  %v9089_v7 = vld [vmem:[#allocation10 + $0x120] sm:$0xff]  ;;  %v9094_v46 = vld [vmem:[#allocation10 + $0x108] sm:$0xff] }
 0x8f1   :  { %v3070_v44 = vsub.f32 1.0, %v3063_v6  ;;  %v3072_v59 = vmul.f32 %v3063_v6, %v8991_v19  ;;  %v9097_v6 = vld [vmem:[#allocation2 + $0x1c] ss:$8 sm:$0x7] }
 0x8f2   :  { %v3068_v30 = vadd.f32 %v3066_v51, %v3065_v24 }
 0x8f4   :  { %6833 = vtanh.f32 %v3068_v30  ;;  %v9084_v30 = vld [vmem:[#allocation10 + $0x138] sm:$0xff] }
 0x8f5   :  { %3453 = vmatpush.msra.mxu3 %v9084_v30 }
 0x8f7   :  { %3454 = vmatpush.msra.mxu3 %v9089_v7 }
 0x8f9   :  { %3455 = vmatpush.msra.mxu3 %v9094_v46 }
 0x8fa   :  { %v6834_v25 = vpop.eup %6833 }
 0x8fb   :  { %v3071_v37 = vmul.f32 %v6834_v25, %v3070_v44  ;;  %v9101_v44 = vld [vmem:[#allocation10 + $0xf0] sm:$0xff] }
 0x8fc   :  { %3456 = vmatpush.msra.mxu3 %v9101_v44 }
 0x8fd   :  { %v9043_v12 = vadd.f32 %v3072_v59, %v3071_v37 }
 0x8ff   :  { %3074 = vst [vmem:[#allocation3 + $0xb] sm:$0x1] %v9043_v12  ;;  %3141 = vmatmul.f32.vlgmr.msrb.gmra.mxu1 %v9043_v12  ;;  %3161 = vmatmul.f32.vlgmr.msra.gmra.mxu2 %v9043_v12 }
 0x900   :  { %3181 = vmatmul.f32.vlgmr.msrb.gmra.mxu3 %v9043_v12  ;;  %3491 = vmatpush.msrb.mxu1 %v8798_v49 }
 0x901   :  { %3614 = vmatpush.msra.mxu2 %v9075_v58 }
 0x902   :  { %3492 = vmatpush.msrb.mxu1 %v8804_v0 }
 0x903   :  { %3615 = vmatpush.msra.mxu2 %v9079_v26 }
 0x904   :  { %3493 = vmatpush.msrb.mxu1 %v8812_v50  ;;  %v3076_v50 = vld [vmem:[#allocation2 + $0x1b] ss:$8 sm:$0x7] }
 0x905   :  { %v3229_v41 = vrot.slane %v3076_v50, 2  ;;  %3616 = vmatpush.msra.mxu2 %v9084_v30 }
 0x906   :  { %3494 = vmatpush.msrb.mxu1 %v8820_v53 }
 0x907   :  { %3617 = vmatpush.msra.mxu2 %v9089_v7 }
 0x908   :  { %3495 = vmatpush.msrb.mxu1 %v8826_v56 }
 0x909   :  { %3618 = vmatpush.msra.mxu2 %v9094_v46 }
 0x90a   :  { %3496 = vmatpush.msrb.mxu1 %v8832_v27 }
 0x90b   :  { %3619 = vmatpush.msra.mxu2 %v9101_v44 }
 0x90c   :  { %3497 = vmatpush.msrb.mxu1 %v8839_v62 }
 0x90e   :  { %3498 = vmatpush.msrb.mxu1 %v8845_v15  ;;  %v3206_v15 = vrot.slane %v3076_v50, 1 }
 0x910   :  { %3499 = vmatpush.msrb.mxu1 %v8850_v18 }
 0x912   :  { %3500 = vmatpush.msrb.mxu1 %v8860_v52 }
 0x914   :  { %3501 = vmatpush.msrb.mxu1 %v8868_v13 }
 0x916   :  { %3502 = vmatpush.msrb.mxu1 %v8880_v31 }
 0x918   :  { %3503 = vmatpush.msrb.mxu1 %v8891_v33 }
 0x91a   :  { %3504 = vmatpush.msrb.mxu1 %v8901_v36 }
 0x91c   :  { %3505 = vmatpush.msrb.mxu1 %v8909_v20 }
 0x91e   :  { %3506 = vmatpush.msrb.mxu1 %v8919_v29 }
 0x97c   :  { %v3142_v49 = vpop.f32.mrf.mxu1 }
 0x97d   :  { %v3143_v0 = vadd.f32 %v3142_v49, %v8040_v32  ;;  %v3369_v49 = vrot.slane %v9097_v6, 1 }
 0x97f   :  { %v3185_v53 = vadd.f32 %v3143_v0, %v3076_v50  ;;  %v9109_v0 = vld [vmem:[#allocation10 + $0xd8] sm:$0xff] }
 0x980   :  { %3457 = vmatpush.msra.mxu3 %v9109_v0  ;;  %3620 = vmatpush.msra.mxu2 %v9109_v0 }
 0x981   :  { %v6634_v56 = vmul.f32 -1.442695, %v3185_v53 }
 0x982   :  { %v3162_v27 = vpop.f32.mrf.mxu2 }
 0x983   :  { %6835 = vpow2.f32 %v6634_v56  ;;  %v3163_v62 = vadd.f32 %v3162_v27, %v8052_v4  ;;  %v3182_v34 = vpop.f32.mrf.mxu3  ;;  %v9115_v56 = vld [vmem:[#allocation10 + $0xc0] sm:$0xff] }
 0x984   :  { %v3183_v17 = vadd.f32 %v3182_v34, %v8063_v38  ;;  %3458 = vmatpush.msra.mxu3 %v9115_v56  ;;  %3621 = vmatpush.msra.mxu2 %v9115_v56 }
 0x985   :  { %v3208_v18 = vadd.f32 %v3206_v15, %v3163_v62  ;;  %v9120_v15 = vld [vmem:[#allocation10 + $0xa8] sm:$0xff] }
 0x986   :  { %3459 = vmatpush.msra.mxu3 %v9120_v15  ;;  %3622 = vmatpush.msra.mxu2 %v9120_v15 }
 0x987   :  { %v6635_v52 = vmul.f32 -1.442695, %v3208_v18  ;;  %v9125_v18 = vld [vmem:[#allocation10 + $0x90] sm:$0xff] }
 0x988   :  { %3460 = vmatpush.msra.mxu3 %v9125_v18  ;;  %3623 = vmatpush.msra.mxu2 %v9125_v18 }
 0x989   :  { %v6836_v13 = vpop.eup %6835  ;;  %6837 = vpow2.f32 %v6635_v52  ;;  %v9133_v52 = vld [vmem:[#allocation10 + $0x48] sm:$0xff] }
 0x98a   :  { %v3189_v31 = vadd.f32 1.0, %v6836_v13  ;;  %3461 = vmatpush.msra.mxu3 %v8852_v63 }
 0x98c   :  { %6839 = vrcp.f32 %v3189_v31  ;;  %v3201_v57 = vand.u32 2147483648, %v3189_v31  ;;  %v3199_v3 = vand.u32 2147483647, %v3189_v31  ;;  %vm3195_vm9 = vweird.f32 %v3189_v31  ;;  %3462 = vmatpush.msra.mxu3 %v8856_v1 }
 0x98e   :  { %v3202_v42 = vor.u32 1.1754944e-38, %v3201_v57  ;;  %vm3200_vm11 = vcmp.eq.f32.partialorder %v3199_v3, 8.507059e+37  ;;  %3463 = vmatpush.msra.mxu3 %v9133_v52 }
 0x98f   :  { %v6838_v33 = vpop.eup %6837 }
 0x990   :  { %v3212_v36 = vadd.f32 1.0, %v6838_v33  ;;  %3464 = vmatpush.msra.mxu3 %v8876_v16 }
 0x992   :  { %v6840_v20 = vpop.eup %6839  ;;  %6841 = vrcp.f32 %v3212_v36  ;;  %v3224_v55 = vand.u32 2147483648, %v3212_v36  ;;  %v3222_v35 = vand.u32 2147483647, %v3212_v36  ;;  %vm3218_vm13 = vweird.f32 %v3212_v36  ;;  %3465 = vmatpush.msra.mxu3 %v8886_v39 }
 0x993   :  { %v3191_v29 = vmul.f32 %v6840_v20, %v3189_v31  ;;  %vm3196_vm8 = vweird.f32 %v6840_v20 }
 0x994   :  { %vm3197_vm10 = vmor %vm3195_vm9, %vm3196_vm8  ;;  %v3225_v40 = vor.u32 1.1754944e-38, %v3224_v55  ;;  %vm3223_vm15 = vcmp.eq.f32.partialorder %v3222_v35, 8.507059e+37  ;;  %3466 = vmatpush.msra.mxu3 %v8897_v23 }
 0x995   :  { %v3192_v19 = vsub.f32 1.0, %v3191_v29 }
 0x997   :  { %v3193_v10 = vmul.f32 %v6840_v20, %v3192_v19 }
 0x998   :  { %v6842_v45 = vpop.eup %6841 }
 0x999   :  { %v3214_v14 = vmul.f32 %v6842_v45, %v3212_v36  ;;  %v3194_v60 = vadd.f32 %v6840_v20, %v3193_v10  ;;  %vm3219_vm12 = vweird.f32 %v6842_v45 }
 0x99a   :  { %vm3220_vm14 = vmor %vm3218_vm13, %vm3219_vm12 }
 0x99b   :  { %v3215_v47 = vsub.f32 1.0, %v3214_v14  ;;  %v3198_v28 = vsel %vm3197_vm10, %v6840_v20, %v3194_v60 }
 0x99c   :  { %v3203_v61 = vsel %vm3200_vm11, %v3202_v42, %v3198_v28 }
 0x99d   :  { %v3216_v21 = vmul.f32 %v6842_v45, %v3215_v47  ;;  %v3228_v9 = vmul.f32 %v3203_v61, %v3183_v17  ;;  %v3392_v61 = vrot.slane %v9097_v6, 2 }
 0x99f   :  { %v3217_v5 = vadd.f32 %v6842_v45, %v3216_v21  ;;  %v3231_v2 = vadd.f32 %v3229_v41, %v3228_v9 }
 0x9a1   :  { %v3221_v43 = vsel %vm3220_vm14, %v6842_v45, %v3217_v5  ;;  %6843 = vtanh.f32 %v3231_v2 }
 0x9a2   :  { %v3226_v48 = vsel %vm3223_vm15, %v3225_v40, %v3221_v43 }
 0x9a3   :  { %v3233_v8 = vsub.f32 1.0, %v3226_v48  ;;  %v3235_v24 = vmul.f32 %v3226_v48, %v9043_v12 }
 0x9a7   :  { %v6844_v22 = vpop.eup %6843 }
 0x9a8   :  { %v3234_v11 = vmul.f32 %v6844_v22, %v3233_v8  ;;  %v9148_v8 = vld [vmem:[#allocation10 + $0x170] sm:$0xff]  ;;  %v9150_v22 = vld [vmem:[#allocation10 + $0x178] sm:$0xff] }
 0x9a9   :  { %3634 = vmatpush.msrb.mxu3 %v9148_v8 }
 0x9aa   :  { %v9069_v51 = vadd.f32 %v3235_v24, %v3234_v11  ;;  %v9154_v11 = vld [vmem:[#allocation10 + $0x158] sm:$0xff]  ;;  %v9156_v24 = vld [vmem:[#allocation10 + $0x160] sm:$0xff] }
 0x9ab   :  { %3635 = vmatpush.msrb.mxu3 %v9154_v11 }
 0x9ac   :  { %3237 = vst [vmem:[#allocation3 + $0xc] sm:$0x1] %v9069_v51  ;;  %3304 = vmatmul.f32.vlgmr.msra.gmra.mxu0 %v9069_v51  ;;  %3324 = vmatmul.f32.vlgmr.msra.gmra.mxu1 %v9069_v51 }
 0x9ad   :  { %3344 = vmatmul.f32.vlgmr.msrb.gmra.mxu2 %v9069_v51  ;;  %3777 = vmatpush.msra.mxu1 %v9075_v58 }
 0x9ae   :  { %3654 = vmatpush.msra.mxu0 %v9150_v22 }
 0x9af   :  { %3778 = vmatpush.msra.mxu1 %v9079_v26 }
 0x9b0   :  { %3655 = vmatpush.msra.mxu0 %v9156_v24 }
 0x9b1   :  { %3779 = vmatpush.msra.mxu1 %v9084_v30 }
 0x9b3   :  { %3780 = vmatpush.msra.mxu1 %v9089_v7 }
 0x9b5   :  { %3781 = vmatpush.msra.mxu1 %v9094_v46 }
 0x9b7   :  { %3782 = vmatpush.msra.mxu1 %v9101_v44 }
 0x9b9   :  { %3783 = vmatpush.msra.mxu1 %v9109_v0 }
 0x9bb   :  { %3784 = vmatpush.msra.mxu1 %v9115_v56 }
 0x9bd   :  { %3785 = vmatpush.msra.mxu1 %v9120_v15 }
 0x9bf   :  { %3786 = vmatpush.msra.mxu1 %v9125_v18 }
 0xa29   :  { %v3305_v25 = vpop.f32.mrf.mxu0  ;;  %v3325_v37 = vpop.f32.mrf.mxu1 }
 0xa2a   :  { %v3306_v59 = vadd.f32 %v3305_v25, %v8040_v32  ;;  %v3326_v12 = vadd.f32 %v3325_v37, %v8052_v4  ;;  %v9164_v25 = vld [vmem:[#allocation10 + $0x148] sm:$0xff] }
 0xa2b   :  { %3656 = vmatpush.msra.mxu0 %v9164_v25 }
 0xa2c   :  { %v3348_v50 = vadd.f32 %v3306_v59, %v9097_v6  ;;  %v3371_v53 = vadd.f32 %v3369_v49, %v3326_v12  ;;  %v9162_v6 = vld [vmem:[#allocation10 + $0x140] sm:$0xff]  ;;  %v9170_v49 = vld [vmem:[#allocation10 + $0x128] sm:$0xff] }
 0xa2d   :  { %3636 = vmatpush.msrb.mxu3 %v9162_v6 }
 0xa2e   :  { %v6636_v27 = vmul.f32 -1.442695, %v3348_v50  ;;  %v6637_v62 = vmul.f32 -1.442695, %v3371_v53  ;;  %v9172_v50 = vld [vmem:[#allocation10 + $0x130] sm:$0xff] }
 0xa2f   :  { %3637 = vmatpush.msrb.mxu3 %v9170_v49  ;;  %3657 = vmatpush.msra.mxu0 %v9172_v50 }
 0xa30   :  { %6845 = vpow2.f32 %v6636_v27  ;;  %v3345_v14 = vpop.f32.mrf.mxu2  ;;  %v9176_v27 = vld [vmem:[#allocation10 + $0x110] sm:$0xff] }
 0xa31   :  { %6847 = vpow2.f32 %v6637_v62  ;;  %v3346_v39 = vadd.f32 %v3345_v14, %v8063_v38  ;;  %v9178_v62 = vld [vmem:[#allocation10 + $0x118] sm:$0xff]  ;;  %3638 = vmatpush.msrb.mxu3 %v9176_v27 }
 0xa32   :  { %3658 = vmatpush.msra.mxu0 %v9178_v62 }
 0xa36   :  { %v6846_v13 = vpop.eup %6845 }
 0xa37   :  { %v6848_v31 = vpop.eup %6847  ;;  %v3352_v33 = vadd.f32 1.0, %v6846_v13 }
 0xa38   :  { %v3375_v36 = vadd.f32 1.0, %v6848_v31  ;;  %v9182_v31 = vld [vmem:[#allocation10 + $0xf8] sm:$0xff] }
 0xa39   :  { %6849 = vrcp.f32 %v3352_v33  ;;  %v3364_v10 = vand.u32 2147483648, %v3352_v33  ;;  %v3362_v45 = vand.u32 2147483647, %v3352_v33  ;;  %vm3358_vm1 = vweird.f32 %v3352_v33  ;;  %3639 = vmatpush.msrb.mxu3 %v9182_v31 }
 0xa3a   :  { %6851 = vrcp.f32 %v3375_v36  ;;  %v3387_v17 = vand.u32 2147483648, %v3375_v36  ;;  %vm3381_vm5 = vweird.f32 %v3375_v36  ;;  %v3385_v41 = vand.u32 2147483647, %v3375_v36 }
 0xa3b   :  { %v3365_v16 = vor.u32 1.1754944e-38, %v3364_v10  ;;  %vm3363_vm3 = vcmp.eq.f32.partialorder %v3362_v45, 8.507059e+37  ;;  %v9200_v10 = vld [vmem:[#allocation10 + $0xb0] sm:$0xff]  ;;  %v9204_v45 = vld [vmem:[#allocation10 + $0x78] sm:$0xff] }
 0xa3c   :  { %v3388_v9 = vor.u32 1.1754944e-38, %v3387_v17  ;;  %vm3386_vm7 = vcmp.eq.f32.partialorder %v3385_v41, 8.507059e+37  ;;  %3624 = vmatpush.msra.mxu2 %v9204_v45  ;;  %3787 = vmatpush.msra.mxu1 %v9204_v45  ;;  %v9228_v17 = vld [vmem:[#allocation10 + $0x30] sm:$0xff]  ;;  %v9238_v41 = vld [vmem:[#allocation10 + $0x18] sm:$0xff] }
 0xa3f   :  { %v6850_v20 = vpop.eup %6849 }
 0xa40   :  { %v6852_v63 = vpop.eup %6851  ;;  %v3354_v29 = vmul.f32 %v6850_v20, %v3352_v33  ;;  %vm3359_vm0 = vweird.f32 %v6850_v20  ;;  %v9184_v33 = vld [vmem:[#allocation10 + $0x100] sm:$0xff] }
 0xa41   :  { %v3377_v1 = vmul.f32 %v6852_v63, %v3375_v36  ;;  %vm3360_vm2 = vmor %vm3358_vm1, %vm3359_vm0  ;;  %vm3382_vm4 = vweird.f32 %v6852_v63  ;;  %3659 = vmatpush.msra.mxu0 %v9184_v33 }
 0xa42   :  { %v3355_v19 = vsub.f32 1.0, %v3354_v29  ;;  %vm3383_vm6 = vmor %vm3381_vm5, %vm3382_vm4  ;;  %v9191_v29 = vld [vmem:[#allocation10 + $0xe8] sm:$0xff] }
 0xa43   :  { %v3378_v57 = vsub.f32 1.0, %v3377_v1  ;;  %v9193_v1 = vld [vmem:[#allocation10 + $0xc8] sm:$0xff]  ;;  %3660 = vmatpush.msra.mxu0 %v9191_v29 }
 0xa44   :  { %v3356_v3 = vmul.f32 %v6850_v20, %v3355_v19  ;;  %v9197_v19 = vld [vmem:[#allocation10 + $0xd0] sm:$0xff] }
 0xa45   :  { %v3379_v34 = vmul.f32 %v6852_v63, %v3378_v57  ;;  %3661 = vmatpush.msra.mxu0 %v9197_v19 }
 0xa46   :  { %v3357_v60 = vadd.f32 %v6850_v20, %v3356_v3  ;;  %v9202_v3 = vld [vmem:[#allocation10 + $0xb8] sm:$0xff] }
 0xa47   :  { %v3380_v47 = vadd.f32 %v6852_v63, %v3379_v34  ;;  %v9208_v34 = vld [vmem:[#allocation10 + $0x60] sm:$0xff]  ;;  %3662 = vmatpush.msra.mxu0 %v9202_v3 }
 0xa48   :  { %v3361_v42 = vsel %vm3360_vm2, %v6850_v20, %v3357_v60  ;;  %v9210_v60 = vld [vmem:[#allocation10 + $0x98] sm:$0xff]  ;;  %3625 = vmatpush.msra.mxu2 %v9208_v34  ;;  %3788 = vmatpush.msra.mxu1 %v9208_v34 }
 0xa49   :  { %v3366_v23 = vsel %vm3363_vm3, %v3365_v16, %v3361_v42  ;;  %v3384_v55 = vsel %vm3383_vm6, %v6852_v63, %v3380_v47  ;;  %v9189_v63 = vld [vmem:[#allocation10 + $0xe0] sm:$0xff] }
 0xa4a   :  { %v3391_v28 = vmul.f32 %v3366_v23, %v3346_v39  ;;  %v3389_v35 = vsel %vm3386_vm7, %v3388_v9, %v3384_v55  ;;  %3640 = vmatpush.msrb.mxu3 %v9189_v63  ;;  %v9212_v16 = vld [vmem:[#allocation10 + $0xa0] sm:$0xff]  ;;  %v9220_v23 = vld [vmem:[#allocation10 + $0x88] sm:$0xff]  ;;  %3626 = vmatpush.msra.mxu2 %v9133_v52  ;;  %v9243_v55 = vld [vmem:[#allocation10 + $0x58] sm:$0xff] }
 0xa4b   :  { %v3396_v5 = vsub.f32 1.0, %v3389_v35  ;;  %v3398_v43 = vmul.f32 %v3389_v35, %v9069_v51  ;;  %v9158_v51 = vld [vmem:[#allocation2 + $0x1d] ss:$8 sm:$0x7]  ;;  %3663 = vmatpush.msra.mxu0 %v9212_v16  ;;  %3789 = vmatpush.msra.mxu1 %v9133_v52 }
 0xa4c   :  { %v3394_v21 = vadd.f32 %v3392_v61, %v3391_v28  ;;  %v3532_v12 = vrot.slane %v9158_v51, 1  ;;  %3641 = vmatpush.msrb.mxu3 %v9193_v1  ;;  %v9218_v42 = vld [vmem:[#allocation10 + $0x80] sm:$0xff]  ;;  %v9230_v28 = vld [vmem:[#allocation10 + $0x68] sm:$0xff]  ;;  %v9232_v61 = vld [vmem:[#allocation10 + $0x70] sm:$0xff]  ;;  %3627 = vmatpush.msra.mxu2 %v9228_v17 }
 0xa4d   :  { %3664 = vmatpush.msra.mxu0 %v9220_v23  ;;  %3790 = vmatpush.msra.mxu1 %v9228_v17  ;;  %v9249_v9 = vld [vmem:[#allocation10] sm:$0xff] }
 0xa4e   :  { %6853 = vtanh.f32 %v3394_v21  ;;  %3642 = vmatpush.msrb.mxu3 %v9200_v10  ;;  %v9241_v21 = vld [vmem:[#allocation10 + $0x50] sm:$0xff]  ;;  %3628 = vmatpush.msra.mxu2 %v9238_v41 }
 0xa4f   :  { %3665 = vmatpush.msra.mxu0 %v9232_v61  ;;  %3791 = vmatpush.msra.mxu1 %v9238_v41 }
 0xa50   :  { %3643 = vmatpush.msrb.mxu3 %v9210_v60  ;;  %3629 = vmatpush.msra.mxu2 %v9249_v9 }
 0xa51   :  { %3666 = vmatpush.msra.mxu0 %v9243_v55  ;;  %3792 = vmatpush.msra.mxu1 %v9249_v9 }
 0xa52   :  { %3644 = vmatpush.msrb.mxu3 %v9218_v42  ;;  %3797 = vmatpush.msrb.mxu2 %v9148_v8 }
 0xa54   :  { %v6854_v2 = vpop.eup %6853  ;;  %3645 = vmatpush.msrb.mxu3 %v9230_v28  ;;  %3798 = vmatpush.msrb.mxu2 %v9154_v11 }
 0xa55   :  { %v3397_v40 = vmul.f32 %v6854_v2, %v3396_v5  ;;  %v9251_v5 = vld [vmem:[#allocation10 + $0x38] sm:$0xff]  ;;  %v9253_v2 = vld [vmem:[#allocation10 + $0x40] sm:$0xff] }
 0xa56   :  { %3646 = vmatpush.msrb.mxu3 %v9241_v21  ;;  %3667 = vmatpush.msra.mxu0 %v9253_v2 }
 0xa57   :  { %v9142_v48 = vadd.f32 %v3398_v43, %v3397_v40  ;;  %v9259_v43 = vld [vmem:[#allocation10 + $0x20] sm:$0xff]  ;;  %3799 = vmatpush.msrb.mxu2 %v9162_v6 }
 0xa58   :  { %3647 = vmatpush.msrb.mxu3 %v9251_v5 }
 0xa59   :  { %3400 = vst [vmem:[#allocation3 + $0xd] sm:$0x1] %v9142_v48  ;;  %3467 = vmatmul.f32.vlgmr.msra.gmra.mxu3 %v9142_v48  ;;  %3487 = vmatmul.f32.vlgmr.msrb.gmra.mxu0 %v9142_v48 }
 0xa5a   :  { %3507 = vmatmul.f32.vlgmr.msrb.gmra.mxu1 %v9142_v48  ;;  %3648 = vmatpush.msrb.mxu3 %v9259_v43 }
 0xa5b   :  { %3960 = vmatpush.msrb.mxu1 %v9148_v8  ;;  %3800 = vmatpush.msrb.mxu2 %v9170_v49 }
 0xa5d   :  { %3961 = vmatpush.msrb.mxu1 %v9154_v11  ;;  %3801 = vmatpush.msrb.mxu2 %v9176_v27 }
 0xa5f   :  { %3962 = vmatpush.msrb.mxu1 %v9162_v6  ;;  %3802 = vmatpush.msrb.mxu2 %v9182_v31 }
 0xa61   :  { %3963 = vmatpush.msrb.mxu1 %v9170_v49  ;;  %3803 = vmatpush.msrb.mxu2 %v9189_v63 }
 0xa63   :  { %3964 = vmatpush.msrb.mxu1 %v9176_v27  ;;  %3804 = vmatpush.msrb.mxu2 %v9193_v1 }
 0xa65   :  { %3965 = vmatpush.msrb.mxu1 %v9182_v31  ;;  %3805 = vmatpush.msrb.mxu2 %v9200_v10 }
 0xa67   :  { %3966 = vmatpush.msrb.mxu1 %v9189_v63  ;;  %3806 = vmatpush.msrb.mxu2 %v9210_v60 }
 0xa69   :  { %3967 = vmatpush.msrb.mxu1 %v9193_v1  ;;  %3807 = vmatpush.msrb.mxu2 %v9218_v42 }
 0xa6b   :  { %3968 = vmatpush.msrb.mxu1 %v9200_v10  ;;  %3808 = vmatpush.msrb.mxu2 %v9230_v28 }
 0xa6d   :  { %3969 = vmatpush.msrb.mxu1 %v9210_v60  ;;  %3809 = vmatpush.msrb.mxu2 %v9241_v21 }
 0xa6f   :  { %3970 = vmatpush.msrb.mxu1 %v9218_v42  ;;  %3810 = vmatpush.msrb.mxu2 %v9251_v5 }
 0xa71   :  { %3971 = vmatpush.msrb.mxu1 %v9230_v28  ;;  %3811 = vmatpush.msrb.mxu2 %v9259_v43 }
 0xa73   :  { %3972 = vmatpush.msrb.mxu1 %v9241_v21 }
 0xa75   :  { %3973 = vmatpush.msrb.mxu1 %v9251_v5 }
 0xa77   :  { %3974 = vmatpush.msrb.mxu1 %v9259_v43 }
 0xad6   :  { %v3488_v37 = vpop.f32.mrf.mxu0 }
 0xad7   :  { %v3489_v59 = vadd.f32 %v3488_v37, %v8052_v4  ;;  %v9261_v37 = vld [vmem:[#allocation10 + $0x28] sm:$0xff] }
 0xad8   :  { %3668 = vmatpush.msra.mxu0 %v9261_v37 }
 0xad9   :  { %v3534_v53 = vadd.f32 %v3532_v12, %v3489_v59  ;;  %v9269_v12 = vld [vmem:[#allocation10 + $0x8] sm:$0xff] }
 0xada   :  { %3649 = vmatpush.msrb.mxu3 %v9269_v12  ;;  %3812 = vmatpush.msrb.mxu2 %v9269_v12 }
 0xadb   :  { %v6639_v13 = vmul.f32 -1.442695, %v3534_v53  ;;  %v9271_v53 = vld [vmem:[#allocation10 + $0x10] sm:$0xff]  ;;  %3975 = vmatpush.msrb.mxu1 %v9269_v12 }
 0xadc   :  { %v3468_v36 = vpop.f32.mrf.mxu3  ;;  %3669 = vmatpush.msra.mxu0 %v9271_v53  ;;  %3817 = vmatpush.msra.mxu3 %v9150_v22 }
 0xadd   :  { %6855 = vpow2.f32 %v6639_v13  ;;  %v3469_v20 = vadd.f32 %v3468_v36, %v8040_v32 }
 0xade   :  { %3940 = vmatpush.msrb.mxu0 %v9075_v58  ;;  %3818 = vmatpush.msra.mxu3 %v9156_v24 }
 0xadf   :  { %v3511_v57 = vadd.f32 %v3469_v20, %v9158_v51 }
 0xae0   :  { %3941 = vmatpush.msrb.mxu0 %v9079_v26  ;;  %3819 = vmatpush.msra.mxu3 %v9164_v25 }
 0xae1   :  { %v6638_v14 = vmul.f32 -1.442695, %v3511_v57 }
 0xae2   :  { %3942 = vmatpush.msrb.mxu0 %v9084_v30  ;;  %3820 = vmatpush.msra.mxu3 %v9172_v50 }
 0xae3   :  { %v6856_v39 = vpop.eup %6855  ;;  %6857 = vpow2.f32 %v6638_v14 }
 0xae4   :  { %v9224_v47 = vadd.f32 1.0, %v6856_v39  ;;  %3943 = vmatpush.msrb.mxu0 %v9089_v7  ;;  %3821 = vmatpush.msra.mxu3 %v9178_v62 }
 0xae6   :  { %6859 = vrcp.f32 %v9224_v47  ;;  %3944 = vmatpush.msrb.mxu0 %v9094_v46  ;;  %3822 = vmatpush.msra.mxu3 %v9184_v33  ;;  %v3550_v46 = vand.u32 2147483648, %v9224_v47  ;;  %vm3544_vm13 = vweird.f32 %v9224_v47 }
 0xae8   :  { %3945 = vmatpush.msrb.mxu0 %v9101_v44  ;;  %3823 = vmatpush.msra.mxu3 %v9191_v29 }
 0xae9   :  { %v6858_v35 = vpop.eup %6857 }
 0xaea   :  { %v3515_v40 = vadd.f32 1.0, %v6858_v35  ;;  %3946 = vmatpush.msrb.mxu0 %v9109_v0  ;;  %3824 = vmatpush.msra.mxu3 %v9197_v19 }
 0xaec   :  { %6861 = vrcp.f32 %v3515_v40  ;;  %v9267_v59 = vpop.eup %6859  ;;  %v3527_v39 = vand.u32 2147483648, %v3515_v40  ;;  %v3525_v35 = vand.u32 2147483647, %v3515_v40  ;;  %vm3521_vm9 = vweird.f32 %v3515_v40  ;;  %3947 = vmatpush.msrb.mxu0 %v9115_v56  ;;  %3825 = vmatpush.msra.mxu3 %v9202_v3 }
 0xaed   :  { %v3540_v13 = vmul.f32 %v9267_v59, %v9224_v47  ;;  %vm3545_vm12 = vweird.f32 %v9267_v59 }
 0xaee   :  { %v3528_v30 = vor.u32 1.1754944e-38, %v3527_v39  ;;  %vm3526_vm11 = vcmp.eq.f32.partialorder %v3525_v35, 8.507059e+37  ;;  %v3555_v39 = vrot.slane %v9158_v51, 2  ;;  %vm3546_vm14 = vmor %vm3544_vm13, %vm3545_vm12  ;;  %v3551_v35 = vor.u32 1.1754944e-38, %v3550_v46  ;;  %3948 = vmatpush.msrb.mxu0 %v9120_v15  ;;  %3826 = vmatpush.msra.mxu3 %v9212_v16 }
 0xaef   :  { %v3541_v57 = vsub.f32 1.0, %v3540_v13  ;;  %v3508_v13 = vpop.f32.mrf.mxu1 }
 0xaf0   :  { %3949 = vmatpush.msrb.mxu0 %v9125_v18  ;;  %3827 = vmatpush.msra.mxu3 %v9220_v23 }
 0xaf1   :  { %v3542_v26 = vmul.f32 %v9267_v59, %v3541_v57 }
 0xaf2   :  { %v6862_v36 = vpop.eup %6861  ;;  %3950 = vmatpush.msrb.mxu0 %v9204_v45  ;;  %3828 = vmatpush.msra.mxu3 %v9232_v61 }
 0xaf3   :  { %v3517_v20 = vmul.f32 %v6862_v36, %v3515_v40  ;;  %vm3522_vm8 = vweird.f32 %v6862_v36  ;;  %v3543_v40 = vadd.f32 %v9267_v59, %v3542_v26 }
 0xaf4   :  { %vm3523_vm10 = vmor %vm3521_vm9, %vm3522_vm8  ;;  %3951 = vmatpush.msrb.mxu0 %v9208_v34  ;;  %3829 = vmatpush.msra.mxu3 %v9243_v55 }
 0xaf5   :  { %v3518_v14 = vsub.f32 1.0, %v3517_v20  ;;  %v3547_v51 = vsel %vm3546_vm14, %v9267_v59, %v3543_v40 }
 0xaf6   :  { %3952 = vmatpush.msrb.mxu0 %v9133_v52  ;;  %3830 = vmatpush.msra.mxu3 %v9253_v2  ;;  %v3565_v52 = vld [vmem:[#allocation2 + $0x1e] ss:$8 sm:$0x7] }
 0xaf7   :  { %v3519_v58 = vmul.f32 %v6862_v36, %v3518_v14  ;;  %v3509_v14 = vadd.f32 %v3508_v13, %v8063_v38 }
 0xaf8   :  { %3831 = vmatpush.msra.mxu3 %v9261_v37  ;;  %3953 = vmatpush.msrb.mxu0 %v9228_v17 }
 0xaf9   :  { %v3520_v20 = vadd.f32 %v6862_v36, %v3519_v58 }
 0xafa   :  { %3832 = vmatpush.msra.mxu3 %v9271_v53  ;;  %3954 = vmatpush.msrb.mxu0 %v9238_v41 }
 0xafb   :  { %v3524_v57 = vsel %vm3523_vm10, %v6862_v36, %v3520_v20  ;;  %v3548_v36 = vand.u32 2147483647, %v9224_v47 }
 0xafc   :  { %v3529_v7 = vsel %vm3526_vm11, %v3528_v30, %v3524_v57  ;;  %3955 = vmatpush.msrb.mxu0 %v9249_v9 }
 0xafd   :  { %v3554_v58 = vmul.f32 %v3529_v7, %v3509_v14  ;;  %vm3549_vm15 = vcmp.eq.f32.partialorder %v3548_v36, 8.507059e+37 }
 0xafe   :  { %v3552_v0 = vsel %vm3549_vm15, %v3551_v35, %v3547_v51  ;;  %v3718_v35 = vrot.slane %v3565_v52, 2 }
 0xaff   :  { %v3557_v44 = vadd.f32 %v3555_v39, %v3554_v58  ;;  %v3559_v56 = vsub.f32 1.0, %v3552_v0  ;;  %v3561_v59 = vmul.f32 %v3552_v0, %v9142_v48 }
 0xb01   :  { %6863 = vtanh.f32 %v3557_v44 }
 0xb07   :  { %v6864_v15 = vpop.eup %6863 }
 0xb08   :  { %v3560_v47 = vmul.f32 %v6864_v15, %v3559_v56 }
 0xb0a   :  { %v9343_v18 = vadd.f32 %v3561_v59, %v3560_v47 }
 0xb0c   :  { %3563 = vst [vmem:[#allocation3 + $0xe] sm:$0x1] %v9343_v18  ;;  %3630 = vmatmul.f32.vlgmr.msra.gmra.mxu2 %v9343_v18  ;;  %3650 = vmatmul.f32.vlgmr.msrb.gmra.mxu3 %v9343_v18 }
 0xb0d   :  { %3670 = vmatmul.f32.vlgmr.msra.gmra.mxu0 %v9343_v18  ;;  %3980 = vmatpush.msra.mxu2 %v9150_v22 }
 0xb0e   :  { %4123 = vmatpush.msra.mxu0 %v9148_v8 }
 0xb0f   :  { %3981 = vmatpush.msra.mxu2 %v9156_v24 }
 0xb10   :  { %4124 = vmatpush.msra.mxu0 %v9154_v11 }
 0xb11   :  { %3982 = vmatpush.msra.mxu2 %v9164_v25 }
 0xb12   :  { %4125 = vmatpush.msra.mxu0 %v9162_v6 }
 0xb13   :  { %3983 = vmatpush.msra.mxu2 %v9172_v50 }
 0xb14   :  { %4126 = vmatpush.msra.mxu0 %v9170_v49  ;;  %v3695_v49 = vrot.slane %v3565_v52, 1 }
 0xb15   :  { %3984 = vmatpush.msra.mxu2 %v9178_v62 }
 0xb16   :  { %4127 = vmatpush.msra.mxu0 %v9176_v27 }
 0xb17   :  { %3985 = vmatpush.msra.mxu2 %v9184_v33 }
 0xb18   :  { %4128 = vmatpush.msra.mxu0 %v9182_v31 }
 0xb19   :  { %3986 = vmatpush.msra.mxu2 %v9191_v29 }
 0xb1a   :  { %4129 = vmatpush.msra.mxu0 %v9189_v63 }
 0xb1b   :  { %3987 = vmatpush.msra.mxu2 %v9197_v19 }
 0xb1c   :  { %4130 = vmatpush.msra.mxu0 %v9193_v1 }
 0xb1d   :  { %3988 = vmatpush.msra.mxu2 %v9202_v3 }
 0xb1e   :  { %4131 = vmatpush.msra.mxu0 %v9200_v10 }
 0xb1f   :  { %3989 = vmatpush.msra.mxu2 %v9212_v16 }
 0xb20   :  { %4132 = vmatpush.msra.mxu0 %v9210_v60 }
 0xb21   :  { %3990 = vmatpush.msra.mxu2 %v9220_v23 }
 0xb22   :  { %4133 = vmatpush.msra.mxu0 %v9218_v42 }
 0xb23   :  { %3991 = vmatpush.msra.mxu2 %v9232_v61 }
 0xb24   :  { %4134 = vmatpush.msra.mxu0 %v9230_v28 }
 0xb25   :  { %3992 = vmatpush.msra.mxu2 %v9243_v55 }
 0xb26   :  { %4135 = vmatpush.msra.mxu0 %v9241_v21 }
 0xb27   :  { %3993 = vmatpush.msra.mxu2 %v9253_v2 }
 0xb28   :  { %4136 = vmatpush.msra.mxu0 %v9251_v5 }
 0xb29   :  { %3994 = vmatpush.msra.mxu2 %v9261_v37 }
 0xb2a   :  { %4137 = vmatpush.msra.mxu0 %v9259_v43 }
 0xb2b   :  { %3995 = vmatpush.msra.mxu2 %v9271_v53 }
 0xb2c   :  { %4138 = vmatpush.msra.mxu0 %v9269_v12 }
 0xb8a   :  { %v3671_v57 = vpop.f32.mrf.mxu0 }
 0xb8b   :  { %v3672_v39 = vadd.f32 %v3671_v57, %v8063_v38 }
 0xb8f   :  { %v3631_v48 = vpop.f32.mrf.mxu2  ;;  %v3651_v8 = vpop.f32.mrf.mxu3 }
 0xb90   :  { %v3632_v11 = vadd.f32 %v3631_v48, %v8040_v32  ;;  %v3652_v6 = vadd.f32 %v3651_v8, %v8052_v4 }
 0xb92   :  { %v3674_v27 = vadd.f32 %v3632_v11, %v3565_v52  ;;  %v3697_v31 = vadd.f32 %v3695_v49, %v3652_v6 }
 0xb94   :  { %v6640_v63 = vmul.f32 -1.442695, %v3674_v27  ;;  %v6641_v1 = vmul.f32 -1.442695, %v3697_v31 }
 0xb96   :  { %6865 = vpow2.f32 %v6640_v63 }
 0xb97   :  { %6867 = vpow2.f32 %v6641_v1 }
 0xb9c   :  { %v6866_v10 = vpop.eup %6865 }
 0xb9d   :  { %v6868_v60 = vpop.eup %6867  ;;  %v3678_v42 = vadd.f32 1.0, %v6866_v10 }
 0xb9e   :  { %v3701_v28 = vadd.f32 1.0, %v6868_v60 }
 0xb9f   :  { %6869 = vrcp.f32 %v3678_v42  ;;  %v3690_v13 = vand.u32 2147483648, %v3678_v42  ;;  %v3688_v14 = vand.u32 2147483647, %v3678_v42  ;;  %vm3684_vm1 = vweird.f32 %v3678_v42 }
 0xba0   :  { %6871 = vrcp.f32 %v3701_v28  ;;  %v3713_v0 = vand.u32 2147483648, %v3701_v28  ;;  %vm3707_vm5 = vweird.f32 %v3701_v28  ;;  %v3711_v56 = vand.u32 2147483647, %v3701_v28 }
 0xba1   :  { %v3691_v46 = vor.u32 1.1754944e-38, %v3690_v13  ;;  %vm3689_vm3 = vcmp.eq.f32.partialorder %v3688_v14, 8.507059e+37 }
 0xba2   :  { %v3714_v59 = vor.u32 1.1754944e-38, %v3713_v0  ;;  %vm3712_vm7 = vcmp.eq.f32.partialorder %v3711_v56, 8.507059e+37  ;;  %v9427_v0 = vld [vmem:[#allocation10 + $0x168] sm:$0xff]  ;;  %v9431_v56 = vld [vmem:[#allocation10 + $0x150] sm:$0xff] }
 0xba3   :  { %4103 = vmatpush.msrb.mxu3 %v9427_v0 }
 0xba5   :  { %v6870_v21 = vpop.eup %6869  ;;  %4104 = vmatpush.msrb.mxu3 %v9431_v56 }
 0xba6   :  { %v6872_v5 = vpop.eup %6871  ;;  %v3680_v43 = vmul.f32 %v6870_v21, %v3678_v42  ;;  %vm3685_vm0 = vweird.f32 %v6870_v21 }
 0xba7   :  { %v3703_v12 = vmul.f32 %v6872_v5, %v3701_v28  ;;  %vm3686_vm2 = vmor %vm3684_vm1, %vm3685_vm0  ;;  %vm3708_vm4 = vweird.f32 %v6872_v5 }
 0xba8   :  { %v3681_v26 = vsub.f32 1.0, %v3680_v43  ;;  %vm3709_vm6 = vmor %vm3707_vm5, %vm3708_vm4 }
 0xba9   :  { %v3704_v20 = vsub.f32 1.0, %v3703_v12 }
 0xbaa   :  { %v3682_v30 = vmul.f32 %v6870_v21, %v3681_v26 }
 0xbab   :  { %v3705_v7 = vmul.f32 %v6872_v5, %v3704_v20 }
 0xbac   :  { %v3683_v40 = vadd.f32 %v6870_v21, %v3682_v30 }
 0xbad   :  { %v3706_v44 = vadd.f32 %v6872_v5, %v3705_v7 }
 0xbae   :  { %v3687_v58 = vsel %vm3686_vm2, %v6870_v21, %v3683_v40 }
 0xbaf   :  { %v3692_v36 = vsel %vm3689_vm3, %v3691_v46, %v3687_v58  ;;  %v3710_v47 = vsel %vm3709_vm6, %v6872_v5, %v3706_v44 }
 0xbb0   :  { %v3717_v51 = vmul.f32 %v3692_v36, %v3672_v39  ;;  %v3715_v48 = vsel %vm3712_vm7, %v3714_v59, %v3710_v47  ;;  %v9441_v47 = vld [vmem:[#allocation10 + $0x120] sm:$0xff]  ;;  %v9446_v59 = vld [vmem:[#allocation2 + $0x30] ss:$8 sm:$0x7] }
 0xbb1   :  { %v3722_v8 = vsub.f32 1.0, %v3715_v48  ;;  %v3724_v49 = vmul.f32 %v3715_v48, %v9343_v18  ;;  %v9448_v48 = vld [vmem:[#allocation10 + $0x108] sm:$0xff] }
 0xbb2   :  { %v3720_v15 = vadd.f32 %v3718_v35, %v3717_v51 }
 0xbb4   :  { %6873 = vtanh.f32 %v3720_v15  ;;  %v9436_v15 = vld [vmem:[#allocation10 + $0x138] sm:$0xff] }
 0xbb5   :  { %4105 = vmatpush.msrb.mxu3 %v9436_v15 }
 0xbb7   :  { %4106 = vmatpush.msrb.mxu3 %v9441_v47 }
 0xbb9   :  { %4107 = vmatpush.msrb.mxu3 %v9448_v48 }
 0xbba   :  { %v6874_v11 = vpop.eup %6873 }
 0xbbb   :  { %v3723_v6 = vmul.f32 %v6874_v11, %v3722_v8 }
 0xbbd   :  { %v9395_v27 = vadd.f32 %v3724_v49, %v3723_v6  ;;  %v9453_v6 = vld [vmem:[#allocation10 + $0xf0] sm:$0xff] }
 0xbbe   :  { %4108 = vmatpush.msrb.mxu3 %v9453_v6 }
 0xbbf   :  { %3726 = vst [vmem:[#allocation3 + $0xf] sm:$0x1] %v9395_v27  ;;  %3793 = vmatmul.f32.vlgmr.msra.gmra.mxu1 %v9395_v27  ;;  %3813 = vmatmul.f32.vlgmr.msrb.gmra.mxu2 %v9395_v27 }
 0xbc0   :  { %3833 = vmatmul.f32.vlgmr.msra.gmra.mxu3 %v9395_v27  ;;  %4143 = vmatpush.msra.mxu1 %v9150_v22 }
 0xbc1   :  { %4266 = vmatpush.msrb.mxu2 %v9427_v0 }
 0xbc2   :  { %4144 = vmatpush.msra.mxu1 %v9156_v24 }
 0xbc3   :  { %4267 = vmatpush.msrb.mxu2 %v9431_v56 }
 0xbc4   :  { %4145 = vmatpush.msra.mxu1 %v9164_v25  ;;  %v3728_v25 = vld [vmem:[#allocation2 + $0x1f] ss:$8 sm:$0x7] }
 0xbc5   :  { %v3881_v26 = vrot.slane %v3728_v25, 2  ;;  %4268 = vmatpush.msrb.mxu2 %v9436_v15 }
 0xbc6   :  { %4146 = vmatpush.msra.mxu1 %v9172_v50 }
 0xbc7   :  { %4269 = vmatpush.msrb.mxu2 %v9441_v47 }
 0xbc8   :  { %4147 = vmatpush.msra.mxu1 %v9178_v62 }
 0xbc9   :  { %4270 = vmatpush.msrb.mxu2 %v9448_v48 }
 0xbca   :  { %4148 = vmatpush.msra.mxu1 %v9184_v33 }
 0xbcb   :  { %4271 = vmatpush.msrb.mxu2 %v9453_v6 }
 0xbcc   :  { %4149 = vmatpush.msra.mxu1 %v9191_v29 }
 0xbce   :  { %4150 = vmatpush.msra.mxu1 %v9197_v19  ;;  %v3858_v19 = vrot.slane %v3728_v25, 1 }
 0xbd0   :  { %4151 = vmatpush.msra.mxu1 %v9202_v3 }
 0xbd2   :  { %4152 = vmatpush.msra.mxu1 %v9212_v16 }
 0xbd4   :  { %4153 = vmatpush.msra.mxu1 %v9220_v23 }
 0xbd6   :  { %4154 = vmatpush.msra.mxu1 %v9232_v61 }
 0xbd8   :  { %4155 = vmatpush.msra.mxu1 %v9243_v55 }
 0xbda   :  { %4156 = vmatpush.msra.mxu1 %v9253_v2 }
 0xbdc   :  { %4157 = vmatpush.msra.mxu1 %v9261_v37 }
 0xbde   :  { %4158 = vmatpush.msra.mxu1 %v9271_v53 }
 0xc3c   :  { %v3794_v22 = vpop.f32.mrf.mxu1 }
 0xc3d   :  { %v3795_v24 = vadd.f32 %v3794_v22, %v8040_v32  ;;  %v4021_v22 = vrot.slane %v9446_v59, 1 }
 0xc3f   :  { %v3837_v50 = vadd.f32 %v3795_v24, %v3728_v25  ;;  %v9461_v24 = vld [vmem:[#allocation10 + $0xd8] sm:$0xff] }
 0xc40   :  { %4109 = vmatpush.msrb.mxu3 %v9461_v24  ;;  %4272 = vmatpush.msrb.mxu2 %v9461_v24 }
 0xc41   :  { %v6642_v62 = vmul.f32 -1.442695, %v3837_v50 }
 0xc42   :  { %v3814_v33 = vpop.f32.mrf.mxu2 }
 0xc43   :  { %6875 = vpow2.f32 %v6642_v62  ;;  %v3815_v29 = vadd.f32 %v3814_v33, %v8052_v4  ;;  %v3834_v10 = vpop.f32.mrf.mxu3  ;;  %v9467_v62 = vld [vmem:[#allocation10 + $0xc0] sm:$0xff] }
 0xc44   :  { %v3835_v5 = vadd.f32 %v3834_v10, %v8063_v38  ;;  %4110 = vmatpush.msrb.mxu3 %v9467_v62  ;;  %4273 = vmatpush.msrb.mxu2 %v9467_v62 }
 0xc45   :  { %v3860_v3 = vadd.f32 %v3858_v19, %v3815_v29  ;;  %v9472_v19 = vld [vmem:[#allocation10 + $0xa8] sm:$0xff] }
 0xc46   :  { %4111 = vmatpush.msrb.mxu3 %v9472_v19  ;;  %4274 = vmatpush.msrb.mxu2 %v9472_v19 }
 0xc47   :  { %v6643_v16 = vmul.f32 -1.442695, %v3860_v3  ;;  %v9477_v3 = vld [vmem:[#allocation10 + $0x90] sm:$0xff] }
 0xc48   :  { %4112 = vmatpush.msrb.mxu3 %v9477_v3  ;;  %4275 = vmatpush.msrb.mxu2 %v9477_v3 }
 0xc49   :  { %v6876_v23 = vpop.eup %6875  ;;  %6877 = vpow2.f32 %v6643_v16  ;;  %v9484_v16 = vld [vmem:[#allocation10 + $0x48] sm:$0xff] }
 0xc4a   :  { %v3841_v61 = vadd.f32 1.0, %v6876_v23  ;;  %4113 = vmatpush.msrb.mxu3 %v9204_v45 }
 0xc4c   :  { %6879 = vrcp.f32 %v3841_v61  ;;  %v3853_v52 = vand.u32 2147483648, %v3841_v61  ;;  %v3851_v63 = vand.u32 2147483647, %v3841_v61  ;;  %vm3847_vm9 = vweird.f32 %v3841_v61  ;;  %4114 = vmatpush.msrb.mxu3 %v9208_v34 }
 0xc4e   :  { %v3854_v28 = vor.u32 1.1754944e-38, %v3853_v52  ;;  %vm3852_vm11 = vcmp.eq.f32.partialorder %v3851_v63, 8.507059e+37  ;;  %4115 = vmatpush.msrb.mxu3 %v9484_v16 }
 0xc4f   :  { %v6878_v55 = vpop.eup %6877 }
 0xc50   :  { %v3864_v2 = vadd.f32 1.0, %v6878_v55  ;;  %4116 = vmatpush.msrb.mxu3 %v9228_v17 }
 0xc52   :  { %v6880_v37 = vpop.eup %6879  ;;  %6881 = vrcp.f32 %v3864_v2  ;;  %v3876_v20 = vand.u32 2147483648, %v3864_v2  ;;  %v3874_v14 = vand.u32 2147483647, %v3864_v2  ;;  %vm3870_vm13 = vweird.f32 %v3864_v2  ;;  %4117 = vmatpush.msrb.mxu3 %v9238_v41 }
 0xc53   :  { %v3843_v53 = vmul.f32 %v6880_v37, %v3841_v61  ;;  %vm3848_vm8 = vweird.f32 %v6880_v37 }
 0xc54   :  { %vm3849_vm10 = vmor %vm3847_vm9, %vm3848_vm8  ;;  %v3877_v40 = vor.u32 1.1754944e-38, %v3876_v20  ;;  %vm3875_vm15 = vcmp.eq.f32.partialorder %v3874_v14, 8.507059e+37  ;;  %4118 = vmatpush.msrb.mxu3 %v9249_v9 }
 0xc55   :  { %v3844_v18 = vsub.f32 1.0, %v3843_v53 }
 0xc57   :  { %v3845_v31 = vmul.f32 %v6880_v37, %v3844_v18 }
 0xc58   :  { %v6882_v1 = vpop.eup %6881 }
 0xc59   :  { %v3866_v60 = vmul.f32 %v6882_v1, %v3864_v2  ;;  %v3846_v42 = vadd.f32 %v6880_v37, %v3845_v31  ;;  %vm3871_vm12 = vweird.f32 %v6882_v1 }
 0xc5a   :  { %vm3872_vm14 = vmor %vm3870_vm13, %vm3871_vm12 }
 0xc5b   :  { %v3867_v21 = vsub.f32 1.0, %v3866_v60  ;;  %v3850_v43 = vsel %vm3849_vm10, %v6880_v37, %v3846_v42 }
 0xc5c   :  { %v3855_v12 = vsel %vm3852_vm11, %v3854_v28, %v3850_v43 }
 0xc5d   :  { %v3868_v13 = vmul.f32 %v6882_v1, %v3867_v21  ;;  %v3880_v30 = vmul.f32 %v3855_v12, %v3835_v5  ;;  %v4044_v12 = vrot.slane %v9446_v59, 2 }
 0xc5f   :  { %v3869_v57 = vadd.f32 %v6882_v1, %v3868_v13  ;;  %v3883_v7 = vadd.f32 %v3881_v26, %v3880_v30 }
 0xc61   :  { %v3873_v46 = vsel %vm3872_vm14, %v6882_v1, %v3869_v57  ;;  %6883 = vtanh.f32 %v3883_v7 }
 0xc62   :  { %v3878_v39 = vsel %vm3875_vm15, %v3877_v40, %v3873_v46 }
 0xc63   :  { %v3885_v58 = vsub.f32 1.0, %v3878_v39  ;;  %v3887_v51 = vmul.f32 %v3878_v39, %v9395_v27 }
 0xc67   :  { %v6884_v36 = vpop.eup %6883 }
 0xc68   :  { %v3886_v44 = vmul.f32 %v6884_v36, %v3885_v58  ;;  %v9500_v58 = vld [vmem:[#allocation10 + $0x170] sm:$0xff]  ;;  %v9502_v36 = vld [vmem:[#allocation10 + $0x178] sm:$0xff] }
 0xc69   :  { %4286 = vmatpush.msra.mxu3 %v9500_v58 }
 0xc6a   :  { %v9421_v35 = vadd.f32 %v3887_v51, %v3886_v44  ;;  %v9506_v44 = vld [vmem:[#allocation2 + $0x31] ss:$8 sm:$0x7] }
 0xc6b   :  { %v9508_v51 = vld [vmem:[#allocation10 + $0x158] sm:$0xff] }
 0xc6c   :  { %3889 = vst [vmem:[#allocation3 + $0x10] sm:$0x1] %v9421_v35  ;;  %3956 = vmatmul.f32.vlgmr.msrb.gmra.mxu0 %v9421_v35  ;;  %3976 = vmatmul.f32.vlgmr.msrb.gmra.mxu1 %v9421_v35 }
 0xc6d   :  { %3996 = vmatmul.f32.vlgmr.msra.gmra.mxu2 %v9421_v35  ;;  %4429 = vmatpush.msrb.mxu1 %v9427_v0 }
 0xc6e   :  { %4306 = vmatpush.msrb.mxu0 %v9502_v36  ;;  %4287 = vmatpush.msra.mxu3 %v9508_v51 }
 0xc6f   :  { %4430 = vmatpush.msrb.mxu1 %v9431_v56 }
 0xc71   :  { %4431 = vmatpush.msrb.mxu1 %v9436_v15 }
 0xc73   :  { %4432 = vmatpush.msrb.mxu1 %v9441_v47 }
 0xc75   :  { %4433 = vmatpush.msrb.mxu1 %v9448_v48 }
 0xc77   :  { %4434 = vmatpush.msrb.mxu1 %v9453_v6 }
 0xc79   :  { %4435 = vmatpush.msrb.mxu1 %v9461_v24 }
 0xc7b   :  { %4436 = vmatpush.msrb.mxu1 %v9467_v62 }
 0xc7d   :  { %4437 = vmatpush.msrb.mxu1 %v9472_v19 }
 0xc7f   :  { %4438 = vmatpush.msrb.mxu1 %v9477_v3 }
 0xce9   :  { %v3957_v8 = vpop.f32.mrf.mxu0  ;;  %v3977_v11 = vpop.f32.mrf.mxu1 }
 0xcea   :  { %v3958_v49 = vadd.f32 %v3957_v8, %v8040_v32  ;;  %v3978_v27 = vadd.f32 %v3977_v11, %v8052_v4  ;;  %v9514_v8 = vld [vmem:[#allocation10 + $0x140] sm:$0xff]  ;;  %v9516_v11 = vld [vmem:[#allocation10 + $0x148] sm:$0xff] }
 0xceb   :  { %4288 = vmatpush.msra.mxu3 %v9514_v8 }
 0xcec   :  { %v4000_v25 = vadd.f32 %v3958_v49, %v9446_v59  ;;  %v4023_v50 = vadd.f32 %v4021_v22, %v3978_v27  ;;  %v4184_v27 = vrot.slane %v9506_v44, 1  ;;  %v9522_v22 = vld [vmem:[#allocation10 + $0x128] sm:$0xff] }
 0xced   :  { %4289 = vmatpush.msra.mxu3 %v9522_v22 }
 0xcee   :  { %v6644_v33 = vmul.f32 -1.442695, %v4000_v25  ;;  %v6645_v29 = vmul.f32 -1.442695, %v4023_v50  ;;  %v9524_v25 = vld [vmem:[#allocation10 + $0x130] sm:$0xff] }
 0xcf0   :  { %6885 = vpow2.f32 %v6644_v33  ;;  %v3997_v60 = vpop.f32.mrf.mxu2  ;;  %v9528_v33 = vld [vmem:[#allocation10 + $0x110] sm:$0xff] }
 0xcf1   :  { %6887 = vpow2.f32 %v6645_v29  ;;  %v3998_v41 = vadd.f32 %v3997_v60, %v8063_v38  ;;  %v9530_v29 = vld [vmem:[#allocation10 + $0x118] sm:$0xff]  ;;  %4290 = vmatpush.msra.mxu3 %v9528_v33 }
 0xcf6   :  { %v6886_v23 = vpop.eup %6885 }
 0xcf7   :  { %v6888_v61 = vpop.eup %6887  ;;  %v4004_v55 = vadd.f32 1.0, %v6886_v23 }
 0xcf8   :  { %v4027_v2 = vadd.f32 1.0, %v6888_v61 }
 0xcf9   :  { %6889 = vrcp.f32 %v4004_v55  ;;  %v4016_v34 = vand.u32 2147483648, %v4004_v55  ;;  %v4014_v1 = vand.u32 2147483647, %v4004_v55  ;;  %vm4010_vm1 = vweird.f32 %v4004_v55 }
 0xcfa   :  { %6891 = vrcp.f32 %v4027_v2  ;;  %v4039_v5 = vand.u32 2147483648, %v4027_v2  ;;  %vm4033_vm5 = vweird.f32 %v4027_v2  ;;  %v4037_v26 = vand.u32 2147483647, %v4027_v2 }
 0xcfb   :  { %v4017_v17 = vor.u32 1.1754944e-38, %v4016_v34  ;;  %vm4015_vm3 = vcmp.eq.f32.partialorder %v4014_v1, 8.507059e+37  ;;  %v9552_v34 = vld [vmem:[#allocation10 + $0x78] sm:$0xff] }
 0xcfc   :  { %v4040_v30 = vor.u32 1.1754944e-38, %v4039_v5  ;;  %vm4038_vm7 = vcmp.eq.f32.partialorder %v4037_v26, 8.507059e+37  ;;  %v9556_v1 = vld [vmem:[#allocation10 + $0xb8] sm:$0xff]  ;;  %4276 = vmatpush.msrb.mxu2 %v9552_v34  ;;  %4439 = vmatpush.msrb.mxu1 %v9552_v34  ;;  %v9578_v5 = vld [vmem:[#allocation10 + $0x88] sm:$0xff]  ;;  %v9588_v26 = vld [vmem:[#allocation10 + $0x70] sm:$0xff] }
 0xcff   :  { %v6890_v37 = vpop.eup %6889 }
 0xd00   :  { %v6892_v45 = vpop.eup %6891  ;;  %v4006_v53 = vmul.f32 %v6890_v37, %v4004_v55  ;;  %vm4011_vm0 = vweird.f32 %v6890_v37  ;;  %v9534_v55 = vld [vmem:[#allocation10 + $0xf8] sm:$0xff] }
 0xd01   :  { %v4029_v18 = vmul.f32 %v6892_v45, %v4027_v2  ;;  %vm4012_vm2 = vmor %vm4010_vm1, %vm4011_vm0  ;;  %vm4034_vm4 = vweird.f32 %v6892_v45  ;;  %v9536_v2 = vld [vmem:[#allocation10 + $0x100] sm:$0xff]  ;;  %4291 = vmatpush.msra.mxu3 %v9534_v55 }
 0xd02   :  { %v4007_v52 = vsub.f32 1.0, %v4006_v53  ;;  %vm4035_vm6 = vmor %vm4033_vm5, %vm4034_vm4  ;;  %v9543_v53 = vld [vmem:[#allocation10 + $0xe8] sm:$0xff] }
 0xd03   :  { %v4030_v31 = vsub.f32 1.0, %v4029_v18  ;;  %v9545_v18 = vld [vmem:[#allocation10 + $0xc8] sm:$0xff] }
 0xd04   :  { %v4008_v63 = vmul.f32 %v6890_v37, %v4007_v52  ;;  %v9547_v52 = vld [vmem:[#allocation10 + $0xd0] sm:$0xff] }
 0xd05   :  { %v4031_v10 = vmul.f32 %v6892_v45, %v4030_v31 }
 0xd06   :  { %v4009_v42 = vadd.f32 %v6890_v37, %v4008_v63  ;;  %v9554_v63 = vld [vmem:[#allocation10 + $0xb0] sm:$0xff] }
 0xd07   :  { %v4032_v21 = vadd.f32 %v6892_v45, %v4031_v10  ;;  %v9559_v10 = vld [vmem:[#allocation10 + $0x60] sm:$0xff] }
 0xd08   :  { %v4013_v28 = vsel %vm4012_vm2, %v6890_v37, %v4009_v42  ;;  %v9564_v42 = vld [vmem:[#allocation10 + $0x98] sm:$0xff]  ;;  %4277 = vmatpush.msrb.mxu2 %v9559_v10  ;;  %4440 = vmatpush.msrb.mxu1 %v9559_v10 }
 0xd09   :  { %v4018_v9 = vsel %vm4015_vm3, %v4017_v17, %v4013_v28  ;;  %v4036_v20 = vsel %vm4035_vm6, %v6892_v45, %v4032_v21  ;;  %v9541_v45 = vld [vmem:[#allocation10 + $0xe0] sm:$0xff]  ;;  %v9572_v28 = vld [vmem:[#allocation10 + $0x30] sm:$0xff] }
 0xd0a   :  { %v4043_v43 = vmul.f32 %v4018_v9, %v3998_v41  ;;  %v4041_v14 = vsel %vm4038_vm7, %v4040_v30, %v4036_v20  ;;  %4292 = vmatpush.msra.mxu3 %v9541_v45  ;;  %v9566_v17 = vld [vmem:[#allocation10 + $0xa0] sm:$0xff]  ;;  %4278 = vmatpush.msrb.mxu2 %v9484_v16  ;;  %v9597_v20 = vld [vmem:[#allocation10 + $0x50] sm:$0xff]  ;;  %v9599_v30 = vld [vmem:[#allocation10 + $0x58] sm:$0xff] }
 0xd0b   :  { %v4048_v57 = vsub.f32 1.0, %v4041_v14  ;;  %v4050_v46 = vmul.f32 %v4041_v14, %v9421_v35  ;;  %v9510_v35 = vld [vmem:[#allocation10 + $0x160] sm:$0xff]  ;;  %4441 = vmatpush.msrb.mxu1 %v9484_v16 }
 0xd0c   :  { %v4046_v13 = vadd.f32 %v4044_v12, %v4043_v43  ;;  %4307 = vmatpush.msrb.mxu0 %v9510_v35  ;;  %4293 = vmatpush.msra.mxu3 %v9545_v18  ;;  %v9576_v21 = vld [vmem:[#allocation10 + $0x80] sm:$0xff]  ;;  %v9584_v43 = vld [vmem:[#allocation10 + $0x18] sm:$0xff]  ;;  %v9586_v12 = vld [vmem:[#allocation10 + $0x68] sm:$0xff] }
 0xd0d   :  { %4279 = vmatpush.msrb.mxu2 %v9572_v28  ;;  %4442 = vmatpush.msrb.mxu1 %v9572_v28 }
 0xd0e   :  { %6893 = vtanh.f32 %v4046_v13  ;;  %4308 = vmatpush.msrb.mxu0 %v9516_v11  ;;  %4294 = vmatpush.msra.mxu3 %v9554_v63  ;;  %v9595_v13 = vld [vmem:[#allocation10] sm:$0xff] }
 0xd0f   :  { %4280 = vmatpush.msrb.mxu2 %v9584_v43  ;;  %4443 = vmatpush.msrb.mxu1 %v9584_v43 }
 0xd10   :  { %4309 = vmatpush.msrb.mxu0 %v9524_v25  ;;  %4295 = vmatpush.msra.mxu3 %v9564_v42 }
 0xd11   :  { %4281 = vmatpush.msrb.mxu2 %v9595_v13  ;;  %4444 = vmatpush.msrb.mxu1 %v9595_v13 }
 0xd12   :  { %4310 = vmatpush.msrb.mxu0 %v9530_v29  ;;  %4296 = vmatpush.msra.mxu3 %v9576_v21 }
 0xd13   :  { %4449 = vmatpush.msra.mxu2 %v9500_v58 }
 0xd14   :  { %v6894_v7 = vpop.eup %6893  ;;  %4311 = vmatpush.msrb.mxu0 %v9536_v2  ;;  %4297 = vmatpush.msra.mxu3 %v9586_v12 }
 0xd15   :  { %v4049_v40 = vmul.f32 %v6894_v7, %v4048_v57  ;;  %v9605_v7 = vld [vmem:[#allocation10 + $0x38] sm:$0xff]  ;;  %4450 = vmatpush.msra.mxu2 %v9508_v51 }
 0xd16   :  { %4312 = vmatpush.msrb.mxu0 %v9543_v53  ;;  %4298 = vmatpush.msra.mxu3 %v9597_v20 }
 0xd17   :  { %v9494_v39 = vadd.f32 %v4050_v46, %v4049_v40  ;;  %v9607_v40 = vld [vmem:[#allocation10 + $0x40] sm:$0xff]  ;;  %4451 = vmatpush.msra.mxu2 %v9514_v8 }
 0xd18   :  { %4313 = vmatpush.msrb.mxu0 %v9547_v52  ;;  %v9613_v46 = vld [vmem:[#allocation10 + $0x20] sm:$0xff]  ;;  %4299 = vmatpush.msra.mxu3 %v9605_v7 }
 0xd19   :  { %4052 = vst [vmem:[#allocation3 + $0x11] sm:$0x1] %v9494_v39  ;;  %4119 = vmatmul.f32.vlgmr.msrb.gmra.mxu3 %v9494_v39  ;;  %4139 = vmatmul.f32.vlgmr.msra.gmra.mxu0 %v9494_v39 }
 0xd1a   :  { %4159 = vmatmul.f32.vlgmr.msra.gmra.mxu1 %v9494_v39  ;;  %4314 = vmatpush.msrb.mxu0 %v9556_v1 }
 0xd1b   :  { %4612 = vmatpush.msra.mxu1 %v9500_v58  ;;  %4300 = vmatpush.msra.mxu3 %v9613_v46 }
 0xd1c   :  { %4315 = vmatpush.msrb.mxu0 %v9566_v17  ;;  %4452 = vmatpush.msra.mxu2 %v9522_v22 }
 0xd1d   :  { %4613 = vmatpush.msra.mxu1 %v9508_v51 }
 0xd1e   :  { %4316 = vmatpush.msrb.mxu0 %v9578_v5  ;;  %4453 = vmatpush.msra.mxu2 %v9528_v33 }
 0xd1f   :  { %4614 = vmatpush.msra.mxu1 %v9514_v8 }
 0xd20   :  { %4317 = vmatpush.msrb.mxu0 %v9588_v26  ;;  %4454 = vmatpush.msra.mxu2 %v9534_v55 }
 0xd21   :  { %4615 = vmatpush.msra.mxu1 %v9522_v22 }
 0xd22   :  { %4318 = vmatpush.msrb.mxu0 %v9599_v30  ;;  %4455 = vmatpush.msra.mxu2 %v9541_v45 }
 0xd23   :  { %4616 = vmatpush.msra.mxu1 %v9528_v33 }
 0xd24   :  { %4319 = vmatpush.msrb.mxu0 %v9607_v40  ;;  %4456 = vmatpush.msra.mxu2 %v9545_v18 }
 0xd25   :  { %4617 = vmatpush.msra.mxu1 %v9534_v55 }
 0xd26   :  { %4457 = vmatpush.msra.mxu2 %v9554_v63 }
 0xd27   :  { %4618 = vmatpush.msra.mxu1 %v9541_v45 }
 0xd28   :  { %4458 = vmatpush.msra.mxu2 %v9564_v42 }
 0xd29   :  { %4619 = vmatpush.msra.mxu1 %v9545_v18 }
 0xd2a   :  { %4459 = vmatpush.msra.mxu2 %v9576_v21 }
 0xd2b   :  { %4620 = vmatpush.msra.mxu1 %v9554_v63 }
 0xd2c   :  { %4460 = vmatpush.msra.mxu2 %v9586_v12 }
 0xd2d   :  { %4621 = vmatpush.msra.mxu1 %v9564_v42 }
 0xd2e   :  { %4461 = vmatpush.msra.mxu2 %v9597_v20 }
 0xd2f   :  { %4622 = vmatpush.msra.mxu1 %v9576_v21 }
 0xd30   :  { %4462 = vmatpush.msra.mxu2 %v9605_v7 }
 0xd31   :  { %4623 = vmatpush.msra.mxu1 %v9586_v12 }
 0xd32   :  { %4463 = vmatpush.msra.mxu2 %v9613_v46 }
 0xd33   :  { %4624 = vmatpush.msra.mxu1 %v9597_v20 }
 0xd35   :  { %4625 = vmatpush.msra.mxu1 %v9605_v7 }
 0xd37   :  { %4626 = vmatpush.msra.mxu1 %v9613_v46 }
 0xd96   :  { %v4140_v59 = vpop.f32.mrf.mxu0 }
 0xd97   :  { %v4141_v49 = vadd.f32 %v4140_v59, %v8052_v4  ;;  %v9615_v59 = vld [vmem:[#allocation10 + $0x28] sm:$0xff]  ;;  %v4160_v54 = vpop.f32.mrf.mxu1 }
 0xd98   :  { %4320 = vmatpush.msrb.mxu0 %v9615_v59 }
 0xd99   :  { %v4186_v50 = vadd.f32 %v4184_v27, %v4141_v49  ;;  %v9623_v27 = vld [vmem:[#allocation10 + $0x8] sm:$0xff] }
 0xd9a   :  { %4301 = vmatpush.msra.mxu3 %v9623_v27  ;;  %4464 = vmatpush.msra.mxu2 %v9623_v27 }
 0xd9b   :  { %v6647_v23 = vmul.f32 -1.442695, %v4186_v50  ;;  %v9625_v50 = vld [vmem:[#allocation10 + $0x10] sm:$0xff]  ;;  %4627 = vmatpush.msra.mxu1 %v9623_v27 }
 0xd9c   :  { %v4120_v61 = vpop.f32.mrf.mxu3  ;;  %4321 = vmatpush.msrb.mxu0 %v9625_v50  ;;  %4469 = vmatpush.msrb.mxu3 %v9502_v36 }
 0xd9d   :  { %6895 = vpow2.f32 %v6647_v23  ;;  %v4121_v37 = vadd.f32 %v4120_v61, %v8040_v32 }
 0xd9e   :  { %4592 = vmatpush.msra.mxu0 %v9427_v0  ;;  %4470 = vmatpush.msrb.mxu3 %v9510_v35 }
 0xd9f   :  { %v4163_v31 = vadd.f32 %v4121_v37, %v9506_v44 }
 0xda0   :  { %4593 = vmatpush.msra.mxu0 %v9431_v56  ;;  %4471 = vmatpush.msrb.mxu3 %v9516_v11 }
 0xda1   :  { %v6646_v60 = vmul.f32 -1.442695, %v4163_v31 }
 0xda2   :  { %4594 = vmatpush.msra.mxu0 %v9436_v15  ;;  %4472 = vmatpush.msrb.mxu3 %v9524_v25  ;;  %v4161_v15 = vadd.f32 %v4160_v54, %v8063_v38 }
 0xda3   :  { %v6896_v41 = vpop.eup %6895  ;;  %6897 = vpow2.f32 %v6646_v60 }
 0xda4   :  { %v9574_v9 = vadd.f32 1.0, %v6896_v41  ;;  %4595 = vmatpush.msra.mxu0 %v9441_v47  ;;  %4473 = vmatpush.msrb.mxu3 %v9530_v29 }
 0xda6   :  { %6899 = vrcp.f32 %v9574_v9  ;;  %4596 = vmatpush.msra.mxu0 %v9448_v48  ;;  %4474 = vmatpush.msrb.mxu3 %v9536_v2  ;;  %vm4196_vm13 = vweird.f32 %v9574_v9  ;;  %v4200_v48 = vand.u32 2147483647, %v9574_v9 }
 0xda8   :  { %4597 = vmatpush.msra.mxu0 %v9453_v6  ;;  %4475 = vmatpush.msrb.mxu3 %v9543_v53  ;;  %vm4201_vm15 = vcmp.eq.f32.partialorder %v4200_v48, 8.507059e+37 }
 0xda9   :  { %v6898_v14 = vpop.eup %6897 }
 0xdaa   :  { %v4167_v57 = vadd.f32 1.0, %v6898_v14  ;;  %4598 = vmatpush.msra.mxu0 %v9461_v24  ;;  %4476 = vmatpush.msrb.mxu3 %v9547_v52 }
 0xdac   :  { %6901 = vrcp.f32 %v4167_v57  ;;  %v9619_v49 = vpop.eup %6899  ;;  %v4179_v41 = vand.u32 2147483648, %v4167_v57  ;;  %v4177_v0 = vand.u32 2147483647, %v4167_v57  ;;  %vm4173_vm9 = vweird.f32 %v4167_v57  ;;  %4599 = vmatpush.msra.mxu0 %v9467_v62  ;;  %4477 = vmatpush.msrb.mxu3 %v9556_v1 }
 0xdad   :  { %v4192_v23 = vmul.f32 %v9619_v49, %v9574_v9  ;;  %vm4197_vm12 = vweird.f32 %v9619_v49 }
 0xdae   :  { %vm4178_vm11 = vcmp.eq.f32.partialorder %v4177_v0, 8.507059e+37  ;;  %vm4198_vm14 = vmor %vm4196_vm13, %vm4197_vm12  ;;  %4600 = vmatpush.msra.mxu0 %v9472_v19  ;;  %4478 = vmatpush.msrb.mxu3 %v9566_v17 }
 0xdaf   :  { %v4193_v31 = vsub.f32 1.0, %v4192_v23 }
 0xdb0   :  { %4601 = vmatpush.msra.mxu0 %v9477_v3  ;;  %4479 = vmatpush.msrb.mxu3 %v9578_v5 }
 0xdb1   :  { %v4194_v23 = vmul.f32 %v9619_v49, %v4193_v31 }
 0xdb2   :  { %v6902_v61 = vpop.eup %6901  ;;  %4602 = vmatpush.msra.mxu0 %v9552_v34  ;;  %4480 = vmatpush.msrb.mxu3 %v9588_v26 }
 0xdb3   :  { %v4169_v37 = vmul.f32 %v6902_v61, %v4167_v57  ;;  %vm4174_vm8 = vweird.f32 %v6902_v61  ;;  %v4195_v47 = vadd.f32 %v9619_v49, %v4194_v23 }
 0xdb4   :  { %vm4175_vm10 = vmor %vm4173_vm9, %vm4174_vm8  ;;  %4603 = vmatpush.msra.mxu0 %v9559_v10  ;;  %4481 = vmatpush.msrb.mxu3 %v9599_v30 }
 0xdb5   :  { %v4170_v60 = vsub.f32 1.0, %v4169_v37  ;;  %v4180_v37 = vor.u32 1.1754944e-38, %v4179_v41  ;;  %v4207_v41 = vrot.slane %v9506_v44, 2  ;;  %v4199_v44 = vsel %vm4198_vm14, %v9619_v49, %v4195_v47 }
 0xdb6   :  { %4604 = vmatpush.msra.mxu0 %v9484_v16  ;;  %4482 = vmatpush.msrb.mxu3 %v9607_v40  ;;  %v4217_v16 = vld [vmem:[#allocation2 + $0x32] ss:$8 sm:$0x7] }
 0xdb7   :  { %v4171_v14 = vmul.f32 %v6902_v61, %v4170_v60  ;;  %v4202_v60 = vand.u32 2147483648, %v9574_v9 }
 0xdb8   :  { %4605 = vmatpush.msra.mxu0 %v9572_v28  ;;  %4483 = vmatpush.msrb.mxu3 %v9615_v59 }
 0xdb9   :  { %v4172_v56 = vadd.f32 %v6902_v61, %v4171_v14  ;;  %v4203_v6 = vor.u32 1.1754944e-38, %v4202_v60 }
 0xdba   :  { %4606 = vmatpush.msra.mxu0 %v9584_v43  ;;  %4484 = vmatpush.msrb.mxu3 %v9625_v50 }
 0xdbb   :  { %v4176_v31 = vsel %vm4175_vm10, %v6902_v61, %v4172_v56  ;;  %v4204_v24 = vsel %vm4201_vm15, %v4203_v6, %v4199_v44  ;;  %v4370_v44 = vrot.slane %v4217_v16, 2 }
 0xdbc   :  { %v4181_v57 = vsel %vm4178_vm11, %v4180_v37, %v4176_v31  ;;  %v4211_v62 = vsub.f32 1.0, %v4204_v24  ;;  %v4213_v49 = vmul.f32 %v4204_v24, %v9494_v39  ;;  %4607 = vmatpush.msra.mxu0 %v9595_v13 }
 0xdbd   :  { %v4206_v54 = vmul.f32 %v4181_v57, %v4161_v15 }
 0xdbf   :  { %v4209_v61 = vadd.f32 %v4207_v41, %v4206_v54 }
 0xdc1   :  { %6903 = vtanh.f32 %v4209_v61 }
 0xdc7   :  { %v6904_v9 = vpop.eup %6903 }
 0xdc8   :  { %v4212_v19 = vmul.f32 %v6904_v9, %v4211_v62 }
 0xdca   :  { %v9695_v3 = vadd.f32 %v4213_v49, %v4212_v19 }
 0xdcc   :  { %4215 = vst [vmem:[#allocation3 + $0x12] sm:$0x1] %v9695_v3  ;;  %4282 = vmatmul.f32.vlgmr.msrb.gmra.mxu2 %v9695_v3  ;;  %4302 = vmatmul.f32.vlgmr.msra.gmra.mxu3 %v9695_v3 }
 0xdcd   :  { %4322 = vmatmul.f32.vlgmr.msrb.gmra.mxu0 %v9695_v3  ;;  %4632 = vmatpush.msrb.mxu2 %v9502_v36 }
 0xdce   :  { %4775 = vmatpush.msrb.mxu0 %v9500_v58 }
 0xdcf   :  { %4633 = vmatpush.msrb.mxu2 %v9510_v35 }
 0xdd0   :  { %4776 = vmatpush.msrb.mxu0 %v9508_v51 }
 0xdd1   :  { %4634 = vmatpush.msrb.mxu2 %v9516_v11 }
 0xdd2   :  { %4777 = vmatpush.msrb.mxu0 %v9514_v8 }
 0xdd3   :  { %4635 = vmatpush.msrb.mxu2 %v9524_v25 }
 0xdd4   :  { %4778 = vmatpush.msrb.mxu0 %v9522_v22  ;;  %v4347_v22 = vrot.slane %v4217_v16, 1 }
 0xdd5   :  { %4636 = vmatpush.msrb.mxu2 %v9530_v29 }
 0xdd6   :  { %4779 = vmatpush.msrb.mxu0 %v9528_v33 }
 0xdd7   :  { %4637 = vmatpush.msrb.mxu2 %v9536_v2 }
 0xdd8   :  { %4780 = vmatpush.msrb.mxu0 %v9534_v55 }
 0xdd9   :  { %4638 = vmatpush.msrb.mxu2 %v9543_v53 }
 0xdda   :  { %4781 = vmatpush.msrb.mxu0 %v9541_v45 }
 0xddb   :  { %4639 = vmatpush.msrb.mxu2 %v9547_v52 }
 0xddc   :  { %4782 = vmatpush.msrb.mxu0 %v9545_v18 }
 0xddd   :  { %4640 = vmatpush.msrb.mxu2 %v9556_v1 }
 0xdde   :  { %4783 = vmatpush.msrb.mxu0 %v9554_v63 }
 0xddf   :  { %4641 = vmatpush.msrb.mxu2 %v9566_v17 }
 0xde0   :  { %4784 = vmatpush.msrb.mxu0 %v9564_v42 }
 0xde1   :  { %4642 = vmatpush.msrb.mxu2 %v9578_v5 }
 0xde2   :  { %4785 = vmatpush.msrb.mxu0 %v9576_v21 }
 0xde3   :  { %4643 = vmatpush.msrb.mxu2 %v9588_v26 }
 0xde4   :  { %4786 = vmatpush.msrb.mxu0 %v9586_v12 }
 0xde5   :  { %4644 = vmatpush.msrb.mxu2 %v9599_v30 }
 0xde6   :  { %4787 = vmatpush.msrb.mxu0 %v9597_v20 }
 0xde7   :  { %4645 = vmatpush.msrb.mxu2 %v9607_v40 }
 0xde8   :  { %4788 = vmatpush.msrb.mxu0 %v9605_v7 }
 0xde9   :  { %4646 = vmatpush.msrb.mxu2 %v9615_v59 }
 0xdea   :  { %4789 = vmatpush.msrb.mxu0 %v9613_v46 }
 0xdeb   :  { %4647 = vmatpush.msrb.mxu2 %v9625_v50 }
 0xdec   :  { %4790 = vmatpush.msrb.mxu0 %v9623_v27 }
 0xe4a   :  { %v4323_v15 = vpop.f32.mrf.mxu0 }
 0xe4b   :  { %v4324_v60 = vadd.f32 %v4323_v15, %v8063_v38 }
 0xe4f   :  { %v4283_v39 = vpop.f32.mrf.mxu2  ;;  %v4303_v58 = vpop.f32.mrf.mxu3 }
 0xe50   :  { %v4284_v51 = vadd.f32 %v4283_v39, %v8040_v32  ;;  %v4304_v8 = vadd.f32 %v4303_v58, %v8052_v4 }
 0xe52   :  { %v4326_v33 = vadd.f32 %v4284_v51, %v4217_v16  ;;  %v4349_v55 = vadd.f32 %v4347_v22, %v4304_v8 }
 0xe54   :  { %v6648_v45 = vmul.f32 -1.442695, %v4326_v33  ;;  %v6649_v18 = vmul.f32 -1.442695, %v4349_v55 }
 0xe56   :  { %6905 = vpow2.f32 %v6648_v45 }
 0xe57   :  { %6907 = vpow2.f32 %v6649_v18 }
 0xe5c   :  { %v6906_v63 = vpop.eup %6905 }
 0xe5d   :  { %v6908_v42 = vpop.eup %6907  ;;  %v4330_v21 = vadd.f32 1.0, %v6906_v63 }
 0xe5e   :  { %v4353_v12 = vadd.f32 1.0, %v6908_v42 }
 0xe5f   :  { %6909 = vrcp.f32 %v4330_v21  ;;  %v4342_v0 = vand.u32 2147483648, %v4330_v21  ;;  %v4340_v37 = vand.u32 2147483647, %v4330_v21  ;;  %vm4336_vm1 = vweird.f32 %v4330_v21 }
 0xe60   :  { %6911 = vrcp.f32 %v4353_v12  ;;  %v4365_v6 = vand.u32 2147483648, %v4353_v12  ;;  %vm4359_vm5 = vweird.f32 %v4353_v12  ;;  %v4363_v24 = vand.u32 2147483647, %v4353_v12 }
 0xe61   :  { %v4343_v47 = vor.u32 1.1754944e-38, %v4342_v0  ;;  %vm4341_vm3 = vcmp.eq.f32.partialorder %v4340_v37, 8.507059e+37 }
 0xe62   :  { %v4366_v19 = vor.u32 1.1754944e-38, %v4365_v6  ;;  %vm4364_vm7 = vcmp.eq.f32.partialorder %v4363_v24, 8.507059e+37  ;;  %v9783_v6 = vld [vmem:[#allocation10 + $0x150] sm:$0xff]  ;;  %v9788_v24 = vld [vmem:[#allocation10 + $0x138] sm:$0xff] }
 0xe65   :  { %v6910_v20 = vpop.eup %6909 }
 0xe66   :  { %v6912_v7 = vpop.eup %6911  ;;  %v4332_v46 = vmul.f32 %v6910_v20, %v4330_v21  ;;  %vm4337_vm0 = vweird.f32 %v6910_v20 }
 0xe67   :  { %v4355_v27 = vmul.f32 %v6912_v7, %v4353_v12  ;;  %vm4338_vm2 = vmor %vm4336_vm1, %vm4337_vm0  ;;  %vm4360_vm4 = vweird.f32 %v6912_v7 }
 0xe68   :  { %v4333_v14 = vsub.f32 1.0, %v4332_v46  ;;  %vm4361_vm6 = vmor %vm4359_vm5, %vm4360_vm4 }
 0xe69   :  { %v4356_v23 = vsub.f32 1.0, %v4355_v27 }
 0xe6a   :  { %v4334_v56 = vmul.f32 %v6910_v20, %v4333_v14 }
 0xe6b   :  { %v4357_v31 = vmul.f32 %v6912_v7, %v4356_v23 }
 0xe6c   :  { %v4335_v57 = vadd.f32 %v6910_v20, %v4334_v56 }
 0xe6d   :  { %v4358_v48 = vadd.f32 %v6912_v7, %v4357_v31 }
 0xe6e   :  { %v4339_v41 = vsel %vm4338_vm2, %v6910_v20, %v4335_v57 }
 0xe6f   :  { %v4344_v54 = vsel %vm4341_vm3, %v4343_v47, %v4339_v41  ;;  %v4362_v9 = vsel %vm4361_vm6, %v6912_v7, %v4358_v48 }
 0xe70   :  { %v4369_v61 = vmul.f32 %v4344_v54, %v4324_v60  ;;  %v4367_v49 = vsel %vm4364_vm7, %v4366_v19, %v4362_v9  ;;  %v9798_v9 = vld [vmem:[#allocation2 + $0x34] ss:$8 sm:$0x7]  ;;  %v9800_v19 = vld [vmem:[#allocation10 + $0x108] sm:$0xff] }
 0xe71   :  { %v4374_v39 = vsub.f32 1.0, %v4367_v49  ;;  %v4376_v8 = vmul.f32 %v4367_v49, %v9695_v3 }
 0xe72   :  { %v4372_v62 = vadd.f32 %v4370_v44, %v4369_v61  ;;  %v9779_v44 = vld [vmem:[#allocation10 + $0x168] sm:$0xff] }
 0xe73   :  { %4755 = vmatpush.msra.mxu3 %v9779_v44 }
 0xe74   :  { %6913 = vtanh.f32 %v4372_v62  ;;  %v9793_v62 = vld [vmem:[#allocation10 + $0x120] sm:$0xff] }
 0xe75   :  { %4756 = vmatpush.msra.mxu3 %v9783_v6 }
 0xe77   :  { %4757 = vmatpush.msra.mxu3 %v9788_v24 }
 0xe79   :  { %4758 = vmatpush.msra.mxu3 %v9793_v62 }
 0xe7a   :  { %v6914_v58 = vpop.eup %6913 }
 0xe7b   :  { %v4375_v51 = vmul.f32 %v6914_v58, %v4374_v39  ;;  %4759 = vmatpush.msra.mxu3 %v9800_v19  ;;  %v9805_v58 = vld [vmem:[#allocation10 + $0xf0] sm:$0xff] }
 0xe7d   :  { %v9747_v22 = vadd.f32 %v4376_v8, %v4375_v51  ;;  %4760 = vmatpush.msra.mxu3 %v9805_v58 }
 0xe7f   :  { %4378 = vst [vmem:[#allocation3 + $0x13] sm:$0x1] %v9747_v22  ;;  %4445 = vmatmul.f32.vlgmr.msrb.gmra.mxu1 %v9747_v22  ;;  %4465 = vmatmul.f32.vlgmr.msra.gmra.mxu2 %v9747_v22 }
 0xe80   :  { %4485 = vmatmul.f32.vlgmr.msrb.gmra.mxu3 %v9747_v22  ;;  %4795 = vmatpush.msrb.mxu1 %v9502_v36 }
 0xe81   :  { %4918 = vmatpush.msra.mxu2 %v9779_v44 }
 0xe82   :  { %4796 = vmatpush.msrb.mxu1 %v9510_v35 }
 0xe83   :  { %4919 = vmatpush.msra.mxu2 %v9783_v6 }
 0xe84   :  { %4797 = vmatpush.msrb.mxu1 %v9516_v11  ;;  %v4380_v11 = vld [vmem:[#allocation2 + $0x33] ss:$8 sm:$0x7] }
 0xe85   :  { %v4533_v27 = vrot.slane %v4380_v11, 2  ;;  %4920 = vmatpush.msra.mxu2 %v9788_v24 }
 0xe86   :  { %4798 = vmatpush.msrb.mxu1 %v9524_v25 }
 0xe87   :  { %4921 = vmatpush.msra.mxu2 %v9793_v62 }
 0xe88   :  { %4799 = vmatpush.msrb.mxu1 %v9530_v29 }
 0xe89   :  { %4922 = vmatpush.msra.mxu2 %v9800_v19 }
 0xe8a   :  { %4800 = vmatpush.msrb.mxu1 %v9536_v2 }
 0xe8b   :  { %4923 = vmatpush.msra.mxu2 %v9805_v58 }
 0xe8c   :  { %4801 = vmatpush.msrb.mxu1 %v9543_v53 }
 0xe8e   :  { %4802 = vmatpush.msrb.mxu1 %v9547_v52  ;;  %v4510_v52 = vrot.slane %v4380_v11, 1 }
 0xe90   :  { %4803 = vmatpush.msrb.mxu1 %v9556_v1 }
 0xe92   :  { %4804 = vmatpush.msrb.mxu1 %v9566_v17 }
 0xe94   :  { %4805 = vmatpush.msrb.mxu1 %v9578_v5 }
 0xe96   :  { %4806 = vmatpush.msrb.mxu1 %v9588_v26 }
 0xe98   :  { %4807 = vmatpush.msrb.mxu1 %v9599_v30 }
 0xe9a   :  { %4808 = vmatpush.msrb.mxu1 %v9607_v40 }
 0xe9c   :  { %4809 = vmatpush.msrb.mxu1 %v9615_v59 }
 0xe9e   :  { %4810 = vmatpush.msrb.mxu1 %v9625_v50 }
 0xefc   :  { %v4446_v36 = vpop.f32.mrf.mxu1 }
 0xefd   :  { %v4447_v35 = vadd.f32 %v4446_v36, %v8040_v32  ;;  %v9813_v36 = vld [vmem:[#allocation10 + $0xd8] sm:$0xff] }
 0xefe   :  { %4761 = vmatpush.msra.mxu3 %v9813_v36  ;;  %4924 = vmatpush.msra.mxu2 %v9813_v36 }
 0xeff   :  { %v4489_v25 = vadd.f32 %v4447_v35, %v4380_v11 }
 0xf01   :  { %v6650_v29 = vmul.f32 -1.442695, %v4489_v25  ;;  %v9819_v25 = vld [vmem:[#allocation10 + $0xc0] sm:$0xff] }
 0xf02   :  { %v4466_v2 = vpop.f32.mrf.mxu2  ;;  %4762 = vmatpush.msra.mxu3 %v9819_v25  ;;  %4925 = vmatpush.msra.mxu2 %v9819_v25 }
 0xf03   :  { %6915 = vpow2.f32 %v6650_v29  ;;  %v4467_v53 = vadd.f32 %v4466_v2, %v8052_v4  ;;  %v4486_v18 = vpop.f32.mrf.mxu3 }
 0xf04   :  { %v4487_v20 = vadd.f32 %v4486_v18, %v8063_v38 }
 0xf05   :  { %v4512_v1 = vadd.f32 %v4510_v52, %v4467_v53  ;;  %v9824_v53 = vld [vmem:[#allocation10 + $0xa8] sm:$0xff]  ;;  %v9829_v52 = vld [vmem:[#allocation10 + $0x90] sm:$0xff] }
 0xf06   :  { %4763 = vmatpush.msra.mxu3 %v9824_v53  ;;  %4926 = vmatpush.msra.mxu2 %v9824_v53 }
 0xf07   :  { %v6651_v17 = vmul.f32 -1.442695, %v4512_v1  ;;  %v9836_v1 = vld [vmem:[#allocation10 + $0x48] sm:$0xff] }
 0xf08   :  { %4764 = vmatpush.msra.mxu3 %v9829_v52  ;;  %4927 = vmatpush.msra.mxu2 %v9829_v52 }
 0xf09   :  { %v6916_v5 = vpop.eup %6915  ;;  %6917 = vpow2.f32 %v6651_v17 }
 0xf0a   :  { %v4493_v26 = vadd.f32 1.0, %v6916_v5  ;;  %4765 = vmatpush.msra.mxu3 %v9552_v34 }
 0xf0c   :  { %6919 = vrcp.f32 %v4493_v26  ;;  %v4505_v16 = vand.u32 2147483648, %v4493_v26  ;;  %v4503_v55 = vand.u32 2147483647, %v4493_v26  ;;  %vm4499_vm9 = vweird.f32 %v4493_v26  ;;  %4766 = vmatpush.msra.mxu3 %v9559_v10 }
 0xf0e   :  { %v4506_v21 = vor.u32 1.1754944e-38, %v4505_v16  ;;  %vm4504_vm11 = vcmp.eq.f32.partialorder %v4503_v55, 8.507059e+37  ;;  %4767 = vmatpush.msra.mxu3 %v9836_v1 }
 0xf0f   :  { %v6918_v30 = vpop.eup %6917 }
 0xf10   :  { %v4516_v40 = vadd.f32 1.0, %v6918_v30  ;;  %4768 = vmatpush.msra.mxu3 %v9572_v28 }
 0xf12   :  { %v6920_v59 = vpop.eup %6919  ;;  %6921 = vrcp.f32 %v4516_v40  ;;  %v4528_v0 = vand.u32 2147483648, %v4516_v40  ;;  %v4526_v56 = vand.u32 2147483647, %v4516_v40  ;;  %vm4522_vm13 = vweird.f32 %v4516_v40  ;;  %4769 = vmatpush.msra.mxu3 %v9584_v43 }
 0xf13   :  { %v4495_v50 = vmul.f32 %v6920_v59, %v4493_v26  ;;  %vm4500_vm8 = vweird.f32 %v6920_v59 }
 0xf14   :  { %vm4501_vm10 = vmor %vm4499_vm9, %vm4500_vm8  ;;  %v4529_v31 = vor.u32 1.1754944e-38, %v4528_v0  ;;  %vm4527_vm15 = vcmp.eq.f32.partialorder %v4526_v56, 8.507059e+37  ;;  %4770 = vmatpush.msra.mxu3 %v9595_v13 }
 0xf15   :  { %v4496_v3 = vsub.f32 1.0, %v4495_v50 }
 0xf17   :  { %v4497_v33 = vmul.f32 %v6920_v59, %v4496_v3 }
 0xf18   :  { %v6922_v45 = vpop.eup %6921 }
 0xf19   :  { %v4518_v63 = vmul.f32 %v6922_v45, %v4516_v40  ;;  %v4498_v42 = vadd.f32 %v6920_v59, %v4497_v33  ;;  %vm4523_vm12 = vweird.f32 %v6922_v45 }
 0xf1a   :  { %vm4524_vm14 = vmor %vm4522_vm13, %vm4523_vm12 }
 0xf1b   :  { %v4519_v12 = vsub.f32 1.0, %v4518_v63  ;;  %v4502_v7 = vsel %vm4501_vm10, %v6920_v59, %v4498_v42 }
 0xf1c   :  { %v4507_v46 = vsel %vm4504_vm11, %v4506_v21, %v4502_v7  ;;  %v4696_v7 = vrot.slane %v9798_v9, 2 }
 0xf1d   :  { %v4520_v14 = vmul.f32 %v6922_v45, %v4519_v12  ;;  %v4532_v23 = vmul.f32 %v4507_v46, %v4487_v20 }
 0xf1f   :  { %v4521_v37 = vadd.f32 %v6922_v45, %v4520_v14  ;;  %v4535_v15 = vadd.f32 %v4533_v27, %v4532_v23 }
 0xf21   :  { %v4525_v57 = vsel %vm4524_vm14, %v6922_v45, %v4521_v37  ;;  %6923 = vtanh.f32 %v4535_v15 }
 0xf22   :  { %v4530_v47 = vsel %vm4527_vm15, %v4529_v31, %v4525_v57 }
 0xf23   :  { %v4537_v60 = vsub.f32 1.0, %v4530_v47  ;;  %v4539_v48 = vmul.f32 %v4530_v47, %v9747_v22  ;;  %v4673_v22 = vrot.slane %v9798_v9, 1  ;;  %v9852_v47 = vld [vmem:[#allocation10 + $0x170] sm:$0xff] }
 0xf24   :  { %4938 = vmatpush.msrb.mxu3 %v9852_v47 }
 0xf27   :  { %v6924_v41 = vpop.eup %6923 }
 0xf28   :  { %v4538_v54 = vmul.f32 %v6924_v41, %v4537_v60  ;;  %v9854_v60 = vld [vmem:[#allocation10 + $0x178] sm:$0xff] }
 0xf29   :  { %v9858_v41 = vld [vmem:[#allocation2 + $0x35] ss:$8 sm:$0x7] }
 0xf2a   :  { %v9773_v61 = vadd.f32 %v4539_v48, %v4538_v54  ;;  %v9860_v54 = vld [vmem:[#allocation10 + $0x158] sm:$0xff]  ;;  %v9862_v48 = vld [vmem:[#allocation10 + $0x160] sm:$0xff] }
 0xf2b   :  { %4939 = vmatpush.msrb.mxu3 %v9860_v54 }
 0xf2c   :  { %4541 = vst [vmem:[#allocation3 + $0x14] sm:$0x1] %v9773_v61  ;;  %4608 = vmatmul.f32.vlgmr.msra.gmra.mxu0 %v9773_v61  ;;  %4628 = vmatmul.f32.vlgmr.msra.gmra.mxu1 %v9773_v61 }
 0xf2d   :  { %4648 = vmatmul.f32.vlgmr.msrb.gmra.mxu2 %v9773_v61  ;;  %5081 = vmatpush.msra.mxu1 %v9779_v44 }
 0xf2e   :  { %4958 = vmatpush.msra.mxu0 %v9854_v60 }
 0xf2f   :  { %5082 = vmatpush.msra.mxu1 %v9783_v6 }
 0xf30   :  { %4959 = vmatpush.msra.mxu0 %v9862_v48 }
 0xf31   :  { %5083 = vmatpush.msra.mxu1 %v9788_v24 }
 0xf33   :  { %5084 = vmatpush.msra.mxu1 %v9793_v62 }
 0xf35   :  { %5085 = vmatpush.msra.mxu1 %v9800_v19 }
 0xf37   :  { %5086 = vmatpush.msra.mxu1 %v9805_v58 }
 0xf39   :  { %5087 = vmatpush.msra.mxu1 %v9813_v36 }
 0xf3b   :  { %5088 = vmatpush.msra.mxu1 %v9819_v25 }
 0xf3d   :  { %5089 = vmatpush.msra.mxu1 %v9824_v53 }
 0xf3f   :  { %5090 = vmatpush.msra.mxu1 %v9829_v52 }
 0xfa9   :  { %v4609_v49 = vpop.f32.mrf.mxu0  ;;  %v4629_v39 = vpop.f32.mrf.mxu1 }
 0xfaa   :  { %v4610_v51 = vadd.f32 %v4609_v49, %v8040_v32  ;;  %v4630_v8 = vadd.f32 %v4629_v39, %v8052_v4  ;;  %v9868_v49 = vld [vmem:[#allocation10 + $0x148] sm:$0xff] }
 0xfab   :  { %4960 = vmatpush.msra.mxu0 %v9868_v49 }
 0xfac   :  { %v4652_v35 = vadd.f32 %v4610_v51, %v9798_v9  ;;  %v4675_v11 = vadd.f32 %v4673_v22, %v4630_v8  ;;  %v9866_v9 = vld [vmem:[#allocation10 + $0x140] sm:$0xff]  ;;  %v4836_v51 = vrot.slane %v9858_v41, 1  ;;  %v9874_v8 = vld [vmem:[#allocation10 + $0x128] sm:$0xff]  ;;  %v9876_v22 = vld [vmem:[#allocation10 + $0x130] sm:$0xff] }
 0xfad   :  { %4940 = vmatpush.msrb.mxu3 %v9866_v9  ;;  %4961 = vmatpush.msra.mxu0 %v9876_v22 }
 0xfae   :  { %v6652_v29 = vmul.f32 -1.442695, %v4652_v35  ;;  %v6653_v2 = vmul.f32 -1.442695, %v4675_v11  ;;  %v9880_v11 = vld [vmem:[#allocation10 + $0x110] sm:$0xff] }
 0xfaf   :  { %4941 = vmatpush.msrb.mxu3 %v9874_v8 }
 0xfb0   :  { %6925 = vpow2.f32 %v6652_v29  ;;  %v4649_v18 = vpop.f32.mrf.mxu2  ;;  %v9882_v29 = vld [vmem:[#allocation10 + $0x118] sm:$0xff] }
 0xfb1   :  { %6927 = vpow2.f32 %v6653_v2  ;;  %v4650_v43 = vadd.f32 %v4649_v18, %v8063_v38  ;;  %4942 = vmatpush.msrb.mxu3 %v9880_v11  ;;  %4962 = vmatpush.msra.mxu0 %v9882_v29  ;;  %v9916_v18 = vld [vmem:[#allocation10 + $0x98] sm:$0xff] }
 0xfb6   :  { %v6926_v17 = vpop.eup %6925 }
 0xfb7   :  { %v6928_v5 = vpop.eup %6927  ;;  %v4656_v26 = vadd.f32 1.0, %v6926_v17 }
 0xfb8   :  { %v4679_v30 = vadd.f32 1.0, %v6928_v5  ;;  %v9886_v5 = vld [vmem:[#allocation10 + $0xf8] sm:$0xff] }
 0xfb9   :  { %6929 = vrcp.f32 %v4656_v26  ;;  %v4668_v10 = vand.u32 2147483648, %v4656_v26  ;;  %v4666_v55 = vand.u32 2147483647, %v4656_v26  ;;  %vm4662_vm1 = vweird.f32 %v4656_v26  ;;  %4943 = vmatpush.msrb.mxu3 %v9886_v5 }
 0xfba   :  { %6931 = vrcp.f32 %v4679_v30  ;;  %v4691_v12 = vand.u32 2147483648, %v4679_v30  ;;  %vm4685_vm5 = vweird.f32 %v4679_v30  ;;  %v4689_v46 = vand.u32 2147483647, %v4679_v30 }
 0xfbb   :  { %v4669_v28 = vor.u32 1.1754944e-38, %v4668_v10  ;;  %vm4667_vm3 = vcmp.eq.f32.partialorder %v4666_v55, 8.507059e+37  ;;  %v9906_v10 = vld [vmem:[#allocation10 + $0xb0] sm:$0xff]  ;;  %v9911_v55 = vld [vmem:[#allocation10 + $0x60] sm:$0xff] }
 0xfbc   :  { %v4692_v0 = vor.u32 1.1754944e-38, %v4691_v12  ;;  %vm4690_vm7 = vcmp.eq.f32.partialorder %v4689_v46, 8.507059e+37  ;;  %v9936_v12 = vld [vmem:[#allocation10 + $0x18] sm:$0xff]  ;;  %v9947_v46 = vld [vmem:[#allocation10] sm:$0xff] }
 0xfbf   :  { %v6930_v40 = vpop.eup %6929 }
 0xfc0   :  { %v6932_v34 = vpop.eup %6931  ;;  %v4658_v59 = vmul.f32 %v6930_v40, %v4656_v26  ;;  %vm4663_vm0 = vweird.f32 %v6930_v40  ;;  %v9888_v26 = vld [vmem:[#allocation10 + $0x100] sm:$0xff] }
 0xfc1   :  { %v4681_v50 = vmul.f32 %v6932_v34, %v4679_v30  ;;  %vm4664_vm2 = vmor %vm4662_vm1, %vm4663_vm0  ;;  %vm4686_vm4 = vweird.f32 %v6932_v34  ;;  %4963 = vmatpush.msra.mxu0 %v9888_v26 }
 0xfc2   :  { %v4659_v3 = vsub.f32 1.0, %v4658_v59  ;;  %vm4687_vm6 = vmor %vm4685_vm5, %vm4686_vm4  ;;  %v9897_v59 = vld [vmem:[#allocation10 + $0xc8] sm:$0xff] }
 0xfc3   :  { %v4682_v16 = vsub.f32 1.0, %v4681_v50  ;;  %v9899_v50 = vld [vmem:[#allocation10 + $0xd0] sm:$0xff] }
 0xfc4   :  { %v4660_v33 = vmul.f32 %v6930_v40, %v4659_v3 }
 0xfc5   :  { %v4683_v45 = vmul.f32 %v6932_v34, %v4682_v16  ;;  %v9904_v16 = vld [vmem:[#allocation10 + $0x78] sm:$0xff] }
 0xfc6   :  { %v4661_v63 = vadd.f32 %v6930_v40, %v4660_v33  ;;  %v9908_v33 = vld [vmem:[#allocation10 + $0xb8] sm:$0xff]  ;;  %4928 = vmatpush.msra.mxu2 %v9904_v16  ;;  %5091 = vmatpush.msra.mxu1 %v9904_v16 }
 0xfc7   :  { %v4684_v21 = vadd.f32 %v6932_v34, %v4683_v45 }
 0xfc8   :  { %v4665_v42 = vsel %vm4664_vm2, %v6930_v40, %v4661_v63  ;;  %v9893_v40 = vld [vmem:[#allocation10 + $0xe0] sm:$0xff]  ;;  %4929 = vmatpush.msra.mxu2 %v9911_v55  ;;  %5092 = vmatpush.msra.mxu1 %v9911_v55 }
 0xfc9   :  { %v4670_v13 = vsel %vm4667_vm3, %v4669_v28, %v4665_v42  ;;  %v4688_v14 = vsel %vm4687_vm6, %v6932_v34, %v4684_v21  ;;  %v9895_v34 = vld [vmem:[#allocation10 + $0xe8] sm:$0xff]  ;;  %4944 = vmatpush.msrb.mxu3 %v9893_v40  ;;  %v9918_v63 = vld [vmem:[#allocation10 + $0xa0] sm:$0xff] }
 0xfca   :  { %v4695_v20 = vmul.f32 %v4670_v13, %v4650_v43  ;;  %v4693_v23 = vsel %vm4690_vm7, %v4692_v0, %v4688_v14  ;;  %4964 = vmatpush.msra.mxu0 %v9895_v34  ;;  %v9924_v43 = vld [vmem:[#allocation10 + $0x30] sm:$0xff]  ;;  %v9928_v13 = vld [vmem:[#allocation10 + $0x80] sm:$0xff]  ;;  %v9930_v21 = vld [vmem:[#allocation10 + $0x88] sm:$0xff]  ;;  %4930 = vmatpush.msra.mxu2 %v9836_v1 }
 0xfcb   :  { %v4700_v56 = vsub.f32 1.0, %v4693_v23  ;;  %v4702_v31 = vmul.f32 %v4693_v23, %v9773_v61  ;;  %4945 = vmatpush.msrb.mxu3 %v9897_v59  ;;  %5093 = vmatpush.msra.mxu1 %v9836_v1  ;;  %v9951_v14 = vld [vmem:[#allocation10 + $0x58] sm:$0xff] }
 0xfcc   :  { %v4698_v27 = vadd.f32 %v4696_v7, %v4695_v20  ;;  %4965 = vmatpush.msra.mxu0 %v9899_v50  ;;  %v9938_v20 = vld [vmem:[#allocation10 + $0x68] sm:$0xff]  ;;  %v9940_v7 = vld [vmem:[#allocation10 + $0x70] sm:$0xff]  ;;  %4931 = vmatpush.msra.mxu2 %v9924_v43 }
 0xfcd   :  { %4946 = vmatpush.msrb.mxu3 %v9906_v10  ;;  %5094 = vmatpush.msra.mxu1 %v9924_v43 }
 0xfce   :  { %6933 = vtanh.f32 %v4698_v27  ;;  %4966 = vmatpush.msra.mxu0 %v9908_v33  ;;  %v9949_v27 = vld [vmem:[#allocation10 + $0x50] sm:$0xff]  ;;  %4932 = vmatpush.msra.mxu2 %v9936_v12 }
 0xfcf   :  { %4947 = vmatpush.msrb.mxu3 %v9916_v18  ;;  %5095 = vmatpush.msra.mxu1 %v9936_v12 }
 0xfd0   :  { %4967 = vmatpush.msra.mxu0 %v9918_v63  ;;  %4933 = vmatpush.msra.mxu2 %v9947_v46 }
 0xfd1   :  { %4948 = vmatpush.msrb.mxu3 %v9928_v13  ;;  %5096 = vmatpush.msra.mxu1 %v9947_v46 }
 0xfd2   :  { %4968 = vmatpush.msra.mxu0 %v9930_v21  ;;  %5101 = vmatpush.msrb.mxu2 %v9852_v47 }
 0xfd3   :  { %4949 = vmatpush.msrb.mxu3 %v9938_v20 }
 0xfd4   :  { %v6934_v37 = vpop.eup %6933  ;;  %4969 = vmatpush.msra.mxu0 %v9940_v7  ;;  %5102 = vmatpush.msrb.mxu2 %v9860_v54 }
 0xfd5   :  { %v4701_v15 = vmul.f32 %v6934_v37, %v4700_v56  ;;  %v9957_v56 = vld [vmem:[#allocation10 + $0x38] sm:$0xff]  ;;  %v9959_v37 = vld [vmem:[#allocation10 + $0x40] sm:$0xff]  ;;  %4950 = vmatpush.msrb.mxu3 %v9949_v27 }
 0xfd6   :  { %4970 = vmatpush.msra.mxu0 %v9951_v14  ;;  %5103 = vmatpush.msrb.mxu2 %v9866_v9 }
 0xfd7   :  { %v9846_v57 = vadd.f32 %v4702_v31, %v4701_v15  ;;  %v9965_v15 = vld [vmem:[#allocation10 + $0x20] sm:$0xff]  ;;  %v9967_v31 = vld [vmem:[#allocation10 + $0x28] sm:$0xff]  ;;  %4951 = vmatpush.msrb.mxu3 %v9957_v56 }
 0xfd8   :  { %4971 = vmatpush.msra.mxu0 %v9959_v37  ;;  %5104 = vmatpush.msrb.mxu2 %v9874_v8 }
 0xfd9   :  { %4704 = vst [vmem:[#allocation3 + $0x15] sm:$0x1] %v9846_v57  ;;  %4771 = vmatmul.f32.vlgmr.msra.gmra.mxu3 %v9846_v57  ;;  %4791 = vmatmul.f32.vlgmr.msrb.gmra.mxu0 %v9846_v57 }
 0xfda   :  { %4811 = vmatmul.f32.vlgmr.msrb.gmra.mxu1 %v9846_v57  ;;  %4952 = vmatpush.msrb.mxu3 %v9965_v15 }
 0xfdb   :  { %5264 = vmatpush.msrb.mxu1 %v9852_v47  ;;  %4972 = vmatpush.msra.mxu0 %v9967_v31 }
 0xfdc   :  { %5105 = vmatpush.msrb.mxu2 %v9880_v11 }
 0xfdd   :  { %5265 = vmatpush.msrb.mxu1 %v9860_v54 }
 0xfde   :  { %5106 = vmatpush.msrb.mxu2 %v9886_v5 }
 0xfdf   :  { %5266 = vmatpush.msrb.mxu1 %v9866_v9 }
 0xfe0   :  { %5107 = vmatpush.msrb.mxu2 %v9893_v40 }
 0xfe1   :  { %5267 = vmatpush.msrb.mxu1 %v9874_v8 }
 0xfe2   :  { %5108 = vmatpush.msrb.mxu2 %v9897_v59 }
 0xfe3   :  { %5268 = vmatpush.msrb.mxu1 %v9880_v11 }
 0xfe4   :  { %5109 = vmatpush.msrb.mxu2 %v9906_v10 }
 0xfe5   :  { %5269 = vmatpush.msrb.mxu1 %v9886_v5 }
 0xfe6   :  { %5110 = vmatpush.msrb.mxu2 %v9916_v18 }
 0xfe7   :  { %5270 = vmatpush.msrb.mxu1 %v9893_v40 }
 0xfe8   :  { %5111 = vmatpush.msrb.mxu2 %v9928_v13 }
 0xfe9   :  { %5271 = vmatpush.msrb.mxu1 %v9897_v59 }
 0xfea   :  { %5112 = vmatpush.msrb.mxu2 %v9938_v20 }
 0xfeb   :  { %5272 = vmatpush.msrb.mxu1 %v9906_v10 }
 0xfec   :  { %5113 = vmatpush.msrb.mxu2 %v9949_v27 }
 0xfed   :  { %5273 = vmatpush.msrb.mxu1 %v9916_v18 }
 0xfee   :  { %5114 = vmatpush.msrb.mxu2 %v9957_v56 }
 0xfef   :  { %5274 = vmatpush.msrb.mxu1 %v9928_v13 }
 0xff0   :  { %5115 = vmatpush.msrb.mxu2 %v9965_v15 }
 0xff1   :  { %5275 = vmatpush.msrb.mxu1 %v9938_v20 }
 0xff3   :  { %5276 = vmatpush.msrb.mxu1 %v9949_v27 }
 0xff5   :  { %5277 = vmatpush.msrb.mxu1 %v9957_v56 }
 0xff7   :  { %5278 = vmatpush.msrb.mxu1 %v9965_v15 }
0x1056   :  { %v4792_v61 = vpop.f32.mrf.mxu0 }
0x1057   :  { %v4793_v39 = vadd.f32 %v4792_v61, %v8052_v4 }
0x1059   :  { %v4838_v35 = vadd.f32 %v4836_v51, %v4793_v39  ;;  %v9975_v39 = vld [vmem:[#allocation10 + $0x8] sm:$0xff]  ;;  %v9977_v51 = vld [vmem:[#allocation10 + $0x10] sm:$0xff] }
0x105a   :  { %4953 = vmatpush.msrb.mxu3 %v9975_v39  ;;  %4973 = vmatpush.msra.mxu0 %v9977_v51 }
0x105b   :  { %v6655_v2 = vmul.f32 -1.442695, %v4838_v35  ;;  %5116 = vmatpush.msrb.mxu2 %v9975_v39  ;;  %5279 = vmatpush.msrb.mxu1 %v9975_v39 }
0x105c   :  { %v4772_v17 = vpop.f32.mrf.mxu3  ;;  %5121 = vmatpush.msra.mxu3 %v9854_v60  ;;  %5244 = vmatpush.msrb.mxu0 %v9779_v44 }
0x105d   :  { %6935 = vpow2.f32 %v6655_v2  ;;  %v4773_v30 = vadd.f32 %v4772_v17, %v8040_v32 }
0x105e   :  { %5122 = vmatpush.msra.mxu3 %v9862_v48  ;;  %5245 = vmatpush.msrb.mxu0 %v9783_v6 }
0x105f   :  { %v4815_v3 = vadd.f32 %v4773_v30, %v9858_v41 }
0x1060   :  { %5123 = vmatpush.msra.mxu3 %v9868_v49  ;;  %5246 = vmatpush.msrb.mxu0 %v9788_v24 }
0x1061   :  { %v6654_v45 = vmul.f32 -1.442695, %v4815_v3 }
0x1062   :  { %5124 = vmatpush.msra.mxu3 %v9876_v22  ;;  %5247 = vmatpush.msrb.mxu0 %v9793_v62 }
0x1063   :  { %v6936_v28 = vpop.eup %6935  ;;  %6937 = vpow2.f32 %v6654_v45 }
0x1064   :  { %v9926_v42 = vadd.f32 1.0, %v6936_v28  ;;  %5125 = vmatpush.msra.mxu3 %v9882_v29  ;;  %5248 = vmatpush.msrb.mxu0 %v9800_v19 }
0x1066   :  { %6939 = vrcp.f32 %v9926_v42  ;;  %5126 = vmatpush.msra.mxu3 %v9888_v26  ;;  %5249 = vmatpush.msrb.mxu0 %v9805_v58  ;;  %vm4848_vm13 = vweird.f32 %v9926_v42  ;;  %v4852_v19 = vand.u32 2147483647, %v9926_v42 }
0x1068   :  { %5127 = vmatpush.msra.mxu3 %v9895_v34  ;;  %5250 = vmatpush.msrb.mxu0 %v9813_v36  ;;  %vm4853_vm15 = vcmp.eq.f32.partialorder %v4852_v19, 8.507059e+37 }
0x1069   :  { %v6938_v0 = vpop.eup %6937 }
0x106a   :  { %v4819_v23 = vadd.f32 1.0, %v6938_v0  ;;  %5128 = vmatpush.msra.mxu3 %v9899_v50  ;;  %5251 = vmatpush.msrb.mxu0 %v9819_v25 }
0x106c   :  { %6941 = vrcp.f32 %v4819_v23  ;;  %v9971_v61 = vpop.eup %6939  ;;  %v4831_v45 = vand.u32 2147483648, %v4819_v23  ;;  %v4829_v44 = vand.u32 2147483647, %v4819_v23  ;;  %vm4825_vm9 = vweird.f32 %v4819_v23  ;;  %5129 = vmatpush.msra.mxu3 %v9908_v33  ;;  %5252 = vmatpush.msrb.mxu0 %v9824_v53 }
0x106d   :  { %v4844_v35 = vmul.f32 %v9971_v61, %v9926_v42  ;;  %vm4849_vm12 = vweird.f32 %v9971_v61 }
0x106e   :  { %vm4830_vm11 = vcmp.eq.f32.partialorder %v4829_v44, 8.507059e+37  ;;  %vm4850_vm14 = vmor %vm4848_vm13, %vm4849_vm12  ;;  %5130 = vmatpush.msra.mxu3 %v9918_v63  ;;  %5253 = vmatpush.msrb.mxu0 %v9829_v52 }
0x106f   :  { %v4845_v30 = vsub.f32 1.0, %v4844_v35  ;;  %v4812_v35 = vpop.f32.mrf.mxu1 }
0x1070   :  { %v4813_v24 = vadd.f32 %v4812_v35, %v8063_v38  ;;  %5131 = vmatpush.msra.mxu3 %v9930_v21  ;;  %5254 = vmatpush.msrb.mxu0 %v9904_v16 }
0x1071   :  { %v4846_v0 = vmul.f32 %v9971_v61, %v4845_v30 }
0x1072   :  { %v6942_v2 = vpop.eup %6941  ;;  %5132 = vmatpush.msra.mxu3 %v9940_v7  ;;  %5255 = vmatpush.msrb.mxu0 %v9911_v55 }
0x1073   :  { %v4821_v17 = vmul.f32 %v6942_v2, %v4819_v23  ;;  %vm4826_vm8 = vweird.f32 %v6942_v2  ;;  %v4847_v62 = vadd.f32 %v9971_v61, %v4846_v0 }
0x1074   :  { %vm4827_vm10 = vmor %vm4825_vm9, %vm4826_vm8  ;;  %5133 = vmatpush.msra.mxu3 %v9951_v14  ;;  %5256 = vmatpush.msrb.mxu0 %v9836_v1  ;;  %v4869_v1 = vld [vmem:[#allocation2 + $0x36] ss:$8 sm:$0x7] }
0x1075   :  { %v4822_v3 = vsub.f32 1.0, %v4821_v17  ;;  %v4832_v17 = vor.u32 1.1754944e-38, %v4831_v45  ;;  %v4859_v45 = vrot.slane %v9858_v41, 2  ;;  %v4851_v41 = vsel %vm4850_vm14, %v9971_v61, %v4847_v62 }
0x1076   :  { %5134 = vmatpush.msra.mxu3 %v9959_v37  ;;  %5257 = vmatpush.msrb.mxu0 %v9924_v43 }
0x1077   :  { %v4823_v28 = vmul.f32 %v6942_v2, %v4822_v3  ;;  %v4854_v3 = vand.u32 2147483648, %v9926_v42 }
0x1078   :  { %5135 = vmatpush.msra.mxu3 %v9967_v31  ;;  %5258 = vmatpush.msrb.mxu0 %v9936_v12 }
0x1079   :  { %v4824_v6 = vadd.f32 %v6942_v2, %v4823_v28  ;;  %v4855_v58 = vor.u32 1.1754944e-38, %v4854_v3 }
0x107a   :  { %5136 = vmatpush.msra.mxu3 %v9977_v51  ;;  %5259 = vmatpush.msrb.mxu0 %v9947_v46 }
0x107b   :  { %v4828_v30 = vsel %vm4827_vm10, %v6942_v2, %v4824_v6  ;;  %v4856_v36 = vsel %vm4853_vm15, %v4855_v58, %v4851_v41  ;;  %v5022_v41 = vrot.slane %v4869_v1, 2 }
0x107c   :  { %v4833_v23 = vsel %vm4830_vm11, %v4832_v17, %v4828_v30  ;;  %v4863_v25 = vsub.f32 1.0, %v4856_v36  ;;  %v4865_v61 = vmul.f32 %v4856_v36, %v9846_v57 }
0x107d   :  { %v4858_v28 = vmul.f32 %v4833_v23, %v4813_v24 }
0x107f   :  { %v4861_v2 = vadd.f32 %v4859_v45, %v4858_v28 }
0x1081   :  { %6943 = vtanh.f32 %v4861_v2 }
0x1087   :  { %v6944_v42 = vpop.eup %6943 }
0x1088   :  { %v4864_v53 = vmul.f32 %v6944_v42, %v4863_v25 }
0x108a   :  { %v10047_v52 = vadd.f32 %v4865_v61, %v4864_v53 }
0x108c   :  { %4867 = vst [vmem:[#allocation3 + $0x16] sm:$0x1] %v10047_v52  ;;  %4934 = vmatmul.f32.vlgmr.msra.gmra.mxu2 %v10047_v52  ;;  %4954 = vmatmul.f32.vlgmr.msrb.gmra.mxu3 %v10047_v52 }
0x108d   :  { %4974 = vmatmul.f32.vlgmr.msra.gmra.mxu0 %v10047_v52  ;;  %5284 = vmatpush.msra.mxu2 %v9854_v60 }
0x108e   :  { %5427 = vmatpush.msra.mxu0 %v9852_v47 }
0x108f   :  { %5285 = vmatpush.msra.mxu2 %v9862_v48 }
0x1090   :  { %5428 = vmatpush.msra.mxu0 %v9860_v54 }
0x1091   :  { %5286 = vmatpush.msra.mxu2 %v9868_v49 }
0x1092   :  { %5429 = vmatpush.msra.mxu0 %v9866_v9 }
0x1093   :  { %5287 = vmatpush.msra.mxu2 %v9876_v22 }
0x1094   :  { %5430 = vmatpush.msra.mxu0 %v9874_v8  ;;  %v4999_v8 = vrot.slane %v4869_v1, 1 }
0x1095   :  { %5288 = vmatpush.msra.mxu2 %v9882_v29 }
0x1096   :  { %5431 = vmatpush.msra.mxu0 %v9880_v11 }
0x1097   :  { %5289 = vmatpush.msra.mxu2 %v9888_v26 }
0x1098   :  { %5432 = vmatpush.msra.mxu0 %v9886_v5 }
0x1099   :  { %5290 = vmatpush.msra.mxu2 %v9895_v34 }
0x109a   :  { %5433 = vmatpush.msra.mxu0 %v9893_v40 }
0x109b   :  { %5291 = vmatpush.msra.mxu2 %v9899_v50 }
0x109c   :  { %5434 = vmatpush.msra.mxu0 %v9897_v59 }
0x109d   :  { %5292 = vmatpush.msra.mxu2 %v9908_v33 }
0x109e   :  { %5435 = vmatpush.msra.mxu0 %v9906_v10 }
0x109f   :  { %5293 = vmatpush.msra.mxu2 %v9918_v63 }
0x10a0   :  { %5436 = vmatpush.msra.mxu0 %v9916_v18 }
0x10a1   :  { %5294 = vmatpush.msra.mxu2 %v9930_v21 }
0x10a2   :  { %5437 = vmatpush.msra.mxu0 %v9928_v13 }
0x10a3   :  { %5295 = vmatpush.msra.mxu2 %v9940_v7 }
0x10a4   :  { %5438 = vmatpush.msra.mxu0 %v9938_v20 }
0x10a5   :  { %5296 = vmatpush.msra.mxu2 %v9951_v14 }
0x10a6   :  { %5439 = vmatpush.msra.mxu0 %v9949_v27 }
0x10a7   :  { %5297 = vmatpush.msra.mxu2 %v9959_v37 }
0x10a8   :  { %5440 = vmatpush.msra.mxu0 %v9957_v56 }
0x10a9   :  { %5298 = vmatpush.msra.mxu2 %v9967_v31 }
0x10aa   :  { %5441 = vmatpush.msra.mxu0 %v9965_v15 }
0x10ab   :  { %5299 = vmatpush.msra.mxu2 %v9977_v51 }
0x10ac   :  { %5442 = vmatpush.msra.mxu0 %v9975_v39 }
0x110a   :  { %v4975_v24 = vpop.f32.mrf.mxu0 }
0x110b   :  { %v4976_v3 = vadd.f32 %v4975_v24, %v8063_v38 }
0x110f   :  { %v4935_v57 = vpop.f32.mrf.mxu2  ;;  %v4955_v47 = vpop.f32.mrf.mxu3 }
0x1110   :  { %v4936_v54 = vadd.f32 %v4935_v57, %v8040_v32  ;;  %v4956_v9 = vadd.f32 %v4955_v47, %v8052_v4 }
0x1112   :  { %v4978_v11 = vadd.f32 %v4936_v54, %v4869_v1  ;;  %v5001_v5 = vadd.f32 %v4999_v8, %v4956_v9 }
0x1114   :  { %v6656_v40 = vmul.f32 -1.442695, %v4978_v11  ;;  %v6657_v59 = vmul.f32 -1.442695, %v5001_v5 }
0x1116   :  { %6945 = vpow2.f32 %v6656_v40 }
0x1117   :  { %6947 = vpow2.f32 %v6657_v59 }
0x111c   :  { %v6946_v10 = vpop.eup %6945 }
0x111d   :  { %v6948_v18 = vpop.eup %6947  ;;  %v4982_v13 = vadd.f32 1.0, %v6946_v10 }
0x111e   :  { %v5005_v20 = vadd.f32 1.0, %v6948_v18 }
0x111f   :  { %6949 = vrcp.f32 %v4982_v13  ;;  %v4994_v0 = vand.u32 2147483648, %v4982_v13  ;;  %v4992_v17 = vand.u32 2147483647, %v4982_v13  ;;  %vm4988_vm1 = vweird.f32 %v4982_v13 }
0x1120   :  { %6951 = vrcp.f32 %v5005_v20  ;;  %v5017_v58 = vand.u32 2147483648, %v5005_v20  ;;  %vm5011_vm5 = vweird.f32 %v5005_v20  ;;  %v5015_v36 = vand.u32 2147483647, %v5005_v20 }
0x1121   :  { %v4995_v62 = vor.u32 1.1754944e-38, %v4994_v0  ;;  %vm4993_vm3 = vcmp.eq.f32.partialorder %v4992_v17, 8.507059e+37 }
0x1122   :  { %v5018_v53 = vor.u32 1.1754944e-38, %v5017_v58  ;;  %vm5016_vm7 = vcmp.eq.f32.partialorder %v5015_v36, 8.507059e+37  ;;  %v10135_v58 = vld [vmem:[#allocation10 + $0x150] sm:$0xff]  ;;  %v10140_v36 = vld [vmem:[#allocation10 + $0x138] sm:$0xff] }
0x1125   :  { %v6950_v27 = vpop.eup %6949 }
0x1126   :  { %v6952_v56 = vpop.eup %6951  ;;  %v4984_v15 = vmul.f32 %v6950_v27, %v4982_v13  ;;  %vm4989_vm0 = vweird.f32 %v6950_v27 }
0x1127   :  { %v5007_v39 = vmul.f32 %v6952_v56, %v5005_v20  ;;  %vm4990_vm2 = vmor %vm4988_vm1, %vm4989_vm0  ;;  %vm5012_vm4 = vweird.f32 %v6952_v56 }
0x1128   :  { %v4985_v44 = vsub.f32 1.0, %v4984_v15  ;;  %vm5013_vm6 = vmor %vm5011_vm5, %vm5012_vm4 }
0x1129   :  { %v5008_v35 = vsub.f32 1.0, %v5007_v39 }
0x112a   :  { %v4986_v6 = vmul.f32 %v6950_v27, %v4985_v44 }
0x112b   :  { %v5009_v30 = vmul.f32 %v6952_v56, %v5008_v35 }
0x112c   :  { %v4987_v23 = vadd.f32 %v6950_v27, %v4986_v6 }
0x112d   :  { %v5010_v19 = vadd.f32 %v6952_v56, %v5009_v30 }
0x112e   :  { %v4991_v45 = vsel %vm4990_vm2, %v6950_v27, %v4987_v23 }
0x112f   :  { %v4996_v28 = vsel %vm4993_vm3, %v4995_v62, %v4991_v45  ;;  %v5014_v42 = vsel %vm5013_vm6, %v6952_v56, %v5010_v19 }
0x1130   :  { %v5021_v2 = vmul.f32 %v4996_v28, %v4976_v3  ;;  %v5019_v61 = vsel %vm5016_vm7, %v5018_v53, %v5014_v42  ;;  %v10148_v42 = vld [vmem:[#allocation2 + $0x48] ss:$8 sm:$0x7] }
0x1131   :  { %v5026_v57 = vsub.f32 1.0, %v5019_v61  ;;  %v5028_v9 = vmul.f32 %v5019_v61, %v10047_v52  ;;  %v10152_v53 = vld [vmem:[#allocation10 + $0x108] sm:$0xff] }
0x1132   :  { %v5024_v25 = vadd.f32 %v5022_v41, %v5021_v2  ;;  %v10131_v41 = vld [vmem:[#allocation10 + $0x168] sm:$0xff] }
0x1133   :  { %5407 = vmatpush.msrb.mxu3 %v10131_v41 }
0x1134   :  { %6953 = vtanh.f32 %v5024_v25  ;;  %v10145_v25 = vld [vmem:[#allocation10 + $0x120] sm:$0xff] }
0x1135   :  { %5408 = vmatpush.msrb.mxu3 %v10135_v58 }
0x1137   :  { %5409 = vmatpush.msrb.mxu3 %v10140_v36 }
0x1139   :  { %5410 = vmatpush.msrb.mxu3 %v10145_v25 }
0x113a   :  { %v6954_v47 = vpop.eup %6953 }
0x113b   :  { %v5027_v54 = vmul.f32 %v6954_v47, %v5026_v57  ;;  %5411 = vmatpush.msrb.mxu3 %v10152_v53 }
0x113d   :  { %v10099_v8 = vadd.f32 %v5028_v9, %v5027_v54  ;;  %v5325_v9 = vrot.slane %v10148_v42, 1 }
0x113f   :  { %5030 = vst [vmem:[#allocation3 + $0x17] sm:$0x1] %v10099_v8  ;;  %5097 = vmatmul.f32.vlgmr.msra.gmra.mxu1 %v10099_v8  ;;  %5117 = vmatmul.f32.vlgmr.msrb.gmra.mxu2 %v10099_v8 }
0x1140   :  { %5137 = vmatmul.f32.vlgmr.msra.gmra.mxu3 %v10099_v8  ;;  %5447 = vmatpush.msra.mxu1 %v9854_v60 }
0x1141   :  { %5570 = vmatpush.msrb.mxu2 %v10131_v41 }
0x1142   :  { %5448 = vmatpush.msra.mxu1 %v9862_v48 }
0x1143   :  { %5571 = vmatpush.msrb.mxu2 %v10135_v58 }
0x1144   :  { %5449 = vmatpush.msra.mxu1 %v9868_v49  ;;  %v5032_v49 = vld [vmem:[#allocation2 + $0x37] ss:$8 sm:$0x7] }
0x1145   :  { %v5185_v39 = vrot.slane %v5032_v49, 2  ;;  %5572 = vmatpush.msrb.mxu2 %v10140_v36 }
0x1146   :  { %5450 = vmatpush.msra.mxu1 %v9876_v22 }
0x1147   :  { %5573 = vmatpush.msrb.mxu2 %v10145_v25 }
0x1148   :  { %5451 = vmatpush.msra.mxu1 %v9882_v29 }
0x1149   :  { %5574 = vmatpush.msrb.mxu2 %v10152_v53 }
0x114a   :  { %5452 = vmatpush.msra.mxu1 %v9888_v26 }
0x114c   :  { %5453 = vmatpush.msra.mxu1 %v9895_v34 }
0x114e   :  { %5454 = vmatpush.msra.mxu1 %v9899_v50  ;;  %v5162_v50 = vrot.slane %v5032_v49, 1 }
0x1150   :  { %5455 = vmatpush.msra.mxu1 %v9908_v33 }
0x1152   :  { %5456 = vmatpush.msra.mxu1 %v9918_v63 }
0x1154   :  { %5457 = vmatpush.msra.mxu1 %v9930_v21 }
0x1156   :  { %5458 = vmatpush.msra.mxu1 %v9940_v7 }
0x1158   :  { %5459 = vmatpush.msra.mxu1 %v9951_v14 }
0x115a   :  { %5460 = vmatpush.msra.mxu1 %v9959_v37 }
0x115c   :  { %5461 = vmatpush.msra.mxu1 %v9967_v31 }
0x115e   :  { %5462 = vmatpush.msra.mxu1 %v9977_v51 }
0x11bc   :  { %v5098_v60 = vpop.f32.mrf.mxu1 }
0x11bd   :  { %v5099_v48 = vadd.f32 %v5098_v60, %v8040_v32 }
0x11bf   :  { %v5141_v22 = vadd.f32 %v5099_v48, %v5032_v49  ;;  %v10166_v49 = vld [vmem:[#allocation10 + $0xd8] sm:$0xff] }
0x11c1   :  { %v6658_v29 = vmul.f32 -1.442695, %v5141_v22 }
0x11c2   :  { %v5118_v26 = vpop.f32.mrf.mxu2 }
0x11c3   :  { %6955 = vpow2.f32 %v6658_v29  ;;  %v5119_v34 = vadd.f32 %v5118_v26, %v8052_v4  ;;  %v5138_v59 = vpop.f32.mrf.mxu3  ;;  %v10171_v26 = vld [vmem:[#allocation10 + $0xc0] sm:$0xff] }
0x11c4   :  { %v5139_v27 = vadd.f32 %v5138_v59, %v8063_v38 }
0x11c5   :  { %v5164_v33 = vadd.f32 %v5162_v50, %v5119_v34  ;;  %v10176_v34 = vld [vmem:[#allocation10 + $0xa8] sm:$0xff]  ;;  %v10181_v50 = vld [vmem:[#allocation10 + $0x90] sm:$0xff] }
0x11c7   :  { %v6659_v63 = vmul.f32 -1.442695, %v5164_v33 }
0x11c9   :  { %v6956_v21 = vpop.eup %6955  ;;  %6957 = vpow2.f32 %v6659_v63  ;;  %v10188_v63 = vld [vmem:[#allocation10 + $0x48] sm:$0xff] }
0x11ca   :  { %v5145_v7 = vadd.f32 1.0, %v6956_v21 }
0x11cc   :  { %6959 = vrcp.f32 %v5145_v7  ;;  %v5157_v1 = vand.u32 2147483648, %v5145_v7  ;;  %v5155_v5 = vand.u32 2147483647, %v5145_v7  ;;  %vm5151_vm9 = vweird.f32 %v5145_v7 }
0x11ce   :  { %v5158_v13 = vor.u32 1.1754944e-38, %v5157_v1  ;;  %vm5156_vm11 = vcmp.eq.f32.partialorder %v5155_v5, 8.507059e+37 }
0x11cf   :  { %v6958_v14 = vpop.eup %6957 }
0x11d0   :  { %v5168_v37 = vadd.f32 1.0, %v6958_v14 }
0x11d2   :  { %v6960_v31 = vpop.eup %6959  ;;  %6961 = vrcp.f32 %v5168_v37  ;;  %v5180_v0 = vand.u32 2147483648, %v5168_v37  ;;  %v5178_v6 = vand.u32 2147483647, %v5168_v37  ;;  %vm5174_vm13 = vweird.f32 %v5168_v37 }
0x11d3   :  { %v5147_v51 = vmul.f32 %v6960_v31, %v5145_v7  ;;  %vm5152_vm8 = vweird.f32 %v6960_v31 }
0x11d4   :  { %vm5153_vm10 = vmor %vm5151_vm9, %vm5152_vm8  ;;  %v5181_v30 = vor.u32 1.1754944e-38, %v5180_v0  ;;  %vm5179_vm15 = vcmp.eq.f32.partialorder %v5178_v6, 8.507059e+37 }
0x11d5   :  { %v5148_v52 = vsub.f32 1.0, %v5147_v51 }
0x11d7   :  { %v5149_v11 = vmul.f32 %v6960_v31, %v5148_v52 }
0x11d8   :  { %v6962_v40 = vpop.eup %6961 }
0x11d9   :  { %v5170_v10 = vmul.f32 %v6962_v40, %v5168_v37  ;;  %v5150_v18 = vadd.f32 %v6960_v31, %v5149_v11  ;;  %vm5175_vm12 = vweird.f32 %v6962_v40 }
0x11da   :  { %vm5176_vm14 = vmor %vm5174_vm13, %vm5175_vm12 }
0x11db   :  { %v5171_v20 = vsub.f32 1.0, %v5170_v10  ;;  %v5154_v56 = vsel %vm5153_vm10, %v6960_v31, %v5150_v18 }
0x11dc   :  { %v5159_v15 = vsel %vm5156_vm11, %v5158_v13, %v5154_v56  ;;  %v5348_v56 = vrot.slane %v10148_v42, 2 }
0x11dd   :  { %v5172_v44 = vmul.f32 %v6962_v40, %v5171_v20  ;;  %v5184_v35 = vmul.f32 %v5159_v15, %v5139_v27 }
0x11df   :  { %v5173_v17 = vadd.f32 %v6962_v40, %v5172_v44  ;;  %v5187_v24 = vadd.f32 %v5185_v39, %v5184_v35 }
0x11e1   :  { %v5177_v23 = vsel %vm5176_vm14, %v6962_v40, %v5173_v17  ;;  %6963 = vtanh.f32 %v5187_v24 }
0x11e2   :  { %v5182_v62 = vsel %vm5179_vm15, %v5181_v30, %v5177_v23 }
0x11e3   :  { %v5189_v3 = vsub.f32 1.0, %v5182_v62  ;;  %v5191_v19 = vmul.f32 %v5182_v62, %v10099_v8  ;;  %v10160_v8 = vld [vmem:[#allocation10 + $0xf0] sm:$0xff] }
0x11e4   :  { %5412 = vmatpush.msrb.mxu3 %v10160_v8  ;;  %5575 = vmatpush.msrb.mxu2 %v10160_v8  ;;  %v10204_v62 = vld [vmem:[#allocation10 + $0x170] sm:$0xff] }
0x11e6   :  { %5413 = vmatpush.msrb.mxu3 %v10166_v49  ;;  %5576 = vmatpush.msrb.mxu2 %v10166_v49 }
0x11e7   :  { %v6964_v45 = vpop.eup %6963 }
0x11e8   :  { %v5190_v28 = vmul.f32 %v6964_v45, %v5189_v3  ;;  %5414 = vmatpush.msrb.mxu3 %v10171_v26  ;;  %5577 = vmatpush.msrb.mxu2 %v10171_v26  ;;  %v10206_v3 = vld [vmem:[#allocation10 + $0x178] sm:$0xff]  ;;  %v10208_v45 = vld [vmem:[#allocation2 + $0x49] ss:$8 sm:$0x7] }
0x11ea   :  { %v10125_v2 = vadd.f32 %v5191_v19, %v5190_v28  ;;  %5415 = vmatpush.msrb.mxu3 %v10176_v34  ;;  %5578 = vmatpush.msrb.mxu2 %v10176_v34  ;;  %v10212_v28 = vld [vmem:[#allocation10 + $0x158] sm:$0xff]  ;;  %v10214_v19 = vld [vmem:[#allocation10 + $0x160] sm:$0xff] }
0x11ec   :  { %5193 = vst [vmem:[#allocation3 + $0x18] sm:$0x1] %v10125_v2  ;;  %5260 = vmatmul.f32.vlgmr.msrb.gmra.mxu0 %v10125_v2  ;;  %5280 = vmatmul.f32.vlgmr.msrb.gmra.mxu1 %v10125_v2 }
0x11ed   :  { %5300 = vmatmul.f32.vlgmr.msra.gmra.mxu2 %v10125_v2  ;;  %5733 = vmatpush.msrb.mxu1 %v10131_v41 }
0x11ee   :  { %5416 = vmatpush.msrb.mxu3 %v10181_v50  ;;  %5579 = vmatpush.msrb.mxu2 %v10181_v50 }
0x11ef   :  { %5734 = vmatpush.msrb.mxu1 %v10135_v58  ;;  %5610 = vmatpush.msrb.mxu0 %v10206_v3 }
0x11f0   :  { %5417 = vmatpush.msrb.mxu3 %v9904_v16 }
0x11f1   :  { %5735 = vmatpush.msrb.mxu1 %v10140_v36  ;;  %5611 = vmatpush.msrb.mxu0 %v10214_v19 }
0x11f2   :  { %5418 = vmatpush.msrb.mxu3 %v9911_v55 }
0x11f3   :  { %5736 = vmatpush.msrb.mxu1 %v10145_v25 }
0x11f4   :  { %5419 = vmatpush.msrb.mxu3 %v10188_v63 }
0x11f5   :  { %5737 = vmatpush.msrb.mxu1 %v10152_v53 }
0x11f6   :  { %5420 = vmatpush.msrb.mxu3 %v9924_v43 }
0x11f7   :  { %5738 = vmatpush.msrb.mxu1 %v10160_v8 }
0x11f8   :  { %5421 = vmatpush.msrb.mxu3 %v9936_v12 }
0x11f9   :  { %5739 = vmatpush.msrb.mxu1 %v10166_v49 }
0x11fa   :  { %5422 = vmatpush.msrb.mxu3 %v9947_v46 }
0x11fb   :  { %5740 = vmatpush.msrb.mxu1 %v10171_v26 }
0x11fc   :  { %5590 = vmatpush.msra.mxu3 %v10204_v62 }
0x11fd   :  { %5741 = vmatpush.msrb.mxu1 %v10176_v34 }
0x11fe   :  { %5591 = vmatpush.msra.mxu3 %v10212_v28 }
0x11ff   :  { %5742 = vmatpush.msrb.mxu1 %v10181_v50 }
0x1269   :  { %v5261_v61 = vpop.f32.mrf.mxu0  ;;  %v5281_v57 = vpop.f32.mrf.mxu1 }
0x126a   :  { %v5262_v47 = vadd.f32 %v5261_v61, %v8040_v32  ;;  %v5282_v54 = vadd.f32 %v5281_v57, %v8052_v4  ;;  %v5488_v61 = vrot.slane %v10208_v45, 1  ;;  %v10220_v57 = vld [vmem:[#allocation10 + $0x140] sm:$0xff] }
0x126b   :  { %5592 = vmatpush.msra.mxu3 %v10220_v57 }
0x126c   :  { %v5304_v60 = vadd.f32 %v5262_v47, %v10148_v42  ;;  %v5327_v48 = vadd.f32 %v5325_v9, %v5282_v54  ;;  %v10222_v47 = vld [vmem:[#allocation10 + $0x148] sm:$0xff] }
0x126d   :  { %5612 = vmatpush.msrb.mxu0 %v10222_v47  ;;  %v10226_v9 = vld [vmem:[#allocation10 + $0x128] sm:$0xff] }
0x126e   :  { %v6660_v22 = vmul.f32 -1.442695, %v5304_v60  ;;  %v6661_v29 = vmul.f32 -1.442695, %v5327_v48  ;;  %v10228_v60 = vld [vmem:[#allocation10 + $0x130] sm:$0xff]  ;;  %5593 = vmatpush.msra.mxu3 %v10226_v9 }
0x126f   :  { %5613 = vmatpush.msrb.mxu0 %v10228_v60 }
0x1270   :  { %6965 = vpow2.f32 %v6660_v22  ;;  %v5301_v59 = vpop.f32.mrf.mxu2  ;;  %v10232_v22 = vld [vmem:[#allocation10 + $0x110] sm:$0xff] }
0x1271   :  { %6967 = vpow2.f32 %v6661_v29  ;;  %v5302_v12 = vadd.f32 %v5301_v59, %v8063_v38  ;;  %v10234_v29 = vld [vmem:[#allocation10 + $0x118] sm:$0xff]  ;;  %5594 = vmatpush.msra.mxu3 %v10232_v22 }
0x1272   :  { %5614 = vmatpush.msrb.mxu0 %v10234_v29 }
0x1276   :  { %v6966_v33 = vpop.eup %6965 }
0x1277   :  { %v6968_v21 = vpop.eup %6967  ;;  %v5308_v7 = vadd.f32 1.0, %v6966_v33 }
0x1278   :  { %v5331_v14 = vadd.f32 1.0, %v6968_v21 }
0x1279   :  { %6969 = vrcp.f32 %v5308_v7  ;;  %v5320_v11 = vand.u32 2147483648, %v5308_v7  ;;  %v5318_v55 = vand.u32 2147483647, %v5308_v7  ;;  %vm5314_vm1 = vweird.f32 %v5308_v7 }
0x127a   :  { %6971 = vrcp.f32 %v5331_v14  ;;  %v5343_v20 = vand.u32 2147483648, %v5331_v14  ;;  %vm5337_vm5 = vweird.f32 %v5331_v14  ;;  %v5341_v15 = vand.u32 2147483647, %v5331_v14 }
0x127b   :  { %v5321_v43 = vor.u32 1.1754944e-38, %v5320_v11  ;;  %vm5319_vm3 = vcmp.eq.f32.partialorder %v5318_v55, 8.507059e+37  ;;  %v10260_v55 = vld [vmem:[#allocation10 + $0xb8] sm:$0xff] }
0x127c   :  { %v5344_v0 = vor.u32 1.1754944e-38, %v5343_v20  ;;  %vm5342_vm7 = vcmp.eq.f32.partialorder %v5341_v15, 8.507059e+37  ;;  %v10288_v20 = vld [vmem:[#allocation10 + $0x18] sm:$0xff]  ;;  %v10299_v15 = vld [vmem:[#allocation10] sm:$0xff] }
0x127f   :  { %v6970_v37 = vpop.eup %6969 }
0x1280   :  { %v6972_v16 = vpop.eup %6971  ;;  %v5310_v31 = vmul.f32 %v6970_v37, %v5308_v7  ;;  %vm5315_vm0 = vweird.f32 %v6970_v37  ;;  %v10239_v7 = vld [vmem:[#allocation10 + $0xf8] sm:$0xff] }
0x1281   :  { %v5333_v51 = vmul.f32 %v6972_v16, %v5331_v14  ;;  %vm5316_vm2 = vmor %vm5314_vm1, %vm5315_vm0  ;;  %vm5338_vm4 = vweird.f32 %v6972_v16  ;;  %v10241_v14 = vld [vmem:[#allocation10 + $0x100] sm:$0xff]  ;;  %5595 = vmatpush.msra.mxu3 %v10239_v7 }
0x1282   :  { %v5311_v52 = vsub.f32 1.0, %v5310_v31  ;;  %vm5339_vm6 = vmor %vm5337_vm5, %vm5338_vm4  ;;  %5615 = vmatpush.msrb.mxu0 %v10241_v14 }
0x1283   :  { %v5334_v1 = vsub.f32 1.0, %v5333_v51  ;;  %v10250_v51 = vld [vmem:[#allocation10 + $0xc8] sm:$0xff] }
0x1284   :  { %v5312_v5 = vmul.f32 %v6970_v37, %v5311_v52  ;;  %v10252_v52 = vld [vmem:[#allocation10 + $0xd0] sm:$0xff] }
0x1285   :  { %v5335_v40 = vmul.f32 %v6972_v16, %v5334_v1  ;;  %v10256_v1 = vld [vmem:[#allocation10 + $0x78] sm:$0xff] }
0x1286   :  { %v5313_v10 = vadd.f32 %v6970_v37, %v5312_v5  ;;  %v10258_v5 = vld [vmem:[#allocation10 + $0xb0] sm:$0xff]  ;;  %5580 = vmatpush.msrb.mxu2 %v10256_v1  ;;  %5743 = vmatpush.msrb.mxu1 %v10256_v1 }
0x1287   :  { %v5336_v13 = vadd.f32 %v6972_v16, %v5335_v40  ;;  %v10263_v40 = vld [vmem:[#allocation10 + $0x60] sm:$0xff] }
0x1288   :  { %v5317_v18 = vsel %vm5316_vm2, %v6970_v37, %v5313_v10  ;;  %v10243_v37 = vld [vmem:[#allocation10 + $0xe0] sm:$0xff]  ;;  %v10268_v10 = vld [vmem:[#allocation10 + $0x98] sm:$0xff]  ;;  %5581 = vmatpush.msrb.mxu2 %v10263_v40  ;;  %5744 = vmatpush.msrb.mxu1 %v10263_v40 }
0x1289   :  { %v5322_v46 = vsel %vm5319_vm3, %v5321_v43, %v5317_v18  ;;  %v5340_v44 = vsel %vm5339_vm6, %v6972_v16, %v5336_v13  ;;  %v10247_v16 = vld [vmem:[#allocation10 + $0xe8] sm:$0xff]  ;;  %5596 = vmatpush.msra.mxu3 %v10243_v37  ;;  %v10270_v43 = vld [vmem:[#allocation10 + $0xa0] sm:$0xff]  ;;  %v10278_v18 = vld [vmem:[#allocation10 + $0x30] sm:$0xff] }
0x128a   :  { %v5347_v27 = vmul.f32 %v5322_v46, %v5302_v12  ;;  %v5345_v35 = vsel %vm5342_vm7, %v5344_v0, %v5340_v44  ;;  %5616 = vmatpush.msrb.mxu0 %v10247_v16  ;;  %v10280_v46 = vld [vmem:[#allocation10 + $0x80] sm:$0xff]  ;;  %v10282_v13 = vld [vmem:[#allocation10 + $0x88] sm:$0xff]  ;;  %5582 = vmatpush.msrb.mxu2 %v10188_v63  ;;  %v10301_v44 = vld [vmem:[#allocation10 + $0x50] sm:$0xff] }
0x128b   :  { %v5352_v6 = vsub.f32 1.0, %v5345_v35  ;;  %v5354_v30 = vmul.f32 %v5345_v35, %v10125_v2  ;;  %5597 = vmatpush.msra.mxu3 %v10250_v51  ;;  %5745 = vmatpush.msrb.mxu1 %v10188_v63  ;;  %v10303_v0 = vld [vmem:[#allocation10 + $0x58] sm:$0xff] }
0x128c   :  { %v5350_v39 = vadd.f32 %v5348_v56, %v5347_v27  ;;  %5617 = vmatpush.msrb.mxu0 %v10252_v52  ;;  %v10291_v27 = vld [vmem:[#allocation10 + $0x68] sm:$0xff]  ;;  %v10293_v56 = vld [vmem:[#allocation10 + $0x70] sm:$0xff]  ;;  %5583 = vmatpush.msrb.mxu2 %v10278_v18 }
0x128d   :  { %5598 = vmatpush.msra.mxu3 %v10258_v5  ;;  %5746 = vmatpush.msrb.mxu1 %v10278_v18 }
0x128e   :  { %6973 = vtanh.f32 %v5350_v39  ;;  %5618 = vmatpush.msrb.mxu0 %v10260_v55  ;;  %5584 = vmatpush.msrb.mxu2 %v10288_v20 }
0x128f   :  { %5599 = vmatpush.msra.mxu3 %v10268_v10  ;;  %5747 = vmatpush.msrb.mxu1 %v10288_v20 }
0x1290   :  { %5619 = vmatpush.msrb.mxu0 %v10270_v43  ;;  %5585 = vmatpush.msrb.mxu2 %v10299_v15 }
0x1291   :  { %5600 = vmatpush.msra.mxu3 %v10280_v46  ;;  %5748 = vmatpush.msrb.mxu1 %v10299_v15 }
0x1292   :  { %5620 = vmatpush.msrb.mxu0 %v10282_v13  ;;  %5753 = vmatpush.msra.mxu2 %v10204_v62 }
0x1293   :  { %5601 = vmatpush.msra.mxu3 %v10291_v27 }
0x1294   :  { %v6974_v17 = vpop.eup %6973  ;;  %5621 = vmatpush.msrb.mxu0 %v10293_v56  ;;  %5754 = vmatpush.msra.mxu2 %v10212_v28 }
0x1295   :  { %v5353_v24 = vmul.f32 %v6974_v17, %v5352_v6  ;;  %v10309_v6 = vld [vmem:[#allocation10 + $0x38] sm:$0xff]  ;;  %v10311_v17 = vld [vmem:[#allocation10 + $0x40] sm:$0xff]  ;;  %5602 = vmatpush.msra.mxu3 %v10301_v44 }
0x1296   :  { %5622 = vmatpush.msrb.mxu0 %v10303_v0  ;;  %5755 = vmatpush.msra.mxu2 %v10220_v57 }
0x1297   :  { %v10198_v23 = vadd.f32 %v5354_v30, %v5353_v24  ;;  %v10319_v30 = vld [vmem:[#allocation10 + $0x20] sm:$0xff]  ;;  %5603 = vmatpush.msra.mxu3 %v10309_v6 }
0x1298   :  { %5623 = vmatpush.msrb.mxu0 %v10311_v17  ;;  %5756 = vmatpush.msra.mxu2 %v10226_v9 }
0x1299   :  { %5356 = vst [vmem:[#allocation3 + $0x19] sm:$0x1] %v10198_v23  ;;  %5423 = vmatmul.f32.vlgmr.msrb.gmra.mxu3 %v10198_v23  ;;  %5443 = vmatmul.f32.vlgmr.msra.gmra.mxu0 %v10198_v23 }
0x129a   :  { %5463 = vmatmul.f32.vlgmr.msra.gmra.mxu1 %v10198_v23  ;;  %5604 = vmatpush.msra.mxu3 %v10319_v30 }
0x129b   :  { %5916 = vmatpush.msra.mxu1 %v10204_v62  ;;  %5757 = vmatpush.msra.mxu2 %v10232_v22 }
0x129d   :  { %5917 = vmatpush.msra.mxu1 %v10212_v28  ;;  %5758 = vmatpush.msra.mxu2 %v10239_v7 }
0x129f   :  { %5918 = vmatpush.msra.mxu1 %v10220_v57  ;;  %5759 = vmatpush.msra.mxu2 %v10243_v37 }
0x12a1   :  { %5919 = vmatpush.msra.mxu1 %v10226_v9  ;;  %5760 = vmatpush.msra.mxu2 %v10250_v51 }
0x12a3   :  { %5920 = vmatpush.msra.mxu1 %v10232_v22  ;;  %5761 = vmatpush.msra.mxu2 %v10258_v5 }
0x12a5   :  { %5921 = vmatpush.msra.mxu1 %v10239_v7  ;;  %5762 = vmatpush.msra.mxu2 %v10268_v10 }
0x12a7   :  { %5922 = vmatpush.msra.mxu1 %v10243_v37  ;;  %5763 = vmatpush.msra.mxu2 %v10280_v46 }
0x12a9   :  { %5923 = vmatpush.msra.mxu1 %v10250_v51  ;;  %5764 = vmatpush.msra.mxu2 %v10291_v27 }
0x12ab   :  { %5924 = vmatpush.msra.mxu1 %v10258_v5  ;;  %5765 = vmatpush.msra.mxu2 %v10301_v44 }
0x12ad   :  { %5925 = vmatpush.msra.mxu1 %v10268_v10  ;;  %5766 = vmatpush.msra.mxu2 %v10309_v6 }
0x12af   :  { %5926 = vmatpush.msra.mxu1 %v10280_v46  ;;  %5767 = vmatpush.msra.mxu2 %v10319_v30 }
0x12b1   :  { %5927 = vmatpush.msra.mxu1 %v10291_v27 }
0x12b3   :  { %5928 = vmatpush.msra.mxu1 %v10301_v44 }
0x12b5   :  { %5929 = vmatpush.msra.mxu1 %v10309_v6 }
0x12b7   :  { %5930 = vmatpush.msra.mxu1 %v10319_v30 }
0x1316   :  { %v5444_v2 = vpop.f32.mrf.mxu0 }
0x1317   :  { %v5445_v42 = vadd.f32 %v5444_v2, %v8052_v4  ;;  %v10321_v2 = vld [vmem:[#allocation10 + $0x28] sm:$0xff] }
0x1318   :  { %5624 = vmatpush.msrb.mxu0 %v10321_v2 }
0x1319   :  { %v5490_v54 = vadd.f32 %v5488_v61, %v5445_v42  ;;  %v10327_v42 = vld [vmem:[#allocation10 + $0x8] sm:$0xff]  ;;  %v10329_v61 = vld [vmem:[#allocation10 + $0x10] sm:$0xff] }
0x131a   :  { %5605 = vmatpush.msra.mxu3 %v10327_v42  ;;  %5625 = vmatpush.msrb.mxu0 %v10329_v61 }
0x131b   :  { %v6663_v48 = vmul.f32 -1.442695, %v5490_v54  ;;  %5768 = vmatpush.msra.mxu2 %v10327_v42  ;;  %5931 = vmatpush.msra.mxu1 %v10327_v42 }
0x131c   :  { %v5424_v33 = vpop.f32.mrf.mxu3  ;;  %5773 = vmatpush.msrb.mxu3 %v10206_v3  ;;  %5896 = vmatpush.msra.mxu0 %v10131_v41 }
0x131d   :  { %6975 = vpow2.f32 %v6663_v48  ;;  %v5425_v21 = vadd.f32 %v5424_v33, %v8040_v32 }
0x131e   :  { %5774 = vmatpush.msrb.mxu3 %v10214_v19  ;;  %5897 = vmatpush.msra.mxu0 %v10135_v58 }
0x131f   :  { %v5467_v31 = vadd.f32 %v5425_v21, %v10208_v45 }
0x1320   :  { %5775 = vmatpush.msrb.mxu3 %v10222_v47  ;;  %5898 = vmatpush.msra.mxu0 %v10140_v36 }
0x1321   :  { %v6662_v11 = vmul.f32 -1.442695, %v5467_v31 }
0x1322   :  { %5776 = vmatpush.msrb.mxu3 %v10228_v60  ;;  %5899 = vmatpush.msra.mxu0 %v10145_v25 }
0x1323   :  { %v6976_v59 = vpop.eup %6975  ;;  %6977 = vpow2.f32 %v6662_v11 }
0x1324   :  { %v10274_v12 = vadd.f32 1.0, %v6976_v59  ;;  %5777 = vmatpush.msrb.mxu3 %v10234_v29  ;;  %5900 = vmatpush.msra.mxu0 %v10152_v53 }
0x1326   :  { %6979 = vrcp.f32 %v10274_v12  ;;  %v5506_v25 = vand.u32 2147483648, %v10274_v12  ;;  %5778 = vmatpush.msrb.mxu3 %v10241_v14  ;;  %vm5500_vm13 = vweird.f32 %v10274_v12  ;;  %5901 = vmatpush.msra.mxu0 %v10160_v8 }
0x1328   :  { %5779 = vmatpush.msrb.mxu3 %v10247_v16  ;;  %5902 = vmatpush.msra.mxu0 %v10166_v49 }
0x1329   :  { %v6978_v39 = vpop.eup %6977 }
0x132a   :  { %v5471_v35 = vadd.f32 1.0, %v6978_v39  ;;  %5780 = vmatpush.msrb.mxu3 %v10252_v52  ;;  %5903 = vmatpush.msra.mxu0 %v10171_v26 }
0x132c   :  { %6981 = vrcp.f32 %v5471_v35  ;;  %v10317_v24 = vpop.eup %6979  ;;  %v5483_v11 = vand.u32 2147483648, %v5471_v35  ;;  %v5481_v39 = vand.u32 2147483647, %v5471_v35  ;;  %vm5477_vm9 = vweird.f32 %v5471_v35  ;;  %5781 = vmatpush.msrb.mxu3 %v10260_v55  ;;  %5904 = vmatpush.msra.mxu0 %v10176_v34 }
0x132d   :  { %v5496_v54 = vmul.f32 %v10317_v24, %v10274_v12  ;;  %vm5501_vm12 = vweird.f32 %v10317_v24 }
0x132e   :  { %v5484_v58 = vor.u32 1.1754944e-38, %v5483_v11  ;;  %vm5482_vm11 = vcmp.eq.f32.partialorder %v5481_v39, 8.507059e+37  ;;  %v5511_v11 = vrot.slane %v10208_v45, 2  ;;  %vm5502_vm14 = vmor %vm5500_vm13, %vm5501_vm12  ;;  %v5507_v39 = vor.u32 1.1754944e-38, %v5506_v25  ;;  %5782 = vmatpush.msrb.mxu3 %v10270_v43  ;;  %5905 = vmatpush.msra.mxu0 %v10181_v50 }
0x132f   :  { %v5497_v21 = vsub.f32 1.0, %v5496_v54  ;;  %v5464_v54 = vpop.f32.mrf.mxu1  ;;  %v5521_v50 = vld [vmem:[#allocation2 + $0x4a] ss:$8 sm:$0x7] }
0x1330   :  { %5783 = vmatpush.msrb.mxu3 %v10282_v13  ;;  %5906 = vmatpush.msra.mxu0 %v10256_v1 }
0x1331   :  { %v5498_v41 = vmul.f32 %v10317_v24, %v5497_v21 }
0x1332   :  { %v6982_v48 = vpop.eup %6981  ;;  %5784 = vmatpush.msrb.mxu3 %v10293_v56  ;;  %5907 = vmatpush.msra.mxu0 %v10263_v40 }
0x1333   :  { %v5473_v33 = vmul.f32 %v6982_v48, %v5471_v35  ;;  %vm5478_vm8 = vweird.f32 %v6982_v48  ;;  %v5499_v35 = vadd.f32 %v10317_v24, %v5498_v41 }
0x1334   :  { %vm5479_vm10 = vmor %vm5477_vm9, %vm5478_vm8  ;;  %5785 = vmatpush.msrb.mxu3 %v10303_v0  ;;  %5908 = vmatpush.msra.mxu0 %v10188_v63 }
0x1335   :  { %v5474_v31 = vsub.f32 1.0, %v5473_v33  ;;  %v5503_v45 = vsel %vm5502_vm14, %v10317_v24, %v5499_v35 }
0x1336   :  { %5786 = vmatpush.msrb.mxu3 %v10311_v17  ;;  %5909 = vmatpush.msra.mxu0 %v10278_v18 }
0x1337   :  { %v5475_v59 = vmul.f32 %v6982_v48, %v5474_v31  ;;  %v5465_v31 = vadd.f32 %v5464_v54, %v8063_v38 }
0x1338   :  { %5787 = vmatpush.msrb.mxu3 %v10321_v2  ;;  %5910 = vmatpush.msra.mxu0 %v10288_v20 }
0x1339   :  { %v5476_v33 = vadd.f32 %v6982_v48, %v5475_v59 }
0x133a   :  { %5788 = vmatpush.msrb.mxu3 %v10329_v61  ;;  %5911 = vmatpush.msra.mxu0 %v10299_v15 }
0x133b   :  { %v5480_v21 = vsel %vm5479_vm10, %v6982_v48, %v5476_v33  ;;  %v5504_v48 = vand.u32 2147483647, %v10274_v12 }
0x133c   :  { %v5485_v36 = vsel %vm5482_vm11, %v5484_v58, %v5480_v21 }
0x133d   :  { %v5510_v59 = vmul.f32 %v5485_v36, %v5465_v31  ;;  %vm5505_vm15 = vcmp.eq.f32.partialorder %v5504_v48, 8.507059e+37 }
0x133e   :  { %v5508_v8 = vsel %vm5505_vm15, %v5507_v39, %v5503_v45  ;;  %v5674_v45 = vrot.slane %v5521_v50, 2 }
0x133f   :  { %v5513_v53 = vadd.f32 %v5511_v11, %v5510_v59  ;;  %v5515_v49 = vsub.f32 1.0, %v5508_v8  ;;  %v5517_v24 = vmul.f32 %v5508_v8, %v10198_v23 }
0x1341   :  { %6983 = vtanh.f32 %v5513_v53 }
0x1347   :  { %v6984_v26 = vpop.eup %6983 }
0x1348   :  { %v5516_v12 = vmul.f32 %v6984_v26, %v5515_v49 }
0x134a   :  { %v10397_v34 = vadd.f32 %v5517_v24, %v5516_v12 }
0x134c   :  { %5519 = vst [vmem:[#allocation3 + $0x1a] sm:$0x1] %v10397_v34  ;;  %5586 = vmatmul.f32.vlgmr.msrb.gmra.mxu2 %v10397_v34  ;;  %5606 = vmatmul.f32.vlgmr.msra.gmra.mxu3 %v10397_v34 }
0x134d   :  { %5626 = vmatmul.f32.vlgmr.msrb.gmra.mxu0 %v10397_v34  ;;  %5936 = vmatpush.msrb.mxu2 %v10206_v3 }
0x134e   :  { %6079 = vmatpush.msrb.mxu0 %v10204_v62 }
0x134f   :  { %5937 = vmatpush.msrb.mxu2 %v10214_v19 }
0x1350   :  { %6080 = vmatpush.msrb.mxu0 %v10212_v28 }
0x1351   :  { %5938 = vmatpush.msrb.mxu2 %v10222_v47 }
0x1352   :  { %6081 = vmatpush.msrb.mxu0 %v10220_v57  ;;  %v5651_v57 = vrot.slane %v5521_v50, 1 }
0x1353   :  { %5939 = vmatpush.msrb.mxu2 %v10228_v60 }
0x1354   :  { %6082 = vmatpush.msrb.mxu0 %v10226_v9 }
0x1355   :  { %5940 = vmatpush.msrb.mxu2 %v10234_v29 }
0x1356   :  { %6083 = vmatpush.msrb.mxu0 %v10232_v22 }
0x1357   :  { %5941 = vmatpush.msrb.mxu2 %v10241_v14 }
0x1358   :  { %6084 = vmatpush.msrb.mxu0 %v10239_v7 }
0x1359   :  { %5942 = vmatpush.msrb.mxu2 %v10247_v16 }
0x135a   :  { %6085 = vmatpush.msrb.mxu0 %v10243_v37 }
0x135b   :  { %5943 = vmatpush.msrb.mxu2 %v10252_v52 }
0x135c   :  { %6086 = vmatpush.msrb.mxu0 %v10250_v51 }
0x135d   :  { %5944 = vmatpush.msrb.mxu2 %v10260_v55 }
0x135e   :  { %6087 = vmatpush.msrb.mxu0 %v10258_v5 }
0x135f   :  { %5945 = vmatpush.msrb.mxu2 %v10270_v43 }
0x1360   :  { %6088 = vmatpush.msrb.mxu0 %v10268_v10 }
0x1361   :  { %5946 = vmatpush.msrb.mxu2 %v10282_v13 }
0x1362   :  { %6089 = vmatpush.msrb.mxu0 %v10280_v46 }
0x1363   :  { %5947 = vmatpush.msrb.mxu2 %v10293_v56 }
0x1364   :  { %6090 = vmatpush.msrb.mxu0 %v10291_v27 }
0x1365   :  { %5948 = vmatpush.msrb.mxu2 %v10303_v0 }
0x1366   :  { %6091 = vmatpush.msrb.mxu0 %v10301_v44 }
0x1367   :  { %5949 = vmatpush.msrb.mxu2 %v10311_v17 }
0x1368   :  { %6092 = vmatpush.msrb.mxu0 %v10309_v6 }
0x1369   :  { %5950 = vmatpush.msrb.mxu2 %v10321_v2 }
0x136a   :  { %6093 = vmatpush.msrb.mxu0 %v10319_v30 }
0x136b   :  { %5951 = vmatpush.msrb.mxu2 %v10329_v61 }
0x136c   :  { %6094 = vmatpush.msrb.mxu0 %v10327_v42 }
0x13ca   :  { %v5627_v31 = vpop.f32.mrf.mxu0 }
0x13cb   :  { %v5628_v25 = vadd.f32 %v5627_v31, %v8063_v38 }
0x13cf   :  { %v5587_v63 = vpop.f32.mrf.mxu2  ;;  %v5607_v23 = vpop.f32.mrf.mxu3 }
0x13d0   :  { %v5588_v62 = vadd.f32 %v5587_v63, %v8040_v32  ;;  %v5608_v28 = vadd.f32 %v5607_v23, %v8052_v4 }
0x13d2   :  { %v5630_v9 = vadd.f32 %v5588_v62, %v5521_v50  ;;  %v5653_v22 = vadd.f32 %v5651_v57, %v5608_v28 }
0x13d4   :  { %v6664_v7 = vmul.f32 -1.442695, %v5630_v9  ;;  %v6665_v37 = vmul.f32 -1.442695, %v5653_v22 }
0x13d6   :  { %6985 = vpow2.f32 %v6664_v7 }
0x13d7   :  { %6987 = vpow2.f32 %v6665_v37 }
0x13dc   :  { %v6986_v51 = vpop.eup %6985 }
0x13dd   :  { %v6988_v5 = vpop.eup %6987  ;;  %v5634_v10 = vadd.f32 1.0, %v6986_v51 }
0x13de   :  { %v5657_v46 = vadd.f32 1.0, %v6988_v5 }
0x13df   :  { %6989 = vrcp.f32 %v5634_v10  ;;  %v5646_v41 = vand.u32 2147483648, %v5634_v10  ;;  %v5644_v58 = vand.u32 2147483647, %v5634_v10  ;;  %vm5640_vm1 = vweird.f32 %v5634_v10 }
0x13e0   :  { %6991 = vrcp.f32 %v5657_v46  ;;  %v5669_v39 = vand.u32 2147483648, %v5657_v46  ;;  %vm5663_vm5 = vweird.f32 %v5657_v46  ;;  %v5667_v8 = vand.u32 2147483647, %v5657_v46 }
0x13e1   :  { %v5647_v35 = vor.u32 1.1754944e-38, %v5646_v41  ;;  %vm5645_vm3 = vcmp.eq.f32.partialorder %v5644_v58, 8.507059e+37 }
0x13e2   :  { %v5670_v12 = vor.u32 1.1754944e-38, %v5669_v39  ;;  %vm5668_vm7 = vcmp.eq.f32.partialorder %v5667_v8, 8.507059e+37  ;;  %v6053_v39 = vld [vmem:[#allocation10 + $0x150] sm:$0xff]  ;;  %v6050_v8 = vld [vmem:[#allocation10 + $0x138] sm:$0xff] }
0x13e5   :  { %v6990_v27 = vpop.eup %6989 }
0x13e6   :  { %v6992_v44 = vpop.eup %6991  ;;  %v5636_v6 = vmul.f32 %v6990_v27, %v5634_v10  ;;  %vm5641_vm0 = vweird.f32 %v6990_v27 }
0x13e7   :  { %v5659_v30 = vmul.f32 %v6992_v44, %v5657_v46  ;;  %vm5642_vm2 = vmor %vm5640_vm1, %vm5641_vm0  ;;  %vm5664_vm4 = vweird.f32 %v6992_v44 }
0x13e8   :  { %v5637_v42 = vsub.f32 1.0, %v5636_v6  ;;  %vm5665_vm6 = vmor %vm5663_vm5, %vm5664_vm4 }
0x13e9   :  { %v5660_v54 = vsub.f32 1.0, %v5659_v30 }
0x13ea   :  { %v5638_v33 = vmul.f32 %v6990_v27, %v5637_v42 }
0x13eb   :  { %v5661_v21 = vmul.f32 %v6992_v44, %v5660_v54 }
0x13ec   :  { %v5639_v36 = vadd.f32 %v6990_v27, %v5638_v33 }
0x13ed   :  { %v5662_v48 = vadd.f32 %v6992_v44, %v5661_v21 }
0x13ee   :  { %v5643_v11 = vsel %vm5642_vm2, %v6990_v27, %v5639_v36 }
0x13ef   :  { %v5648_v59 = vsel %vm5645_vm3, %v5647_v35, %v5643_v11  ;;  %v5666_v26 = vsel %vm5665_vm6, %v6992_v44, %v5662_v48 }
0x13f0   :  { %v5673_v53 = vmul.f32 %v5648_v59, %v5628_v25  ;;  %v5671_v24 = vsel %vm5668_vm7, %v5670_v12, %v5666_v26  ;;  %v10483_v26 = vld [vmem:[#allocation2 + $0x4c] ss:$8 sm:$0x7] }
0x13f1   :  { %v5678_v63 = vsub.f32 1.0, %v5671_v24  ;;  %v5680_v28 = vmul.f32 %v5671_v24, %v10397_v34  ;;  %v6044_v12 = vld [vmem:[#allocation10 + $0x108] sm:$0xff] }
0x13f2   :  { %v5676_v49 = vadd.f32 %v5674_v45, %v5673_v53  ;;  %v6056_v45 = vld [vmem:[#allocation10 + $0x168] sm:$0xff] }
0x13f3   :  { %6059 = vmatpush.msra.mxu3 %v6056_v45 }
0x13f4   :  { %6993 = vtanh.f32 %v5676_v49  ;;  %v6047_v49 = vld [vmem:[#allocation10 + $0x120] sm:$0xff] }
0x13f5   :  { %6060 = vmatpush.msra.mxu3 %v6053_v39 }
0x13f7   :  { %6061 = vmatpush.msra.mxu3 %v6050_v8 }
0x13f9   :  { %6062 = vmatpush.msra.mxu3 %v6047_v49 }
0x13fa   :  { %v6994_v23 = vpop.eup %6993 }
0x13fb   :  { %v5679_v62 = vmul.f32 %v6994_v23, %v5678_v63  ;;  %6063 = vmatpush.msra.mxu3 %v6044_v12 }
0x13fd   :  { %v10451_v57 = vadd.f32 %v5680_v28, %v5679_v62  ;;  %v5977_v28 = vrot.slane %v10483_v26, 1 }
0x13ff   :  { %5682 = vst [vmem:[#allocation3 + $0x1b] sm:$0x1] %v10451_v57  ;;  %5749 = vmatmul.f32.vlgmr.msrb.gmra.mxu1 %v10451_v57  ;;  %5769 = vmatmul.f32.vlgmr.msra.gmra.mxu2 %v10451_v57 }
0x1400   :  { %5789 = vmatmul.f32.vlgmr.msrb.gmra.mxu3 %v10451_v57  ;;  %6099 = vmatpush.msrb.mxu1 %v10206_v3 }
0x1401   :  { %6222 = vmatpush.msra.mxu2 %v6056_v45 }
0x1402   :  { %6100 = vmatpush.msrb.mxu1 %v10214_v19 }
0x1403   :  { %6223 = vmatpush.msra.mxu2 %v6053_v39 }
0x1404   :  { %6101 = vmatpush.msrb.mxu1 %v10222_v47  ;;  %v5684_v47 = vld [vmem:[#allocation2 + $0x4b] ss:$8 sm:$0x7] }
0x1405   :  { %v5837_v30 = vrot.slane %v5684_v47, 2  ;;  %6224 = vmatpush.msra.mxu2 %v6050_v8 }
0x1406   :  { %6102 = vmatpush.msrb.mxu1 %v10228_v60 }
0x1407   :  { %6225 = vmatpush.msra.mxu2 %v6047_v49 }
0x1408   :  { %6103 = vmatpush.msrb.mxu1 %v10234_v29 }
0x1409   :  { %6226 = vmatpush.msra.mxu2 %v6044_v12 }
0x140a   :  { %6104 = vmatpush.msrb.mxu1 %v10241_v14 }
0x140c   :  { %6105 = vmatpush.msrb.mxu1 %v10247_v16 }
0x140e   :  { %6106 = vmatpush.msrb.mxu1 %v10252_v52  ;;  %v5814_v52 = vrot.slane %v5684_v47, 1 }
0x1410   :  { %6107 = vmatpush.msrb.mxu1 %v10260_v55 }
0x1412   :  { %6108 = vmatpush.msrb.mxu1 %v10270_v43 }
0x1414   :  { %6109 = vmatpush.msrb.mxu1 %v10282_v13 }
0x1416   :  { %6110 = vmatpush.msrb.mxu1 %v10293_v56 }
0x1418   :  { %6111 = vmatpush.msrb.mxu1 %v10303_v0 }
0x141a   :  { %6112 = vmatpush.msrb.mxu1 %v10311_v17 }
0x141c   :  { %6113 = vmatpush.msrb.mxu1 %v10321_v2 }
0x141e   :  { %6114 = vmatpush.msrb.mxu1 %v10329_v61 }
0x147c   :  { %v5750_v3 = vpop.f32.mrf.mxu1 }
0x147d   :  { %v5751_v19 = vadd.f32 %v5750_v3, %v8040_v32 }
0x147f   :  { %v5793_v60 = vadd.f32 %v5751_v19, %v5684_v47  ;;  %v6038_v47 = vld [vmem:[#allocation10 + $0xd8] sm:$0xff] }
0x1481   :  { %v6666_v29 = vmul.f32 -1.442695, %v5793_v60 }
0x1482   :  { %v5770_v14 = vpop.f32.mrf.mxu2 }
0x1483   :  { %6995 = vpow2.f32 %v6666_v29  ;;  %v5771_v16 = vadd.f32 %v5770_v14, %v8052_v4  ;;  %v5790_v37 = vpop.f32.mrf.mxu3  ;;  %v6035_v14 = vld [vmem:[#allocation10 + $0xc0] sm:$0xff] }
0x1484   :  { %v5791_v27 = vadd.f32 %v5790_v37, %v8063_v38 }
0x1485   :  { %v5816_v55 = vadd.f32 %v5814_v52, %v5771_v16  ;;  %v6032_v16 = vld [vmem:[#allocation10 + $0xa8] sm:$0xff]  ;;  %v6029_v52 = vld [vmem:[#allocation10 + $0x90] sm:$0xff] }
0x1487   :  { %v6667_v43 = vmul.f32 -1.442695, %v5816_v55 }
0x1489   :  { %v6996_v13 = vpop.eup %6995  ;;  %6997 = vpow2.f32 %v6667_v43  ;;  %v10491_v43 = vld [vmem:[#allocation10 + $0x48] sm:$0xff] }
0x148a   :  { %v5797_v56 = vadd.f32 1.0, %v6996_v13 }
0x148c   :  { %6999 = vrcp.f32 %v5797_v56  ;;  %v5809_v50 = vand.u32 2147483648, %v5797_v56  ;;  %v5807_v22 = vand.u32 2147483647, %v5797_v56  ;;  %vm5803_vm9 = vweird.f32 %v5797_v56 }
0x148e   :  { %v5810_v10 = vor.u32 1.1754944e-38, %v5809_v50  ;;  %vm5808_vm11 = vcmp.eq.f32.partialorder %v5807_v22, 8.507059e+37 }
0x148f   :  { %v6998_v0 = vpop.eup %6997 }
0x1490   :  { %v5820_v17 = vadd.f32 1.0, %v6998_v0 }
0x1492   :  { %v7000_v2 = vpop.eup %6999  ;;  %7001 = vrcp.f32 %v5820_v17  ;;  %v5832_v41 = vand.u32 2147483648, %v5820_v17  ;;  %v5830_v33 = vand.u32 2147483647, %v5820_v17  ;;  %vm5826_vm13 = vweird.f32 %v5820_v17 }
0x1493   :  { %v5799_v61 = vmul.f32 %v7000_v2, %v5797_v56  ;;  %vm5804_vm8 = vweird.f32 %v7000_v2 }
0x1494   :  { %vm5805_vm10 = vmor %vm5803_vm9, %vm5804_vm8  ;;  %v5833_v21 = vor.u32 1.1754944e-38, %v5832_v41  ;;  %vm5831_vm15 = vcmp.eq.f32.partialorder %v5830_v33, 8.507059e+37 }
0x1495   :  { %v5800_v34 = vsub.f32 1.0, %v5799_v61 }
0x1497   :  { %v5801_v9 = vmul.f32 %v7000_v2, %v5800_v34 }
0x1498   :  { %v7002_v7 = vpop.eup %7001 }
0x1499   :  { %v5822_v51 = vmul.f32 %v7002_v7, %v5820_v17  ;;  %v5802_v5 = vadd.f32 %v7000_v2, %v5801_v9  ;;  %vm5827_vm12 = vweird.f32 %v7002_v7 }
0x149a   :  { %vm5828_vm14 = vmor %vm5826_vm13, %vm5827_vm12 }
0x149b   :  { %v5823_v46 = vsub.f32 1.0, %v5822_v51  ;;  %v5806_v44 = vsel %vm5805_vm10, %v7000_v2, %v5802_v5 }
0x149c   :  { %v5811_v6 = vsel %vm5808_vm11, %v5810_v10, %v5806_v44  ;;  %v6000_v44 = vrot.slane %v10483_v26, 2 }
0x149d   :  { %v5824_v42 = vmul.f32 %v7002_v7, %v5823_v46  ;;  %v5836_v54 = vmul.f32 %v5811_v6, %v5791_v27 }
0x149f   :  { %v5825_v58 = vadd.f32 %v7002_v7, %v5824_v42  ;;  %v5839_v31 = vadd.f32 %v5837_v30, %v5836_v54 }
0x14a1   :  { %v5829_v36 = vsel %vm5828_vm14, %v7002_v7, %v5825_v58  ;;  %7003 = vtanh.f32 %v5839_v31 }
0x14a2   :  { %v5834_v35 = vsel %vm5831_vm15, %v5833_v21, %v5829_v36 }
0x14a3   :  { %v5841_v25 = vsub.f32 1.0, %v5834_v35  ;;  %v5843_v48 = vmul.f32 %v5834_v35, %v10451_v57  ;;  %v6041_v57 = vld [vmem:[#allocation10 + $0xf0] sm:$0xff]  ;;  %v10762_v35 = vld [vmem:[#allocation28_spill] sm:$0xff] }
0x14a4   :  { %6064 = vmatpush.msra.mxu3 %v6041_v57  ;;  %6227 = vmatpush.msra.mxu2 %v6041_v57 }
0x14a6   :  { %6065 = vmatpush.msra.mxu3 %v6038_v47  ;;  %6228 = vmatpush.msra.mxu2 %v6038_v47 }
0x14a7   :  { %v7004_v11 = vpop.eup %7003 }
0x14a8   :  { %v5842_v59 = vmul.f32 %v7004_v11, %v5841_v25  ;;  %6066 = vmatpush.msra.mxu3 %v6035_v14  ;;  %6229 = vmatpush.msra.mxu2 %v6035_v14  ;;  %v10763_v25 = vld [vmem:[#allocation26_spill] sm:$0xff]  ;;  %v10764_v11 = vld [vmem:[#allocation24_spill] sm:$0xff] }
0x14aa   :  { %v10477_v53 = vadd.f32 %v5843_v48, %v5842_v59  ;;  %6067 = vmatpush.msra.mxu3 %v6032_v16  ;;  %6230 = vmatpush.msra.mxu2 %v6032_v16  ;;  %v10765_v59 = vld [vmem:[#allocation22_spill] sm:$0xff]  ;;  %v10766_v48 = vld [vmem:[#allocation36_spill] sm:$0xff] }
0x14ac   :  { %5845 = vst [vmem:[#allocation3 + $0x1c] sm:$0x1] %v10477_v53  ;;  %5912 = vmatmul.f32.vlgmr.msra.gmra.mxu0 %v10477_v53  ;;  %5932 = vmatmul.f32.vlgmr.msra.gmra.mxu1 %v10477_v53 }
0x14ad   :  { %5952 = vmatmul.f32.vlgmr.msrb.gmra.mxu2 %v10477_v53  ;;  %6385 = vmatpush.msra.mxu1 %v6056_v45  ;;  %v10768_v45 = vld [vmem:[#allocation34_spill] sm:$0xff] }
0x14ae   :  { %6068 = vmatpush.msra.mxu3 %v6029_v52  ;;  %6231 = vmatpush.msra.mxu2 %v6029_v52 }
0x14af   :  { %6386 = vmatpush.msra.mxu1 %v6053_v39  ;;  %v10769_v39 = vld [vmem:[#allocation33_spill] sm:$0xff] }
0x14b0   :  { %6069 = vmatpush.msra.mxu3 %v10256_v1 }
0x14b1   :  { %6387 = vmatpush.msra.mxu1 %v6050_v8  ;;  %v10770_v8 = vld [vmem:[#allocation32_spill] sm:$0xff] }
0x14b2   :  { %6070 = vmatpush.msra.mxu3 %v10263_v40 }
0x14b3   :  { %6388 = vmatpush.msra.mxu1 %v6047_v49  ;;  %v10771_v49 = vld [vmem:[#allocation31_spill] sm:$0xff] }
0x14b4   :  { %6071 = vmatpush.msra.mxu3 %v10491_v43 }
0x14b5   :  { %6389 = vmatpush.msra.mxu1 %v6044_v12  ;;  %v10773_v12 = vld [vmem:[#allocation29_spill] sm:$0xff] }
0x14b6   :  { %6072 = vmatpush.msra.mxu3 %v10278_v18 }
0x14b7   :  { %6390 = vmatpush.msra.mxu1 %v6041_v57  ;;  %v10530_v57 = vld [vmem:[#allocation10 + $0x178] sm:$0xff] }
0x14b8   :  { %6073 = vmatpush.msra.mxu3 %v10288_v20  ;;  %6262 = vmatpush.msra.mxu0 %v10530_v57 }
0x14b9   :  { %6391 = vmatpush.msra.mxu1 %v6038_v47  ;;  %v10538_v47 = vld [vmem:[#allocation10 + $0x160] sm:$0xff] }
0x14ba   :  { %6074 = vmatpush.msra.mxu3 %v10299_v15  ;;  %6263 = vmatpush.msra.mxu0 %v10538_v47 }
0x14bb   :  { %6392 = vmatpush.msra.mxu1 %v6035_v14 }
0x14bd   :  { %6393 = vmatpush.msra.mxu1 %v6032_v16  ;;  %v10544_v16 = vld [vmem:[#allocation10 + $0x140] sm:$0xff] }
0x14bf   :  { %6394 = vmatpush.msra.mxu1 %v6029_v52  ;;  %v10546_v52 = vld [vmem:[#allocation10 + $0x148] sm:$0xff] }
0x14c0   :  { %6264 = vmatpush.msra.mxu0 %v10546_v52 }
0x14c1   :  { %6395 = vmatpush.msra.mxu1 %v10256_v1 }
0x14c3   :  { %6396 = vmatpush.msra.mxu1 %v10263_v40 }
0x14c5   :  { %6397 = vmatpush.msra.mxu1 %v10491_v43 }
0x14c7   :  { %6398 = vmatpush.msra.mxu1 %v10278_v18 }
0x14c9   :  { %6399 = vmatpush.msra.mxu1 %v10288_v20 }
0x14cb   :  { %6400 = vmatpush.msra.mxu1 %v10299_v15 }
0x1529   :  { %v5913_v24 = vpop.f32.mrf.mxu0  ;;  %v5933_v63 = vpop.f32.mrf.mxu1 }
0x152a   :  { %v5914_v23 = vadd.f32 %v5913_v24, %v8040_v32  ;;  %v5934_v62 = vadd.f32 %v5933_v63, %v8052_v4  ;;  %v10774_v24 = vld [vmem:[#allocation27_spill] sm:$0xff]  ;;  %v10775_v63 = vld [vmem:[#allocation25_spill] sm:$0xff] }
0x152c   :  { %v5956_v3 = vadd.f32 %v5914_v23, %v10483_v26  ;;  %v5979_v19 = vadd.f32 %v5977_v28, %v5934_v62  ;;  %v10772_v26 = vld [vmem:[#allocation30_spill] sm:$0xff]  ;;  %v10776_v23 = vld [vmem:[#allocation23_spill] sm:$0xff]  ;;  %v10777_v62 = vld [vmem:[#allocation21_spill] sm:$0xff] }
0x152d   :  { %v10528_v28 = vld [vmem:[#allocation10 + $0x170] sm:$0xff] }
0x152e   :  { %v6668_v60 = vmul.f32 -1.442695, %v5956_v3  ;;  %v6669_v29 = vmul.f32 -1.442695, %v5979_v19  ;;  %6242 = vmatpush.msrb.mxu3 %v10528_v28  ;;  %v10536_v19 = vld [vmem:[#allocation10 + $0x158] sm:$0xff] }
0x152f   :  { %v10532_v3 = vld [vmem:[#allocation2 + $0x4d] ss:$8 sm:$0x7] }
0x1530   :  { %7005 = vpow2.f32 %v6668_v60  ;;  %v5953_v18 = vpop.f32.mrf.mxu2  ;;  %6243 = vmatpush.msrb.mxu3 %v10536_v19  ;;  %v6140_v14 = vrot.slane %v10532_v3, 1 }
0x1531   :  { %7007 = vpow2.f32 %v6669_v29  ;;  %v5954_v51 = vadd.f32 %v5953_v18, %v8063_v38  ;;  %v10576_v18 = vld [vmem:[#allocation10 + $0xd0] sm:$0xff] }
0x1532   :  { %6244 = vmatpush.msrb.mxu3 %v10544_v16 }
0x1536   :  { %v7006_v55 = vpop.eup %7005 }
0x1537   :  { %v7008_v13 = vpop.eup %7007  ;;  %v5960_v56 = vadd.f32 1.0, %v7006_v55 }
0x1538   :  { %v5983_v0 = vadd.f32 1.0, %v7008_v13  ;;  %v10550_v13 = vld [vmem:[#allocation10 + $0x128] sm:$0xff] }
0x1539   :  { %7009 = vrcp.f32 %v5960_v56  ;;  %v5972_v50 = vand.u32 2147483648, %v5960_v56  ;;  %v5970_v22 = vand.u32 2147483647, %v5960_v56  ;;  %vm5966_vm1 = vweird.f32 %v5960_v56  ;;  %6245 = vmatpush.msrb.mxu3 %v10550_v13 }
0x153a   :  { %7011 = vrcp.f32 %v5983_v0  ;;  %v5995_v46 = vand.u32 2147483648, %v5983_v0  ;;  %vm5989_vm5 = vweird.f32 %v5983_v0  ;;  %v5993_v6 = vand.u32 2147483647, %v5983_v0 }
0x153b   :  { %v5973_v20 = vor.u32 1.1754944e-38, %v5972_v50  ;;  %vm5971_vm3 = vcmp.eq.f32.partialorder %v5970_v22, 8.507059e+37  ;;  %v10567_v50 = vld [vmem:[#allocation10 + $0xe0] sm:$0xff] }
0x153c   :  { %v5996_v41 = vor.u32 1.1754944e-38, %v5995_v46  ;;  %vm5994_vm7 = vcmp.eq.f32.partialorder %v5993_v6, 8.507059e+37  ;;  %v10586_v46 = vld [vmem:[#allocation10 + $0x98] sm:$0xff]  ;;  %v6180_v6 = vld [vmem:[#allocation10 + $0x30] sm:$0xff] }
0x153f   :  { %v7010_v1 = vpop.eup %7009 }
0x1540   :  { %v7012_v40 = vpop.eup %7011  ;;  %v5962_v17 = vmul.f32 %v7010_v1, %v5960_v56  ;;  %vm5967_vm0 = vweird.f32 %v7010_v1  ;;  %v10552_v56 = vld [vmem:[#allocation10 + $0x130] sm:$0xff] }
0x1541   :  { %v5985_v2 = vmul.f32 %v7012_v40, %v5983_v0  ;;  %vm5968_vm2 = vmor %vm5966_vm1, %vm5967_vm0  ;;  %vm5990_vm4 = vweird.f32 %v7012_v40  ;;  %6265 = vmatpush.msra.mxu0 %v10552_v56 }
0x1542   :  { %v5963_v61 = vsub.f32 1.0, %v5962_v17  ;;  %vm5991_vm6 = vmor %vm5989_vm5, %vm5990_vm4 }
0x1543   :  { %v5986_v34 = vsub.f32 1.0, %v5985_v2 }
0x1544   :  { %v5964_v9 = vmul.f32 %v7010_v1, %v5963_v61  ;;  %v10563_v61 = vld [vmem:[#allocation10 + $0xf8] sm:$0xff] }
0x1545   :  { %v5987_v7 = vmul.f32 %v7012_v40, %v5986_v34  ;;  %v10565_v34 = vld [vmem:[#allocation10 + $0x100] sm:$0xff] }
0x1546   :  { %v5965_v37 = vadd.f32 %v7010_v1, %v5964_v9  ;;  %v10571_v9 = vld [vmem:[#allocation10 + $0xe8] sm:$0xff] }
0x1547   :  { %v5988_v10 = vadd.f32 %v7012_v40, %v5987_v7  ;;  %v10574_v7 = vld [vmem:[#allocation10 + $0xc8] sm:$0xff] }
0x1548   :  { %v5969_v5 = vsel %vm5968_vm2, %v7010_v1, %v5965_v37  ;;  %v10556_v1 = vld [vmem:[#allocation10 + $0x110] sm:$0xff]  ;;  %v6189_v37 = vld [vmem:[#allocation10 + $0x78] sm:$0xff] }
0x1549   :  { %v5974_v15 = vsel %vm5971_vm3, %v5973_v20, %v5969_v5  ;;  %v5992_v42 = vsel %vm5991_vm6, %v7012_v40, %v5988_v10  ;;  %v10558_v40 = vld [vmem:[#allocation10 + $0x118] sm:$0xff]  ;;  %6246 = vmatpush.msrb.mxu3 %v10556_v1  ;;  %6232 = vmatpush.msra.mxu2 %v6189_v37 }
0x154a   :  { %v5999_v27 = vmul.f32 %v5974_v15, %v5954_v51  ;;  %v5997_v54 = vsel %vm5994_vm7, %v5996_v41, %v5992_v42  ;;  %6266 = vmatpush.msra.mxu0 %v10558_v40  ;;  %v10580_v51 = vld [vmem:[#allocation10 + $0xb0] sm:$0xff]  ;;  %v10582_v5 = vld [vmem:[#allocation10 + $0xb8] sm:$0xff]  ;;  %v6186_v15 = vld [vmem:[#allocation10 + $0x60] sm:$0xff] }
0x154b   :  { %v6004_v33 = vsub.f32 1.0, %v5997_v54  ;;  %v6006_v21 = vmul.f32 %v5997_v54, %v10477_v53  ;;  %v10767_v53 = vld [vmem:[#allocation35_spill] sm:$0xff]  ;;  %6247 = vmatpush.msrb.mxu3 %v10563_v61  ;;  %6233 = vmatpush.msra.mxu2 %v6186_v15  ;;  %v10596_v42 = vld [vmem:[#allocation10 + $0x88] sm:$0xff]  ;;  %v6177_v41 = vld [vmem:[#allocation10 + $0x18] sm:$0xff] }
0x154c   :  { %v6002_v30 = vadd.f32 %v6000_v44, %v5999_v27  ;;  %6267 = vmatpush.msra.mxu0 %v10565_v34  ;;  %v10588_v27 = vld [vmem:[#allocation10 + $0xa0] sm:$0xff]  ;;  %v10602_v54 = vld [vmem:[#allocation10 + $0x68] sm:$0xff] }
0x154d   :  { %6248 = vmatpush.msrb.mxu3 %v10567_v50  ;;  %6234 = vmatpush.msra.mxu2 %v10491_v43  ;;  %v10610_v43 = vld [vmem:[#allocation10 + $0x58] sm:$0xff] }
0x154e   :  { %7013 = vtanh.f32 %v6002_v30  ;;  %6268 = vmatpush.msra.mxu0 %v10571_v9  ;;  %v10594_v30 = vld [vmem:[#allocation10 + $0x80] sm:$0xff] }
0x154f   :  { %6249 = vmatpush.msrb.mxu3 %v10574_v7  ;;  %6235 = vmatpush.msra.mxu2 %v6180_v6 }
0x1550   :  { %6269 = vmatpush.msra.mxu0 %v10576_v18 }
0x1551   :  { %6250 = vmatpush.msrb.mxu3 %v10580_v51  ;;  %6236 = vmatpush.msra.mxu2 %v6177_v41 }
0x1552   :  { %6270 = vmatpush.msra.mxu0 %v10582_v5 }
0x1553   :  { %6251 = vmatpush.msrb.mxu3 %v10586_v46 }
0x1554   :  { %v7014_v58 = vpop.eup %7013  ;;  %6271 = vmatpush.msra.mxu0 %v10588_v27 }
0x1555   :  { %v6005_v31 = vmul.f32 %v7014_v58, %v6004_v33  ;;  %v10604_v33 = vld [vmem:[#allocation10 + $0x70] sm:$0xff]  ;;  %6252 = vmatpush.msrb.mxu3 %v10594_v30  ;;  %v6174_v58 = vld [vmem:[#allocation10] sm:$0xff] }
0x1556   :  { %6272 = vmatpush.msra.mxu0 %v10596_v42  ;;  %6237 = vmatpush.msra.mxu2 %v6174_v58 }
0x1557   :  { %v10506_v36 = vadd.f32 %v6006_v21, %v6005_v31  ;;  %v10608_v21 = vld [vmem:[#allocation10 + $0x50] sm:$0xff]  ;;  %6253 = vmatpush.msrb.mxu3 %v10602_v54 }
0x1558   :  { %6273 = vmatpush.msra.mxu0 %v10604_v33  ;;  %6405 = vmatpush.msrb.mxu2 %v10528_v28 }
0x1559   :  { %6008 = vst [vmem:[#allocation3 + $0x1d] sm:$0x1] %v10506_v36  ;;  %6075 = vmatmul.f32.vlgmr.msra.gmra.mxu3 %v10506_v36  ;;  %6095 = vmatmul.f32.vlgmr.msrb.gmra.mxu0 %v10506_v36 }
0x155a   :  { %6115 = vmatmul.f32.vlgmr.msrb.gmra.mxu1 %v10506_v36  ;;  %6254 = vmatpush.msrb.mxu3 %v10608_v21 }
0x155b   :  { %6533 = vmatpush.xpose.msrb.mxu1 %v10762_v35  ;;  %6274 = vmatpush.msra.mxu0 %v10610_v43 }
0x155c   :  { %6406 = vmatpush.msrb.mxu2 %v10536_v19 }
0x155e   :  { %6407 = vmatpush.msrb.mxu2 %v10544_v16 }
0x155f   :  { %6534 = vmatpush.xpose.msrb.mxu1 %v10763_v25  ;;  %v10614_v25 = vld [vmem:[#allocation10 + $0x38] sm:$0xff] }
0x1560   :  { %6255 = vmatpush.msrb.mxu3 %v10614_v25  ;;  %6408 = vmatpush.msrb.mxu2 %v10550_v13  ;;  %v6163_v13 = vrot.slane %v10532_v3, 2 }
0x1562   :  { %6409 = vmatpush.msrb.mxu2 %v10556_v1 }
0x1563   :  { %6535 = vmatpush.xpose.msrb.mxu1 %v10764_v11  ;;  %v10616_v11 = vld [vmem:[#allocation10 + $0x40] sm:$0xff] }
0x1564   :  { %6275 = vmatpush.msra.mxu0 %v10616_v11  ;;  %6410 = vmatpush.msrb.mxu2 %v10563_v61 }
0x1566   :  { %6411 = vmatpush.msrb.mxu2 %v10567_v50 }
0x1567   :  { %6536 = vmatpush.xpose.msrb.mxu1 %v10765_v59 }
0x1568   :  { %6412 = vmatpush.msrb.mxu2 %v10574_v7 }
0x156a   :  { %6413 = vmatpush.msrb.mxu2 %v10580_v51 }
0x156b   :  { %6537 = vmatpush.xpose.msrb.mxu1 %v10766_v48  ;;  %v10622_v48 = vld [vmem:[#allocation10 + $0x20] sm:$0xff] }
0x156c   :  { %6256 = vmatpush.msrb.mxu3 %v10622_v48  ;;  %6414 = vmatpush.msrb.mxu2 %v10586_v46 }
0x156e   :  { %6415 = vmatpush.msrb.mxu2 %v10594_v30 }
0x156f   :  { %6538 = vmatpush.xpose.msrb.mxu1 %v10767_v53  ;;  %v10624_v53 = vld [vmem:[#allocation10 + $0x28] sm:$0xff] }
0x1570   :  { %6276 = vmatpush.msra.mxu0 %v10624_v53  ;;  %6416 = vmatpush.msrb.mxu2 %v10602_v54 }
0x1572   :  { %6417 = vmatpush.msrb.mxu2 %v10608_v21 }
0x1573   :  { %6539 = vmatpush.xpose.msrb.mxu1 %v10768_v45  ;;  %v10629_v45 = vld [vmem:[#allocation10 + $0x8] sm:$0xff] }
0x1574   :  { %6257 = vmatpush.msrb.mxu3 %v10629_v45  ;;  %6418 = vmatpush.msrb.mxu2 %v10614_v25 }
0x1576   :  { %6425 = vmatpush.msra.mxu3 %v10530_v57  ;;  %6419 = vmatpush.msrb.mxu2 %v10622_v48 }
0x1577   :  { %6540 = vmatpush.xpose.msrb.mxu1 %v10769_v39  ;;  %v10631_v39 = vld [vmem:[#allocation10 + $0x10] sm:$0xff] }
0x1578   :  { %6277 = vmatpush.msra.mxu0 %v10631_v39  ;;  %6426 = vmatpush.msra.mxu3 %v10538_v47 }
0x1579   :  { %6420 = vmatpush.msrb.mxu2 %v10629_v45 }
0x157a   :  { %6427 = vmatpush.msra.mxu3 %v10546_v52 }
0x157b   :  { %6541 = vmatpush.xpose.msrb.mxu1 %v10770_v8 }
0x157c   :  { %6428 = vmatpush.msra.mxu3 %v10552_v56 }
0x157e   :  { %6429 = vmatpush.msra.mxu3 %v10558_v40 }
0x157f   :  { %6542 = vmatpush.xpose.msrb.mxu1 %v10771_v49 }
0x1580   :  { %6430 = vmatpush.msra.mxu3 %v10565_v34 }
0x1582   :  { %6431 = vmatpush.msra.mxu3 %v10571_v9 }
0x1583   :  { %6543 = vmatpush.xpose.msrb.mxu1 %v10772_v26 }
0x1584   :  { %6432 = vmatpush.msra.mxu3 %v10576_v18 }
0x1586   :  { %6433 = vmatpush.msra.mxu3 %v10582_v5 }
0x1587   :  { %6544 = vmatpush.xpose.msrb.mxu1 %v10773_v12  ;;  %v10641_v12 = vld [vmem:[#allocation3 + $0x20] sm:$0xff] }
0x1588   :  { %6513 = vmatpush.xpose.msrb.mxu0 %v10641_v12  ;;  %6434 = vmatpush.msra.mxu3 %v10588_v27 }
0x158a   :  { %6435 = vmatpush.msra.mxu3 %v10596_v42 }
0x158b   :  { %6545 = vmatpush.xpose.msrb.mxu1 %v10774_v24 }
0x158c   :  { %6514 = vmatpush.xpose.msrb.mxu0 %v10641_v12  ;;  %6436 = vmatpush.msra.mxu3 %v10604_v33 }
0x158e   :  { %6437 = vmatpush.msra.mxu3 %v10610_v43 }
0x158f   :  { %6546 = vmatpush.xpose.msrb.mxu1 %v10775_v63 }
0x1590   :  { %6515 = vmatpush.xpose.msrb.mxu0 %v10641_v12  ;;  %6438 = vmatpush.msra.mxu3 %v10616_v11 }
0x1592   :  { %6439 = vmatpush.msra.mxu3 %v10624_v53 }
0x1593   :  { %6547 = vmatpush.xpose.msrb.mxu1 %v10776_v23 }
0x1594   :  { %6516 = vmatpush.xpose.msrb.mxu0 %v10641_v12  ;;  %6440 = vmatpush.msra.mxu3 %v10631_v39 }
0x1597   :  { %6548 = vmatpush.xpose.msrb.mxu1 %v10777_v62 }
0x1598   :  { %6517 = vmatpush.xpose.msrb.mxu0 %v10641_v12 }
0x159c   :  { %6518 = vmatpush.xpose.msrb.mxu0 %v10641_v12 }
0x15a0   :  { %6519 = vmatpush.xpose.msrb.mxu0 %v10641_v12 }
0x15a4   :  { %6520 = vmatpush.xpose.msrb.mxu0 %v10641_v12 }
0x15a8   :  { %6521 = vmatpush.xpose.msrb.mxu0 %v10641_v12 }
0x15ac   :  { %6522 = vmatpush.xpose.msrb.mxu0 %v10641_v12 }
0x15b0   :  { %6523 = vmatpush.xpose.msrb.mxu0 %v10641_v12 }
0x15b4   :  { %6524 = vmatpush.xpose.msrb.mxu0 %v10641_v12 }
0x15d6   :  { %v6096_v60 = vpop.f32.mrf.mxu0 }
0x15d7   :  { %v6097_v29 = vadd.f32 %v6096_v60, %v8052_v4  ;;  %v6116_v60 = vpop.f32.mrf.mxu1 }
0x15d9   :  { %v6142_v55 = vadd.f32 %v6140_v14, %v6097_v29  ;;  %v6117_v29 = vadd.f32 %v6116_v60, %v8063_v38 }
0x15db   :  { %v6671_v0 = vmul.f32 -1.442695, %v6142_v55 }
0x15dc   :  { %v6076_v17 = vpop.f32.mrf.mxu3 }
0x15dd   :  { %7015 = vpow2.f32 %v6671_v0  ;;  %v6077_v2 = vadd.f32 %v6076_v17, %v8040_v32 }
0x15df   :  { %v6119_v22 = vadd.f32 %v6077_v2, %v10532_v3 }
0x15e1   :  { %v6670_v20 = vmul.f32 -1.442695, %v6119_v22 }
0x15e3   :  { %v7016_v10 = vpop.eup %7015  ;;  %7017 = vpow2.f32 %v6670_v20 }
0x15e4   :  { %v10590_v44 = vadd.f32 1.0, %v7016_v10 }
0x15e6   :  { %7019 = vrcp.f32 %v10590_v44  ;;  %v6158_v55 = vand.u32 2147483648, %v10590_v44  ;;  %vm6152_vm13 = vweird.f32 %v10590_v44  ;;  %v6156_v0 = vand.u32 2147483647, %v10590_v44 }
0x15e8   :  { %v6159_v3 = vor.u32 1.1754944e-38, %v6158_v55  ;;  %vm6157_vm15 = vcmp.eq.f32.partialorder %v6156_v0, 8.507059e+37  ;;  %v6497_v55 = vld [vmem:[#allocation3] sm:$0xff] }
0x15e9   :  { %v7018_v31 = vpop.eup %7017 }
0x15ea   :  { %v6123_v35 = vadd.f32 1.0, %v7018_v31 }
0x15ec   :  { %7021 = vrcp.f32 %v6123_v35  ;;  %v10620_v59 = vpop.eup %7019  ;;  %v6135_v23 = vand.u32 2147483648, %v6123_v35  ;;  %v6133_v28 = vand.u32 2147483647, %v6123_v35  ;;  %vm6129_vm9 = vweird.f32 %v6123_v35 }
0x15ed   :  { %v6148_v8 = vmul.f32 %v10620_v59, %v10590_v44  ;;  %vm6153_vm12 = vweird.f32 %v10620_v59 }
0x15ee   :  { %v6136_v47 = vor.u32 1.1754944e-38, %v6135_v23  ;;  %vm6134_vm11 = vcmp.eq.f32.partialorder %v6133_v28, 8.507059e+37  ;;  %vm6154_vm14 = vmor %vm6152_vm13, %vm6153_vm12 }
0x15ef   :  { %v6149_v24 = vsub.f32 1.0, %v6148_v8 }
0x15f1   :  { %v6150_v19 = vmul.f32 %v10620_v59, %v6149_v24 }
0x15f2   :  { %v7022_v49 = vpop.eup %7021 }
0x15f3   :  { %v6125_v26 = vmul.f32 %v7022_v49, %v6123_v35  ;;  %vm6130_vm8 = vweird.f32 %v7022_v49  ;;  %v6151_v52 = vadd.f32 %v10620_v59, %v6150_v19 }
0x15f4   :  { %vm6131_vm10 = vmor %vm6129_vm9, %vm6130_vm8 }
0x15f5   :  { %v6126_v63 = vsub.f32 1.0, %v6125_v26  ;;  %v6155_v40 = vsel %vm6154_vm14, %v10620_v59, %v6151_v52  ;;  %v6498_v52 = vld [vmem:[#allocation3 + $0x8] sm:$0xff] }
0x15f6   :  { %v6160_v17 = vsel %vm6157_vm15, %v6159_v3, %v6155_v40 }
0x15f7   :  { %v6127_v62 = vmul.f32 %v7022_v49, %v6126_v63  ;;  %v6167_v2 = vsub.f32 1.0, %v6160_v17  ;;  %v6169_v50 = vmul.f32 %v6160_v17, %v10506_v36  ;;  %v6173_v36 = vld [vmem:[#allocation2 + $0x4e] ss:$8 sm:$0x7] }
0x15f8   :  { %v6303_v20 = vrot.slane %v6173_v36, 1 }
0x15f9   :  { %v6128_v57 = vadd.f32 %v7022_v49, %v6127_v62 }
0x15fb   :  { %v6132_v14 = vsel %vm6131_vm10, %v7022_v49, %v6128_v57  ;;  %v6326_v49 = vrot.slane %v6173_v36, 2 }
0x15fc   :  { %v6137_v16 = vsel %vm6134_vm11, %v6136_v47, %v6132_v14 }
0x15fd   :  { %v6162_v56 = vmul.f32 %v6137_v16, %v6117_v29  ;;  %v108_v29 = vld [vmem:[#allocation7 + $0x1] sm:$0x1]  ;;  %v6499_v16 = vld [vmem:[#allocation3 + $0x10] sm:$0xff] }
0x15ff   :  { %v6165_v1 = vadd.f32 %v6163_v13, %v6162_v56  ;;  %v109_v13 = vld [vmem:[#allocation7 + $0x2] sm:$0x1] }
0x1601   :  { %7023 = vtanh.f32 %v6165_v1  ;;  %v6336_v1 = vld [vmem:[#allocation2 + $0x4f] ss:$8 sm:$0x7] }
0x1607   :  { %v7024_v61 = vpop.eup %7023 }
0x1608   :  { %v6168_v34 = vmul.f32 %v7024_v61, %v6167_v2  ;;  %v6466_v61 = vrot.slane %v6336_v1, 1 }
0x160a   :  { %v10682_v9 = vadd.f32 %v6169_v50, %v6168_v34 }
0x160c   :  { %6171 = vst [vmem:[#allocation3 + $0x1e] sm:$0x1] %v10682_v9  ;;  %6238 = vmatmul.f32.vlgmr.msra.gmra.mxu2 %v10682_v9  ;;  %6258 = vmatmul.f32.vlgmr.msrb.gmra.mxu3 %v10682_v9 }
0x160d   :  { %6278 = vmatmul.f32.vlgmr.msra.gmra.mxu0 %v10682_v9 }
0x168a   :  { %v6279_v35 = vpop.f32.mrf.mxu0 }
0x168b   :  { %v6280_v48 = vadd.f32 %v6279_v35, %v8063_v38 }
0x168f   :  { %v6239_v22 = vpop.f32.mrf.mxu2  ;;  %v6259_v7 = vpop.f32.mrf.mxu3 }
0x1690   :  { %v6240_v18 = vadd.f32 %v6239_v22, %v8040_v32  ;;  %v6260_v37 = vadd.f32 %v6259_v7, %v8052_v4 }
0x1692   :  { %v6282_v51 = vadd.f32 %v6240_v18, %v6173_v36  ;;  %v6305_v5 = vadd.f32 %v6303_v20, %v6260_v37 }
0x1694   :  { %v6672_v15 = vmul.f32 -1.442695, %v6282_v51  ;;  %v6673_v10 = vmul.f32 -1.442695, %v6305_v5  ;;  %v6556_v51 = vpop.permute.xlu0 %6555 }
0x1696   :  { %7025 = vpow2.f32 %v6672_v15 }
0x1697   :  { %7027 = vpow2.f32 %v6673_v10 }
0x169c   :  { %v7026_v46 = vpop.eup %7025 }
0x169d   :  { %v7028_v27 = vpop.eup %7027  ;;  %v6286_v44 = vadd.f32 1.0, %v7026_v46 }
0x169e   :  { %v6309_v6 = vadd.f32 1.0, %v7028_v27 }
0x169f   :  { %7029 = vrcp.f32 %v6286_v44  ;;  %v6298_v58 = vand.u32 2147483648, %v6286_v44  ;;  %v6296_v43 = vand.u32 2147483647, %v6286_v44  ;;  %vm6292_vm1 = vweird.f32 %v6286_v44 }
0x16a0   :  { %7031 = vrcp.f32 %v6309_v6  ;;  %v6321_v26 = vand.u32 2147483648, %v6309_v6  ;;  %vm6315_vm5 = vweird.f32 %v6309_v6  ;;  %v6319_v12 = vand.u32 2147483647, %v6309_v6 }
0x16a1   :  { %v6299_v59 = vor.u32 1.1754944e-38, %v6298_v58  ;;  %vm6297_vm3 = vcmp.eq.f32.partialorder %v6296_v43, 8.507059e+37 }
0x16a2   :  { %v6322_v23 = vor.u32 1.1754944e-38, %v6321_v26  ;;  %vm6320_vm7 = vcmp.eq.f32.partialorder %v6319_v12, 8.507059e+37 }
0x16a5   :  { %v7030_v30 = vpop.eup %7029 }
0x16a6   :  { %v7032_v42 = vpop.eup %7031  ;;  %v6288_v41 = vmul.f32 %v7030_v30, %v6286_v44  ;;  %vm6293_vm0 = vweird.f32 %v7030_v30 }
0x16a7   :  { %v6311_v54 = vmul.f32 %v7032_v42, %v6309_v6  ;;  %vm6294_vm2 = vmor %vm6292_vm1, %vm6293_vm0  ;;  %vm6316_vm4 = vweird.f32 %v7032_v42 }
0x16a8   :  { %v6289_v33 = vsub.f32 1.0, %v6288_v41  ;;  %vm6317_vm6 = vmor %vm6315_vm5, %vm6316_vm4 }
0x16a9   :  { %v6312_v31 = vsub.f32 1.0, %v6311_v54 }
0x16aa   :  { %v6290_v21 = vmul.f32 %v7030_v30, %v6289_v33 }
0x16ab   :  { %v6313_v25 = vmul.f32 %v7032_v42, %v6312_v31 }
0x16ac   :  { %v6291_v11 = vadd.f32 %v7030_v30, %v6290_v21  ;;  %v6489_v21 = vrot.slane %v6336_v1, 2 }
0x16ad   :  { %v6314_v39 = vadd.f32 %v7032_v42, %v6313_v25 }
0x16ae   :  { %v6295_v53 = vsel %vm6294_vm2, %v7030_v30, %v6291_v11 }
0x16af   :  { %v6300_v45 = vsel %vm6297_vm3, %v6299_v59, %v6295_v53  ;;  %v6318_v63 = vsel %vm6317_vm6, %v7032_v42, %v6314_v39 }
0x16b0   :  { %v6325_v8 = vmul.f32 %v6300_v45, %v6280_v48  ;;  %v6323_v62 = vsel %vm6320_vm7, %v6322_v23, %v6318_v63 }
0x16b1   :  { %v6330_v28 = vsub.f32 1.0, %v6323_v62  ;;  %v6332_v57 = vmul.f32 %v6323_v62, %v10682_v9 }
0x16b2   :  { %v6328_v24 = vadd.f32 %v6326_v49, %v6325_v8 }
0x16b4   :  { %7033 = vtanh.f32 %v6328_v24 }
0x16ba   :  { %v7034_v19 = vpop.eup %7033 }
0x16bb   :  { %v6331_v60 = vmul.f32 %v7034_v19, %v6330_v28 }
0x16bd   :  { %v10704_v47 = vadd.f32 %v6332_v57, %v6331_v60 }
0x16bf   :  { %6334 = vst [vmem:[#allocation3 + $0x1f] sm:$0x1] %v10704_v47  ;;  %6401 = vmatmul.f32.vlgmr.msra.gmra.mxu1 %v10704_v47  ;;  %6421 = vmatmul.f32.vlgmr.msrb.gmra.mxu2 %v10704_v47 }
0x16c0   :  { %6441 = vmatmul.f32.vlgmr.msra.gmra.mxu3 %v10704_v47 }
0x16c6   :  { %v6500_v14 = vld [vmem:[#allocation3 + $0x18] sm:$0xff] }
0x16c7   :  { %6525 = vmatpush.xpose.msrb.mxu0 %v6500_v14  ;;  %6549 = vmatmul.f32.vlgmr.msrb.gmra.mxu1 %v108_v29 }
0x16cb   :  { %6526 = vmatpush.xpose.msrb.mxu0 %v6499_v16 }
0x16cf   :  { %6527 = vmatpush.xpose.msrb.mxu0 %v6498_v52 }
0x16d3   :  { %6528 = vmatpush.xpose.msrb.mxu0 %v6497_v55 }
0x16d6   :  { %6529 = vmatmul.f32.vlgmr.msrb.gmra.mxu0 %v109_v13 }
0x173c   :  { %v6402_v56 = vpop.f32.mrf.mxu1 }
0x173d   :  { %v6403_v0 = vadd.f32 %v6402_v56, %v8040_v32 }
0x173f   :  { %v6445_v40 = vadd.f32 %v6403_v0, %v6336_v1 }
0x1741   :  { %v6674_v3 = vmul.f32 -1.442695, %v6445_v40 }
0x1742   :  { %v6422_v17 = vpop.f32.mrf.mxu2 }
0x1743   :  { %7035 = vpow2.f32 %v6674_v3  ;;  %v6423_v2 = vadd.f32 %v6422_v17, %v8052_v4  ;;  %v6442_v6 = vpop.f32.mrf.mxu3 }
0x1744   :  { %v6550_v18 = vpop.f32.mrf.mxu1  ;;  %v6443_v33 = vadd.f32 %v6442_v6, %v8063_v38 }
0x1745   :  { %v6468_v34 = vadd.f32 %v6466_v61, %v6423_v2 }
0x1747   :  { %v6675_v50 = vmul.f32 -1.442695, %v6468_v34 }
0x1749   :  { %v7036_v9 = vpop.eup %7035  ;;  %7037 = vpow2.f32 %v6675_v50 }
0x174a   :  { %v6449_v36 = vadd.f32 1.0, %v7036_v9 }
0x174c   :  { %7039 = vrcp.f32 %v6449_v36  ;;  %v6461_v15 = vand.u32 2147483648, %v6449_v36  ;;  %v6459_v27 = vand.u32 2147483647, %v6449_v36  ;;  %vm6455_vm9 = vweird.f32 %v6449_v36 }
0x174e   :  { %v6462_v41 = vor.u32 1.1754944e-38, %v6461_v15  ;;  %vm6460_vm11 = vcmp.eq.f32.partialorder %v6459_v27, 8.507059e+37 }
0x174f   :  { %v7038_v22 = vpop.eup %7037 }
0x1750   :  { %v6472_v7 = vadd.f32 1.0, %v7038_v22 }
0x1752   :  { %v7040_v37 = vpop.eup %7039  ;;  %7041 = vrcp.f32 %v6472_v7  ;;  %v6484_v25 = vand.u32 2147483648, %v6472_v7  ;;  %v6482_v11 = vand.u32 2147483647, %v6472_v7  ;;  %vm6478_vm13 = vweird.f32 %v6472_v7 }
0x1753   :  { %v6451_v32 = vmul.f32 %v7040_v37, %v6449_v36  ;;  %v6530_v20 = vpop.f32.mrf.mxu0  ;;  %vm6456_vm8 = vweird.f32 %v7040_v37 }
0x1754   :  { %v6551_v4 = vadd.f32 %v6550_v18, %v6530_v20  ;;  %vm6457_vm10 = vmor %vm6455_vm9, %vm6456_vm8  ;;  %v6485_v45 = vor.u32 1.1754944e-38, %v6484_v25  ;;  %vm6483_vm15 = vcmp.eq.f32.partialorder %v6482_v11, 8.507059e+37 }
0x1755   :  { %v6452_v5 = vsub.f32 1.0, %v6451_v32 }
0x1756   :  { %v6558_v10 = vadd.f32 %v6556_v51, %v6551_v4 }
0x1757   :  { %v6453_v46 = vmul.f32 %v7040_v37, %v6452_v5 }
0x1758   :  { %v7042_v44 = vpop.eup %7041  ;;  %6559 = vst [vmem:[#allocation13] sm:$0x1] %v6558_v10 }
0x1759   :  { %v6474_v30 = vmul.f32 %v7042_v44, %v6472_v7  ;;  %v6454_v42 = vadd.f32 %v7040_v37, %v6453_v46  ;;  %6571 = dma.vmem_to_hbm [thread:$0]  %s6567_s1, 16, %s6569_s25, [#allocation6]   ;;  %vm6479_vm12 = vweird.f32 %v7042_v44 }
0x175a   :  { %vm6480_vm14 = vmor %vm6478_vm13, %vm6479_vm12 }
0x175b   :  { %v6475_v54 = vsub.f32 1.0, %v6474_v30  ;;  %v6458_v58 = vsel %vm6457_vm10, %v7040_v37, %v6454_v42 }
0x175c   :  { %v6463_v31 = vsel %vm6460_vm11, %v6462_v41, %v6458_v58 }
0x175d   :  { %v6488_v43 = vmul.f32 %v6463_v31, %v6443_v33  ;;  %v6476_v35 = vmul.f32 %v7042_v44, %v6475_v54 }
0x175f   :  { %v6491_v59 = vadd.f32 %v6489_v21, %v6488_v43  ;;  %v6477_v48 = vadd.f32 %v7042_v44, %v6476_v35 }
0x1761   :  { %7043 = vtanh.f32 %v6491_v59  ;;  %v6481_v53 = vsel %vm6480_vm14, %v7042_v44, %v6477_v48 }
0x1762   :  { %v6486_v39 = vsel %vm6483_vm15, %v6485_v45, %v6481_v53 }
0x1763   :  { %v6493_v8 = vsub.f32 1.0, %v6486_v39  ;;  %v6495_v26 = vmul.f32 %v6486_v39, %v10704_v47 }
0x1767   :  { %v7044_v38 = vpop.eup %7043 }
0x1768   :  { %v6494_v49 = vmul.f32 %v7044_v38, %v6493_v8 }
0x176a   :  { %v6496_v12 = vadd.f32 %v6495_v26, %v6494_v49 }
0x176c   :  { %6560 = vst [vmem:[#allocation14] sm:$0x1] %v6496_v12 }
0x176d   :  { %6582 = dma.vmem_to_hbm [thread:$0]  %s6578_s26, 16, %s6580_s28, [#allocation15]  }
0x176e   :  { %7220 = dma.done.wait [#allocation6], 16  }
0x176f   :  { %7221 = vsyncadd [#allocation6], 4294967280 }
0x1770   :  { %7222 = dma.done.wait [#allocation15], 16  }
0x1771   :  { %7223 = vsyncadd [#allocation15], 4294967280 }
0x1772   :  { %6591 = vsyncpa [#allocation5], 1 }
0x1773   :  { %6592 = vsyncpa [#allocation8], 1 }
0x1774   :  { %6593 = vsyncpa [#allocation11], 1 }
0x1775   :  { %6594 = vsyncpa [#allocation6], 1 }
0x1776   :  { %6595 = vsyncpa [#allocation15], 1 }

</bundles_post_ra>
